<compile_context>
chip_gen: v7x
topology: tpu7x:2x2x1
jax: 0.10.0
libtpu: 0.0.40
codegen_flags: <defaults>
</compile_context>

<pallas_src>
import functools

import jax
import jax.numpy as jnp
from jax.experimental import pallas as pl
from jax.experimental.pallas import tpu as pltpu


def _round_up(x, m):
    return (x + m - 1) // m * m


def _vmem_limit(need_bytes):
    # Workload-derived VMEM request with headroom, capped at 56 MiB so it is
    # always inside v7x's 64 MiB physical per-TC VMEM (v5e/v6e have 128 MiB).
    return int(min(56 * 1024 * 1024, max(32 * 1024 * 1024, need_bytes * 3 // 2)))


# ----------------------------------------------------------------------------
# Fused dense: y_j = sum_i x_i @ W_{j,i} + b_j  [+ tanh], tiled over rows.
# Used for (a) the per-layer gate pre-compute of BOTH directions in one call
# (x streamed once), consuming y_fwd/y_bwd of the previous layer directly via
# row-split weights (no HBM concat), and (b) the final l_last projection.
# ----------------------------------------------------------------------------
def _dense_kernel(*refs, n_in, n_out, activation):
    x_refs = refs[:n_in]
    w_refs = refs[n_in:n_in + n_in * n_out]                  # [j * n_in + i]
    b_refs = refs[n_in + n_in * n_out:n_in + n_in * n_out + n_out]
    o_refs = refs[n_in + n_in * n_out + n_out:]

    xs = [x_refs[i][...] for i in range(n_in)]               # bf16 row tiles
    for j in range(n_out):
        acc = b_refs[j][...].astype(jnp.float32)             # (1, N_j)
        for i in range(n_in):
            acc = acc + jnp.dot(xs[i], w_refs[j * n_in + i][...],
                                preferred_element_type=jnp.float32)
        if activation == "tanh":
            acc = jnp.tanh(acc)
        o_refs[j][...] = acc.astype(o_refs[j].dtype)


def fused_dense(xs, ws, bs, activation=None, out_dtypes=None, tm=512):
    """xs: list of (M, K_i); ws[j][i]: (K_i, N_j); bs[j]: (N_j,) -> list of (M, N_j)."""
    n_in, n_out = len(xs), len(bs)
    M = xs[0].shape[0]
    tm = min(tm, _round_up(M, 8))
    M_pad = _round_up(M, tm)

    xbs = []
    for x in xs:
        if M_pad != M:
            x = jnp.pad(x, ((0, M_pad - M), (0, 0)))
        xbs.append(x.astype(jnp.bfloat16))
    wbs = [ws[j][i].astype(jnp.bfloat16) for j in range(n_out) for i in range(n_in)]
    bb = [bs[j].reshape(1, -1).astype(jnp.float32) for j in range(n_out)]

    Ks = [int(x.shape[1]) for x in xbs]
    Ns = [int(b.shape[1]) for b in bb]
    if out_dtypes is None:
        out_dtypes = [jnp.float32] * n_out

    flops = 2 * M_pad * sum(Ks[i] * Ns[j] for j in range(n_out) for i in range(n_in))
    trans = M_pad * sum(Ns) if activation == "tanh" else 0
    bytes_acc = (sum(M_pad * k * 2 for k in Ks)
                 + sum(Ks[i] * Ns[j] * 2 for j in range(n_out) for i in range(n_in))
                 + sum(M_pad * Ns[j] * jnp.dtype(out_dtypes[j]).itemsize
                       for j in range(n_out)))
    cost = pl.CostEstimate(flops=flops, transcendentals=trans,
                           bytes_accessed=bytes_acc)

    in_specs = (
        [pl.BlockSpec((tm, Ks[i]), lambda m: (m, 0)) for i in range(n_in)]
        + [pl.BlockSpec(tuple(w.shape), lambda m: (0, 0)) for w in wbs]
        + [pl.BlockSpec((1, Ns[j]), lambda m: (0, 0)) for j in range(n_out)]
    )
    out_specs = tuple(pl.BlockSpec((tm, Ns[j]), lambda m: (m, 0))
                      for j in range(n_out))
    out_shape = tuple(jax.ShapeDtypeStruct((M_pad, Ns[j]), out_dtypes[j])
                      for j in range(n_out))

    need = (2 * sum(tm * k * 2 for k in Ks)                     # x tiles (2 bufs)
            + 2 * sum(tm * Ns[j] * jnp.dtype(out_dtypes[j]).itemsize
                      for j in range(n_out))                    # out tiles
            + 2 * sum(w.size * 2 for w in wbs)                  # resident weights
            + 2 * sum(Ns) * 4)                                  # biases

    outs = pl.pallas_call(
        functools.partial(_dense_kernel, n_in=n_in, n_out=n_out,
                          activation=activation),
        grid=(M_pad // tm,),
        in_specs=in_specs,
        out_specs=out_specs,
        out_shape=out_shape,
        compiler_params=pltpu.CompilerParams(
            dimension_semantics=("parallel",),
            vmem_limit_bytes=_vmem_limit(need),
        ),
        cost_estimate=cost,
    )(*xbs, *wbs, *bb)

    if M_pad != M:
        outs = tuple(o[:M] for o in outs)
    return list(outs)


# ----------------------------------------------------------------------------
# Fused bidirectional LSTM layer: grid over time blocks, TT steps statically
# unrolled, both direction chains advanced per step, per-step loads/stores,
# bf16 h carry + f32 c carry in VMEM scratch, resident bf16 W_hh, in-kernel
# length mask via jnp.where.  Gate columns pre-permuted to [i, f, o, g].
# ----------------------------------------------------------------------------
def _bilstm_kernel(lens_ref, xgf_ref, xgb_ref, whhf_ref, whhb_ref,
                   yf_ref, yb_ref, hn_ref, cn_ref,
                   hf_sc, cf_sc, hb_sc, cb_sc, *, hidden, tt, nb):
    tb = pl.program_id(0)

    @pl.when(tb == 0)
    def _():
        hf_sc[...] = jnp.zeros_like(hf_sc)
        cf_sc[...] = jnp.zeros_like(cf_sc)
        hb_sc[...] = jnp.zeros_like(hb_sc)
        cb_sc[...] = jnp.zeros_like(cb_sc)

    lens = lens_ref[...]                       # (B, 1) int32, resident
    whh_f = whhf_ref[...]                      # (H, 4H) bf16, resident
    whh_b = whhb_ref[...]

    hf = hf_sc[...]                            # (B, H) bf16 carries
    hb = hb_sc[...]
    cf = cf_sc[...]                            # (B, H) f32 carries
    cb = cb_sc[...]

    H = hidden
    t0_f = tb * tt                             # global time of fwd block start
    t0_b = (nb - 1 - tb) * tt                  # global time of bwd block start

    def cell(xg_t, h, c, whh):
        gates = xg_t.astype(jnp.float32) + jnp.dot(
            h, whh, preferred_element_type=jnp.float32)
        sig = jax.nn.sigmoid(gates[:, :3 * H])           # one wide sigmoid [i,f,o]
        i = sig[:, 0 * H:1 * H]
        f = sig[:, 1 * H:2 * H]
        o = sig[:, 2 * H:3 * H]
        g = jnp.tanh(gates[:, 3 * H:])                   # single tanh
        c_new = f * c + i * g
        h_new = (o * jnp.tanh(c_new)).astype(jnp.bfloat16)
        return h_new, c_new

    for s in range(tt):                        # static unroll, per-step ld/st
        # ---- forward chain: local step s (global time t0_f + s) ----
        hf_new, cf_new = cell(xgf_ref[s], hf, cf, whh_f)
        mf = (t0_f + s) < lens                 # (B, 1) validity mask
        yf_ref[s] = jnp.where(mf, hf_new, jnp.zeros_like(hf_new))
        hf = jnp.where(mf, hf_new, hf)         # freeze over padding
        cf = jnp.where(mf, cf_new, cf)

        # ---- backward chain: local step tt-1-s (descending in time) ----
        sb = tt - 1 - s
        hb_new, cb_new = cell(xgb_ref[sb], hb, cb, whh_b)
        mb = (t0_b + sb) < lens
        yb_ref[sb] = jnp.where(mb, hb_new, jnp.zeros_like(hb_new))
        hb = jnp.where(mb, hb_new, hb)
        cb = jnp.where(mb, cb_new, cb)

    hf_sc[...] = hf
    cf_sc[...] = cf
    hb_sc[...] = hb
    cb_sc[...] = cb

    @pl.when(tb == nb - 1)
    def _():
        hn_ref[0] = hf.astype(jnp.float32)     # fwd final state (at t = len-1)
        cn_ref[0] = cf
        hn_ref[1] = hb.astype(jnp.float32)     # bwd final state (at t = 0)
        cn_ref[1] = cb


def bilstm_layer(lens_col, xg_f, xg_b, whh_f, whh_b, *, tt):
    """xg_*: (T, B, 4H) bf16 time-major gate streams; returns y_f, y_b, hn, cn."""
    T, B, G = xg_f.shape
    H = whh_f.shape[0]
    nb = T // tt

    need = (2 * 2 * tt * B * G * 2             # two gate streams, 2 buffers, bf16
            + 2 * 2 * tt * B * H * 2           # two y outputs
            + 2 * 2 * H * G * 2                # two resident W_hh
            + 2 * 2 * 2 * B * H * 4            # hn / cn
            + 2 * B * 4                        # lens
            + 2 * B * H * (2 + 4))             # h/c scratch, both directions

    y_f, y_b, hn, cn = pl.pallas_call(
        functools.partial(_bilstm_kernel, hidden=H, tt=tt, nb=nb),
        grid=(nb,),
        in_specs=[
            pl.BlockSpec((B, 1), lambda t: (0, 0)),                  # ilens
            pl.BlockSpec((tt, B, G), lambda t: (t, 0, 0)),           # fwd gates
            pl.BlockSpec((tt, B, G), lambda t: (nb - 1 - t, 0, 0)),  # bwd gates
            pl.BlockSpec((H, G), lambda t: (0, 0)),                  # W_hh fwd
            pl.BlockSpec((H, G), lambda t: (0, 0)),                  # W_hh bwd
        ],
        out_specs=(
            pl.BlockSpec((tt, B, H), lambda t: (t, 0, 0)),
            pl.BlockSpec((tt, B, H), lambda t: (nb - 1 - t, 0, 0)),
            pl.BlockSpec((2, B, H), lambda t: (0, 0, 0)),
            pl.BlockSpec((2, B, H), lambda t: (0, 0, 0)),
        ),
        out_shape=(
            jax.ShapeDtypeStruct((T, B, H), jnp.bfloat16),
            jax.ShapeDtypeStruct((T, B, H), jnp.bfloat16),
            jax.ShapeDtypeStruct((2, B, H), jnp.float32),
            jax.ShapeDtypeStruct((2, B, H), jnp.float32),
        ),
        scratch_shapes=[
            pltpu.VMEM((B, H), jnp.bfloat16),   # h fwd
            pltpu.VMEM((B, H), jnp.float32),    # c fwd
            pltpu.VMEM((B, H), jnp.bfloat16),   # h bwd
            pltpu.VMEM((B, H), jnp.float32),    # c bwd
        ],
        compiler_params=pltpu.CompilerParams(
            dimension_semantics=("arbitrary",),
            vmem_limit_bytes=_vmem_limit(need),
        ),
    )(lens_col, xg_f, xg_b, whh_f, whh_b)
    return y_f, y_b, hn, cn


# ----------------------------------------------------------------------------
# Full RNN forward (blstm): elayers bidirectional LSTM layers + tanh(Linear).
# ----------------------------------------------------------------------------
def rnn_forward(packed, xs_pad, ilens, *, tt=32):
    B0, T0, idim = xs_pad.shape
    tt = min(tt, _round_up(T0, 8))             # time block (cap for short seqs)
    B = _round_up(B0, 8)                       # sublane-dense batch
    T = _round_up(T0, tt)                      # full time blocks

    # Time-major activations so per-step slices are contiguous 2-D tiles.
    x = jnp.transpose(xs_pad.astype(jnp.float32), (1, 0, 2))     # (T0, B0, D)
    x = jnp.pad(x, ((0, T - T0), (0, B - B0), (0, 0)))           # (T, B, D)
    lens_col = jnp.pad(ilens.astype(jnp.int32), (0, B - B0)).reshape(B, 1)

    feats = [x.reshape(T * B, idim)]           # row-major (t-major) activations
    h_states, c_states = [], []
    for (wih_f, wih_b, b_f, b_b, whh_f, whh_b) in packed["lstm"]:
        H = whh_f.shape[0]
        # One gate pre-compute per layer for BOTH directions (x streamed once).
        xg_f, xg_b = fused_dense(feats, [list(wih_f), list(wih_b)], [b_f, b_b],
                                 out_dtypes=[jnp.bfloat16, jnp.bfloat16])
        y_f, y_b, hn, cn = bilstm_layer(lens_col,
                                        xg_f.reshape(T, B, 4 * H),
                                        xg_b.reshape(T, B, 4 * H),
                                        whh_f, whh_b, tt=tt)
        # Next layer consumes y_f / y_b directly via row-split weights: the
        # bidirectional concat is never materialized in HBM.
        feats = [y_f.reshape(T * B, H), y_b.reshape(T * B, H)]
        h_states.append(hn)
        c_states.append(cn)

    h_n = jnp.concatenate(h_states, axis=0)[:, :B0]   # (elayers*2, B, cdim)
    c_n = jnp.concatenate(c_states, axis=0)[:, :B0]

    (wl_f, wl_b), b_last = packed["l_last"]
    proj = fused_dense(feats, [[wl_f, wl_b]], [b_last], activation="tanh",
                       out_dtypes=[jnp.float32])[0]   # (T*B, hdim)
    out = jnp.transpose(proj.reshape(T, B, -1)[:T0, :B0], (1, 0, 2))
    return out, ilens, (h_n, c_n)


# ----------------------------------------------------------------------------
# Parameter init (PyTorch layout) and packing into kernel layout.
# ----------------------------------------------------------------------------
def init_params(key, idim, elayers, cdim, hdim):
    bound = 1.0 / jnp.sqrt(jnp.float32(cdim))

    def unif(k, shape, bnd):
        return jax.random.uniform(k, shape, jnp.float32, -bnd, bnd)

    layers = []
    for layer in range(elayers):
        in_size = idim if layer == 0 else 2 * cdim
        dirs = []
        for _d in range(2):                     # forward, backward
            key, k1, k2, k3, k4 = jax.random.split(key, 5)
            w_ih = unif(k1, (4 * cdim, in_size), bound)
            w_hh = unif(k2, (4 * cdim, cdim), bound)
            b_ih = unif(k3, (4 * cdim,), bound)
            b_hh = unif(k4, (4 * cdim,), bound)
            dirs.append((w_ih, w_hh, b_ih, b_hh))
        layers.append(tuple(dirs))

    key, k1, k2 = jax.random.split(key, 3)
    lb = 1.0 / jnp.sqrt(jnp.float32(2 * cdim))
    W_last = unif(k1, (hdim, 2 * cdim), lb)
    b_last = unif(k2, (hdim,), lb)
    return {"lstm": layers, "l_last": (W_last, b_last)}


def _gate_perm(H):
    # PyTorch row order [i, f, g, o] -> [i, f, o, g] (sigmoid block contiguous).
    return jnp.concatenate([jnp.arange(0, H), jnp.arange(H, 2 * H),
                            jnp.arange(3 * H, 4 * H), jnp.arange(2 * H, 3 * H)])


def _pack_dir(w_ih, w_hh, b_ih, b_hh, split_in):
    H = w_hh.shape[1]
    perm = _gate_perm(H)
    w_ih_k = jnp.take(w_ih, perm, axis=0).T.astype(jnp.float32)     # (Din, 4H)
    w_hh_k = jnp.take(w_hh, perm, axis=0).T.astype(jnp.bfloat16)    # (H, 4H)
    b_k = jnp.take(b_ih + b_hh, perm, axis=0).astype(jnp.float32)   # (4H,)
    if split_in:                                # Din == 2H: split rows fwd/bwd
        parts = (w_ih_k[:H], w_ih_k[H:])
    else:
        parts = (w_ih_k,)
    return parts, b_k, w_hh_k


def pack_params(params):
    layers = []
    for li, (fwd, bwd) in enumerate(params["lstm"]):
        split = li > 0
        wih_f, b_f, whh_f = _pack_dir(*fwd, split_in=split)
        wih_b, b_b, whh_b = _pack_dir(*bwd, split_in=split)
        layers.append((wih_f, wih_b, b_f, b_b, whh_f, whh_b))
    W_last, b_last = params["l_last"]
    Wt = W_last.T.astype(jnp.float32)           # (2*cdim, hdim)
    cdim = Wt.shape[0] // 2
    return {"lstm": layers,
            "l_last": ((Wt[:cdim], Wt[cdim:]), b_last.astype(jnp.float32))}


if __name__ == "__main__":
    # Small shapes consistent with the module forward: (B, Tmax, idim)
    B, T, idim = 2, 16, 16
    elayers, cdim, hdim = 2, 32, 32

    key = jax.random.PRNGKey(0)
    key, kx = jax.random.split(key)
    xs_pad = jax.random.normal(kx, (B, T, idim), jnp.float32)
    # pack_padded_sequence requires lengths sorted descending, ilens[0] == Tmax
    ilens = jnp.array([16, 11], dtype=jnp.int32)

    params = init_params(key, idim, elayers, cdim, hdim)
    packed = pack_params(params)

    forward = jax.jit(functools.partial(rnn_forward, tt=32))
    out, olens, (h_n, c_n) = forward(packed, xs_pad, ilens)
    jax.block_until_ready(out)
    jax.block_until_ready(h_n)
    jax.block_until_ready(c_n)

    assert out.shape == (B, T, hdim), out.shape
    assert h_n.shape == (elayers * 2, B, cdim), h_n.shape
    assert c_n.shape == (elayers * 2, B, cdim), c_n.shape
    print("KERNEL_OK")
</pallas_src>

<mosaic_0001>
module attributes {stable_mosaic.version = 11 : i64} {
  func.func @_dense_kernel(%arg0: i32, %arg1: memref<128x16xbf16, #tpu.memory_space<vmem>>, %arg2: memref<16x128xbf16, #tpu.memory_space<vmem>>, %arg3: memref<16x128xbf16, #tpu.memory_space<vmem>>, %arg4: memref<1x128xf32, #tpu.memory_space<vmem>>, %arg5: memref<1x128xf32, #tpu.memory_space<vmem>>, %arg6: memref<128x128xbf16, #tpu.memory_space<vmem>>, %arg7: memref<128x128xbf16, #tpu.memory_space<vmem>>) attributes {dimension_semantics = [#tpu.dimension_semantics<parallel>], iteration_bounds = array<i64: 1>, scalar_prefetch = 0 : i64, scratch_operands = 0 : i64, tpu.core_type = #tpu.core_type<tc>, window_params = [{transform_indices = @transform_0, window_bounds = array<i64: 128, 16>}, {pipeline_mode = #tpu.pipeline_mode<synchronous>, transform_indices = @transform_1, window_bounds = array<i64: 16, 128>}, {pipeline_mode = #tpu.pipeline_mode<synchronous>, transform_indices = @transform_2, window_bounds = array<i64: 16, 128>}, {pipeline_mode = #tpu.pipeline_mode<synchronous>, transform_indices = @transform_3, window_bounds = array<i64: 1, 128>}, {pipeline_mode = #tpu.pipeline_mode<synchronous>, transform_indices = @transform_4, window_bounds = array<i64: 1, 128>}, {transform_indices = @transform_5, window_bounds = array<i64: 128, 128>}, {transform_indices = @transform_6, window_bounds = array<i64: 128, 128>}]} {
    %c0 = arith.constant 0 : index
    %c0_0 = arith.constant 0 : index
    %0 = vector.load %arg1[%c0, %c0_0] : memref<128x16xbf16, #tpu.memory_space<vmem>>, vector<128x16xbf16>
    %c0_1 = arith.constant 0 : index
    %c0_2 = arith.constant 0 : index
    %1 = vector.load %arg4[%c0_1, %c0_2] : memref<1x128xf32, #tpu.memory_space<vmem>>, vector<1x128xf32>
    %c0_3 = arith.constant 0 : index
    %c0_4 = arith.constant 0 : index
    %2 = vector.load %arg2[%c0_3, %c0_4] : memref<16x128xbf16, #tpu.memory_space<vmem>>, vector<16x128xbf16>
    %cst = arith.constant dense<0.000000e+00> : vector<128x128xf32>
    %3 = tpu.matmul %0, %2, %cst {dimension_numbers = #tpu.dot_dimension_numbers<[1], [0], [0], [1], [0, 0, 1, 1], [], []>} : vector<128x16xbf16>, vector<16x128xbf16>, vector<128x128xf32> -> vector<128x128xf32>
    %4 = vector.broadcast %1 : vector<1x128xf32> to vector<128x128xf32>
    %5 = arith.addf %4, %3 : vector<128x128xf32>
    %6 = arith.truncf %5 : vector<128x128xf32> to vector<128x128xbf16>
    %c0_5 = arith.constant 0 : index
    %c0_6 = arith.constant 0 : index
    %7 = vector.load %arg6[%c0_5, %c0_6] : memref<128x128xbf16, #tpu.memory_space<vmem>>, vector<128x128xbf16>
    tpu.vector_store %arg6[%c0_5, %c0_6], %6 {strides = array<i32>} : memref<128x128xbf16, #tpu.memory_space<vmem>>, vector<128x128xbf16>,
    %c0_7 = arith.constant 0 : index
    %c0_8 = arith.constant 0 : index
    %8 = vector.load %arg5[%c0_7, %c0_8] : memref<1x128xf32, #tpu.memory_space<vmem>>, vector<1x128xf32>
    %c0_9 = arith.constant 0 : index
    %c0_10 = arith.constant 0 : index
    %9 = vector.load %arg3[%c0_9, %c0_10] : memref<16x128xbf16, #tpu.memory_space<vmem>>, vector<16x128xbf16>
    %cst_11 = arith.constant dense<0.000000e+00> : vector<128x128xf32>
    %10 = tpu.matmul %0, %9, %cst_11 {dimension_numbers = #tpu.dot_dimension_numbers<[1], [0], [0], [1], [0, 0, 1, 1], [], []>} : vector<128x16xbf16>, vector<16x128xbf16>, vector<128x128xf32> -> vector<128x128xf32>
    %11 = vector.broadcast %8 : vector<1x128xf32> to vector<128x128xf32>
    %12 = arith.addf %11, %10 : vector<128x128xf32>
    %13 = arith.truncf %12 : vector<128x128xf32> to vector<128x128xbf16>
    %c0_12 = arith.constant 0 : index
    %c0_13 = arith.constant 0 : index
    %14 = vector.load %arg7[%c0_12, %c0_13] : memref<128x128xbf16, #tpu.memory_space<vmem>>, vector<128x128xbf16>
    tpu.vector_store %arg7[%c0_12, %c0_13], %13 {strides = array<i32>} : memref<128x128xbf16, #tpu.memory_space<vmem>>, vector<128x128xbf16>,
    return
  }
  func.func @transform_0(%arg0: i32) -> (i32, i32) {
    %c0_i32 = arith.constant 0 : i32
    %c0_i32_0 = arith.constant 0 : i32
    return %arg0, %c0_i32 : i32, i32
  }
  func.func @transform_1(%arg0: i32) -> (i32, i32) {
    %c0_i32 = arith.constant 0 : i32
    %c0_i32_0 = arith.constant 0 : i32
    %c0_i32_1 = arith.constant 0 : i32
    return %c0_i32, %c0_i32_0 : i32, i32
  }
  func.func @transform_2(%arg0: i32) -> (i32, i32) {
    %c0_i32 = arith.constant 0 : i32
    %c0_i32_0 = arith.constant 0 : i32
    %c0_i32_1 = arith.constant 0 : i32
    return %c0_i32, %c0_i32_0 : i32, i32
  }
  func.func @transform_3(%arg0: i32) -> (i32, i32) {
    %c0_i32 = arith.constant 0 : i32
    %c0_i32_0 = arith.constant 0 : i32
    %c0_i32_1 = arith.constant 0 : i32
    return %c0_i32, %c0_i32_0 : i32, i32
  }
  func.func @transform_4(%arg0: i32) -> (i32, i32) {
    %c0_i32 = arith.constant 0 : i32
    %c0_i32_0 = arith.constant 0 : i32
    %c0_i32_1 = arith.constant 0 : i32
    return %c0_i32, %c0_i32_0 : i32, i32
  }
  func.func @transform_5(%arg0: i32) -> (i32, i32) {
    %c0_i32 = arith.constant 0 : i32
    %c0_i32_0 = arith.constant 0 : i32
    return %arg0, %c0_i32 : i32, i32
  }
  func.func @transform_6(%arg0: i32) -> (i32, i32) {
    %c0_i32 = arith.constant 0 : i32
    %c0_i32_0 = arith.constant 0 : i32
    return %arg0, %c0_i32 : i32, i32
  }
}

module attributes {stable_mosaic.version = 11 : i64} {
  func.func @_dense_kernel(%arg0: i32, %arg1: memref<128x32xbf16, #tpu.memory_space<vmem>>, %arg2: memref<128x32xbf16, #tpu.memory_space<vmem>>, %arg3: memref<32x128xbf16, #tpu.memory_space<vmem>>, %arg4: memref<32x128xbf16, #tpu.memory_space<vmem>>, %arg5: memref<32x128xbf16, #tpu.memory_space<vmem>>, %arg6: memref<32x128xbf16, #tpu.memory_space<vmem>>, %arg7: memref<1x128xf32, #tpu.memory_space<vmem>>, %arg8: memref<1x128xf32, #tpu.memory_space<vmem>>, %arg9: memref<128x128xbf16, #tpu.memory_space<vmem>>, %arg10: memref<128x128xbf16, #tpu.memory_space<vmem>>) attributes {dimension_semantics = [#tpu.dimension_semantics<parallel>], iteration_bounds = array<i64: 1>, scalar_prefetch = 0 : i64, scratch_operands = 0 : i64, tpu.core_type = #tpu.core_type<tc>, window_params = [{transform_indices = @transform_0, window_bounds = array<i64: 128, 32>}, {transform_indices = @transform_1, window_bounds = array<i64: 128, 32>}, {pipeline_mode = #tpu.pipeline_mode<synchronous>, transform_indices = @transform_2, window_bounds = array<i64: 32, 128>}, {pipeline_mode = #tpu.pipeline_mode<synchronous>, transform_indices = @transform_3, window_bounds = array<i64: 32, 128>}, {pipeline_mode = #tpu.pipeline_mode<synchronous>, transform_indices = @transform_4, window_bounds = array<i64: 32, 128>}, {pipeline_mode = #tpu.pipeline_mode<synchronous>, transform_indices = @transform_5, window_bounds = array<i64: 32, 128>}, {pipeline_mode = #tpu.pipeline_mode<synchronous>, transform_indices = @transform_6, window_bounds = array<i64: 1, 128>}, {pipeline_mode = #tpu.pipeline_mode<synchronous>, transform_indices = @transform_7, window_bounds = array<i64: 1, 128>}, {transform_indices = @transform_8, window_bounds = array<i64: 128, 128>}, {transform_indices = @transform_9, window_bounds = array<i64: 128, 128>}]} {
    %c0 = arith.constant 0 : index
    %c0_0 = arith.constant 0 : index
    %0 = vector.load %arg1[%c0, %c0_0] : memref<128x32xbf16, #tpu.memory_space<vmem>>, vector<128x32xbf16>
    %c0_1 = arith.constant 0 : index
    %c0_2 = arith.constant 0 : index
    %1 = vector.load %arg2[%c0_1, %c0_2] : memref<128x32xbf16, #tpu.memory_space<vmem>>, vector<128x32xbf16>
    %c0_3 = arith.constant 0 : index
    %c0_4 = arith.constant 0 : index
    %2 = vector.load %arg7[%c0_3, %c0_4] : memref<1x128xf32, #tpu.memory_space<vmem>>, vector<1x128xf32>
    %c0_5 = arith.constant 0 : index
    %c0_6 = arith.constant 0 : index
    %3 = vector.load %arg3[%c0_5, %c0_6] : memref<32x128xbf16, #tpu.memory_space<vmem>>, vector<32x128xbf16>
    %cst = arith.constant dense<0.000000e+00> : vector<128x128xf32>
    %4 = tpu.matmul %0, %3, %cst {dimension_numbers = #tpu.dot_dimension_numbers<[1], [0], [0], [1], [0, 0, 1, 1], [], []>} : vector<128x32xbf16>, vector<32x128xbf16>, vector<128x128xf32> -> vector<128x128xf32>
    %5 = vector.broadcast %2 : vector<1x128xf32> to vector<128x128xf32>
    %6 = arith.addf %5, %4 : vector<128x128xf32>
    %c0_7 = arith.constant 0 : index
    %c0_8 = arith.constant 0 : index
    %7 = vector.load %arg4[%c0_7, %c0_8] : memref<32x128xbf16, #tpu.memory_space<vmem>>, vector<32x128xbf16>
    %cst_9 = arith.constant dense<0.000000e+00> : vector<128x128xf32>
    %8 = tpu.matmul %1, %7, %cst_9 {dimension_numbers = #tpu.dot_dimension_numbers<[1], [0], [0], [1], [0, 0, 1, 1], [], []>} : vector<128x32xbf16>, vector<32x128xbf16>, vector<128x128xf32> -> vector<128x128xf32>
    %9 = arith.addf %6, %8 : vector<128x128xf32>
    %10 = arith.truncf %9 : vector<128x128xf32> to vector<128x128xbf16>
    %c0_10 = arith.constant 0 : index
    %c0_11 = arith.constant 0 : index
    %11 = vector.load %arg9[%c0_10, %c0_11] : memref<128x128xbf16, #tpu.memory_space<vmem>>, vector<128x128xbf16>
    tpu.vector_store %arg9[%c0_10, %c0_11], %10 {strides = array<i32>} : memref<128x128xbf16, #tpu.memory_space<vmem>>, vector<128x128xbf16>,
    %c0_12 = arith.constant 0 : index
    %c0_13 = arith.constant 0 : index
    %12 = vector.load %arg8[%c0_12, %c0_13] : memref<1x128xf32, #tpu.memory_space<vmem>>, vector<1x128xf32>
    %c0_14 = arith.constant 0 : index
    %c0_15 = arith.constant 0 : index
    %13 = vector.load %arg5[%c0_14, %c0_15] : memref<32x128xbf16, #tpu.memory_space<vmem>>, vector<32x128xbf16>
    %cst_16 = arith.constant dense<0.000000e+00> : vector<128x128xf32>
    %14 = tpu.matmul %0, %13, %cst_16 {dimension_numbers = #tpu.dot_dimension_numbers<[1], [0], [0], [1], [0, 0, 1, 1], [], []>} : vector<128x32xbf16>, vector<32x128xbf16>, vector<128x128xf32> -> vector<128x128xf32>
    %15 = vector.broadcast %12 : vector<1x128xf32> to vector<128x128xf32>
    %16 = arith.addf %15, %14 : vector<128x128xf32>
    %c0_17 = arith.constant 0 : index
    %c0_18 = arith.constant 0 : index
    %17 = vector.load %arg6[%c0_17, %c0_18] : memref<32x128xbf16, #tpu.memory_space<vmem>>, vector<32x128xbf16>
    %cst_19 = arith.constant dense<0.000000e+00> : vector<128x128xf32>
    %18 = tpu.matmul %1, %17, %cst_19 {dimension_numbers = #tpu.dot_dimension_numbers<[1], [0], [0], [1], [0, 0, 1, 1], [], []>} : vector<128x32xbf16>, vector<32x128xbf16>, vector<128x128xf32> -> vector<128x128xf32>
    %19 = arith.addf %16, %18 : vector<128x128xf32>
    %20 = arith.truncf %19 : vector<128x128xf32> to vector<128x128xbf16>
    %c0_20 = arith.constant 0 : index
    %c0_21 = arith.constant 0 : index
    %21 = vector.load %arg10[%c0_20, %c0_21] : memref<128x128xbf16, #tpu.memory_space<vmem>>, vector<128x128xbf16>
    tpu.vector_store %arg10[%c0_20, %c0_21], %20 {strides = array<i32>} : memref<128x128xbf16, #tpu.memory_space<vmem>>, vector<128x128xbf16>,
    return
  }
  func.func @transform_0(%arg0: i32) -> (i32, i32) {
    %c0_i32 = arith.constant 0 : i32
    %c0_i32_0 = arith.constant 0 : i32
    return %arg0, %c0_i32 : i32, i32
  }
  func.func @transform_1(%arg0: i32) -> (i32, i32) {
    %c0_i32 = arith.constant 0 : i32
    %c0_i32_0 = arith.constant 0 : i32
    return %arg0, %c0_i32 : i32, i32
  }
  func.func @transform_2(%arg0: i32) -> (i32, i32) {
    %c0_i32 = arith.constant 0 : i32
    %c0_i32_0 = arith.constant 0 : i32
    %c0_i32_1 = arith.constant 0 : i32
    return %c0_i32, %c0_i32_0 : i32, i32
  }
  func.func @transform_3(%arg0: i32) -> (i32, i32) {
    %c0_i32 = arith.constant 0 : i32
    %c0_i32_0 = arith.constant 0 : i32
    %c0_i32_1 = arith.constant 0 : i32
    return %c0_i32, %c0_i32_0 : i32, i32
  }
  func.func @transform_4(%arg0: i32) -> (i32, i32) {
    %c0_i32 = arith.constant 0 : i32
    %c0_i32_0 = arith.constant 0 : i32
    %c0_i32_1 = arith.constant 0 : i32
    return %c0_i32, %c0_i32_0 : i32, i32
  }
  func.func @transform_5(%arg0: i32) -> (i32, i32) {
    %c0_i32 = arith.constant 0 : i32
    %c0_i32_0 = arith.constant 0 : i32
    %c0_i32_1 = arith.constant 0 : i32
    return %c0_i32, %c0_i32_0 : i32, i32
  }
  func.func @transform_6(%arg0: i32) -> (i32, i32) {
    %c0_i32 = arith.constant 0 : i32
    %c0_i32_0 = arith.constant 0 : i32
    %c0_i32_1 = arith.constant 0 : i32
    return %c0_i32, %c0_i32_0 : i32, i32
  }
  func.func @transform_7(%arg0: i32) -> (i32, i32) {
    %c0_i32 = arith.constant 0 : i32
    %c0_i32_0 = arith.constant 0 : i32
    %c0_i32_1 = arith.constant 0 : i32
    return %c0_i32, %c0_i32_0 : i32, i32
  }
  func.func @transform_8(%arg0: i32) -> (i32, i32) {
    %c0_i32 = arith.constant 0 : i32
    %c0_i32_0 = arith.constant 0 : i32
    return %arg0, %c0_i32 : i32, i32
  }
  func.func @transform_9(%arg0: i32) -> (i32, i32) {
    %c0_i32 = arith.constant 0 : i32
    %c0_i32_0 = arith.constant 0 : i32
    return %arg0, %c0_i32 : i32, i32
  }
}

module attributes {stable_mosaic.version = 11 : i64} {
  func.func @_bilstm_kernel(%arg0: i32, %arg1: memref<8x1xi32, #tpu.memory_space<vmem>>, %arg2: memref<16x8x128xbf16, #tpu.memory_space<vmem>>, %arg3: memref<16x8x128xbf16, #tpu.memory_space<vmem>>, %arg4: memref<32x128xbf16, #tpu.memory_space<vmem>>, %arg5: memref<32x128xbf16, #tpu.memory_space<vmem>>, %arg6: memref<16x8x32xbf16, #tpu.memory_space<vmem>>, %arg7: memref<16x8x32xbf16, #tpu.memory_space<vmem>>, %arg8: memref<2x8x32xf32, #tpu.memory_space<vmem>>, %arg9: memref<2x8x32xf32, #tpu.memory_space<vmem>>, %arg10: memref<8x32xbf16, #tpu.memory_space<vmem>>, %arg11: memref<8x32xf32, #tpu.memory_space<vmem>>, %arg12: memref<8x32xbf16, #tpu.memory_space<vmem>>, %arg13: memref<8x32xf32, #tpu.memory_space<vmem>>) attributes {dimension_semantics = [#tpu.dimension_semantics<arbitrary>], iteration_bounds = array<i64: 1>, scalar_prefetch = 0 : i64, scratch_operands = 4 : i64, tpu.core_type = #tpu.core_type<tc>, window_params = [{pipeline_mode = #tpu.pipeline_mode<synchronous>, transform_indices = @transform_0, window_bounds = array<i64: 8, 1>}, {transform_indices = @transform_1, window_bounds = array<i64: 16, 8, 128>}, {transform_indices = @transform_2, window_bounds = array<i64: 16, 8, 128>}, {pipeline_mode = #tpu.pipeline_mode<synchronous>, transform_indices = @transform_3, window_bounds = array<i64: 32, 128>}, {pipeline_mode = #tpu.pipeline_mode<synchronous>, transform_indices = @transform_4, window_bounds = array<i64: 32, 128>}, {transform_indices = @transform_5, window_bounds = array<i64: 16, 8, 32>}, {transform_indices = @transform_6, window_bounds = array<i64: 16, 8, 32>}, {pipeline_mode = #tpu.pipeline_mode<synchronous>, transform_indices = @transform_7, window_bounds = array<i64: 2, 8, 32>}, {pipeline_mode = #tpu.pipeline_mode<synchronous>, transform_indices = @transform_8, window_bounds = array<i64: 2, 8, 32>}]} {
    %c0_i32 = arith.constant 0 : i32
    %0 = arith.cmpi eq, %arg0, %c0_i32 : i32
    %1 = arith.extui %0 : i1 to i32
    %c0_i32_0 = arith.constant 0 : i32
    %2 = arith.cmpi ne, %1, %c0_i32_0 : i32
    scf.if %2 {
      %cst_315 = arith.constant 0.000000e+00 : bf16
      %1236 = vector.broadcast %cst_315 : bf16 to vector<8x32xbf16>
      %c0_316 = arith.constant 0 : index
      %c0_317 = arith.constant 0 : index
      %1237 = vector.load %arg10[%c0_316, %c0_317] : memref<8x32xbf16, #tpu.memory_space<vmem>>, vector<8x32xbf16>
      tpu.vector_store %arg10[%c0_316, %c0_317], %1236 {strides = array<i32>} : memref<8x32xbf16, #tpu.memory_space<vmem>>, vector<8x32xbf16>,
      %cst_318 = arith.constant 0.000000e+00 : f32
      %1238 = vector.broadcast %cst_318 : f32 to vector<8x32xf32>
      %c0_319 = arith.constant 0 : index
      %c0_320 = arith.constant 0 : index
      %1239 = vector.load %arg11[%c0_319, %c0_320] : memref<8x32xf32, #tpu.memory_space<vmem>>, vector<8x32xf32>
      tpu.vector_store %arg11[%c0_319, %c0_320], %1238 {strides = array<i32>} : memref<8x32xf32, #tpu.memory_space<vmem>>, vector<8x32xf32>,
      %cst_321 = arith.constant 0.000000e+00 : bf16
      %1240 = vector.broadcast %cst_321 : bf16 to vector<8x32xbf16>
      %c0_322 = arith.constant 0 : index
      %c0_323 = arith.constant 0 : index
      %1241 = vector.load %arg12[%c0_322, %c0_323] : memref<8x32xbf16, #tpu.memory_space<vmem>>, vector<8x32xbf16>
      tpu.vector_store %arg12[%c0_322, %c0_323], %1240 {strides = array<i32>} : memref<8x32xbf16, #tpu.memory_space<vmem>>, vector<8x32xbf16>,
      %cst_324 = arith.constant 0.000000e+00 : f32
      %1242 = vector.broadcast %cst_324 : f32 to vector<8x32xf32>
      %c0_325 = arith.constant 0 : index
      %c0_326 = arith.constant 0 : index
      %1243 = vector.load %arg13[%c0_325, %c0_326] : memref<8x32xf32, #tpu.memory_space<vmem>>, vector<8x32xf32>
      tpu.vector_store %arg13[%c0_325, %c0_326], %1242 {strides = array<i32>} : memref<8x32xf32, #tpu.memory_space<vmem>>, vector<8x32xf32>,
    } else {
    }
    %c0 = arith.constant 0 : index
    %c0_1 = arith.constant 0 : index
    %3 = vector.load %arg1[%c0, %c0_1] : memref<8x1xi32, #tpu.memory_space<vmem>>, vector<8x1xi32>
    %c0_2 = arith.constant 0 : index
    %c0_3 = arith.constant 0 : index
    %4 = vector.load %arg4[%c0_2, %c0_3] : memref<32x128xbf16, #tpu.memory_space<vmem>>, vector<32x128xbf16>
    %c0_4 = arith.constant 0 : index
    %c0_5 = arith.constant 0 : index
    %5 = vector.load %arg5[%c0_4, %c0_5] : memref<32x128xbf16, #tpu.memory_space<vmem>>, vector<32x128xbf16>
    %c0_6 = arith.constant 0 : index
    %c0_7 = arith.constant 0 : index
    %6 = vector.load %arg10[%c0_6, %c0_7] : memref<8x32xbf16, #tpu.memory_space<vmem>>, vector<8x32xbf16>
    %c0_8 = arith.constant 0 : index
    %c0_9 = arith.constant 0 : index
    %7 = vector.load %arg12[%c0_8, %c0_9] : memref<8x32xbf16, #tpu.memory_space<vmem>>, vector<8x32xbf16>
    %c0_10 = arith.constant 0 : index
    %c0_11 = arith.constant 0 : index
    %8 = vector.load %arg11[%c0_10, %c0_11] : memref<8x32xf32, #tpu.memory_space<vmem>>, vector<8x32xf32>
    %c0_12 = arith.constant 0 : index
    %c0_13 = arith.constant 0 : index
    %9 = vector.load %arg13[%c0_12, %c0_13] : memref<8x32xf32, #tpu.memory_space<vmem>>, vector<8x32xf32>
    %c16_i32 = arith.constant 16 : i32
    %10 = arith.muli %arg0, %c16_i32 : i32
    %c0_i32_14 = arith.constant 0 : i32
    %11 = arith.subi %c0_i32_14, %arg0 : i32
    %c16_i32_15 = arith.constant 16 : i32
    %12 = arith.muli %11, %c16_i32_15 : i32
    %c0_16 = arith.constant 0 : index
    %c0_17 = arith.constant 0 : index
    %c0_18 = arith.constant 0 : index
    %13 = vector.load %arg2[%c0_16, %c0_17, %c0_18] : memref<16x8x128xbf16, #tpu.memory_space<vmem>>, vector<1x8x128xbf16>
    %14 = vector.shape_cast %13 : vector<1x8x128xbf16> to vector<8x128xbf16>
    %15 = arith.extf %14 : vector<8x128xbf16> to vector<8x128xf32>
    %cst = arith.constant dense<0.000000e+00> : vector<8x128xf32>
    %16 = tpu.matmul %6, %4, %cst {dimension_numbers = #tpu.dot_dimension_numbers<[1], [0], [0], [1], [0, 0, 1, 1], [], []>} : vector<8x32xbf16>, vector<32x128xbf16>, vector<8x128xf32> -> vector<8x128xf32>
    %17 = arith.addf %15, %16 : vector<8x128xf32>
    %18 = vector.extract_strided_slice %17 {offsets = [0, 0], sizes = [8, 96], strides = [1, 1]} : vector<8x128xf32> to vector<8x96xf32>
    %19 = arith.negf %18 : vector<8x96xf32>
    %20 = math.exp %19 : vector<8x96xf32>
    %cst_19 = arith.constant 1.000000e+00 : f32
    %21 = vector.broadcast %cst_19 : f32 to vector<8x96xf32>
    %22 = arith.addf %21, %20 : vector<8x96xf32>
    %23 = arith.divf %21, %22 : vector<8x96xf32>
    %24 = vector.extract_strided_slice %23 {offsets = [0, 0], sizes = [8, 32], strides = [1, 1]} : vector<8x96xf32> to vector<8x32xf32>
    %25 = vector.extract_strided_slice %23 {offsets = [0, 32], sizes = [8, 32], strides = [1, 1]} : vector<8x96xf32> to vector<8x32xf32>
    %26 = vector.extract_strided_slice %23 {offsets = [0, 64], sizes = [8, 32], strides = [1, 1]} : vector<8x96xf32> to vector<8x32xf32>
    %27 = vector.extract_strided_slice %17 {offsets = [0, 96], sizes = [8, 32], strides = [1, 1]} : vector<8x128xf32> to vector<8x32xf32>
    %28 = math.tanh %27 : vector<8x32xf32>
    %29 = arith.mulf %25, %8 : vector<8x32xf32>
    %30 = arith.mulf %24, %28 : vector<8x32xf32>
    %31 = arith.addf %29, %30 : vector<8x32xf32>
    %32 = math.tanh %31 : vector<8x32xf32>
    %33 = arith.mulf %26, %32 : vector<8x32xf32>
    %34 = arith.truncf %33 : vector<8x32xf32> to vector<8x32xbf16>
    %c0_i32_20 = arith.constant 0 : i32
    %35 = arith.addi %10, %c0_i32_20 : i32
    %36 = vector.broadcast %35 : i32 to vector<8x1xi32>
    %37 = arith.cmpi slt, %36, %3 : vector<8x1xi32>
    %cst_21 = arith.constant 0.000000e+00 : bf16
    %38 = vector.broadcast %cst_21 : bf16 to vector<8x32xbf16>
    %39 = vector.shape_cast %37 : vector<8x1xi1> to vector<8x1xi1>
    %40 = vector.broadcast %39 : vector<8x1xi1> to vector<8x32xi1>
    %41 = arith.select %40, %34, %38 : vector<8x32xi1>, vector<8x32xbf16>
    %c0_22 = arith.constant 0 : index
    %c0_23 = arith.constant 0 : index
    %c0_24 = arith.constant 0 : index
    %42 = vector.load %arg6[%c0_22, %c0_23, %c0_24] : memref<16x8x32xbf16, #tpu.memory_space<vmem>>, vector<1x8x32xbf16>
    %43 = vector.shape_cast %42 : vector<1x8x32xbf16> to vector<8x32xbf16>
    %44 = vector.shape_cast %41 : vector<8x32xbf16> to vector<1x8x32xbf16>
    tpu.vector_store %arg6[%c0_22, %c0_23, %c0_24], %44 {strides = array<i32>} : memref<16x8x32xbf16, #tpu.memory_space<vmem>>, vector<1x8x32xbf16>,
    %45 = vector.shape_cast %37 : vector<8x1xi1> to vector<8x1xi1>
    %46 = vector.broadcast %45 : vector<8x1xi1> to vector<8x32xi1>
    %47 = arith.select %46, %34, %6 : vector<8x32xi1>, vector<8x32xbf16>
    %48 = vector.shape_cast %37 : vector<8x1xi1> to vector<8x1xi1>
    %49 = vector.broadcast %48 : vector<8x1xi1> to vector<8x32xi1>
    %50 = arith.select %49, %31, %8 : vector<8x32xi1>, vector<8x32xf32>
    %c15 = arith.constant 15 : index
    %c0_25 = arith.constant 0 : index
    %c0_26 = arith.constant 0 : index
    %51 = vector.load %arg3[%c15, %c0_25, %c0_26] : memref<16x8x128xbf16, #tpu.memory_space<vmem>>, vector<1x8x128xbf16>
    %52 = vector.shape_cast %51 : vector<1x8x128xbf16> to vector<8x128xbf16>
    %53 = arith.extf %52 : vector<8x128xbf16> to vector<8x128xf32>
    %cst_27 = arith.constant dense<0.000000e+00> : vector<8x128xf32>
    %54 = tpu.matmul %7, %5, %cst_27 {dimension_numbers = #tpu.dot_dimension_numbers<[1], [0], [0], [1], [0, 0, 1, 1], [], []>} : vector<8x32xbf16>, vector<32x128xbf16>, vector<8x128xf32> -> vector<8x128xf32>
    %55 = arith.addf %53, %54 : vector<8x128xf32>
    %56 = vector.extract_strided_slice %55 {offsets = [0, 0], sizes = [8, 96], strides = [1, 1]} : vector<8x128xf32> to vector<8x96xf32>
    %57 = arith.negf %56 : vector<8x96xf32>
    %58 = math.exp %57 : vector<8x96xf32>
    %cst_28 = arith.constant 1.000000e+00 : f32
    %59 = vector.broadcast %cst_28 : f32 to vector<8x96xf32>
    %60 = arith.addf %59, %58 : vector<8x96xf32>
    %61 = arith.divf %59, %60 : vector<8x96xf32>
    %62 = vector.extract_strided_slice %61 {offsets = [0, 0], sizes = [8, 32], strides = [1, 1]} : vector<8x96xf32> to vector<8x32xf32>
    %63 = vector.extract_strided_slice %61 {offsets = [0, 32], sizes = [8, 32], strides = [1, 1]} : vector<8x96xf32> to vector<8x32xf32>
    %64 = vector.extract_strided_slice %61 {offsets = [0, 64], sizes = [8, 32], strides = [1, 1]} : vector<8x96xf32> to vector<8x32xf32>
    %65 = vector.extract_strided_slice %55 {offsets = [0, 96], sizes = [8, 32], strides = [1, 1]} : vector<8x128xf32> to vector<8x32xf32>
    %66 = math.tanh %65 : vector<8x32xf32>
    %67 = arith.mulf %63, %9 : vector<8x32xf32>
    %68 = arith.mulf %62, %66 : vector<8x32xf32>
    %69 = arith.addf %67, %68 : vector<8x32xf32>
    %70 = math.tanh %69 : vector<8x32xf32>
    %71 = arith.mulf %64, %70 : vector<8x32xf32>
    %72 = arith.truncf %71 : vector<8x32xf32> to vector<8x32xbf16>
    %c15_i32 = arith.constant 15 : i32
    %73 = arith.addi %12, %c15_i32 : i32
    %74 = vector.broadcast %73 : i32 to vector<8x1xi32>
    %75 = arith.cmpi slt, %74, %3 : vector<8x1xi32>
    %cst_29 = arith.constant 0.000000e+00 : bf16
    %76 = vector.broadcast %cst_29 : bf16 to vector<8x32xbf16>
    %77 = vector.shape_cast %75 : vector<8x1xi1> to vector<8x1xi1>
    %78 = vector.broadcast %77 : vector<8x1xi1> to vector<8x32xi1>
    %79 = arith.select %78, %72, %76 : vector<8x32xi1>, vector<8x32xbf16>
    %c15_30 = arith.constant 15 : index
    %c0_31 = arith.constant 0 : index
    %c0_32 = arith.constant 0 : index
    %80 = vector.load %arg7[%c15_30, %c0_31, %c0_32] : memref<16x8x32xbf16, #tpu.memory_space<vmem>>, vector<1x8x32xbf16>
    %81 = vector.shape_cast %80 : vector<1x8x32xbf16> to vector<8x32xbf16>
    %82 = vector.shape_cast %79 : vector<8x32xbf16> to vector<1x8x32xbf16>
    tpu.vector_store %arg7[%c15_30, %c0_31, %c0_32], %82 {strides = array<i32>} : memref<16x8x32xbf16, #tpu.memory_space<vmem>>, vector<1x8x32xbf16>,
    %83 = vector.shape_cast %75 : vector<8x1xi1> to vector<8x1xi1>
    %84 = vector.broadcast %83 : vector<8x1xi1> to vector<8x32xi1>
    %85 = arith.select %84, %72, %7 : vector<8x32xi1>, vector<8x32xbf16>
    %86 = vector.shape_cast %75 : vector<8x1xi1> to vector<8x1xi1>
    %87 = vector.broadcast %86 : vector<8x1xi1> to vector<8x32xi1>
    %88 = arith.select %87, %69, %9 : vector<8x32xi1>, vector<8x32xf32>
    %c1 = arith.constant 1 : index
    %c0_33 = arith.constant 0 : index
    %c0_34 = arith.constant 0 : index
    %89 = vector.load %arg2[%c1, %c0_33, %c0_34] : memref<16x8x128xbf16, #tpu.memory_space<vmem>>, vector<1x8x128xbf16>
    %90 = vector.shape_cast %89 : vector<1x8x128xbf16> to vector<8x128xbf16>
    %91 = arith.extf %90 : vector<8x128xbf16> to vector<8x128xf32>
    %cst_35 = arith.constant dense<0.000000e+00> : vector<8x128xf32>
    %92 = tpu.matmul %47, %4, %cst_35 {dimension_numbers = #tpu.dot_dimension_numbers<[1], [0], [0], [1], [0, 0, 1, 1], [], []>} : vector<8x32xbf16>, vector<32x128xbf16>, vector<8x128xf32> -> vector<8x128xf32>
    %93 = arith.addf %91, %92 : vector<8x128xf32>
    %94 = vector.extract_strided_slice %93 {offsets = [0, 0], sizes = [8, 96], strides = [1, 1]} : vector<8x128xf32> to vector<8x96xf32>
    %95 = arith.negf %94 : vector<8x96xf32>
    %96 = math.exp %95 : vector<8x96xf32>
    %cst_36 = arith.constant 1.000000e+00 : f32
    %97 = vector.broadcast %cst_36 : f32 to vector<8x96xf32>
    %98 = arith.addf %97, %96 : vector<8x96xf32>
    %99 = arith.divf %97, %98 : vector<8x96xf32>
    %100 = vector.extract_strided_slice %99 {offsets = [0, 0], sizes = [8, 32], strides = [1, 1]} : vector<8x96xf32> to vector<8x32xf32>
    %101 = vector.extract_strided_slice %99 {offsets = [0, 32], sizes = [8, 32], strides = [1, 1]} : vector<8x96xf32> to vector<8x32xf32>
    %102 = vector.extract_strided_slice %99 {offsets = [0, 64], sizes = [8, 32], strides = [1, 1]} : vector<8x96xf32> to vector<8x32xf32>
    %103 = vector.extract_strided_slice %93 {offsets = [0, 96], sizes = [8, 32], strides = [1, 1]} : vector<8x128xf32> to vector<8x32xf32>
    %104 = math.tanh %103 : vector<8x32xf32>
    %105 = arith.mulf %101, %50 : vector<8x32xf32>
    %106 = arith.mulf %100, %104 : vector<8x32xf32>
    %107 = arith.addf %105, %106 : vector<8x32xf32>
    %108 = math.tanh %107 : vector<8x32xf32>
    %109 = arith.mulf %102, %108 : vector<8x32xf32>
    %110 = arith.truncf %109 : vector<8x32xf32> to vector<8x32xbf16>
    %c1_i32 = arith.constant 1 : i32
    %111 = arith.addi %10, %c1_i32 : i32
    %112 = vector.broadcast %111 : i32 to vector<8x1xi32>
    %113 = arith.cmpi slt, %112, %3 : vector<8x1xi32>
    %cst_37 = arith.constant 0.000000e+00 : bf16
    %114 = vector.broadcast %cst_37 : bf16 to vector<8x32xbf16>
    %115 = vector.shape_cast %113 : vector<8x1xi1> to vector<8x1xi1>
    %116 = vector.broadcast %115 : vector<8x1xi1> to vector<8x32xi1>
    %117 = arith.select %116, %110, %114 : vector<8x32xi1>, vector<8x32xbf16>
    %c1_38 = arith.constant 1 : index
    %c0_39 = arith.constant 0 : index
    %c0_40 = arith.constant 0 : index
    %118 = vector.load %arg6[%c1_38, %c0_39, %c0_40] : memref<16x8x32xbf16, #tpu.memory_space<vmem>>, vector<1x8x32xbf16>
    %119 = vector.shape_cast %118 : vector<1x8x32xbf16> to vector<8x32xbf16>
    %120 = vector.shape_cast %117 : vector<8x32xbf16> to vector<1x8x32xbf16>
    tpu.vector_store %arg6[%c1_38, %c0_39, %c0_40], %120 {strides = array<i32>} : memref<16x8x32xbf16, #tpu.memory_space<vmem>>, vector<1x8x32xbf16>,
    %121 = vector.shape_cast %113 : vector<8x1xi1> to vector<8x1xi1>
    %122 = vector.broadcast %121 : vector<8x1xi1> to vector<8x32xi1>
    %123 = arith.select %122, %110, %47 : vector<8x32xi1>, vector<8x32xbf16>
    %124 = vector.shape_cast %113 : vector<8x1xi1> to vector<8x1xi1>
    %125 = vector.broadcast %124 : vector<8x1xi1> to vector<8x32xi1>
    %126 = arith.select %125, %107, %50 : vector<8x32xi1>, vector<8x32xf32>
    %c14 = arith.constant 14 : index
    %c0_41 = arith.constant 0 : index
    %c0_42 = arith.constant 0 : index
    %127 = vector.load %arg3[%c14, %c0_41, %c0_42] : memref<16x8x128xbf16, #tpu.memory_space<vmem>>, vector<1x8x128xbf16>
    %128 = vector.shape_cast %127 : vector<1x8x128xbf16> to vector<8x128xbf16>
    %129 = arith.extf %128 : vector<8x128xbf16> to vector<8x128xf32>
    %cst_43 = arith.constant dense<0.000000e+00> : vector<8x128xf32>
    %130 = tpu.matmul %85, %5, %cst_43 {dimension_numbers = #tpu.dot_dimension_numbers<[1], [0], [0], [1], [0, 0, 1, 1], [], []>} : vector<8x32xbf16>, vector<32x128xbf16>, vector<8x128xf32> -> vector<8x128xf32>
    %131 = arith.addf %129, %130 : vector<8x128xf32>
    %132 = vector.extract_strided_slice %131 {offsets = [0, 0], sizes = [8, 96], strides = [1, 1]} : vector<8x128xf32> to vector<8x96xf32>
    %133 = arith.negf %132 : vector<8x96xf32>
    %134 = math.exp %133 : vector<8x96xf32>
    %cst_44 = arith.constant 1.000000e+00 : f32
    %135 = vector.broadcast %cst_44 : f32 to vector<8x96xf32>
    %136 = arith.addf %135, %134 : vector<8x96xf32>
    %137 = arith.divf %135, %136 : vector<8x96xf32>
    %138 = vector.extract_strided_slice %137 {offsets = [0, 0], sizes = [8, 32], strides = [1, 1]} : vector<8x96xf32> to vector<8x32xf32>
    %139 = vector.extract_strided_slice %137 {offsets = [0, 32], sizes = [8, 32], strides = [1, 1]} : vector<8x96xf32> to vector<8x32xf32>
    %140 = vector.extract_strided_slice %137 {offsets = [0, 64], sizes = [8, 32], strides = [1, 1]} : vector<8x96xf32> to vector<8x32xf32>
    %141 = vector.extract_strided_slice %131 {offsets = [0, 96], sizes = [8, 32], strides = [1, 1]} : vector<8x128xf32> to vector<8x32xf32>
    %142 = math.tanh %141 : vector<8x32xf32>
    %143 = arith.mulf %139, %88 : vector<8x32xf32>
    %144 = arith.mulf %138, %142 : vector<8x32xf32>
    %145 = arith.addf %143, %144 : vector<8x32xf32>
    %146 = math.tanh %145 : vector<8x32xf32>
    %147 = arith.mulf %140, %146 : vector<8x32xf32>
    %148 = arith.truncf %147 : vector<8x32xf32> to vector<8x32xbf16>
    %c14_i32 = arith.constant 14 : i32
    %149 = arith.addi %12, %c14_i32 : i32
    %150 = vector.broadcast %149 : i32 to vector<8x1xi32>
    %151 = arith.cmpi slt, %150, %3 : vector<8x1xi32>
    %cst_45 = arith.constant 0.000000e+00 : bf16
    %152 = vector.broadcast %cst_45 : bf16 to vector<8x32xbf16>
    %153 = vector.shape_cast %151 : vector<8x1xi1> to vector<8x1xi1>
    %154 = vector.broadcast %153 : vector<8x1xi1> to vector<8x32xi1>
    %155 = arith.select %154, %148, %152 : vector<8x32xi1>, vector<8x32xbf16>
    %c14_46 = arith.constant 14 : index
    %c0_47 = arith.constant 0 : index
    %c0_48 = arith.constant 0 : index
    %156 = vector.load %arg7[%c14_46, %c0_47, %c0_48] : memref<16x8x32xbf16, #tpu.memory_space<vmem>>, vector<1x8x32xbf16>
    %157 = vector.shape_cast %156 : vector<1x8x32xbf16> to vector<8x32xbf16>
    %158 = vector.shape_cast %155 : vector<8x32xbf16> to vector<1x8x32xbf16>
    tpu.vector_store %arg7[%c14_46, %c0_47, %c0_48], %158 {strides = array<i32>} : memref<16x8x32xbf16, #tpu.memory_space<vmem>>, vector<1x8x32xbf16>,
    %159 = vector.shape_cast %151 : vector<8x1xi1> to vector<8x1xi1>
    %160 = vector.broadcast %159 : vector<8x1xi1> to vector<8x32xi1>
    %161 = arith.select %160, %148, %85 : vector<8x32xi1>, vector<8x32xbf16>
    %162 = vector.shape_cast %151 : vector<8x1xi1> to vector<8x1xi1>
    %163 = vector.broadcast %162 : vector<8x1xi1> to vector<8x32xi1>
    %164 = arith.select %163, %145, %88 : vector<8x32xi1>, vector<8x32xf32>
    %c2 = arith.constant 2 : index
    %c0_49 = arith.constant 0 : index
    %c0_50 = arith.constant 0 : index
    %165 = vector.load %arg2[%c2, %c0_49, %c0_50] : memref<16x8x128xbf16, #tpu.memory_space<vmem>>, vector<1x8x128xbf16>
    %166 = vector.shape_cast %165 : vector<1x8x128xbf16> to vector<8x128xbf16>
    %167 = arith.extf %166 : vector<8x128xbf16> to vector<8x128xf32>
    %cst_51 = arith.constant dense<0.000000e+00> : vector<8x128xf32>
    %168 = tpu.matmul %123, %4, %cst_51 {dimension_numbers = #tpu.dot_dimension_numbers<[1], [0], [0], [1], [0, 0, 1, 1], [], []>} : vector<8x32xbf16>, vector<32x128xbf16>, vector<8x128xf32> -> vector<8x128xf32>
    %169 = arith.addf %167, %168 : vector<8x128xf32>
    %170 = vector.extract_strided_slice %169 {offsets = [0, 0], sizes = [8, 96], strides = [1, 1]} : vector<8x128xf32> to vector<8x96xf32>
    %171 = arith.negf %170 : vector<8x96xf32>
    %172 = math.exp %171 : vector<8x96xf32>
    %cst_52 = arith.constant 1.000000e+00 : f32
    %173 = vector.broadcast %cst_52 : f32 to vector<8x96xf32>
    %174 = arith.addf %173, %172 : vector<8x96xf32>
    %175 = arith.divf %173, %174 : vector<8x96xf32>
    %176 = vector.extract_strided_slice %175 {offsets = [0, 0], sizes = [8, 32], strides = [1, 1]} : vector<8x96xf32> to vector<8x32xf32>
    %177 = vector.extract_strided_slice %175 {offsets = [0, 32], sizes = [8, 32], strides = [1, 1]} : vector<8x96xf32> to vector<8x32xf32>
    %178 = vector.extract_strided_slice %175 {offsets = [0, 64], sizes = [8, 32], strides = [1, 1]} : vector<8x96xf32> to vector<8x32xf32>
    %179 = vector.extract_strided_slice %169 {offsets = [0, 96], sizes = [8, 32], strides = [1, 1]} : vector<8x128xf32> to vector<8x32xf32>
    %180 = math.tanh %179 : vector<8x32xf32>
    %181 = arith.mulf %177, %126 : vector<8x32xf32>
    %182 = arith.mulf %176, %180 : vector<8x32xf32>
    %183 = arith.addf %181, %182 : vector<8x32xf32>
    %184 = math.tanh %183 : vector<8x32xf32>
    %185 = arith.mulf %178, %184 : vector<8x32xf32>
    %186 = arith.truncf %185 : vector<8x32xf32> to vector<8x32xbf16>
    %c2_i32 = arith.constant 2 : i32
    %187 = arith.addi %10, %c2_i32 : i32
    %188 = vector.broadcast %187 : i32 to vector<8x1xi32>
    %189 = arith.cmpi slt, %188, %3 : vector<8x1xi32>
    %cst_53 = arith.constant 0.000000e+00 : bf16
    %190 = vector.broadcast %cst_53 : bf16 to vector<8x32xbf16>
    %191 = vector.shape_cast %189 : vector<8x1xi1> to vector<8x1xi1>
    %192 = vector.broadcast %191 : vector<8x1xi1> to vector<8x32xi1>
    %193 = arith.select %192, %186, %190 : vector<8x32xi1>, vector<8x32xbf16>
    %c2_54 = arith.constant 2 : index
    %c0_55 = arith.constant 0 : index
    %c0_56 = arith.constant 0 : index
    %194 = vector.load %arg6[%c2_54, %c0_55, %c0_56] : memref<16x8x32xbf16, #tpu.memory_space<vmem>>, vector<1x8x32xbf16>
    %195 = vector.shape_cast %194 : vector<1x8x32xbf16> to vector<8x32xbf16>
    %196 = vector.shape_cast %193 : vector<8x32xbf16> to vector<1x8x32xbf16>
    tpu.vector_store %arg6[%c2_54, %c0_55, %c0_56], %196 {strides = array<i32>} : memref<16x8x32xbf16, #tpu.memory_space<vmem>>, vector<1x8x32xbf16>,
    %197 = vector.shape_cast %189 : vector<8x1xi1> to vector<8x1xi1>
    %198 = vector.broadcast %197 : vector<8x1xi1> to vector<8x32xi1>
    %199 = arith.select %198, %186, %123 : vector<8x32xi1>, vector<8x32xbf16>
    %200 = vector.shape_cast %189 : vector<8x1xi1> to vector<8x1xi1>
    %201 = vector.broadcast %200 : vector<8x1xi1> to vector<8x32xi1>
    %202 = arith.select %201, %183, %126 : vector<8x32xi1>, vector<8x32xf32>
    %c13 = arith.constant 13 : index
    %c0_57 = arith.constant 0 : index
    %c0_58 = arith.constant 0 : index
    %203 = vector.load %arg3[%c13, %c0_57, %c0_58] : memref<16x8x128xbf16, #tpu.memory_space<vmem>>, vector<1x8x128xbf16>
    %204 = vector.shape_cast %203 : vector<1x8x128xbf16> to vector<8x128xbf16>
    %205 = arith.extf %204 : vector<8x128xbf16> to vector<8x128xf32>
    %cst_59 = arith.constant dense<0.000000e+00> : vector<8x128xf32>
    %206 = tpu.matmul %161, %5, %cst_59 {dimension_numbers = #tpu.dot_dimension_numbers<[1], [0], [0], [1], [0, 0, 1, 1], [], []>} : vector<8x32xbf16>, vector<32x128xbf16>, vector<8x128xf32> -> vector<8x128xf32>
    %207 = arith.addf %205, %206 : vector<8x128xf32>
    %208 = vector.extract_strided_slice %207 {offsets = [0, 0], sizes = [8, 96], strides = [1, 1]} : vector<8x128xf32> to vector<8x96xf32>
    %209 = arith.negf %208 : vector<8x96xf32>
    %210 = math.exp %209 : vector<8x96xf32>
    %cst_60 = arith.constant 1.000000e+00 : f32
    %211 = vector.broadcast %cst_60 : f32 to vector<8x96xf32>
    %212 = arith.addf %211, %210 : vector<8x96xf32>
    %213 = arith.divf %211, %212 : vector<8x96xf32>
    %214 = vector.extract_strided_slice %213 {offsets = [0, 0], sizes = [8, 32], strides = [1, 1]} : vector<8x96xf32> to vector<8x32xf32>
    %215 = vector.extract_strided_slice %213 {offsets = [0, 32], sizes = [8, 32], strides = [1, 1]} : vector<8x96xf32> to vector<8x32xf32>
    %216 = vector.extract_strided_slice %213 {offsets = [0, 64], sizes = [8, 32], strides = [1, 1]} : vector<8x96xf32> to vector<8x32xf32>
    %217 = vector.extract_strided_slice %207 {offsets = [0, 96], sizes = [8, 32], strides = [1, 1]} : vector<8x128xf32> to vector<8x32xf32>
    %218 = math.tanh %217 : vector<8x32xf32>
    %219 = arith.mulf %215, %164 : vector<8x32xf32>
    %220 = arith.mulf %214, %218 : vector<8x32xf32>
    %221 = arith.addf %219, %220 : vector<8x32xf32>
    %222 = math.tanh %221 : vector<8x32xf32>
    %223 = arith.mulf %216, %222 : vector<8x32xf32>
    %224 = arith.truncf %223 : vector<8x32xf32> to vector<8x32xbf16>
    %c13_i32 = arith.constant 13 : i32
    %225 = arith.addi %12, %c13_i32 : i32
    %226 = vector.broadcast %225 : i32 to vector<8x1xi32>
    %227 = arith.cmpi slt, %226, %3 : vector<8x1xi32>
    %cst_61 = arith.constant 0.000000e+00 : bf16
    %228 = vector.broadcast %cst_61 : bf16 to vector<8x32xbf16>
    %229 = vector.shape_cast %227 : vector<8x1xi1> to vector<8x1xi1>
    %230 = vector.broadcast %229 : vector<8x1xi1> to vector<8x32xi1>
    %231 = arith.select %230, %224, %228 : vector<8x32xi1>, vector<8x32xbf16>
    %c13_62 = arith.constant 13 : index
    %c0_63 = arith.constant 0 : index
    %c0_64 = arith.constant 0 : index
    %232 = vector.load %arg7[%c13_62, %c0_63, %c0_64] : memref<16x8x32xbf16, #tpu.memory_space<vmem>>, vector<1x8x32xbf16>
    %233 = vector.shape_cast %232 : vector<1x8x32xbf16> to vector<8x32xbf16>
    %234 = vector.shape_cast %231 : vector<8x32xbf16> to vector<1x8x32xbf16>
    tpu.vector_store %arg7[%c13_62, %c0_63, %c0_64], %234 {strides = array<i32>} : memref<16x8x32xbf16, #tpu.memory_space<vmem>>, vector<1x8x32xbf16>,
    %235 = vector.shape_cast %227 : vector<8x1xi1> to vector<8x1xi1>
    %236 = vector.broadcast %235 : vector<8x1xi1> to vector<8x32xi1>
    %237 = arith.select %236, %224, %161 : vector<8x32xi1>, vector<8x32xbf16>
    %238 = vector.shape_cast %227 : vector<8x1xi1> to vector<8x1xi1>
    %239 = vector.broadcast %238 : vector<8x1xi1> to vector<8x32xi1>
    %240 = arith.select %239, %221, %164 : vector<8x32xi1>, vector<8x32xf32>
    %c3 = arith.constant 3 : index
    %c0_65 = arith.constant 0 : index
    %c0_66 = arith.constant 0 : index
    %241 = vector.load %arg2[%c3, %c0_65, %c0_66] : memref<16x8x128xbf16, #tpu.memory_space<vmem>>, vector<1x8x128xbf16>
    %242 = vector.shape_cast %241 : vector<1x8x128xbf16> to vector<8x128xbf16>
    %243 = arith.extf %242 : vector<8x128xbf16> to vector<8x128xf32>
    %cst_67 = arith.constant dense<0.000000e+00> : vector<8x128xf32>
    %244 = tpu.matmul %199, %4, %cst_67 {dimension_numbers = #tpu.dot_dimension_numbers<[1], [0], [0], [1], [0, 0, 1, 1], [], []>} : vector<8x32xbf16>, vector<32x128xbf16>, vector<8x128xf32> -> vector<8x128xf32>
    %245 = arith.addf %243, %244 : vector<8x128xf32>
    %246 = vector.extract_strided_slice %245 {offsets = [0, 0], sizes = [8, 96], strides = [1, 1]} : vector<8x128xf32> to vector<8x96xf32>
    %247 = arith.negf %246 : vector<8x96xf32>
    %248 = math.exp %247 : vector<8x96xf32>
    %cst_68 = arith.constant 1.000000e+00 : f32
    %249 = vector.broadcast %cst_68 : f32 to vector<8x96xf32>
    %250 = arith.addf %249, %248 : vector<8x96xf32>
    %251 = arith.divf %249, %250 : vector<8x96xf32>
    %252 = vector.extract_strided_slice %251 {offsets = [0, 0], sizes = [8, 32], strides = [1, 1]} : vector<8x96xf32> to vector<8x32xf32>
    %253 = vector.extract_strided_slice %251 {offsets = [0, 32], sizes = [8, 32], strides = [1, 1]} : vector<8x96xf32> to vector<8x32xf32>
    %254 = vector.extract_strided_slice %251 {offsets = [0, 64], sizes = [8, 32], strides = [1, 1]} : vector<8x96xf32> to vector<8x32xf32>
    %255 = vector.extract_strided_slice %245 {offsets = [0, 96], sizes = [8, 32], strides = [1, 1]} : vector<8x128xf32> to vector<8x32xf32>
    %256 = math.tanh %255 : vector<8x32xf32>
    %257 = arith.mulf %253, %202 : vector<8x32xf32>
    %258 = arith.mulf %252, %256 : vector<8x32xf32>
    %259 = arith.addf %257, %258 : vector<8x32xf32>
    %260 = math.tanh %259 : vector<8x32xf32>
    %261 = arith.mulf %254, %260 : vector<8x32xf32>
    %262 = arith.truncf %261 : vector<8x32xf32> to vector<8x32xbf16>
    %c3_i32 = arith.constant 3 : i32
    %263 = arith.addi %10, %c3_i32 : i32
    %264 = vector.broadcast %263 : i32 to vector<8x1xi32>
    %265 = arith.cmpi slt, %264, %3 : vector<8x1xi32>
    %cst_69 = arith.constant 0.000000e+00 : bf16
    %266 = vector.broadcast %cst_69 : bf16 to vector<8x32xbf16>
    %267 = vector.shape_cast %265 : vector<8x1xi1> to vector<8x1xi1>
    %268 = vector.broadcast %267 : vector<8x1xi1> to vector<8x32xi1>
    %269 = arith.select %268, %262, %266 : vector<8x32xi1>, vector<8x32xbf16>
    %c3_70 = arith.constant 3 : index
    %c0_71 = arith.constant 0 : index
    %c0_72 = arith.constant 0 : index
    %270 = vector.load %arg6[%c3_70, %c0_71, %c0_72] : memref<16x8x32xbf16, #tpu.memory_space<vmem>>, vector<1x8x32xbf16>
    %271 = vector.shape_cast %270 : vector<1x8x32xbf16> to vector<8x32xbf16>
    %272 = vector.shape_cast %269 : vector<8x32xbf16> to vector<1x8x32xbf16>
    tpu.vector_store %arg6[%c3_70, %c0_71, %c0_72], %272 {strides = array<i32>} : memref<16x8x32xbf16, #tpu.memory_space<vmem>>, vector<1x8x32xbf16>,
    %273 = vector.shape_cast %265 : vector<8x1xi1> to vector<8x1xi1>
    %274 = vector.broadcast %273 : vector<8x1xi1> to vector<8x32xi1>
    %275 = arith.select %274, %262, %199 : vector<8x32xi1>, vector<8x32xbf16>
    %276 = vector.shape_cast %265 : vector<8x1xi1> to vector<8x1xi1>
    %277 = vector.broadcast %276 : vector<8x1xi1> to vector<8x32xi1>
    %278 = arith.select %277, %259, %202 : vector<8x32xi1>, vector<8x32xf32>
    %c12 = arith.constant 12 : index
    %c0_73 = arith.constant 0 : index
    %c0_74 = arith.constant 0 : index
    %279 = vector.load %arg3[%c12, %c0_73, %c0_74] : memref<16x8x128xbf16, #tpu.memory_space<vmem>>, vector<1x8x128xbf16>
    %280 = vector.shape_cast %279 : vector<1x8x128xbf16> to vector<8x128xbf16>
    %281 = arith.extf %280 : vector<8x128xbf16> to vector<8x128xf32>
    %cst_75 = arith.constant dense<0.000000e+00> : vector<8x128xf32>
    %282 = tpu.matmul %237, %5, %cst_75 {dimension_numbers = #tpu.dot_dimension_numbers<[1], [0], [0], [1], [0, 0, 1, 1], [], []>} : vector<8x32xbf16>, vector<32x128xbf16>, vector<8x128xf32> -> vector<8x128xf32>
    %283 = arith.addf %281, %282 : vector<8x128xf32>
    %284 = vector.extract_strided_slice %283 {offsets = [0, 0], sizes = [8, 96], strides = [1, 1]} : vector<8x128xf32> to vector<8x96xf32>
    %285 = arith.negf %284 : vector<8x96xf32>
    %286 = math.exp %285 : vector<8x96xf32>
    %cst_76 = arith.constant 1.000000e+00 : f32
    %287 = vector.broadcast %cst_76 : f32 to vector<8x96xf32>
    %288 = arith.addf %287, %286 : vector<8x96xf32>
    %289 = arith.divf %287, %288 : vector<8x96xf32>
    %290 = vector.extract_strided_slice %289 {offsets = [0, 0], sizes = [8, 32], strides = [1, 1]} : vector<8x96xf32> to vector<8x32xf32>
    %291 = vector.extract_strided_slice %289 {offsets = [0, 32], sizes = [8, 32], strides = [1, 1]} : vector<8x96xf32> to vector<8x32xf32>
    %292 = vector.extract_strided_slice %289 {offsets = [0, 64], sizes = [8, 32], strides = [1, 1]} : vector<8x96xf32> to vector<8x32xf32>
    %293 = vector.extract_strided_slice %283 {offsets = [0, 96], sizes = [8, 32], strides = [1, 1]} : vector<8x128xf32> to vector<8x32xf32>
    %294 = math.tanh %293 : vector<8x32xf32>
    %295 = arith.mulf %291, %240 : vector<8x32xf32>
    %296 = arith.mulf %290, %294 : vector<8x32xf32>
    %297 = arith.addf %295, %296 : vector<8x32xf32>
    %298 = math.tanh %297 : vector<8x32xf32>
    %299 = arith.mulf %292, %298 : vector<8x32xf32>
    %300 = arith.truncf %299 : vector<8x32xf32> to vector<8x32xbf16>
    %c12_i32 = arith.constant 12 : i32
    %301 = arith.addi %12, %c12_i32 : i32
    %302 = vector.broadcast %301 : i32 to vector<8x1xi32>
    %303 = arith.cmpi slt, %302, %3 : vector<8x1xi32>
    %cst_77 = arith.constant 0.000000e+00 : bf16
    %304 = vector.broadcast %cst_77 : bf16 to vector<8x32xbf16>
    %305 = vector.shape_cast %303 : vector<8x1xi1> to vector<8x1xi1>
    %306 = vector.broadcast %305 : vector<8x1xi1> to vector<8x32xi1>
    %307 = arith.select %306, %300, %304 : vector<8x32xi1>, vector<8x32xbf16>
    %c12_78 = arith.constant 12 : index
    %c0_79 = arith.constant 0 : index
    %c0_80 = arith.constant 0 : index
    %308 = vector.load %arg7[%c12_78, %c0_79, %c0_80] : memref<16x8x32xbf16, #tpu.memory_space<vmem>>, vector<1x8x32xbf16>
    %309 = vector.shape_cast %308 : vector<1x8x32xbf16> to vector<8x32xbf16>
    %310 = vector.shape_cast %307 : vector<8x32xbf16> to vector<1x8x32xbf16>
    tpu.vector_store %arg7[%c12_78, %c0_79, %c0_80], %310 {strides = array<i32>} : memref<16x8x32xbf16, #tpu.memory_space<vmem>>, vector<1x8x32xbf16>,
    %311 = vector.shape_cast %303 : vector<8x1xi1> to vector<8x1xi1>
    %312 = vector.broadcast %311 : vector<8x1xi1> to vector<8x32xi1>
    %313 = arith.select %312, %300, %237 : vector<8x32xi1>, vector<8x32xbf16>
    %314 = vector.shape_cast %303 : vector<8x1xi1> to vector<8x1xi1>
    %315 = vector.broadcast %314 : vector<8x1xi1> to vector<8x32xi1>
    %316 = arith.select %315, %297, %240 : vector<8x32xi1>, vector<8x32xf32>
    %c4 = arith.constant 4 : index
    %c0_81 = arith.constant 0 : index
    %c0_82 = arith.constant 0 : index
    %317 = vector.load %arg2[%c4, %c0_81, %c0_82] : memref<16x8x128xbf16, #tpu.memory_space<vmem>>, vector<1x8x128xbf16>
    %318 = vector.shape_cast %317 : vector<1x8x128xbf16> to vector<8x128xbf16>
    %319 = arith.extf %318 : vector<8x128xbf16> to vector<8x128xf32>
    %cst_83 = arith.constant dense<0.000000e+00> : vector<8x128xf32>
    %320 = tpu.matmul %275, %4, %cst_83 {dimension_numbers = #tpu.dot_dimension_numbers<[1], [0], [0], [1], [0, 0, 1, 1], [], []>} : vector<8x32xbf16>, vector<32x128xbf16>, vector<8x128xf32> -> vector<8x128xf32>
    %321 = arith.addf %319, %320 : vector<8x128xf32>
    %322 = vector.extract_strided_slice %321 {offsets = [0, 0], sizes = [8, 96], strides = [1, 1]} : vector<8x128xf32> to vector<8x96xf32>
    %323 = arith.negf %322 : vector<8x96xf32>
    %324 = math.exp %323 : vector<8x96xf32>
    %cst_84 = arith.constant 1.000000e+00 : f32
    %325 = vector.broadcast %cst_84 : f32 to vector<8x96xf32>
    %326 = arith.addf %325, %324 : vector<8x96xf32>
    %327 = arith.divf %325, %326 : vector<8x96xf32>
    %328 = vector.extract_strided_slice %327 {offsets = [0, 0], sizes = [8, 32], strides = [1, 1]} : vector<8x96xf32> to vector<8x32xf32>
    %329 = vector.extract_strided_slice %327 {offsets = [0, 32], sizes = [8, 32], strides = [1, 1]} : vector<8x96xf32> to vector<8x32xf32>
    %330 = vector.extract_strided_slice %327 {offsets = [0, 64], sizes = [8, 32], strides = [1, 1]} : vector<8x96xf32> to vector<8x32xf32>
    %331 = vector.extract_strided_slice %321 {offsets = [0, 96], sizes = [8, 32], strides = [1, 1]} : vector<8x128xf32> to vector<8x32xf32>
    %332 = math.tanh %331 : vector<8x32xf32>
    %333 = arith.mulf %329, %278 : vector<8x32xf32>
    %334 = arith.mulf %328, %332 : vector<8x32xf32>
    %335 = arith.addf %333, %334 : vector<8x32xf32>
    %336 = math.tanh %335 : vector<8x32xf32>
    %337 = arith.mulf %330, %336 : vector<8x32xf32>
    %338 = arith.truncf %337 : vector<8x32xf32> to vector<8x32xbf16>
    %c4_i32 = arith.constant 4 : i32
    %339 = arith.addi %10, %c4_i32 : i32
    %340 = vector.broadcast %339 : i32 to vector<8x1xi32>
    %341 = arith.cmpi slt, %340, %3 : vector<8x1xi32>
    %cst_85 = arith.constant 0.000000e+00 : bf16
    %342 = vector.broadcast %cst_85 : bf16 to vector<8x32xbf16>
    %343 = vector.shape_cast %341 : vector<8x1xi1> to vector<8x1xi1>
    %344 = vector.broadcast %343 : vector<8x1xi1> to vector<8x32xi1>
    %345 = arith.select %344, %338, %342 : vector<8x32xi1>, vector<8x32xbf16>
    %c4_86 = arith.constant 4 : index
    %c0_87 = arith.constant 0 : index
    %c0_88 = arith.constant 0 : index
    %346 = vector.load %arg6[%c4_86, %c0_87, %c0_88] : memref<16x8x32xbf16, #tpu.memory_space<vmem>>, vector<1x8x32xbf16>
    %347 = vector.shape_cast %346 : vector<1x8x32xbf16> to vector<8x32xbf16>
    %348 = vector.shape_cast %345 : vector<8x32xbf16> to vector<1x8x32xbf16>
    tpu.vector_store %arg6[%c4_86, %c0_87, %c0_88], %348 {strides = array<i32>} : memref<16x8x32xbf16, #tpu.memory_space<vmem>>, vector<1x8x32xbf16>,
    %349 = vector.shape_cast %341 : vector<8x1xi1> to vector<8x1xi1>
    %350 = vector.broadcast %349 : vector<8x1xi1> to vector<8x32xi1>
    %351 = arith.select %350, %338, %275 : vector<8x32xi1>, vector<8x32xbf16>
    %352 = vector.shape_cast %341 : vector<8x1xi1> to vector<8x1xi1>
    %353 = vector.broadcast %352 : vector<8x1xi1> to vector<8x32xi1>
    %354 = arith.select %353, %335, %278 : vector<8x32xi1>, vector<8x32xf32>
    %c11 = arith.constant 11 : index
    %c0_89 = arith.constant 0 : index
    %c0_90 = arith.constant 0 : index
    %355 = vector.load %arg3[%c11, %c0_89, %c0_90] : memref<16x8x128xbf16, #tpu.memory_space<vmem>>, vector<1x8x128xbf16>
    %356 = vector.shape_cast %355 : vector<1x8x128xbf16> to vector<8x128xbf16>
    %357 = arith.extf %356 : vector<8x128xbf16> to vector<8x128xf32>
    %cst_91 = arith.constant dense<0.000000e+00> : vector<8x128xf32>
    %358 = tpu.matmul %313, %5, %cst_91 {dimension_numbers = #tpu.dot_dimension_numbers<[1], [0], [0], [1], [0, 0, 1, 1], [], []>} : vector<8x32xbf16>, vector<32x128xbf16>, vector<8x128xf32> -> vector<8x128xf32>
    %359 = arith.addf %357, %358 : vector<8x128xf32>
    %360 = vector.extract_strided_slice %359 {offsets = [0, 0], sizes = [8, 96], strides = [1, 1]} : vector<8x128xf32> to vector<8x96xf32>
    %361 = arith.negf %360 : vector<8x96xf32>
    %362 = math.exp %361 : vector<8x96xf32>
    %cst_92 = arith.constant 1.000000e+00 : f32
    %363 = vector.broadcast %cst_92 : f32 to vector<8x96xf32>
    %364 = arith.addf %363, %362 : vector<8x96xf32>
    %365 = arith.divf %363, %364 : vector<8x96xf32>
    %366 = vector.extract_strided_slice %365 {offsets = [0, 0], sizes = [8, 32], strides = [1, 1]} : vector<8x96xf32> to vector<8x32xf32>
    %367 = vector.extract_strided_slice %365 {offsets = [0, 32], sizes = [8, 32], strides = [1, 1]} : vector<8x96xf32> to vector<8x32xf32>
    %368 = vector.extract_strided_slice %365 {offsets = [0, 64], sizes = [8, 32], strides = [1, 1]} : vector<8x96xf32> to vector<8x32xf32>
    %369 = vector.extract_strided_slice %359 {offsets = [0, 96], sizes = [8, 32], strides = [1, 1]} : vector<8x128xf32> to vector<8x32xf32>
    %370 = math.tanh %369 : vector<8x32xf32>
    %371 = arith.mulf %367, %316 : vector<8x32xf32>
    %372 = arith.mulf %366, %370 : vector<8x32xf32>
    %373 = arith.addf %371, %372 : vector<8x32xf32>
    %374 = math.tanh %373 : vector<8x32xf32>
    %375 = arith.mulf %368, %374 : vector<8x32xf32>
    %376 = arith.truncf %375 : vector<8x32xf32> to vector<8x32xbf16>
    %c11_i32 = arith.constant 11 : i32
    %377 = arith.addi %12, %c11_i32 : i32
    %378 = vector.broadcast %377 : i32 to vector<8x1xi32>
    %379 = arith.cmpi slt, %378, %3 : vector<8x1xi32>
    %cst_93 = arith.constant 0.000000e+00 : bf16
    %380 = vector.broadcast %cst_93 : bf16 to vector<8x32xbf16>
    %381 = vector.shape_cast %379 : vector<8x1xi1> to vector<8x1xi1>
    %382 = vector.broadcast %381 : vector<8x1xi1> to vector<8x32xi1>
    %383 = arith.select %382, %376, %380 : vector<8x32xi1>, vector<8x32xbf16>
    %c11_94 = arith.constant 11 : index
    %c0_95 = arith.constant 0 : index
    %c0_96 = arith.constant 0 : index
    %384 = vector.load %arg7[%c11_94, %c0_95, %c0_96] : memref<16x8x32xbf16, #tpu.memory_space<vmem>>, vector<1x8x32xbf16>
    %385 = vector.shape_cast %384 : vector<1x8x32xbf16> to vector<8x32xbf16>
    %386 = vector.shape_cast %383 : vector<8x32xbf16> to vector<1x8x32xbf16>
    tpu.vector_store %arg7[%c11_94, %c0_95, %c0_96], %386 {strides = array<i32>} : memref<16x8x32xbf16, #tpu.memory_space<vmem>>, vector<1x8x32xbf16>,
    %387 = vector.shape_cast %379 : vector<8x1xi1> to vector<8x1xi1>
    %388 = vector.broadcast %387 : vector<8x1xi1> to vector<8x32xi1>
    %389 = arith.select %388, %376, %313 : vector<8x32xi1>, vector<8x32xbf16>
    %390 = vector.shape_cast %379 : vector<8x1xi1> to vector<8x1xi1>
    %391 = vector.broadcast %390 : vector<8x1xi1> to vector<8x32xi1>
    %392 = arith.select %391, %373, %316 : vector<8x32xi1>, vector<8x32xf32>
    %c5 = arith.constant 5 : index
    %c0_97 = arith.constant 0 : index
    %c0_98 = arith.constant 0 : index
    %393 = vector.load %arg2[%c5, %c0_97, %c0_98] : memref<16x8x128xbf16, #tpu.memory_space<vmem>>, vector<1x8x128xbf16>
    %394 = vector.shape_cast %393 : vector<1x8x128xbf16> to vector<8x128xbf16>
    %395 = arith.extf %394 : vector<8x128xbf16> to vector<8x128xf32>
    %cst_99 = arith.constant dense<0.000000e+00> : vector<8x128xf32>
    %396 = tpu.matmul %351, %4, %cst_99 {dimension_numbers = #tpu.dot_dimension_numbers<[1], [0], [0], [1], [0, 0, 1, 1], [], []>} : vector<8x32xbf16>, vector<32x128xbf16>, vector<8x128xf32> -> vector<8x128xf32>
    %397 = arith.addf %395, %396 : vector<8x128xf32>
    %398 = vector.extract_strided_slice %397 {offsets = [0, 0], sizes = [8, 96], strides = [1, 1]} : vector<8x128xf32> to vector<8x96xf32>
    %399 = arith.negf %398 : vector<8x96xf32>
    %400 = math.exp %399 : vector<8x96xf32>
    %cst_100 = arith.constant 1.000000e+00 : f32
    %401 = vector.broadcast %cst_100 : f32 to vector<8x96xf32>
    %402 = arith.addf %401, %400 : vector<8x96xf32>
    %403 = arith.divf %401, %402 : vector<8x96xf32>
    %404 = vector.extract_strided_slice %403 {offsets = [0, 0], sizes = [8, 32], strides = [1, 1]} : vector<8x96xf32> to vector<8x32xf32>
    %405 = vector.extract_strided_slice %403 {offsets = [0, 32], sizes = [8, 32], strides = [1, 1]} : vector<8x96xf32> to vector<8x32xf32>
    %406 = vector.extract_strided_slice %403 {offsets = [0, 64], sizes = [8, 32], strides = [1, 1]} : vector<8x96xf32> to vector<8x32xf32>
    %407 = vector.extract_strided_slice %397 {offsets = [0, 96], sizes = [8, 32], strides = [1, 1]} : vector<8x128xf32> to vector<8x32xf32>
    %408 = math.tanh %407 : vector<8x32xf32>
    %409 = arith.mulf %405, %354 : vector<8x32xf32>
    %410 = arith.mulf %404, %408 : vector<8x32xf32>
    %411 = arith.addf %409, %410 : vector<8x32xf32>
    %412 = math.tanh %411 : vector<8x32xf32>
    %413 = arith.mulf %406, %412 : vector<8x32xf32>
    %414 = arith.truncf %413 : vector<8x32xf32> to vector<8x32xbf16>
    %c5_i32 = arith.constant 5 : i32
    %415 = arith.addi %10, %c5_i32 : i32
    %416 = vector.broadcast %415 : i32 to vector<8x1xi32>
    %417 = arith.cmpi slt, %416, %3 : vector<8x1xi32>
    %cst_101 = arith.constant 0.000000e+00 : bf16
    %418 = vector.broadcast %cst_101 : bf16 to vector<8x32xbf16>
    %419 = vector.shape_cast %417 : vector<8x1xi1> to vector<8x1xi1>
    %420 = vector.broadcast %419 : vector<8x1xi1> to vector<8x32xi1>
    %421 = arith.select %420, %414, %418 : vector<8x32xi1>, vector<8x32xbf16>
    %c5_102 = arith.constant 5 : index
    %c0_103 = arith.constant 0 : index
    %c0_104 = arith.constant 0 : index
    %422 = vector.load %arg6[%c5_102, %c0_103, %c0_104] : memref<16x8x32xbf16, #tpu.memory_space<vmem>>, vector<1x8x32xbf16>
    %423 = vector.shape_cast %422 : vector<1x8x32xbf16> to vector<8x32xbf16>
    %424 = vector.shape_cast %421 : vector<8x32xbf16> to vector<1x8x32xbf16>
    tpu.vector_store %arg6[%c5_102, %c0_103, %c0_104], %424 {strides = array<i32>} : memref<16x8x32xbf16, #tpu.memory_space<vmem>>, vector<1x8x32xbf16>,
    %425 = vector.shape_cast %417 : vector<8x1xi1> to vector<8x1xi1>
    %426 = vector.broadcast %425 : vector<8x1xi1> to vector<8x32xi1>
    %427 = arith.select %426, %414, %351 : vector<8x32xi1>, vector<8x32xbf16>
    %428 = vector.shape_cast %417 : vector<8x1xi1> to vector<8x1xi1>
    %429 = vector.broadcast %428 : vector<8x1xi1> to vector<8x32xi1>
    %430 = arith.select %429, %411, %354 : vector<8x32xi1>, vector<8x32xf32>
    %c10 = arith.constant 10 : index
    %c0_105 = arith.constant 0 : index
    %c0_106 = arith.constant 0 : index
    %431 = vector.load %arg3[%c10, %c0_105, %c0_106] : memref<16x8x128xbf16, #tpu.memory_space<vmem>>, vector<1x8x128xbf16>
    %432 = vector.shape_cast %431 : vector<1x8x128xbf16> to vector<8x128xbf16>
    %433 = arith.extf %432 : vector<8x128xbf16> to vector<8x128xf32>
    %cst_107 = arith.constant dense<0.000000e+00> : vector<8x128xf32>
    %434 = tpu.matmul %389, %5, %cst_107 {dimension_numbers = #tpu.dot_dimension_numbers<[1], [0], [0], [1], [0, 0, 1, 1], [], []>} : vector<8x32xbf16>, vector<32x128xbf16>, vector<8x128xf32> -> vector<8x128xf32>
    %435 = arith.addf %433, %434 : vector<8x128xf32>
    %436 = vector.extract_strided_slice %435 {offsets = [0, 0], sizes = [8, 96], strides = [1, 1]} : vector<8x128xf32> to vector<8x96xf32>
    %437 = arith.negf %436 : vector<8x96xf32>
    %438 = math.exp %437 : vector<8x96xf32>
    %cst_108 = arith.constant 1.000000e+00 : f32
    %439 = vector.broadcast %cst_108 : f32 to vector<8x96xf32>
    %440 = arith.addf %439, %438 : vector<8x96xf32>
    %441 = arith.divf %439, %440 : vector<8x96xf32>
    %442 = vector.extract_strided_slice %441 {offsets = [0, 0], sizes = [8, 32], strides = [1, 1]} : vector<8x96xf32> to vector<8x32xf32>
    %443 = vector.extract_strided_slice %441 {offsets = [0, 32], sizes = [8, 32], strides = [1, 1]} : vector<8x96xf32> to vector<8x32xf32>
    %444 = vector.extract_strided_slice %441 {offsets = [0, 64], sizes = [8, 32], strides = [1, 1]} : vector<8x96xf32> to vector<8x32xf32>
    %445 = vector.extract_strided_slice %435 {offsets = [0, 96], sizes = [8, 32], strides = [1, 1]} : vector<8x128xf32> to vector<8x32xf32>
    %446 = math.tanh %445 : vector<8x32xf32>
    %447 = arith.mulf %443, %392 : vector<8x32xf32>
    %448 = arith.mulf %442, %446 : vector<8x32xf32>
    %449 = arith.addf %447, %448 : vector<8x32xf32>
    %450 = math.tanh %449 : vector<8x32xf32>
    %451 = arith.mulf %444, %450 : vector<8x32xf32>
    %452 = arith.truncf %451 : vector<8x32xf32> to vector<8x32xbf16>
    %c10_i32 = arith.constant 10 : i32
    %453 = arith.addi %12, %c10_i32 : i32
    %454 = vector.broadcast %453 : i32 to vector<8x1xi32>
    %455 = arith.cmpi slt, %454, %3 : vector<8x1xi32>
    %cst_109 = arith.constant 0.000000e+00 : bf16
    %456 = vector.broadcast %cst_109 : bf16 to vector<8x32xbf16>
    %457 = vector.shape_cast %455 : vector<8x1xi1> to vector<8x1xi1>
    %458 = vector.broadcast %457 : vector<8x1xi1> to vector<8x32xi1>
    %459 = arith.select %458, %452, %456 : vector<8x32xi1>, vector<8x32xbf16>
    %c10_110 = arith.constant 10 : index
    %c0_111 = arith.constant 0 : index
    %c0_112 = arith.constant 0 : index
    %460 = vector.load %arg7[%c10_110, %c0_111, %c0_112] : memref<16x8x32xbf16, #tpu.memory_space<vmem>>, vector<1x8x32xbf16>
    %461 = vector.shape_cast %460 : vector<1x8x32xbf16> to vector<8x32xbf16>
    %462 = vector.shape_cast %459 : vector<8x32xbf16> to vector<1x8x32xbf16>
    tpu.vector_store %arg7[%c10_110, %c0_111, %c0_112], %462 {strides = array<i32>} : memref<16x8x32xbf16, #tpu.memory_space<vmem>>, vector<1x8x32xbf16>,
    %463 = vector.shape_cast %455 : vector<8x1xi1> to vector<8x1xi1>
    %464 = vector.broadcast %463 : vector<8x1xi1> to vector<8x32xi1>
    %465 = arith.select %464, %452, %389 : vector<8x32xi1>, vector<8x32xbf16>
    %466 = vector.shape_cast %455 : vector<8x1xi1> to vector<8x1xi1>
    %467 = vector.broadcast %466 : vector<8x1xi1> to vector<8x32xi1>
    %468 = arith.select %467, %449, %392 : vector<8x32xi1>, vector<8x32xf32>
    %c6 = arith.constant 6 : index
    %c0_113 = arith.constant 0 : index
    %c0_114 = arith.constant 0 : index
    %469 = vector.load %arg2[%c6, %c0_113, %c0_114] : memref<16x8x128xbf16, #tpu.memory_space<vmem>>, vector<1x8x128xbf16>
    %470 = vector.shape_cast %469 : vector<1x8x128xbf16> to vector<8x128xbf16>
    %471 = arith.extf %470 : vector<8x128xbf16> to vector<8x128xf32>
    %cst_115 = arith.constant dense<0.000000e+00> : vector<8x128xf32>
    %472 = tpu.matmul %427, %4, %cst_115 {dimension_numbers = #tpu.dot_dimension_numbers<[1], [0], [0], [1], [0, 0, 1, 1], [], []>} : vector<8x32xbf16>, vector<32x128xbf16>, vector<8x128xf32> -> vector<8x128xf32>
    %473 = arith.addf %471, %472 : vector<8x128xf32>
    %474 = vector.extract_strided_slice %473 {offsets = [0, 0], sizes = [8, 96], strides = [1, 1]} : vector<8x128xf32> to vector<8x96xf32>
    %475 = arith.negf %474 : vector<8x96xf32>
    %476 = math.exp %475 : vector<8x96xf32>
    %cst_116 = arith.constant 1.000000e+00 : f32
    %477 = vector.broadcast %cst_116 : f32 to vector<8x96xf32>
    %478 = arith.addf %477, %476 : vector<8x96xf32>
    %479 = arith.divf %477, %478 : vector<8x96xf32>
    %480 = vector.extract_strided_slice %479 {offsets = [0, 0], sizes = [8, 32], strides = [1, 1]} : vector<8x96xf32> to vector<8x32xf32>
    %481 = vector.extract_strided_slice %479 {offsets = [0, 32], sizes = [8, 32], strides = [1, 1]} : vector<8x96xf32> to vector<8x32xf32>
    %482 = vector.extract_strided_slice %479 {offsets = [0, 64], sizes = [8, 32], strides = [1, 1]} : vector<8x96xf32> to vector<8x32xf32>
    %483 = vector.extract_strided_slice %473 {offsets = [0, 96], sizes = [8, 32], strides = [1, 1]} : vector<8x128xf32> to vector<8x32xf32>
    %484 = math.tanh %483 : vector<8x32xf32>
    %485 = arith.mulf %481, %430 : vector<8x32xf32>
    %486 = arith.mulf %480, %484 : vector<8x32xf32>
    %487 = arith.addf %485, %486 : vector<8x32xf32>
    %488 = math.tanh %487 : vector<8x32xf32>
    %489 = arith.mulf %482, %488 : vector<8x32xf32>
    %490 = arith.truncf %489 : vector<8x32xf32> to vector<8x32xbf16>
    %c6_i32 = arith.constant 6 : i32
    %491 = arith.addi %10, %c6_i32 : i32
    %492 = vector.broadcast %491 : i32 to vector<8x1xi32>
    %493 = arith.cmpi slt, %492, %3 : vector<8x1xi32>
    %cst_117 = arith.constant 0.000000e+00 : bf16
    %494 = vector.broadcast %cst_117 : bf16 to vector<8x32xbf16>
    %495 = vector.shape_cast %493 : vector<8x1xi1> to vector<8x1xi1>
    %496 = vector.broadcast %495 : vector<8x1xi1> to vector<8x32xi1>
    %497 = arith.select %496, %490, %494 : vector<8x32xi1>, vector<8x32xbf16>
    %c6_118 = arith.constant 6 : index
    %c0_119 = arith.constant 0 : index
    %c0_120 = arith.constant 0 : index
    %498 = vector.load %arg6[%c6_118, %c0_119, %c0_120] : memref<16x8x32xbf16, #tpu.memory_space<vmem>>, vector<1x8x32xbf16>
    %499 = vector.shape_cast %498 : vector<1x8x32xbf16> to vector<8x32xbf16>
    %500 = vector.shape_cast %497 : vector<8x32xbf16> to vector<1x8x32xbf16>
    tpu.vector_store %arg6[%c6_118, %c0_119, %c0_120], %500 {strides = array<i32>} : memref<16x8x32xbf16, #tpu.memory_space<vmem>>, vector<1x8x32xbf16>,
    %501 = vector.shape_cast %493 : vector<8x1xi1> to vector<8x1xi1>
    %502 = vector.broadcast %501 : vector<8x1xi1> to vector<8x32xi1>
    %503 = arith.select %502, %490, %427 : vector<8x32xi1>, vector<8x32xbf16>
    %504 = vector.shape_cast %493 : vector<8x1xi1> to vector<8x1xi1>
    %505 = vector.broadcast %504 : vector<8x1xi1> to vector<8x32xi1>
    %506 = arith.select %505, %487, %430 : vector<8x32xi1>, vector<8x32xf32>
    %c9 = arith.constant 9 : index
    %c0_121 = arith.constant 0 : index
    %c0_122 = arith.constant 0 : index
    %507 = vector.load %arg3[%c9, %c0_121, %c0_122] : memref<16x8x128xbf16, #tpu.memory_space<vmem>>, vector<1x8x128xbf16>
    %508 = vector.shape_cast %507 : vector<1x8x128xbf16> to vector<8x128xbf16>
    %509 = arith.extf %508 : vector<8x128xbf16> to vector<8x128xf32>
    %cst_123 = arith.constant dense<0.000000e+00> : vector<8x128xf32>
    %510 = tpu.matmul %465, %5, %cst_123 {dimension_numbers = #tpu.dot_dimension_numbers<[1], [0], [0], [1], [0, 0, 1, 1], [], []>} : vector<8x32xbf16>, vector<32x128xbf16>, vector<8x128xf32> -> vector<8x128xf32>
    %511 = arith.addf %509, %510 : vector<8x128xf32>
    %512 = vector.extract_strided_slice %511 {offsets = [0, 0], sizes = [8, 96], strides = [1, 1]} : vector<8x128xf32> to vector<8x96xf32>
    %513 = arith.negf %512 : vector<8x96xf32>
    %514 = math.exp %513 : vector<8x96xf32>
    %cst_124 = arith.constant 1.000000e+00 : f32
    %515 = vector.broadcast %cst_124 : f32 to vector<8x96xf32>
    %516 = arith.addf %515, %514 : vector<8x96xf32>
    %517 = arith.divf %515, %516 : vector<8x96xf32>
    %518 = vector.extract_strided_slice %517 {offsets = [0, 0], sizes = [8, 32], strides = [1, 1]} : vector<8x96xf32> to vector<8x32xf32>
    %519 = vector.extract_strided_slice %517 {offsets = [0, 32], sizes = [8, 32], strides = [1, 1]} : vector<8x96xf32> to vector<8x32xf32>
    %520 = vector.extract_strided_slice %517 {offsets = [0, 64], sizes = [8, 32], strides = [1, 1]} : vector<8x96xf32> to vector<8x32xf32>
    %521 = vector.extract_strided_slice %511 {offsets = [0, 96], sizes = [8, 32], strides = [1, 1]} : vector<8x128xf32> to vector<8x32xf32>
    %522 = math.tanh %521 : vector<8x32xf32>
    %523 = arith.mulf %519, %468 : vector<8x32xf32>
    %524 = arith.mulf %518, %522 : vector<8x32xf32>
    %525 = arith.addf %523, %524 : vector<8x32xf32>
    %526 = math.tanh %525 : vector<8x32xf32>
    %527 = arith.mulf %520, %526 : vector<8x32xf32>
    %528 = arith.truncf %527 : vector<8x32xf32> to vector<8x32xbf16>
    %c9_i32 = arith.constant 9 : i32
    %529 = arith.addi %12, %c9_i32 : i32
    %530 = vector.broadcast %529 : i32 to vector<8x1xi32>
    %531 = arith.cmpi slt, %530, %3 : vector<8x1xi32>
    %cst_125 = arith.constant 0.000000e+00 : bf16
    %532 = vector.broadcast %cst_125 : bf16 to vector<8x32xbf16>
    %533 = vector.shape_cast %531 : vector<8x1xi1> to vector<8x1xi1>
    %534 = vector.broadcast %533 : vector<8x1xi1> to vector<8x32xi1>
    %535 = arith.select %534, %528, %532 : vector<8x32xi1>, vector<8x32xbf16>
    %c9_126 = arith.constant 9 : index
    %c0_127 = arith.constant 0 : index
    %c0_128 = arith.constant 0 : index
    %536 = vector.load %arg7[%c9_126, %c0_127, %c0_128] : memref<16x8x32xbf16, #tpu.memory_space<vmem>>, vector<1x8x32xbf16>
    %537 = vector.shape_cast %536 : vector<1x8x32xbf16> to vector<8x32xbf16>
    %538 = vector.shape_cast %535 : vector<8x32xbf16> to vector<1x8x32xbf16>
    tpu.vector_store %arg7[%c9_126, %c0_127, %c0_128], %538 {strides = array<i32>} : memref<16x8x32xbf16, #tpu.memory_space<vmem>>, vector<1x8x32xbf16>,
    %539 = vector.shape_cast %531 : vector<8x1xi1> to vector<8x1xi1>
    %540 = vector.broadcast %539 : vector<8x1xi1> to vector<8x32xi1>
    %541 = arith.select %540, %528, %465 : vector<8x32xi1>, vector<8x32xbf16>
    %542 = vector.shape_cast %531 : vector<8x1xi1> to vector<8x1xi1>
    %543 = vector.broadcast %542 : vector<8x1xi1> to vector<8x32xi1>
    %544 = arith.select %543, %525, %468 : vector<8x32xi1>, vector<8x32xf32>
    %c7 = arith.constant 7 : index
    %c0_129 = arith.constant 0 : index
    %c0_130 = arith.constant 0 : index
    %545 = vector.load %arg2[%c7, %c0_129, %c0_130] : memref<16x8x128xbf16, #tpu.memory_space<vmem>>, vector<1x8x128xbf16>
    %546 = vector.shape_cast %545 : vector<1x8x128xbf16> to vector<8x128xbf16>
    %547 = arith.extf %546 : vector<8x128xbf16> to vector<8x128xf32>
    %cst_131 = arith.constant dense<0.000000e+00> : vector<8x128xf32>
    %548 = tpu.matmul %503, %4, %cst_131 {dimension_numbers = #tpu.dot_dimension_numbers<[1], [0], [0], [1], [0, 0, 1, 1], [], []>} : vector<8x32xbf16>, vector<32x128xbf16>, vector<8x128xf32> -> vector<8x128xf32>
    %549 = arith.addf %547, %548 : vector<8x128xf32>
    %550 = vector.extract_strided_slice %549 {offsets = [0, 0], sizes = [8, 96], strides = [1, 1]} : vector<8x128xf32> to vector<8x96xf32>
    %551 = arith.negf %550 : vector<8x96xf32>
    %552 = math.exp %551 : vector<8x96xf32>
    %cst_132 = arith.constant 1.000000e+00 : f32
    %553 = vector.broadcast %cst_132 : f32 to vector<8x96xf32>
    %554 = arith.addf %553, %552 : vector<8x96xf32>
    %555 = arith.divf %553, %554 : vector<8x96xf32>
    %556 = vector.extract_strided_slice %555 {offsets = [0, 0], sizes = [8, 32], strides = [1, 1]} : vector<8x96xf32> to vector<8x32xf32>
    %557 = vector.extract_strided_slice %555 {offsets = [0, 32], sizes = [8, 32], strides = [1, 1]} : vector<8x96xf32> to vector<8x32xf32>
    %558 = vector.extract_strided_slice %555 {offsets = [0, 64], sizes = [8, 32], strides = [1, 1]} : vector<8x96xf32> to vector<8x32xf32>
    %559 = vector.extract_strided_slice %549 {offsets = [0, 96], sizes = [8, 32], strides = [1, 1]} : vector<8x128xf32> to vector<8x32xf32>
    %560 = math.tanh %559 : vector<8x32xf32>
    %561 = arith.mulf %557, %506 : vector<8x32xf32>
    %562 = arith.mulf %556, %560 : vector<8x32xf32>
    %563 = arith.addf %561, %562 : vector<8x32xf32>
    %564 = math.tanh %563 : vector<8x32xf32>
    %565 = arith.mulf %558, %564 : vector<8x32xf32>
    %566 = arith.truncf %565 : vector<8x32xf32> to vector<8x32xbf16>
    %c7_i32 = arith.constant 7 : i32
    %567 = arith.addi %10, %c7_i32 : i32
    %568 = vector.broadcast %567 : i32 to vector<8x1xi32>
    %569 = arith.cmpi slt, %568, %3 : vector<8x1xi32>
    %cst_133 = arith.constant 0.000000e+00 : bf16
    %570 = vector.broadcast %cst_133 : bf16 to vector<8x32xbf16>
    %571 = vector.shape_cast %569 : vector<8x1xi1> to vector<8x1xi1>
    %572 = vector.broadcast %571 : vector<8x1xi1> to vector<8x32xi1>
    %573 = arith.select %572, %566, %570 : vector<8x32xi1>, vector<8x32xbf16>
    %c7_134 = arith.constant 7 : index
    %c0_135 = arith.constant 0 : index
    %c0_136 = arith.constant 0 : index
    %574 = vector.load %arg6[%c7_134, %c0_135, %c0_136] : memref<16x8x32xbf16, #tpu.memory_space<vmem>>, vector<1x8x32xbf16>
    %575 = vector.shape_cast %574 : vector<1x8x32xbf16> to vector<8x32xbf16>
    %576 = vector.shape_cast %573 : vector<8x32xbf16> to vector<1x8x32xbf16>
    tpu.vector_store %arg6[%c7_134, %c0_135, %c0_136], %576 {strides = array<i32>} : memref<16x8x32xbf16, #tpu.memory_space<vmem>>, vector<1x8x32xbf16>,
    %577 = vector.shape_cast %569 : vector<8x1xi1> to vector<8x1xi1>
    %578 = vector.broadcast %577 : vector<8x1xi1> to vector<8x32xi1>
    %579 = arith.select %578, %566, %503 : vector<8x32xi1>, vector<8x32xbf16>
    %580 = vector.shape_cast %569 : vector<8x1xi1> to vector<8x1xi1>
    %581 = vector.broadcast %580 : vector<8x1xi1> to vector<8x32xi1>
    %582 = arith.select %581, %563, %506 : vector<8x32xi1>, vector<8x32xf32>
    %c8 = arith.constant 8 : index
    %c0_137 = arith.constant 0 : index
    %c0_138 = arith.constant 0 : index
    %583 = vector.load %arg3[%c8, %c0_137, %c0_138] : memref<16x8x128xbf16, #tpu.memory_space<vmem>>, vector<1x8x128xbf16>
    %584 = vector.shape_cast %583 : vector<1x8x128xbf16> to vector<8x128xbf16>
    %585 = arith.extf %584 : vector<8x128xbf16> to vector<8x128xf32>
    %cst_139 = arith.constant dense<0.000000e+00> : vector<8x128xf32>
    %586 = tpu.matmul %541, %5, %cst_139 {dimension_numbers = #tpu.dot_dimension_numbers<[1], [0], [0], [1], [0, 0, 1, 1], [], []>} : vector<8x32xbf16>, vector<32x128xbf16>, vector<8x128xf32> -> vector<8x128xf32>
    %587 = arith.addf %585, %586 : vector<8x128xf32>
    %588 = vector.extract_strided_slice %587 {offsets = [0, 0], sizes = [8, 96], strides = [1, 1]} : vector<8x128xf32> to vector<8x96xf32>
    %589 = arith.negf %588 : vector<8x96xf32>
    %590 = math.exp %589 : vector<8x96xf32>
    %cst_140 = arith.constant 1.000000e+00 : f32
    %591 = vector.broadcast %cst_140 : f32 to vector<8x96xf32>
    %592 = arith.addf %591, %590 : vector<8x96xf32>
    %593 = arith.divf %591, %592 : vector<8x96xf32>
    %594 = vector.extract_strided_slice %593 {offsets = [0, 0], sizes = [8, 32], strides = [1, 1]} : vector<8x96xf32> to vector<8x32xf32>
    %595 = vector.extract_strided_slice %593 {offsets = [0, 32], sizes = [8, 32], strides = [1, 1]} : vector<8x96xf32> to vector<8x32xf32>
    %596 = vector.extract_strided_slice %593 {offsets = [0, 64], sizes = [8, 32], strides = [1, 1]} : vector<8x96xf32> to vector<8x32xf32>
    %597 = vector.extract_strided_slice %587 {offsets = [0, 96], sizes = [8, 32], strides = [1, 1]} : vector<8x128xf32> to vector<8x32xf32>
    %598 = math.tanh %597 : vector<8x32xf32>
    %599 = arith.mulf %595, %544 : vector<8x32xf32>
    %600 = arith.mulf %594, %598 : vector<8x32xf32>
    %601 = arith.addf %599, %600 : vector<8x32xf32>
    %602 = math.tanh %601 : vector<8x32xf32>
    %603 = arith.mulf %596, %602 : vector<8x32xf32>
    %604 = arith.truncf %603 : vector<8x32xf32> to vector<8x32xbf16>
    %c8_i32 = arith.constant 8 : i32
    %605 = arith.addi %12, %c8_i32 : i32
    %606 = vector.broadcast %605 : i32 to vector<8x1xi32>
    %607 = arith.cmpi slt, %606, %3 : vector<8x1xi32>
    %cst_141 = arith.constant 0.000000e+00 : bf16
    %608 = vector.broadcast %cst_141 : bf16 to vector<8x32xbf16>
    %609 = vector.shape_cast %607 : vector<8x1xi1> to vector<8x1xi1>
    %610 = vector.broadcast %609 : vector<8x1xi1> to vector<8x32xi1>
    %611 = arith.select %610, %604, %608 : vector<8x32xi1>, vector<8x32xbf16>
    %c8_142 = arith.constant 8 : index
    %c0_143 = arith.constant 0 : index
    %c0_144 = arith.constant 0 : index
    %612 = vector.load %arg7[%c8_142, %c0_143, %c0_144] : memref<16x8x32xbf16, #tpu.memory_space<vmem>>, vector<1x8x32xbf16>
    %613 = vector.shape_cast %612 : vector<1x8x32xbf16> to vector<8x32xbf16>
    %614 = vector.shape_cast %611 : vector<8x32xbf16> to vector<1x8x32xbf16>
    tpu.vector_store %arg7[%c8_142, %c0_143, %c0_144], %614 {strides = array<i32>} : memref<16x8x32xbf16, #tpu.memory_space<vmem>>, vector<1x8x32xbf16>,
    %615 = vector.shape_cast %607 : vector<8x1xi1> to vector<8x1xi1>
    %616 = vector.broadcast %615 : vector<8x1xi1> to vector<8x32xi1>
    %617 = arith.select %616, %604, %541 : vector<8x32xi1>, vector<8x32xbf16>
    %618 = vector.shape_cast %607 : vector<8x1xi1> to vector<8x1xi1>
    %619 = vector.broadcast %618 : vector<8x1xi1> to vector<8x32xi1>
    %620 = arith.select %619, %601, %544 : vector<8x32xi1>, vector<8x32xf32>
    %c8_145 = arith.constant 8 : index
    %c0_146 = arith.constant 0 : index
    %c0_147 = arith.constant 0 : index
    %621 = vector.load %arg2[%c8_145, %c0_146, %c0_147] : memref<16x8x128xbf16, #tpu.memory_space<vmem>>, vector<1x8x128xbf16>
    %622 = vector.shape_cast %621 : vector<1x8x128xbf16> to vector<8x128xbf16>
    %623 = arith.extf %622 : vector<8x128xbf16> to vector<8x128xf32>
    %cst_148 = arith.constant dense<0.000000e+00> : vector<8x128xf32>
    %624 = tpu.matmul %579, %4, %cst_148 {dimension_numbers = #tpu.dot_dimension_numbers<[1], [0], [0], [1], [0, 0, 1, 1], [], []>} : vector<8x32xbf16>, vector<32x128xbf16>, vector<8x128xf32> -> vector<8x128xf32>
    %625 = arith.addf %623, %624 : vector<8x128xf32>
    %626 = vector.extract_strided_slice %625 {offsets = [0, 0], sizes = [8, 96], strides = [1, 1]} : vector<8x128xf32> to vector<8x96xf32>
    %627 = arith.negf %626 : vector<8x96xf32>
    %628 = math.exp %627 : vector<8x96xf32>
    %cst_149 = arith.constant 1.000000e+00 : f32
    %629 = vector.broadcast %cst_149 : f32 to vector<8x96xf32>
    %630 = arith.addf %629, %628 : vector<8x96xf32>
    %631 = arith.divf %629, %630 : vector<8x96xf32>
    %632 = vector.extract_strided_slice %631 {offsets = [0, 0], sizes = [8, 32], strides = [1, 1]} : vector<8x96xf32> to vector<8x32xf32>
    %633 = vector.extract_strided_slice %631 {offsets = [0, 32], sizes = [8, 32], strides = [1, 1]} : vector<8x96xf32> to vector<8x32xf32>
    %634 = vector.extract_strided_slice %631 {offsets = [0, 64], sizes = [8, 32], strides = [1, 1]} : vector<8x96xf32> to vector<8x32xf32>
    %635 = vector.extract_strided_slice %625 {offsets = [0, 96], sizes = [8, 32], strides = [1, 1]} : vector<8x128xf32> to vector<8x32xf32>
    %636 = math.tanh %635 : vector<8x32xf32>
    %637 = arith.mulf %633, %582 : vector<8x32xf32>
    %638 = arith.mulf %632, %636 : vector<8x32xf32>
    %639 = arith.addf %637, %638 : vector<8x32xf32>
    %640 = math.tanh %639 : vector<8x32xf32>
    %641 = arith.mulf %634, %640 : vector<8x32xf32>
    %642 = arith.truncf %641 : vector<8x32xf32> to vector<8x32xbf16>
    %c8_i32_150 = arith.constant 8 : i32
    %643 = arith.addi %10, %c8_i32_150 : i32
    %644 = vector.broadcast %643 : i32 to vector<8x1xi32>
    %645 = arith.cmpi slt, %644, %3 : vector<8x1xi32>
    %cst_151 = arith.constant 0.000000e+00 : bf16
    %646 = vector.broadcast %cst_151 : bf16 to vector<8x32xbf16>
    %647 = vector.shape_cast %645 : vector<8x1xi1> to vector<8x1xi1>
    %648 = vector.broadcast %647 : vector<8x1xi1> to vector<8x32xi1>
    %649 = arith.select %648, %642, %646 : vector<8x32xi1>, vector<8x32xbf16>
    %c8_152 = arith.constant 8 : index
    %c0_153 = arith.constant 0 : index
    %c0_154 = arith.constant 0 : index
    %650 = vector.load %arg6[%c8_152, %c0_153, %c0_154] : memref<16x8x32xbf16, #tpu.memory_space<vmem>>, vector<1x8x32xbf16>
    %651 = vector.shape_cast %650 : vector<1x8x32xbf16> to vector<8x32xbf16>
    %652 = vector.shape_cast %649 : vector<8x32xbf16> to vector<1x8x32xbf16>
    tpu.vector_store %arg6[%c8_152, %c0_153, %c0_154], %652 {strides = array<i32>} : memref<16x8x32xbf16, #tpu.memory_space<vmem>>, vector<1x8x32xbf16>,
    %653 = vector.shape_cast %645 : vector<8x1xi1> to vector<8x1xi1>
    %654 = vector.broadcast %653 : vector<8x1xi1> to vector<8x32xi1>
    %655 = arith.select %654, %642, %579 : vector<8x32xi1>, vector<8x32xbf16>
    %656 = vector.shape_cast %645 : vector<8x1xi1> to vector<8x1xi1>
    %657 = vector.broadcast %656 : vector<8x1xi1> to vector<8x32xi1>
    %658 = arith.select %657, %639, %582 : vector<8x32xi1>, vector<8x32xf32>
    %c7_155 = arith.constant 7 : index
    %c0_156 = arith.constant 0 : index
    %c0_157 = arith.constant 0 : index
    %659 = vector.load %arg3[%c7_155, %c0_156, %c0_157] : memref<16x8x128xbf16, #tpu.memory_space<vmem>>, vector<1x8x128xbf16>
    %660 = vector.shape_cast %659 : vector<1x8x128xbf16> to vector<8x128xbf16>
    %661 = arith.extf %660 : vector<8x128xbf16> to vector<8x128xf32>
    %cst_158 = arith.constant dense<0.000000e+00> : vector<8x128xf32>
    %662 = tpu.matmul %617, %5, %cst_158 {dimension_numbers = #tpu.dot_dimension_numbers<[1], [0], [0], [1], [0, 0, 1, 1], [], []>} : vector<8x32xbf16>, vector<32x128xbf16>, vector<8x128xf32> -> vector<8x128xf32>
    %663 = arith.addf %661, %662 : vector<8x128xf32>
    %664 = vector.extract_strided_slice %663 {offsets = [0, 0], sizes = [8, 96], strides = [1, 1]} : vector<8x128xf32> to vector<8x96xf32>
    %665 = arith.negf %664 : vector<8x96xf32>
    %666 = math.exp %665 : vector<8x96xf32>
    %cst_159 = arith.constant 1.000000e+00 : f32
    %667 = vector.broadcast %cst_159 : f32 to vector<8x96xf32>
    %668 = arith.addf %667, %666 : vector<8x96xf32>
    %669 = arith.divf %667, %668 : vector<8x96xf32>
    %670 = vector.extract_strided_slice %669 {offsets = [0, 0], sizes = [8, 32], strides = [1, 1]} : vector<8x96xf32> to vector<8x32xf32>
    %671 = vector.extract_strided_slice %669 {offsets = [0, 32], sizes = [8, 32], strides = [1, 1]} : vector<8x96xf32> to vector<8x32xf32>
    %672 = vector.extract_strided_slice %669 {offsets = [0, 64], sizes = [8, 32], strides = [1, 1]} : vector<8x96xf32> to vector<8x32xf32>
    %673 = vector.extract_strided_slice %663 {offsets = [0, 96], sizes = [8, 32], strides = [1, 1]} : vector<8x128xf32> to vector<8x32xf32>
    %674 = math.tanh %673 : vector<8x32xf32>
    %675 = arith.mulf %671, %620 : vector<8x32xf32>
    %676 = arith.mulf %670, %674 : vector<8x32xf32>
    %677 = arith.addf %675, %676 : vector<8x32xf32>
    %678 = math.tanh %677 : vector<8x32xf32>
    %679 = arith.mulf %672, %678 : vector<8x32xf32>
    %680 = arith.truncf %679 : vector<8x32xf32> to vector<8x32xbf16>
    %c7_i32_160 = arith.constant 7 : i32
    %681 = arith.addi %12, %c7_i32_160 : i32
    %682 = vector.broadcast %681 : i32 to vector<8x1xi32>
    %683 = arith.cmpi slt, %682, %3 : vector<8x1xi32>
    %cst_161 = arith.constant 0.000000e+00 : bf16
    %684 = vector.broadcast %cst_161 : bf16 to vector<8x32xbf16>
    %685 = vector.shape_cast %683 : vector<8x1xi1> to vector<8x1xi1>
    %686 = vector.broadcast %685 : vector<8x1xi1> to vector<8x32xi1>
    %687 = arith.select %686, %680, %684 : vector<8x32xi1>, vector<8x32xbf16>
    %c7_162 = arith.constant 7 : index
    %c0_163 = arith.constant 0 : index
    %c0_164 = arith.constant 0 : index
    %688 = vector.load %arg7[%c7_162, %c0_163, %c0_164] : memref<16x8x32xbf16, #tpu.memory_space<vmem>>, vector<1x8x32xbf16>
    %689 = vector.shape_cast %688 : vector<1x8x32xbf16> to vector<8x32xbf16>
    %690 = vector.shape_cast %687 : vector<8x32xbf16> to vector<1x8x32xbf16>
    tpu.vector_store %arg7[%c7_162, %c0_163, %c0_164], %690 {strides = array<i32>} : memref<16x8x32xbf16, #tpu.memory_space<vmem>>, vector<1x8x32xbf16>,
    %691 = vector.shape_cast %683 : vector<8x1xi1> to vector<8x1xi1>
    %692 = vector.broadcast %691 : vector<8x1xi1> to vector<8x32xi1>
    %693 = arith.select %692, %680, %617 : vector<8x32xi1>, vector<8x32xbf16>
    %694 = vector.shape_cast %683 : vector<8x1xi1> to vector<8x1xi1>
    %695 = vector.broadcast %694 : vector<8x1xi1> to vector<8x32xi1>
    %696 = arith.select %695, %677, %620 : vector<8x32xi1>, vector<8x32xf32>
    %c9_165 = arith.constant 9 : index
    %c0_166 = arith.constant 0 : index
    %c0_167 = arith.constant 0 : index
    %697 = vector.load %arg2[%c9_165, %c0_166, %c0_167] : memref<16x8x128xbf16, #tpu.memory_space<vmem>>, vector<1x8x128xbf16>
    %698 = vector.shape_cast %697 : vector<1x8x128xbf16> to vector<8x128xbf16>
    %699 = arith.extf %698 : vector<8x128xbf16> to vector<8x128xf32>
    %cst_168 = arith.constant dense<0.000000e+00> : vector<8x128xf32>
    %700 = tpu.matmul %655, %4, %cst_168 {dimension_numbers = #tpu.dot_dimension_numbers<[1], [0], [0], [1], [0, 0, 1, 1], [], []>} : vector<8x32xbf16>, vector<32x128xbf16>, vector<8x128xf32> -> vector<8x128xf32>
    %701 = arith.addf %699, %700 : vector<8x128xf32>
    %702 = vector.extract_strided_slice %701 {offsets = [0, 0], sizes = [8, 96], strides = [1, 1]} : vector<8x128xf32> to vector<8x96xf32>
    %703 = arith.negf %702 : vector<8x96xf32>
    %704 = math.exp %703 : vector<8x96xf32>
    %cst_169 = arith.constant 1.000000e+00 : f32
    %705 = vector.broadcast %cst_169 : f32 to vector<8x96xf32>
    %706 = arith.addf %705, %704 : vector<8x96xf32>
    %707 = arith.divf %705, %706 : vector<8x96xf32>
    %708 = vector.extract_strided_slice %707 {offsets = [0, 0], sizes = [8, 32], strides = [1, 1]} : vector<8x96xf32> to vector<8x32xf32>
    %709 = vector.extract_strided_slice %707 {offsets = [0, 32], sizes = [8, 32], strides = [1, 1]} : vector<8x96xf32> to vector<8x32xf32>
    %710 = vector.extract_strided_slice %707 {offsets = [0, 64], sizes = [8, 32], strides = [1, 1]} : vector<8x96xf32> to vector<8x32xf32>
    %711 = vector.extract_strided_slice %701 {offsets = [0, 96], sizes = [8, 32], strides = [1, 1]} : vector<8x128xf32> to vector<8x32xf32>
    %712 = math.tanh %711 : vector<8x32xf32>
    %713 = arith.mulf %709, %658 : vector<8x32xf32>
    %714 = arith.mulf %708, %712 : vector<8x32xf32>
    %715 = arith.addf %713, %714 : vector<8x32xf32>
    %716 = math.tanh %715 : vector<8x32xf32>
    %717 = arith.mulf %710, %716 : vector<8x32xf32>
    %718 = arith.truncf %717 : vector<8x32xf32> to vector<8x32xbf16>
    %c9_i32_170 = arith.constant 9 : i32
    %719 = arith.addi %10, %c9_i32_170 : i32
    %720 = vector.broadcast %719 : i32 to vector<8x1xi32>
    %721 = arith.cmpi slt, %720, %3 : vector<8x1xi32>
    %cst_171 = arith.constant 0.000000e+00 : bf16
    %722 = vector.broadcast %cst_171 : bf16 to vector<8x32xbf16>
    %723 = vector.shape_cast %721 : vector<8x1xi1> to vector<8x1xi1>
    %724 = vector.broadcast %723 : vector<8x1xi1> to vector<8x32xi1>
    %725 = arith.select %724, %718, %722 : vector<8x32xi1>, vector<8x32xbf16>
    %c9_172 = arith.constant 9 : index
    %c0_173 = arith.constant 0 : index
    %c0_174 = arith.constant 0 : index
    %726 = vector.load %arg6[%c9_172, %c0_173, %c0_174] : memref<16x8x32xbf16, #tpu.memory_space<vmem>>, vector<1x8x32xbf16>
    %727 = vector.shape_cast %726 : vector<1x8x32xbf16> to vector<8x32xbf16>
    %728 = vector.shape_cast %725 : vector<8x32xbf16> to vector<1x8x32xbf16>
    tpu.vector_store %arg6[%c9_172, %c0_173, %c0_174], %728 {strides = array<i32>} : memref<16x8x32xbf16, #tpu.memory_space<vmem>>, vector<1x8x32xbf16>,
    %729 = vector.shape_cast %721 : vector<8x1xi1> to vector<8x1xi1>
    %730 = vector.broadcast %729 : vector<8x1xi1> to vector<8x32xi1>
    %731 = arith.select %730, %718, %655 : vector<8x32xi1>, vector<8x32xbf16>
    %732 = vector.shape_cast %721 : vector<8x1xi1> to vector<8x1xi1>
    %733 = vector.broadcast %732 : vector<8x1xi1> to vector<8x32xi1>
    %734 = arith.select %733, %715, %658 : vector<8x32xi1>, vector<8x32xf32>
    %c6_175 = arith.constant 6 : index
    %c0_176 = arith.constant 0 : index
    %c0_177 = arith.constant 0 : index
    %735 = vector.load %arg3[%c6_175, %c0_176, %c0_177] : memref<16x8x128xbf16, #tpu.memory_space<vmem>>, vector<1x8x128xbf16>
    %736 = vector.shape_cast %735 : vector<1x8x128xbf16> to vector<8x128xbf16>
    %737 = arith.extf %736 : vector<8x128xbf16> to vector<8x128xf32>
    %cst_178 = arith.constant dense<0.000000e+00> : vector<8x128xf32>
    %738 = tpu.matmul %693, %5, %cst_178 {dimension_numbers = #tpu.dot_dimension_numbers<[1], [0], [0], [1], [0, 0, 1, 1], [], []>} : vector<8x32xbf16>, vector<32x128xbf16>, vector<8x128xf32> -> vector<8x128xf32>
    %739 = arith.addf %737, %738 : vector<8x128xf32>
    %740 = vector.extract_strided_slice %739 {offsets = [0, 0], sizes = [8, 96], strides = [1, 1]} : vector<8x128xf32> to vector<8x96xf32>
    %741 = arith.negf %740 : vector<8x96xf32>
    %742 = math.exp %741 : vector<8x96xf32>
    %cst_179 = arith.constant 1.000000e+00 : f32
    %743 = vector.broadcast %cst_179 : f32 to vector<8x96xf32>
    %744 = arith.addf %743, %742 : vector<8x96xf32>
    %745 = arith.divf %743, %744 : vector<8x96xf32>
    %746 = vector.extract_strided_slice %745 {offsets = [0, 0], sizes = [8, 32], strides = [1, 1]} : vector<8x96xf32> to vector<8x32xf32>
    %747 = vector.extract_strided_slice %745 {offsets = [0, 32], sizes = [8, 32], strides = [1, 1]} : vector<8x96xf32> to vector<8x32xf32>
    %748 = vector.extract_strided_slice %745 {offsets = [0, 64], sizes = [8, 32], strides = [1, 1]} : vector<8x96xf32> to vector<8x32xf32>
    %749 = vector.extract_strided_slice %739 {offsets = [0, 96], sizes = [8, 32], strides = [1, 1]} : vector<8x128xf32> to vector<8x32xf32>
    %750 = math.tanh %749 : vector<8x32xf32>
    %751 = arith.mulf %747, %696 : vector<8x32xf32>
    %752 = arith.mulf %746, %750 : vector<8x32xf32>
    %753 = arith.addf %751, %752 : vector<8x32xf32>
    %754 = math.tanh %753 : vector<8x32xf32>
    %755 = arith.mulf %748, %754 : vector<8x32xf32>
    %756 = arith.truncf %755 : vector<8x32xf32> to vector<8x32xbf16>
    %c6_i32_180 = arith.constant 6 : i32
    %757 = arith.addi %12, %c6_i32_180 : i32
    %758 = vector.broadcast %757 : i32 to vector<8x1xi32>
    %759 = arith.cmpi slt, %758, %3 : vector<8x1xi32>
    %cst_181 = arith.constant 0.000000e+00 : bf16
    %760 = vector.broadcast %cst_181 : bf16 to vector<8x32xbf16>
    %761 = vector.shape_cast %759 : vector<8x1xi1> to vector<8x1xi1>
    %762 = vector.broadcast %761 : vector<8x1xi1> to vector<8x32xi1>
    %763 = arith.select %762, %756, %760 : vector<8x32xi1>, vector<8x32xbf16>
    %c6_182 = arith.constant 6 : index
    %c0_183 = arith.constant 0 : index
    %c0_184 = arith.constant 0 : index
    %764 = vector.load %arg7[%c6_182, %c0_183, %c0_184] : memref<16x8x32xbf16, #tpu.memory_space<vmem>>, vector<1x8x32xbf16>
    %765 = vector.shape_cast %764 : vector<1x8x32xbf16> to vector<8x32xbf16>
    %766 = vector.shape_cast %763 : vector<8x32xbf16> to vector<1x8x32xbf16>
    tpu.vector_store %arg7[%c6_182, %c0_183, %c0_184], %766 {strides = array<i32>} : memref<16x8x32xbf16, #tpu.memory_space<vmem>>, vector<1x8x32xbf16>,
    %767 = vector.shape_cast %759 : vector<8x1xi1> to vector<8x1xi1>
    %768 = vector.broadcast %767 : vector<8x1xi1> to vector<8x32xi1>
    %769 = arith.select %768, %756, %693 : vector<8x32xi1>, vector<8x32xbf16>
    %770 = vector.shape_cast %759 : vector<8x1xi1> to vector<8x1xi1>
    %771 = vector.broadcast %770 : vector<8x1xi1> to vector<8x32xi1>
    %772 = arith.select %771, %753, %696 : vector<8x32xi1>, vector<8x32xf32>
    %c10_185 = arith.constant 10 : index
    %c0_186 = arith.constant 0 : index
    %c0_187 = arith.constant 0 : index
    %773 = vector.load %arg2[%c10_185, %c0_186, %c0_187] : memref<16x8x128xbf16, #tpu.memory_space<vmem>>, vector<1x8x128xbf16>
    %774 = vector.shape_cast %773 : vector<1x8x128xbf16> to vector<8x128xbf16>
    %775 = arith.extf %774 : vector<8x128xbf16> to vector<8x128xf32>
    %cst_188 = arith.constant dense<0.000000e+00> : vector<8x128xf32>
    %776 = tpu.matmul %731, %4, %cst_188 {dimension_numbers = #tpu.dot_dimension_numbers<[1], [0], [0], [1], [0, 0, 1, 1], [], []>} : vector<8x32xbf16>, vector<32x128xbf16>, vector<8x128xf32> -> vector<8x128xf32>
    %777 = arith.addf %775, %776 : vector<8x128xf32>
    %778 = vector.extract_strided_slice %777 {offsets = [0, 0], sizes = [8, 96], strides = [1, 1]} : vector<8x128xf32> to vector<8x96xf32>
    %779 = arith.negf %778 : vector<8x96xf32>
    %780 = math.exp %779 : vector<8x96xf32>
    %cst_189 = arith.constant 1.000000e+00 : f32
    %781 = vector.broadcast %cst_189 : f32 to vector<8x96xf32>
    %782 = arith.addf %781, %780 : vector<8x96xf32>
    %783 = arith.divf %781, %782 : vector<8x96xf32>
    %784 = vector.extract_strided_slice %783 {offsets = [0, 0], sizes = [8, 32], strides = [1, 1]} : vector<8x96xf32> to vector<8x32xf32>
    %785 = vector.extract_strided_slice %783 {offsets = [0, 32], sizes = [8, 32], strides = [1, 1]} : vector<8x96xf32> to vector<8x32xf32>
    %786 = vector.extract_strided_slice %783 {offsets = [0, 64], sizes = [8, 32], strides = [1, 1]} : vector<8x96xf32> to vector<8x32xf32>
    %787 = vector.extract_strided_slice %777 {offsets = [0, 96], sizes = [8, 32], strides = [1, 1]} : vector<8x128xf32> to vector<8x32xf32>
    %788 = math.tanh %787 : vector<8x32xf32>
    %789 = arith.mulf %785, %734 : vector<8x32xf32>
    %790 = arith.mulf %784, %788 : vector<8x32xf32>
    %791 = arith.addf %789, %790 : vector<8x32xf32>
    %792 = math.tanh %791 : vector<8x32xf32>
    %793 = arith.mulf %786, %792 : vector<8x32xf32>
    %794 = arith.truncf %793 : vector<8x32xf32> to vector<8x32xbf16>
    %c10_i32_190 = arith.constant 10 : i32
    %795 = arith.addi %10, %c10_i32_190 : i32
    %796 = vector.broadcast %795 : i32 to vector<8x1xi32>
    %797 = arith.cmpi slt, %796, %3 : vector<8x1xi32>
    %cst_191 = arith.constant 0.000000e+00 : bf16
    %798 = vector.broadcast %cst_191 : bf16 to vector<8x32xbf16>
    %799 = vector.shape_cast %797 : vector<8x1xi1> to vector<8x1xi1>
    %800 = vector.broadcast %799 : vector<8x1xi1> to vector<8x32xi1>
    %801 = arith.select %800, %794, %798 : vector<8x32xi1>, vector<8x32xbf16>
    %c10_192 = arith.constant 10 : index
    %c0_193 = arith.constant 0 : index
    %c0_194 = arith.constant 0 : index
    %802 = vector.load %arg6[%c10_192, %c0_193, %c0_194] : memref<16x8x32xbf16, #tpu.memory_space<vmem>>, vector<1x8x32xbf16>
    %803 = vector.shape_cast %802 : vector<1x8x32xbf16> to vector<8x32xbf16>
    %804 = vector.shape_cast %801 : vector<8x32xbf16> to vector<1x8x32xbf16>
    tpu.vector_store %arg6[%c10_192, %c0_193, %c0_194], %804 {strides = array<i32>} : memref<16x8x32xbf16, #tpu.memory_space<vmem>>, vector<1x8x32xbf16>,
    %805 = vector.shape_cast %797 : vector<8x1xi1> to vector<8x1xi1>
    %806 = vector.broadcast %805 : vector<8x1xi1> to vector<8x32xi1>
    %807 = arith.select %806, %794, %731 : vector<8x32xi1>, vector<8x32xbf16>
    %808 = vector.shape_cast %797 : vector<8x1xi1> to vector<8x1xi1>
    %809 = vector.broadcast %808 : vector<8x1xi1> to vector<8x32xi1>
    %810 = arith.select %809, %791, %734 : vector<8x32xi1>, vector<8x32xf32>
    %c5_195 = arith.constant 5 : index
    %c0_196 = arith.constant 0 : index
    %c0_197 = arith.constant 0 : index
    %811 = vector.load %arg3[%c5_195, %c0_196, %c0_197] : memref<16x8x128xbf16, #tpu.memory_space<vmem>>, vector<1x8x128xbf16>
    %812 = vector.shape_cast %811 : vector<1x8x128xbf16> to vector<8x128xbf16>
    %813 = arith.extf %812 : vector<8x128xbf16> to vector<8x128xf32>
    %cst_198 = arith.constant dense<0.000000e+00> : vector<8x128xf32>
    %814 = tpu.matmul %769, %5, %cst_198 {dimension_numbers = #tpu.dot_dimension_numbers<[1], [0], [0], [1], [0, 0, 1, 1], [], []>} : vector<8x32xbf16>, vector<32x128xbf16>, vector<8x128xf32> -> vector<8x128xf32>
    %815 = arith.addf %813, %814 : vector<8x128xf32>
    %816 = vector.extract_strided_slice %815 {offsets = [0, 0], sizes = [8, 96], strides = [1, 1]} : vector<8x128xf32> to vector<8x96xf32>
    %817 = arith.negf %816 : vector<8x96xf32>
    %818 = math.exp %817 : vector<8x96xf32>
    %cst_199 = arith.constant 1.000000e+00 : f32
    %819 = vector.broadcast %cst_199 : f32 to vector<8x96xf32>
    %820 = arith.addf %819, %818 : vector<8x96xf32>
    %821 = arith.divf %819, %820 : vector<8x96xf32>
    %822 = vector.extract_strided_slice %821 {offsets = [0, 0], sizes = [8, 32], strides = [1, 1]} : vector<8x96xf32> to vector<8x32xf32>
    %823 = vector.extract_strided_slice %821 {offsets = [0, 32], sizes = [8, 32], strides = [1, 1]} : vector<8x96xf32> to vector<8x32xf32>
    %824 = vector.extract_strided_slice %821 {offsets = [0, 64], sizes = [8, 32], strides = [1, 1]} : vector<8x96xf32> to vector<8x32xf32>
    %825 = vector.extract_strided_slice %815 {offsets = [0, 96], sizes = [8, 32], strides = [1, 1]} : vector<8x128xf32> to vector<8x32xf32>
    %826 = math.tanh %825 : vector<8x32xf32>
    %827 = arith.mulf %823, %772 : vector<8x32xf32>
    %828 = arith.mulf %822, %826 : vector<8x32xf32>
    %829 = arith.addf %827, %828 : vector<8x32xf32>
    %830 = math.tanh %829 : vector<8x32xf32>
    %831 = arith.mulf %824, %830 : vector<8x32xf32>
    %832 = arith.truncf %831 : vector<8x32xf32> to vector<8x32xbf16>
    %c5_i32_200 = arith.constant 5 : i32
    %833 = arith.addi %12, %c5_i32_200 : i32
    %834 = vector.broadcast %833 : i32 to vector<8x1xi32>
    %835 = arith.cmpi slt, %834, %3 : vector<8x1xi32>
    %cst_201 = arith.constant 0.000000e+00 : bf16
    %836 = vector.broadcast %cst_201 : bf16 to vector<8x32xbf16>
    %837 = vector.shape_cast %835 : vector<8x1xi1> to vector<8x1xi1>
    %838 = vector.broadcast %837 : vector<8x1xi1> to vector<8x32xi1>
    %839 = arith.select %838, %832, %836 : vector<8x32xi1>, vector<8x32xbf16>
    %c5_202 = arith.constant 5 : index
    %c0_203 = arith.constant 0 : index
    %c0_204 = arith.constant 0 : index
    %840 = vector.load %arg7[%c5_202, %c0_203, %c0_204] : memref<16x8x32xbf16, #tpu.memory_space<vmem>>, vector<1x8x32xbf16>
    %841 = vector.shape_cast %840 : vector<1x8x32xbf16> to vector<8x32xbf16>
    %842 = vector.shape_cast %839 : vector<8x32xbf16> to vector<1x8x32xbf16>
    tpu.vector_store %arg7[%c5_202, %c0_203, %c0_204], %842 {strides = array<i32>} : memref<16x8x32xbf16, #tpu.memory_space<vmem>>, vector<1x8x32xbf16>,
    %843 = vector.shape_cast %835 : vector<8x1xi1> to vector<8x1xi1>
    %844 = vector.broadcast %843 : vector<8x1xi1> to vector<8x32xi1>
    %845 = arith.select %844, %832, %769 : vector<8x32xi1>, vector<8x32xbf16>
    %846 = vector.shape_cast %835 : vector<8x1xi1> to vector<8x1xi1>
    %847 = vector.broadcast %846 : vector<8x1xi1> to vector<8x32xi1>
    %848 = arith.select %847, %829, %772 : vector<8x32xi1>, vector<8x32xf32>
    %c11_205 = arith.constant 11 : index
    %c0_206 = arith.constant 0 : index
    %c0_207 = arith.constant 0 : index
    %849 = vector.load %arg2[%c11_205, %c0_206, %c0_207] : memref<16x8x128xbf16, #tpu.memory_space<vmem>>, vector<1x8x128xbf16>
    %850 = vector.shape_cast %849 : vector<1x8x128xbf16> to vector<8x128xbf16>
    %851 = arith.extf %850 : vector<8x128xbf16> to vector<8x128xf32>
    %cst_208 = arith.constant dense<0.000000e+00> : vector<8x128xf32>
    %852 = tpu.matmul %807, %4, %cst_208 {dimension_numbers = #tpu.dot_dimension_numbers<[1], [0], [0], [1], [0, 0, 1, 1], [], []>} : vector<8x32xbf16>, vector<32x128xbf16>, vector<8x128xf32> -> vector<8x128xf32>
    %853 = arith.addf %851, %852 : vector<8x128xf32>
    %854 = vector.extract_strided_slice %853 {offsets = [0, 0], sizes = [8, 96], strides = [1, 1]} : vector<8x128xf32> to vector<8x96xf32>
    %855 = arith.negf %854 : vector<8x96xf32>
    %856 = math.exp %855 : vector<8x96xf32>
    %cst_209 = arith.constant 1.000000e+00 : f32
    %857 = vector.broadcast %cst_209 : f32 to vector<8x96xf32>
    %858 = arith.addf %857, %856 : vector<8x96xf32>
    %859 = arith.divf %857, %858 : vector<8x96xf32>
    %860 = vector.extract_strided_slice %859 {offsets = [0, 0], sizes = [8, 32], strides = [1, 1]} : vector<8x96xf32> to vector<8x32xf32>
    %861 = vector.extract_strided_slice %859 {offsets = [0, 32], sizes = [8, 32], strides = [1, 1]} : vector<8x96xf32> to vector<8x32xf32>
    %862 = vector.extract_strided_slice %859 {offsets = [0, 64], sizes = [8, 32], strides = [1, 1]} : vector<8x96xf32> to vector<8x32xf32>
    %863 = vector.extract_strided_slice %853 {offsets = [0, 96], sizes = [8, 32], strides = [1, 1]} : vector<8x128xf32> to vector<8x32xf32>
    %864 = math.tanh %863 : vector<8x32xf32>
    %865 = arith.mulf %861, %810 : vector<8x32xf32>
    %866 = arith.mulf %860, %864 : vector<8x32xf32>
    %867 = arith.addf %865, %866 : vector<8x32xf32>
    %868 = math.tanh %867 : vector<8x32xf32>
    %869 = arith.mulf %862, %868 : vector<8x32xf32>
    %870 = arith.truncf %869 : vector<8x32xf32> to vector<8x32xbf16>
    %c11_i32_210 = arith.constant 11 : i32
    %871 = arith.addi %10, %c11_i32_210 : i32
    %872 = vector.broadcast %871 : i32 to vector<8x1xi32>
    %873 = arith.cmpi slt, %872, %3 : vector<8x1xi32>
    %cst_211 = arith.constant 0.000000e+00 : bf16
    %874 = vector.broadcast %cst_211 : bf16 to vector<8x32xbf16>
    %875 = vector.shape_cast %873 : vector<8x1xi1> to vector<8x1xi1>
    %876 = vector.broadcast %875 : vector<8x1xi1> to vector<8x32xi1>
    %877 = arith.select %876, %870, %874 : vector<8x32xi1>, vector<8x32xbf16>
    %c11_212 = arith.constant 11 : index
    %c0_213 = arith.constant 0 : index
    %c0_214 = arith.constant 0 : index
    %878 = vector.load %arg6[%c11_212, %c0_213, %c0_214] : memref<16x8x32xbf16, #tpu.memory_space<vmem>>, vector<1x8x32xbf16>
    %879 = vector.shape_cast %878 : vector<1x8x32xbf16> to vector<8x32xbf16>
    %880 = vector.shape_cast %877 : vector<8x32xbf16> to vector<1x8x32xbf16>
    tpu.vector_store %arg6[%c11_212, %c0_213, %c0_214], %880 {strides = array<i32>} : memref<16x8x32xbf16, #tpu.memory_space<vmem>>, vector<1x8x32xbf16>,
    %881 = vector.shape_cast %873 : vector<8x1xi1> to vector<8x1xi1>
    %882 = vector.broadcast %881 : vector<8x1xi1> to vector<8x32xi1>
    %883 = arith.select %882, %870, %807 : vector<8x32xi1>, vector<8x32xbf16>
    %884 = vector.shape_cast %873 : vector<8x1xi1> to vector<8x1xi1>
    %885 = vector.broadcast %884 : vector<8x1xi1> to vector<8x32xi1>
    %886 = arith.select %885, %867, %810 : vector<8x32xi1>, vector<8x32xf32>
    %c4_215 = arith.constant 4 : index
    %c0_216 = arith.constant 0 : index
    %c0_217 = arith.constant 0 : index
    %887 = vector.load %arg3[%c4_215, %c0_216, %c0_217] : memref<16x8x128xbf16, #tpu.memory_space<vmem>>, vector<1x8x128xbf16>
    %888 = vector.shape_cast %887 : vector<1x8x128xbf16> to vector<8x128xbf16>
    %889 = arith.extf %888 : vector<8x128xbf16> to vector<8x128xf32>
    %cst_218 = arith.constant dense<0.000000e+00> : vector<8x128xf32>
    %890 = tpu.matmul %845, %5, %cst_218 {dimension_numbers = #tpu.dot_dimension_numbers<[1], [0], [0], [1], [0, 0, 1, 1], [], []>} : vector<8x32xbf16>, vector<32x128xbf16>, vector<8x128xf32> -> vector<8x128xf32>
    %891 = arith.addf %889, %890 : vector<8x128xf32>
    %892 = vector.extract_strided_slice %891 {offsets = [0, 0], sizes = [8, 96], strides = [1, 1]} : vector<8x128xf32> to vector<8x96xf32>
    %893 = arith.negf %892 : vector<8x96xf32>
    %894 = math.exp %893 : vector<8x96xf32>
    %cst_219 = arith.constant 1.000000e+00 : f32
    %895 = vector.broadcast %cst_219 : f32 to vector<8x96xf32>
    %896 = arith.addf %895, %894 : vector<8x96xf32>
    %897 = arith.divf %895, %896 : vector<8x96xf32>
    %898 = vector.extract_strided_slice %897 {offsets = [0, 0], sizes = [8, 32], strides = [1, 1]} : vector<8x96xf32> to vector<8x32xf32>
    %899 = vector.extract_strided_slice %897 {offsets = [0, 32], sizes = [8, 32], strides = [1, 1]} : vector<8x96xf32> to vector<8x32xf32>
    %900 = vector.extract_strided_slice %897 {offsets = [0, 64], sizes = [8, 32], strides = [1, 1]} : vector<8x96xf32> to vector<8x32xf32>
    %901 = vector.extract_strided_slice %891 {offsets = [0, 96], sizes = [8, 32], strides = [1, 1]} : vector<8x128xf32> to vector<8x32xf32>
    %902 = math.tanh %901 : vector<8x32xf32>
    %903 = arith.mulf %899, %848 : vector<8x32xf32>
    %904 = arith.mulf %898, %902 : vector<8x32xf32>
    %905 = arith.addf %903, %904 : vector<8x32xf32>
    %906 = math.tanh %905 : vector<8x32xf32>
    %907 = arith.mulf %900, %906 : vector<8x32xf32>
    %908 = arith.truncf %907 : vector<8x32xf32> to vector<8x32xbf16>
    %c4_i32_220 = arith.constant 4 : i32
    %909 = arith.addi %12, %c4_i32_220 : i32
    %910 = vector.broadcast %909 : i32 to vector<8x1xi32>
    %911 = arith.cmpi slt, %910, %3 : vector<8x1xi32>
    %cst_221 = arith.constant 0.000000e+00 : bf16
    %912 = vector.broadcast %cst_221 : bf16 to vector<8x32xbf16>
    %913 = vector.shape_cast %911 : vector<8x1xi1> to vector<8x1xi1>
    %914 = vector.broadcast %913 : vector<8x1xi1> to vector<8x32xi1>
    %915 = arith.select %914, %908, %912 : vector<8x32xi1>, vector<8x32xbf16>
    %c4_222 = arith.constant 4 : index
    %c0_223 = arith.constant 0 : index
    %c0_224 = arith.constant 0 : index
    %916 = vector.load %arg7[%c4_222, %c0_223, %c0_224] : memref<16x8x32xbf16, #tpu.memory_space<vmem>>, vector<1x8x32xbf16>
    %917 = vector.shape_cast %916 : vector<1x8x32xbf16> to vector<8x32xbf16>
    %918 = vector.shape_cast %915 : vector<8x32xbf16> to vector<1x8x32xbf16>
    tpu.vector_store %arg7[%c4_222, %c0_223, %c0_224], %918 {strides = array<i32>} : memref<16x8x32xbf16, #tpu.memory_space<vmem>>, vector<1x8x32xbf16>,
    %919 = vector.shape_cast %911 : vector<8x1xi1> to vector<8x1xi1>
    %920 = vector.broadcast %919 : vector<8x1xi1> to vector<8x32xi1>
    %921 = arith.select %920, %908, %845 : vector<8x32xi1>, vector<8x32xbf16>
    %922 = vector.shape_cast %911 : vector<8x1xi1> to vector<8x1xi1>
    %923 = vector.broadcast %922 : vector<8x1xi1> to vector<8x32xi1>
    %924 = arith.select %923, %905, %848 : vector<8x32xi1>, vector<8x32xf32>
    %c12_225 = arith.constant 12 : index
    %c0_226 = arith.constant 0 : index
    %c0_227 = arith.constant 0 : index
    %925 = vector.load %arg2[%c12_225, %c0_226, %c0_227] : memref<16x8x128xbf16, #tpu.memory_space<vmem>>, vector<1x8x128xbf16>
    %926 = vector.shape_cast %925 : vector<1x8x128xbf16> to vector<8x128xbf16>
    %927 = arith.extf %926 : vector<8x128xbf16> to vector<8x128xf32>
    %cst_228 = arith.constant dense<0.000000e+00> : vector<8x128xf32>
    %928 = tpu.matmul %883, %4, %cst_228 {dimension_numbers = #tpu.dot_dimension_numbers<[1], [0], [0], [1], [0, 0, 1, 1], [], []>} : vector<8x32xbf16>, vector<32x128xbf16>, vector<8x128xf32> -> vector<8x128xf32>
    %929 = arith.addf %927, %928 : vector<8x128xf32>
    %930 = vector.extract_strided_slice %929 {offsets = [0, 0], sizes = [8, 96], strides = [1, 1]} : vector<8x128xf32> to vector<8x96xf32>
    %931 = arith.negf %930 : vector<8x96xf32>
    %932 = math.exp %931 : vector<8x96xf32>
    %cst_229 = arith.constant 1.000000e+00 : f32
    %933 = vector.broadcast %cst_229 : f32 to vector<8x96xf32>
    %934 = arith.addf %933, %932 : vector<8x96xf32>
    %935 = arith.divf %933, %934 : vector<8x96xf32>
    %936 = vector.extract_strided_slice %935 {offsets = [0, 0], sizes = [8, 32], strides = [1, 1]} : vector<8x96xf32> to vector<8x32xf32>
    %937 = vector.extract_strided_slice %935 {offsets = [0, 32], sizes = [8, 32], strides = [1, 1]} : vector<8x96xf32> to vector<8x32xf32>
    %938 = vector.extract_strided_slice %935 {offsets = [0, 64], sizes = [8, 32], strides = [1, 1]} : vector<8x96xf32> to vector<8x32xf32>
    %939 = vector.extract_strided_slice %929 {offsets = [0, 96], sizes = [8, 32], strides = [1, 1]} : vector<8x128xf32> to vector<8x32xf32>
    %940 = math.tanh %939 : vector<8x32xf32>
    %941 = arith.mulf %937, %886 : vector<8x32xf32>
    %942 = arith.mulf %936, %940 : vector<8x32xf32>
    %943 = arith.addf %941, %942 : vector<8x32xf32>
    %944 = math.tanh %943 : vector<8x32xf32>
    %945 = arith.mulf %938, %944 : vector<8x32xf32>
    %946 = arith.truncf %945 : vector<8x32xf32> to vector<8x32xbf16>
    %c12_i32_230 = arith.constant 12 : i32
    %947 = arith.addi %10, %c12_i32_230 : i32
    %948 = vector.broadcast %947 : i32 to vector<8x1xi32>
    %949 = arith.cmpi slt, %948, %3 : vector<8x1xi32>
    %cst_231 = arith.constant 0.000000e+00 : bf16
    %950 = vector.broadcast %cst_231 : bf16 to vector<8x32xbf16>
    %951 = vector.shape_cast %949 : vector<8x1xi1> to vector<8x1xi1>
    %952 = vector.broadcast %951 : vector<8x1xi1> to vector<8x32xi1>
    %953 = arith.select %952, %946, %950 : vector<8x32xi1>, vector<8x32xbf16>
    %c12_232 = arith.constant 12 : index
    %c0_233 = arith.constant 0 : index
    %c0_234 = arith.constant 0 : index
    %954 = vector.load %arg6[%c12_232, %c0_233, %c0_234] : memref<16x8x32xbf16, #tpu.memory_space<vmem>>, vector<1x8x32xbf16>
    %955 = vector.shape_cast %954 : vector<1x8x32xbf16> to vector<8x32xbf16>
    %956 = vector.shape_cast %953 : vector<8x32xbf16> to vector<1x8x32xbf16>
    tpu.vector_store %arg6[%c12_232, %c0_233, %c0_234], %956 {strides = array<i32>} : memref<16x8x32xbf16, #tpu.memory_space<vmem>>, vector<1x8x32xbf16>,
    %957 = vector.shape_cast %949 : vector<8x1xi1> to vector<8x1xi1>
    %958 = vector.broadcast %957 : vector<8x1xi1> to vector<8x32xi1>
    %959 = arith.select %958, %946, %883 : vector<8x32xi1>, vector<8x32xbf16>
    %960 = vector.shape_cast %949 : vector<8x1xi1> to vector<8x1xi1>
    %961 = vector.broadcast %960 : vector<8x1xi1> to vector<8x32xi1>
    %962 = arith.select %961, %943, %886 : vector<8x32xi1>, vector<8x32xf32>
    %c3_235 = arith.constant 3 : index
    %c0_236 = arith.constant 0 : index
    %c0_237 = arith.constant 0 : index
    %963 = vector.load %arg3[%c3_235, %c0_236, %c0_237] : memref<16x8x128xbf16, #tpu.memory_space<vmem>>, vector<1x8x128xbf16>
    %964 = vector.shape_cast %963 : vector<1x8x128xbf16> to vector<8x128xbf16>
    %965 = arith.extf %964 : vector<8x128xbf16> to vector<8x128xf32>
    %cst_238 = arith.constant dense<0.000000e+00> : vector<8x128xf32>
    %966 = tpu.matmul %921, %5, %cst_238 {dimension_numbers = #tpu.dot_dimension_numbers<[1], [0], [0], [1], [0, 0, 1, 1], [], []>} : vector<8x32xbf16>, vector<32x128xbf16>, vector<8x128xf32> -> vector<8x128xf32>
    %967 = arith.addf %965, %966 : vector<8x128xf32>
    %968 = vector.extract_strided_slice %967 {offsets = [0, 0], sizes = [8, 96], strides = [1, 1]} : vector<8x128xf32> to vector<8x96xf32>
    %969 = arith.negf %968 : vector<8x96xf32>
    %970 = math.exp %969 : vector<8x96xf32>
    %cst_239 = arith.constant 1.000000e+00 : f32
    %971 = vector.broadcast %cst_239 : f32 to vector<8x96xf32>
    %972 = arith.addf %971, %970 : vector<8x96xf32>
    %973 = arith.divf %971, %972 : vector<8x96xf32>
    %974 = vector.extract_strided_slice %973 {offsets = [0, 0], sizes = [8, 32], strides = [1, 1]} : vector<8x96xf32> to vector<8x32xf32>
    %975 = vector.extract_strided_slice %973 {offsets = [0, 32], sizes = [8, 32], strides = [1, 1]} : vector<8x96xf32> to vector<8x32xf32>
    %976 = vector.extract_strided_slice %973 {offsets = [0, 64], sizes = [8, 32], strides = [1, 1]} : vector<8x96xf32> to vector<8x32xf32>
    %977 = vector.extract_strided_slice %967 {offsets = [0, 96], sizes = [8, 32], strides = [1, 1]} : vector<8x128xf32> to vector<8x32xf32>
    %978 = math.tanh %977 : vector<8x32xf32>
    %979 = arith.mulf %975, %924 : vector<8x32xf32>
    %980 = arith.mulf %974, %978 : vector<8x32xf32>
    %981 = arith.addf %979, %980 : vector<8x32xf32>
    %982 = math.tanh %981 : vector<8x32xf32>
    %983 = arith.mulf %976, %982 : vector<8x32xf32>
    %984 = arith.truncf %983 : vector<8x32xf32> to vector<8x32xbf16>
    %c3_i32_240 = arith.constant 3 : i32
    %985 = arith.addi %12, %c3_i32_240 : i32
    %986 = vector.broadcast %985 : i32 to vector<8x1xi32>
    %987 = arith.cmpi slt, %986, %3 : vector<8x1xi32>
    %cst_241 = arith.constant 0.000000e+00 : bf16
    %988 = vector.broadcast %cst_241 : bf16 to vector<8x32xbf16>
    %989 = vector.shape_cast %987 : vector<8x1xi1> to vector<8x1xi1>
    %990 = vector.broadcast %989 : vector<8x1xi1> to vector<8x32xi1>
    %991 = arith.select %990, %984, %988 : vector<8x32xi1>, vector<8x32xbf16>
    %c3_242 = arith.constant 3 : index
    %c0_243 = arith.constant 0 : index
    %c0_244 = arith.constant 0 : index
    %992 = vector.load %arg7[%c3_242, %c0_243, %c0_244] : memref<16x8x32xbf16, #tpu.memory_space<vmem>>, vector<1x8x32xbf16>
    %993 = vector.shape_cast %992 : vector<1x8x32xbf16> to vector<8x32xbf16>
    %994 = vector.shape_cast %991 : vector<8x32xbf16> to vector<1x8x32xbf16>
    tpu.vector_store %arg7[%c3_242, %c0_243, %c0_244], %994 {strides = array<i32>} : memref<16x8x32xbf16, #tpu.memory_space<vmem>>, vector<1x8x32xbf16>,
    %995 = vector.shape_cast %987 : vector<8x1xi1> to vector<8x1xi1>
    %996 = vector.broadcast %995 : vector<8x1xi1> to vector<8x32xi1>
    %997 = arith.select %996, %984, %921 : vector<8x32xi1>, vector<8x32xbf16>
    %998 = vector.shape_cast %987 : vector<8x1xi1> to vector<8x1xi1>
    %999 = vector.broadcast %998 : vector<8x1xi1> to vector<8x32xi1>
    %1000 = arith.select %999, %981, %924 : vector<8x32xi1>, vector<8x32xf32>
    %c13_245 = arith.constant 13 : index
    %c0_246 = arith.constant 0 : index
    %c0_247 = arith.constant 0 : index
    %1001 = vector.load %arg2[%c13_245, %c0_246, %c0_247] : memref<16x8x128xbf16, #tpu.memory_space<vmem>>, vector<1x8x128xbf16>
    %1002 = vector.shape_cast %1001 : vector<1x8x128xbf16> to vector<8x128xbf16>
    %1003 = arith.extf %1002 : vector<8x128xbf16> to vector<8x128xf32>
    %cst_248 = arith.constant dense<0.000000e+00> : vector<8x128xf32>
    %1004 = tpu.matmul %959, %4, %cst_248 {dimension_numbers = #tpu.dot_dimension_numbers<[1], [0], [0], [1], [0, 0, 1, 1], [], []>} : vector<8x32xbf16>, vector<32x128xbf16>, vector<8x128xf32> -> vector<8x128xf32>
    %1005 = arith.addf %1003, %1004 : vector<8x128xf32>
    %1006 = vector.extract_strided_slice %1005 {offsets = [0, 0], sizes = [8, 96], strides = [1, 1]} : vector<8x128xf32> to vector<8x96xf32>
    %1007 = arith.negf %1006 : vector<8x96xf32>
    %1008 = math.exp %1007 : vector<8x96xf32>
    %cst_249 = arith.constant 1.000000e+00 : f32
    %1009 = vector.broadcast %cst_249 : f32 to vector<8x96xf32>
    %1010 = arith.addf %1009, %1008 : vector<8x96xf32>
    %1011 = arith.divf %1009, %1010 : vector<8x96xf32>
    %1012 = vector.extract_strided_slice %1011 {offsets = [0, 0], sizes = [8, 32], strides = [1, 1]} : vector<8x96xf32> to vector<8x32xf32>
    %1013 = vector.extract_strided_slice %1011 {offsets = [0, 32], sizes = [8, 32], strides = [1, 1]} : vector<8x96xf32> to vector<8x32xf32>
    %1014 = vector.extract_strided_slice %1011 {offsets = [0, 64], sizes = [8, 32], strides = [1, 1]} : vector<8x96xf32> to vector<8x32xf32>
    %1015 = vector.extract_strided_slice %1005 {offsets = [0, 96], sizes = [8, 32], strides = [1, 1]} : vector<8x128xf32> to vector<8x32xf32>
    %1016 = math.tanh %1015 : vector<8x32xf32>
    %1017 = arith.mulf %1013, %962 : vector<8x32xf32>
    %1018 = arith.mulf %1012, %1016 : vector<8x32xf32>
    %1019 = arith.addf %1017, %1018 : vector<8x32xf32>
    %1020 = math.tanh %1019 : vector<8x32xf32>
    %1021 = arith.mulf %1014, %1020 : vector<8x32xf32>
    %1022 = arith.truncf %1021 : vector<8x32xf32> to vector<8x32xbf16>
    %c13_i32_250 = arith.constant 13 : i32
    %1023 = arith.addi %10, %c13_i32_250 : i32
    %1024 = vector.broadcast %1023 : i32 to vector<8x1xi32>
    %1025 = arith.cmpi slt, %1024, %3 : vector<8x1xi32>
    %cst_251 = arith.constant 0.000000e+00 : bf16
    %1026 = vector.broadcast %cst_251 : bf16 to vector<8x32xbf16>
    %1027 = vector.shape_cast %1025 : vector<8x1xi1> to vector<8x1xi1>
    %1028 = vector.broadcast %1027 : vector<8x1xi1> to vector<8x32xi1>
    %1029 = arith.select %1028, %1022, %1026 : vector<8x32xi1>, vector<8x32xbf16>
    %c13_252 = arith.constant 13 : index
    %c0_253 = arith.constant 0 : index
    %c0_254 = arith.constant 0 : index
    %1030 = vector.load %arg6[%c13_252, %c0_253, %c0_254] : memref<16x8x32xbf16, #tpu.memory_space<vmem>>, vector<1x8x32xbf16>
    %1031 = vector.shape_cast %1030 : vector<1x8x32xbf16> to vector<8x32xbf16>
    %1032 = vector.shape_cast %1029 : vector<8x32xbf16> to vector<1x8x32xbf16>
    tpu.vector_store %arg6[%c13_252, %c0_253, %c0_254], %1032 {strides = array<i32>} : memref<16x8x32xbf16, #tpu.memory_space<vmem>>, vector<1x8x32xbf16>,
    %1033 = vector.shape_cast %1025 : vector<8x1xi1> to vector<8x1xi1>
    %1034 = vector.broadcast %1033 : vector<8x1xi1> to vector<8x32xi1>
    %1035 = arith.select %1034, %1022, %959 : vector<8x32xi1>, vector<8x32xbf16>
    %1036 = vector.shape_cast %1025 : vector<8x1xi1> to vector<8x1xi1>
    %1037 = vector.broadcast %1036 : vector<8x1xi1> to vector<8x32xi1>
    %1038 = arith.select %1037, %1019, %962 : vector<8x32xi1>, vector<8x32xf32>
    %c2_255 = arith.constant 2 : index
    %c0_256 = arith.constant 0 : index
    %c0_257 = arith.constant 0 : index
    %1039 = vector.load %arg3[%c2_255, %c0_256, %c0_257] : memref<16x8x128xbf16, #tpu.memory_space<vmem>>, vector<1x8x128xbf16>
    %1040 = vector.shape_cast %1039 : vector<1x8x128xbf16> to vector<8x128xbf16>
    %1041 = arith.extf %1040 : vector<8x128xbf16> to vector<8x128xf32>
    %cst_258 = arith.constant dense<0.000000e+00> : vector<8x128xf32>
    %1042 = tpu.matmul %997, %5, %cst_258 {dimension_numbers = #tpu.dot_dimension_numbers<[1], [0], [0], [1], [0, 0, 1, 1], [], []>} : vector<8x32xbf16>, vector<32x128xbf16>, vector<8x128xf32> -> vector<8x128xf32>
    %1043 = arith.addf %1041, %1042 : vector<8x128xf32>
    %1044 = vector.extract_strided_slice %1043 {offsets = [0, 0], sizes = [8, 96], strides = [1, 1]} : vector<8x128xf32> to vector<8x96xf32>
    %1045 = arith.negf %1044 : vector<8x96xf32>
    %1046 = math.exp %1045 : vector<8x96xf32>
    %cst_259 = arith.constant 1.000000e+00 : f32
    %1047 = vector.broadcast %cst_259 : f32 to vector<8x96xf32>
    %1048 = arith.addf %1047, %1046 : vector<8x96xf32>
    %1049 = arith.divf %1047, %1048 : vector<8x96xf32>
    %1050 = vector.extract_strided_slice %1049 {offsets = [0, 0], sizes = [8, 32], strides = [1, 1]} : vector<8x96xf32> to vector<8x32xf32>
    %1051 = vector.extract_strided_slice %1049 {offsets = [0, 32], sizes = [8, 32], strides = [1, 1]} : vector<8x96xf32> to vector<8x32xf32>
    %1052 = vector.extract_strided_slice %1049 {offsets = [0, 64], sizes = [8, 32], strides = [1, 1]} : vector<8x96xf32> to vector<8x32xf32>
    %1053 = vector.extract_strided_slice %1043 {offsets = [0, 96], sizes = [8, 32], strides = [1, 1]} : vector<8x128xf32> to vector<8x32xf32>
    %1054 = math.tanh %1053 : vector<8x32xf32>
    %1055 = arith.mulf %1051, %1000 : vector<8x32xf32>
    %1056 = arith.mulf %1050, %1054 : vector<8x32xf32>
    %1057 = arith.addf %1055, %1056 : vector<8x32xf32>
    %1058 = math.tanh %1057 : vector<8x32xf32>
    %1059 = arith.mulf %1052, %1058 : vector<8x32xf32>
    %1060 = arith.truncf %1059 : vector<8x32xf32> to vector<8x32xbf16>
    %c2_i32_260 = arith.constant 2 : i32
    %1061 = arith.addi %12, %c2_i32_260 : i32
    %1062 = vector.broadcast %1061 : i32 to vector<8x1xi32>
    %1063 = arith.cmpi slt, %1062, %3 : vector<8x1xi32>
    %cst_261 = arith.constant 0.000000e+00 : bf16
    %1064 = vector.broadcast %cst_261 : bf16 to vector<8x32xbf16>
    %1065 = vector.shape_cast %1063 : vector<8x1xi1> to vector<8x1xi1>
    %1066 = vector.broadcast %1065 : vector<8x1xi1> to vector<8x32xi1>
    %1067 = arith.select %1066, %1060, %1064 : vector<8x32xi1>, vector<8x32xbf16>
    %c2_262 = arith.constant 2 : index
    %c0_263 = arith.constant 0 : index
    %c0_264 = arith.constant 0 : index
    %1068 = vector.load %arg7[%c2_262, %c0_263, %c0_264] : memref<16x8x32xbf16, #tpu.memory_space<vmem>>, vector<1x8x32xbf16>
    %1069 = vector.shape_cast %1068 : vector<1x8x32xbf16> to vector<8x32xbf16>
    %1070 = vector.shape_cast %1067 : vector<8x32xbf16> to vector<1x8x32xbf16>
    tpu.vector_store %arg7[%c2_262, %c0_263, %c0_264], %1070 {strides = array<i32>} : memref<16x8x32xbf16, #tpu.memory_space<vmem>>, vector<1x8x32xbf16>,
    %1071 = vector.shape_cast %1063 : vector<8x1xi1> to vector<8x1xi1>
    %1072 = vector.broadcast %1071 : vector<8x1xi1> to vector<8x32xi1>
    %1073 = arith.select %1072, %1060, %997 : vector<8x32xi1>, vector<8x32xbf16>
    %1074 = vector.shape_cast %1063 : vector<8x1xi1> to vector<8x1xi1>
    %1075 = vector.broadcast %1074 : vector<8x1xi1> to vector<8x32xi1>
    %1076 = arith.select %1075, %1057, %1000 : vector<8x32xi1>, vector<8x32xf32>
    %c14_265 = arith.constant 14 : index
    %c0_266 = arith.constant 0 : index
    %c0_267 = arith.constant 0 : index
    %1077 = vector.load %arg2[%c14_265, %c0_266, %c0_267] : memref<16x8x128xbf16, #tpu.memory_space<vmem>>, vector<1x8x128xbf16>
    %1078 = vector.shape_cast %1077 : vector<1x8x128xbf16> to vector<8x128xbf16>
    %1079 = arith.extf %1078 : vector<8x128xbf16> to vector<8x128xf32>
    %cst_268 = arith.constant dense<0.000000e+00> : vector<8x128xf32>
    %1080 = tpu.matmul %1035, %4, %cst_268 {dimension_numbers = #tpu.dot_dimension_numbers<[1], [0], [0], [1], [0, 0, 1, 1], [], []>} : vector<8x32xbf16>, vector<32x128xbf16>, vector<8x128xf32> -> vector<8x128xf32>
    %1081 = arith.addf %1079, %1080 : vector<8x128xf32>
    %1082 = vector.extract_strided_slice %1081 {offsets = [0, 0], sizes = [8, 96], strides = [1, 1]} : vector<8x128xf32> to vector<8x96xf32>
    %1083 = arith.negf %1082 : vector<8x96xf32>
    %1084 = math.exp %1083 : vector<8x96xf32>
    %cst_269 = arith.constant 1.000000e+00 : f32
    %1085 = vector.broadcast %cst_269 : f32 to vector<8x96xf32>
    %1086 = arith.addf %1085, %1084 : vector<8x96xf32>
    %1087 = arith.divf %1085, %1086 : vector<8x96xf32>
    %1088 = vector.extract_strided_slice %1087 {offsets = [0, 0], sizes = [8, 32], strides = [1, 1]} : vector<8x96xf32> to vector<8x32xf32>
    %1089 = vector.extract_strided_slice %1087 {offsets = [0, 32], sizes = [8, 32], strides = [1, 1]} : vector<8x96xf32> to vector<8x32xf32>
    %1090 = vector.extract_strided_slice %1087 {offsets = [0, 64], sizes = [8, 32], strides = [1, 1]} : vector<8x96xf32> to vector<8x32xf32>
    %1091 = vector.extract_strided_slice %1081 {offsets = [0, 96], sizes = [8, 32], strides = [1, 1]} : vector<8x128xf32> to vector<8x32xf32>
    %1092 = math.tanh %1091 : vector<8x32xf32>
    %1093 = arith.mulf %1089, %1038 : vector<8x32xf32>
    %1094 = arith.mulf %1088, %1092 : vector<8x32xf32>
    %1095 = arith.addf %1093, %1094 : vector<8x32xf32>
    %1096 = math.tanh %1095 : vector<8x32xf32>
    %1097 = arith.mulf %1090, %1096 : vector<8x32xf32>
    %1098 = arith.truncf %1097 : vector<8x32xf32> to vector<8x32xbf16>
    %c14_i32_270 = arith.constant 14 : i32
    %1099 = arith.addi %10, %c14_i32_270 : i32
    %1100 = vector.broadcast %1099 : i32 to vector<8x1xi32>
    %1101 = arith.cmpi slt, %1100, %3 : vector<8x1xi32>
    %cst_271 = arith.constant 0.000000e+00 : bf16
    %1102 = vector.broadcast %cst_271 : bf16 to vector<8x32xbf16>
    %1103 = vector.shape_cast %1101 : vector<8x1xi1> to vector<8x1xi1>
    %1104 = vector.broadcast %1103 : vector<8x1xi1> to vector<8x32xi1>
    %1105 = arith.select %1104, %1098, %1102 : vector<8x32xi1>, vector<8x32xbf16>
    %c14_272 = arith.constant 14 : index
    %c0_273 = arith.constant 0 : index
    %c0_274 = arith.constant 0 : index
    %1106 = vector.load %arg6[%c14_272, %c0_273, %c0_274] : memref<16x8x32xbf16, #tpu.memory_space<vmem>>, vector<1x8x32xbf16>
    %1107 = vector.shape_cast %1106 : vector<1x8x32xbf16> to vector<8x32xbf16>
    %1108 = vector.shape_cast %1105 : vector<8x32xbf16> to vector<1x8x32xbf16>
    tpu.vector_store %arg6[%c14_272, %c0_273, %c0_274], %1108 {strides = array<i32>} : memref<16x8x32xbf16, #tpu.memory_space<vmem>>, vector<1x8x32xbf16>,
    %1109 = vector.shape_cast %1101 : vector<8x1xi1> to vector<8x1xi1>
    %1110 = vector.broadcast %1109 : vector<8x1xi1> to vector<8x32xi1>
    %1111 = arith.select %1110, %1098, %1035 : vector<8x32xi1>, vector<8x32xbf16>
    %1112 = vector.shape_cast %1101 : vector<8x1xi1> to vector<8x1xi1>
    %1113 = vector.broadcast %1112 : vector<8x1xi1> to vector<8x32xi1>
    %1114 = arith.select %1113, %1095, %1038 : vector<8x32xi1>, vector<8x32xf32>
    %c1_275 = arith.constant 1 : index
    %c0_276 = arith.constant 0 : index
    %c0_277 = arith.constant 0 : index
    %1115 = vector.load %arg3[%c1_275, %c0_276, %c0_277] : memref<16x8x128xbf16, #tpu.memory_space<vmem>>, vector<1x8x128xbf16>
    %1116 = vector.shape_cast %1115 : vector<1x8x128xbf16> to vector<8x128xbf16>
    %1117 = arith.extf %1116 : vector<8x128xbf16> to vector<8x128xf32>
    %cst_278 = arith.constant dense<0.000000e+00> : vector<8x128xf32>
    %1118 = tpu.matmul %1073, %5, %cst_278 {dimension_numbers = #tpu.dot_dimension_numbers<[1], [0], [0], [1], [0, 0, 1, 1], [], []>} : vector<8x32xbf16>, vector<32x128xbf16>, vector<8x128xf32> -> vector<8x128xf32>
    %1119 = arith.addf %1117, %1118 : vector<8x128xf32>
    %1120 = vector.extract_strided_slice %1119 {offsets = [0, 0], sizes = [8, 96], strides = [1, 1]} : vector<8x128xf32> to vector<8x96xf32>
    %1121 = arith.negf %1120 : vector<8x96xf32>
    %1122 = math.exp %1121 : vector<8x96xf32>
    %cst_279 = arith.constant 1.000000e+00 : f32
    %1123 = vector.broadcast %cst_279 : f32 to vector<8x96xf32>
    %1124 = arith.addf %1123, %1122 : vector<8x96xf32>
    %1125 = arith.divf %1123, %1124 : vector<8x96xf32>
    %1126 = vector.extract_strided_slice %1125 {offsets = [0, 0], sizes = [8, 32], strides = [1, 1]} : vector<8x96xf32> to vector<8x32xf32>
    %1127 = vector.extract_strided_slice %1125 {offsets = [0, 32], sizes = [8, 32], strides = [1, 1]} : vector<8x96xf32> to vector<8x32xf32>
    %1128 = vector.extract_strided_slice %1125 {offsets = [0, 64], sizes = [8, 32], strides = [1, 1]} : vector<8x96xf32> to vector<8x32xf32>
    %1129 = vector.extract_strided_slice %1119 {offsets = [0, 96], sizes = [8, 32], strides = [1, 1]} : vector<8x128xf32> to vector<8x32xf32>
    %1130 = math.tanh %1129 : vector<8x32xf32>
    %1131 = arith.mulf %1127, %1076 : vector<8x32xf32>
    %1132 = arith.mulf %1126, %1130 : vector<8x32xf32>
    %1133 = arith.addf %1131, %1132 : vector<8x32xf32>
    %1134 = math.tanh %1133 : vector<8x32xf32>
    %1135 = arith.mulf %1128, %1134 : vector<8x32xf32>
    %1136 = arith.truncf %1135 : vector<8x32xf32> to vector<8x32xbf16>
    %c1_i32_280 = arith.constant 1 : i32
    %1137 = arith.addi %12, %c1_i32_280 : i32
    %1138 = vector.broadcast %1137 : i32 to vector<8x1xi32>
    %1139 = arith.cmpi slt, %1138, %3 : vector<8x1xi32>
    %cst_281 = arith.constant 0.000000e+00 : bf16
    %1140 = vector.broadcast %cst_281 : bf16 to vector<8x32xbf16>
    %1141 = vector.shape_cast %1139 : vector<8x1xi1> to vector<8x1xi1>
    %1142 = vector.broadcast %1141 : vector<8x1xi1> to vector<8x32xi1>
    %1143 = arith.select %1142, %1136, %1140 : vector<8x32xi1>, vector<8x32xbf16>
    %c1_282 = arith.constant 1 : index
    %c0_283 = arith.constant 0 : index
    %c0_284 = arith.constant 0 : index
    %1144 = vector.load %arg7[%c1_282, %c0_283, %c0_284] : memref<16x8x32xbf16, #tpu.memory_space<vmem>>, vector<1x8x32xbf16>
    %1145 = vector.shape_cast %1144 : vector<1x8x32xbf16> to vector<8x32xbf16>
    %1146 = vector.shape_cast %1143 : vector<8x32xbf16> to vector<1x8x32xbf16>
    tpu.vector_store %arg7[%c1_282, %c0_283, %c0_284], %1146 {strides = array<i32>} : memref<16x8x32xbf16, #tpu.memory_space<vmem>>, vector<1x8x32xbf16>,
    %1147 = vector.shape_cast %1139 : vector<8x1xi1> to vector<8x1xi1>
    %1148 = vector.broadcast %1147 : vector<8x1xi1> to vector<8x32xi1>
    %1149 = arith.select %1148, %1136, %1073 : vector<8x32xi1>, vector<8x32xbf16>
    %1150 = vector.shape_cast %1139 : vector<8x1xi1> to vector<8x1xi1>
    %1151 = vector.broadcast %1150 : vector<8x1xi1> to vector<8x32xi1>
    %1152 = arith.select %1151, %1133, %1076 : vector<8x32xi1>, vector<8x32xf32>
    %c15_285 = arith.constant 15 : index
    %c0_286 = arith.constant 0 : index
    %c0_287 = arith.constant 0 : index
    %1153 = vector.load %arg2[%c15_285, %c0_286, %c0_287] : memref<16x8x128xbf16, #tpu.memory_space<vmem>>, vector<1x8x128xbf16>
    %1154 = vector.shape_cast %1153 : vector<1x8x128xbf16> to vector<8x128xbf16>
    %1155 = arith.extf %1154 : vector<8x128xbf16> to vector<8x128xf32>
    %cst_288 = arith.constant dense<0.000000e+00> : vector<8x128xf32>
    %1156 = tpu.matmul %1111, %4, %cst_288 {dimension_numbers = #tpu.dot_dimension_numbers<[1], [0], [0], [1], [0, 0, 1, 1], [], []>} : vector<8x32xbf16>, vector<32x128xbf16>, vector<8x128xf32> -> vector<8x128xf32>
    %1157 = arith.addf %1155, %1156 : vector<8x128xf32>
    %1158 = vector.extract_strided_slice %1157 {offsets = [0, 0], sizes = [8, 96], strides = [1, 1]} : vector<8x128xf32> to vector<8x96xf32>
    %1159 = arith.negf %1158 : vector<8x96xf32>
    %1160 = math.exp %1159 : vector<8x96xf32>
    %cst_289 = arith.constant 1.000000e+00 : f32
    %1161 = vector.broadcast %cst_289 : f32 to vector<8x96xf32>
    %1162 = arith.addf %1161, %1160 : vector<8x96xf32>
    %1163 = arith.divf %1161, %1162 : vector<8x96xf32>
    %1164 = vector.extract_strided_slice %1163 {offsets = [0, 0], sizes = [8, 32], strides = [1, 1]} : vector<8x96xf32> to vector<8x32xf32>
    %1165 = vector.extract_strided_slice %1163 {offsets = [0, 32], sizes = [8, 32], strides = [1, 1]} : vector<8x96xf32> to vector<8x32xf32>
    %1166 = vector.extract_strided_slice %1163 {offsets = [0, 64], sizes = [8, 32], strides = [1, 1]} : vector<8x96xf32> to vector<8x32xf32>
    %1167 = vector.extract_strided_slice %1157 {offsets = [0, 96], sizes = [8, 32], strides = [1, 1]} : vector<8x128xf32> to vector<8x32xf32>
    %1168 = math.tanh %1167 : vector<8x32xf32>
    %1169 = arith.mulf %1165, %1114 : vector<8x32xf32>
    %1170 = arith.mulf %1164, %1168 : vector<8x32xf32>
    %1171 = arith.addf %1169, %1170 : vector<8x32xf32>
    %1172 = math.tanh %1171 : vector<8x32xf32>
    %1173 = arith.mulf %1166, %1172 : vector<8x32xf32>
    %1174 = arith.truncf %1173 : vector<8x32xf32> to vector<8x32xbf16>
    %c15_i32_290 = arith.constant 15 : i32
    %1175 = arith.addi %10, %c15_i32_290 : i32
    %1176 = vector.broadcast %1175 : i32 to vector<8x1xi32>
    %1177 = arith.cmpi slt, %1176, %3 : vector<8x1xi32>
    %cst_291 = arith.constant 0.000000e+00 : bf16
    %1178 = vector.broadcast %cst_291 : bf16 to vector<8x32xbf16>
    %1179 = vector.shape_cast %1177 : vector<8x1xi1> to vector<8x1xi1>
    %1180 = vector.broadcast %1179 : vector<8x1xi1> to vector<8x32xi1>
    %1181 = arith.select %1180, %1174, %1178 : vector<8x32xi1>, vector<8x32xbf16>
    %c15_292 = arith.constant 15 : index
    %c0_293 = arith.constant 0 : index
    %c0_294 = arith.constant 0 : index
    %1182 = vector.load %arg6[%c15_292, %c0_293, %c0_294] : memref<16x8x32xbf16, #tpu.memory_space<vmem>>, vector<1x8x32xbf16>
    %1183 = vector.shape_cast %1182 : vector<1x8x32xbf16> to vector<8x32xbf16>
    %1184 = vector.shape_cast %1181 : vector<8x32xbf16> to vector<1x8x32xbf16>
    tpu.vector_store %arg6[%c15_292, %c0_293, %c0_294], %1184 {strides = array<i32>} : memref<16x8x32xbf16, #tpu.memory_space<vmem>>, vector<1x8x32xbf16>,
    %1185 = vector.shape_cast %1177 : vector<8x1xi1> to vector<8x1xi1>
    %1186 = vector.broadcast %1185 : vector<8x1xi1> to vector<8x32xi1>
    %1187 = arith.select %1186, %1174, %1111 : vector<8x32xi1>, vector<8x32xbf16>
    %1188 = vector.shape_cast %1177 : vector<8x1xi1> to vector<8x1xi1>
    %1189 = vector.broadcast %1188 : vector<8x1xi1> to vector<8x32xi1>
    %1190 = arith.select %1189, %1171, %1114 : vector<8x32xi1>, vector<8x32xf32>
    %c0_295 = arith.constant 0 : index
    %c0_296 = arith.constant 0 : index
    %c0_297 = arith.constant 0 : index
    %1191 = vector.load %arg3[%c0_295, %c0_296, %c0_297] : memref<16x8x128xbf16, #tpu.memory_space<vmem>>, vector<1x8x128xbf16>
    %1192 = vector.shape_cast %1191 : vector<1x8x128xbf16> to vector<8x128xbf16>
    %1193 = arith.extf %1192 : vector<8x128xbf16> to vector<8x128xf32>
    %cst_298 = arith.constant dense<0.000000e+00> : vector<8x128xf32>
    %1194 = tpu.matmul %1149, %5, %cst_298 {dimension_numbers = #tpu.dot_dimension_numbers<[1], [0], [0], [1], [0, 0, 1, 1], [], []>} : vector<8x32xbf16>, vector<32x128xbf16>, vector<8x128xf32> -> vector<8x128xf32>
    %1195 = arith.addf %1193, %1194 : vector<8x128xf32>
    %1196 = vector.extract_strided_slice %1195 {offsets = [0, 0], sizes = [8, 96], strides = [1, 1]} : vector<8x128xf32> to vector<8x96xf32>
    %1197 = arith.negf %1196 : vector<8x96xf32>
    %1198 = math.exp %1197 : vector<8x96xf32>
    %cst_299 = arith.constant 1.000000e+00 : f32
    %1199 = vector.broadcast %cst_299 : f32 to vector<8x96xf32>
    %1200 = arith.addf %1199, %1198 : vector<8x96xf32>
    %1201 = arith.divf %1199, %1200 : vector<8x96xf32>
    %1202 = vector.extract_strided_slice %1201 {offsets = [0, 0], sizes = [8, 32], strides = [1, 1]} : vector<8x96xf32> to vector<8x32xf32>
    %1203 = vector.extract_strided_slice %1201 {offsets = [0, 32], sizes = [8, 32], strides = [1, 1]} : vector<8x96xf32> to vector<8x32xf32>
    %1204 = vector.extract_strided_slice %1201 {offsets = [0, 64], sizes = [8, 32], strides = [1, 1]} : vector<8x96xf32> to vector<8x32xf32>
    %1205 = vector.extract_strided_slice %1195 {offsets = [0, 96], sizes = [8, 32], strides = [1, 1]} : vector<8x128xf32> to vector<8x32xf32>
    %1206 = math.tanh %1205 : vector<8x32xf32>
    %1207 = arith.mulf %1203, %1152 : vector<8x32xf32>
    %1208 = arith.mulf %1202, %1206 : vector<8x32xf32>
    %1209 = arith.addf %1207, %1208 : vector<8x32xf32>
    %1210 = math.tanh %1209 : vector<8x32xf32>
    %1211 = arith.mulf %1204, %1210 : vector<8x32xf32>
    %1212 = arith.truncf %1211 : vector<8x32xf32> to vector<8x32xbf16>
    %c0_i32_300 = arith.constant 0 : i32
    %1213 = arith.addi %12, %c0_i32_300 : i32
    %1214 = vector.broadcast %1213 : i32 to vector<8x1xi32>
    %1215 = arith.cmpi slt, %1214, %3 : vector<8x1xi32>
    %cst_301 = arith.constant 0.000000e+00 : bf16
    %1216 = vector.broadcast %cst_301 : bf16 to vector<8x32xbf16>
    %1217 = vector.shape_cast %1215 : vector<8x1xi1> to vector<8x1xi1>
    %1218 = vector.broadcast %1217 : vector<8x1xi1> to vector<8x32xi1>
    %1219 = arith.select %1218, %1212, %1216 : vector<8x32xi1>, vector<8x32xbf16>
    %c0_302 = arith.constant 0 : index
    %c0_303 = arith.constant 0 : index
    %c0_304 = arith.constant 0 : index
    %1220 = vector.load %arg7[%c0_302, %c0_303, %c0_304] : memref<16x8x32xbf16, #tpu.memory_space<vmem>>, vector<1x8x32xbf16>
    %1221 = vector.shape_cast %1220 : vector<1x8x32xbf16> to vector<8x32xbf16>
    %1222 = vector.shape_cast %1219 : vector<8x32xbf16> to vector<1x8x32xbf16>
    tpu.vector_store %arg7[%c0_302, %c0_303, %c0_304], %1222 {strides = array<i32>} : memref<16x8x32xbf16, #tpu.memory_space<vmem>>, vector<1x8x32xbf16>,
    %1223 = vector.shape_cast %1215 : vector<8x1xi1> to vector<8x1xi1>
    %1224 = vector.broadcast %1223 : vector<8x1xi1> to vector<8x32xi1>
    %1225 = arith.select %1224, %1212, %1149 : vector<8x32xi1>, vector<8x32xbf16>
    %1226 = vector.shape_cast %1215 : vector<8x1xi1> to vector<8x1xi1>
    %1227 = vector.broadcast %1226 : vector<8x1xi1> to vector<8x32xi1>
    %1228 = arith.select %1227, %1209, %1152 : vector<8x32xi1>, vector<8x32xf32>
    %c0_305 = arith.constant 0 : index
    %c0_306 = arith.constant 0 : index
    %1229 = vector.load %arg10[%c0_305, %c0_306] : memref<8x32xbf16, #tpu.memory_space<vmem>>, vector<8x32xbf16>
    tpu.vector_store %arg10[%c0_305, %c0_306], %1187 {strides = array<i32>} : memref<8x32xbf16, #tpu.memory_space<vmem>>, vector<8x32xbf16>,
    %c0_307 = arith.constant 0 : index
    %c0_308 = arith.constant 0 : index
    %1230 = vector.load %arg11[%c0_307, %c0_308] : memref<8x32xf32, #tpu.memory_space<vmem>>, vector<8x32xf32>
    tpu.vector_store %arg11[%c0_307, %c0_308], %1190 {strides = array<i32>} : memref<8x32xf32, #tpu.memory_space<vmem>>, vector<8x32xf32>,
    %c0_309 = arith.constant 0 : index
    %c0_310 = arith.constant 0 : index
    %1231 = vector.load %arg12[%c0_309, %c0_310] : memref<8x32xbf16, #tpu.memory_space<vmem>>, vector<8x32xbf16>
    tpu.vector_store %arg12[%c0_309, %c0_310], %1225 {strides = array<i32>} : memref<8x32xbf16, #tpu.memory_space<vmem>>, vector<8x32xbf16>,
    %c0_311 = arith.constant 0 : index
    %c0_312 = arith.constant 0 : index
    %1232 = vector.load %arg13[%c0_311, %c0_312] : memref<8x32xf32, #tpu.memory_space<vmem>>, vector<8x32xf32>
    tpu.vector_store %arg13[%c0_311, %c0_312], %1228 {strides = array<i32>} : memref<8x32xf32, #tpu.memory_space<vmem>>, vector<8x32xf32>,
    %c0_i32_313 = arith.constant 0 : i32
    %1233 = arith.cmpi eq, %arg0, %c0_i32_313 : i32
    %1234 = arith.extui %1233 : i1 to i32
    %c0_i32_314 = arith.constant 0 : i32
    %1235 = arith.cmpi ne, %1234, %c0_i32_314 : i32
    scf.if %1235 {
      %1236 = arith.extf %1187 : vector<8x32xbf16> to vector<8x32xf32>
      %c0_315 = arith.constant 0 : index
      %c0_316 = arith.constant 0 : index
      %c0_317 = arith.constant 0 : index
      %1237 = vector.load %arg8[%c0_315, %c0_316, %c0_317] : memref<2x8x32xf32, #tpu.memory_space<vmem>>, vector<1x8x32xf32>
      %1238 = vector.shape_cast %1237 : vector<1x8x32xf32> to vector<8x32xf32>
      %1239 = vector.shape_cast %1236 : vector<8x32xf32> to vector<1x8x32xf32>
      tpu.vector_store %arg8[%c0_315, %c0_316, %c0_317], %1239 {strides = array<i32>} : memref<2x8x32xf32, #tpu.memory_space<vmem>>, vector<1x8x32xf32>,
      %c0_318 = arith.constant 0 : index
      %c0_319 = arith.constant 0 : index
      %c0_320 = arith.constant 0 : index
      %1240 = vector.load %arg9[%c0_318, %c0_319, %c0_320] : memref<2x8x32xf32, #tpu.memory_space<vmem>>, vector<1x8x32xf32>
      %1241 = vector.shape_cast %1240 : vector<1x8x32xf32> to vector<8x32xf32>
      %1242 = vector.shape_cast %1190 : vector<8x32xf32> to vector<1x8x32xf32>
      tpu.vector_store %arg9[%c0_318, %c0_319, %c0_320], %1242 {strides = array<i32>} : memref<2x8x32xf32, #tpu.memory_space<vmem>>, vector<1x8x32xf32>,
      %1243 = arith.extf %1225 : vector<8x32xbf16> to vector<8x32xf32>
      %c1_321 = arith.constant 1 : index
      %c0_322 = arith.constant 0 : index
      %c0_323 = arith.constant 0 : index
      %1244 = vector.load %arg8[%c1_321, %c0_322, %c0_323] : memref<2x8x32xf32, #tpu.memory_space<vmem>>, vector<1x8x32xf32>
      %1245 = vector.shape_cast %1244 : vector<1x8x32xf32> to vector<8x32xf32>
      %1246 = vector.shape_cast %1243 : vector<8x32xf32> to vector<1x8x32xf32>
      tpu.vector_store %arg8[%c1_321, %c0_322, %c0_323], %1246 {strides = array<i32>} : memref<2x8x32xf32, #tpu.memory_space<vmem>>, vector<1x8x32xf32>,
      %c1_324 = arith.constant 1 : index
      %c0_325 = arith.constant 0 : index
      %c0_326 = arith.constant 0 : index
      %1247 = vector.load %arg9[%c1_324, %c0_325, %c0_326] : memref<2x8x32xf32, #tpu.memory_space<vmem>>, vector<1x8x32xf32>
      %1248 = vector.shape_cast %1247 : vector<1x8x32xf32> to vector<8x32xf32>
      %1249 = vector.shape_cast %1228 : vector<8x32xf32> to vector<1x8x32xf32>
      tpu.vector_store %arg9[%c1_324, %c0_325, %c0_326], %1249 {strides = array<i32>} : memref<2x8x32xf32, #tpu.memory_space<vmem>>, vector<1x8x32xf32>,
    } else {
    }
    return
  }
  func.func @transform_0(%arg0: i32) -> (i32, i32) {
    %c0_i32 = arith.constant 0 : i32
    %c0_i32_0 = arith.constant 0 : i32
    %c0_i32_1 = arith.constant 0 : i32
    return %c0_i32, %c0_i32_0 : i32, i32
  }
  func.func @transform_1(%arg0: i32) -> (i32, i32, i32) {
    %c0_i32 = arith.constant 0 : i32
    %c0_i32_0 = arith.constant 0 : i32
    %c0_i32_1 = arith.constant 0 : i32
    return %arg0, %c0_i32, %c0_i32_0 : i32, i32, i32
  }
  func.func @transform_2(%arg0: i32) -> (i32, i32, i32) {
    %c0_i32 = arith.constant 0 : i32
    %0 = arith.subi %c0_i32, %arg0 : i32
    %c0_i32_0 = arith.constant 0 : i32
    %c0_i32_1 = arith.constant 0 : i32
    %c0_i32_2 = arith.constant 0 : i32
    return %0, %c0_i32_0, %c0_i32_1 : i32, i32, i32
  }
  func.func @transform_3(%arg0: i32) -> (i32, i32) {
    %c0_i32 = arith.constant 0 : i32
    %c0_i32_0 = arith.constant 0 : i32
    %c0_i32_1 = arith.constant 0 : i32
    return %c0_i32, %c0_i32_0 : i32, i32
  }
  func.func @transform_4(%arg0: i32) -> (i32, i32) {
    %c0_i32 = arith.constant 0 : i32
    %c0_i32_0 = arith.constant 0 : i32
    %c0_i32_1 = arith.constant 0 : i32
    return %c0_i32, %c0_i32_0 : i32, i32
  }
  func.func @transform_5(%arg0: i32) -> (i32, i32, i32) {
    %c0_i32 = arith.constant 0 : i32
    %c0_i32_0 = arith.constant 0 : i32
    %c0_i32_1 = arith.constant 0 : i32
    return %arg0, %c0_i32, %c0_i32_0 : i32, i32, i32
  }
  func.func @transform_6(%arg0: i32) -> (i32, i32, i32) {
    %c0_i32 = arith.constant 0 : i32
    %0 = arith.subi %c0_i32, %arg0 : i32
    %c0_i32_0 = arith.constant 0 : i32
    %c0_i32_1 = arith.constant 0 : i32
    %c0_i32_2 = arith.constant 0 : i32
    return %0, %c0_i32_0, %c0_i32_1 : i32, i32, i32
  }
  func.func @transform_7(%arg0: i32) -> (i32, i32, i32) {
    %c0_i32 = arith.constant 0 : i32
    %c0_i32_0 = arith.constant 0 : i32
    %c0_i32_1 = arith.constant 0 : i32
    %c0_i32_2 = arith.constant 0 : i32
    return %c0_i32, %c0_i32_0, %c0_i32_1 : i32, i32, i32
  }
  func.func @transform_8(%arg0: i32) -> (i32, i32, i32) {
    %c0_i32 = arith.constant 0 : i32
    %c0_i32_0 = arith.constant 0 : i32
    %c0_i32_1 = arith.constant 0 : i32
    %c0_i32_2 = arith.constant 0 : i32
    return %c0_i32, %c0_i32_0, %c0_i32_1 : i32, i32, i32
  }
}

module attributes {stable_mosaic.version = 11 : i64} {
  func.func @_dense_kernel(%arg0: i32, %arg1: memref<128x32xbf16, #tpu.memory_space<vmem>>, %arg2: memref<128x32xbf16, #tpu.memory_space<vmem>>, %arg3: memref<32x32xbf16, #tpu.memory_space<vmem>>, %arg4: memref<32x32xbf16, #tpu.memory_space<vmem>>, %arg5: memref<1x32xf32, #tpu.memory_space<vmem>>, %arg6: memref<128x32xf32, #tpu.memory_space<vmem>>) attributes {dimension_semantics = [#tpu.dimension_semantics<parallel>], iteration_bounds = array<i64: 1>, scalar_prefetch = 0 : i64, scratch_operands = 0 : i64, tpu.core_type = #tpu.core_type<tc>, window_params = [{transform_indices = @transform_0, window_bounds = array<i64: 128, 32>}, {transform_indices = @transform_1, window_bounds = array<i64: 128, 32>}, {pipeline_mode = #tpu.pipeline_mode<synchronous>, transform_indices = @transform_2, window_bounds = array<i64: 32, 32>}, {pipeline_mode = #tpu.pipeline_mode<synchronous>, transform_indices = @transform_3, window_bounds = array<i64: 32, 32>}, {pipeline_mode = #tpu.pipeline_mode<synchronous>, transform_indices = @transform_4, window_bounds = array<i64: 1, 32>}, {transform_indices = @transform_5, window_bounds = array<i64: 128, 32>}]} {
    %c0 = arith.constant 0 : index
    %c0_0 = arith.constant 0 : index
    %0 = vector.load %arg1[%c0, %c0_0] : memref<128x32xbf16, #tpu.memory_space<vmem>>, vector<128x32xbf16>
    %c0_1 = arith.constant 0 : index
    %c0_2 = arith.constant 0 : index
    %1 = vector.load %arg2[%c0_1, %c0_2] : memref<128x32xbf16, #tpu.memory_space<vmem>>, vector<128x32xbf16>
    %c0_3 = arith.constant 0 : index
    %c0_4 = arith.constant 0 : index
    %2 = vector.load %arg5[%c0_3, %c0_4] : memref<1x32xf32, #tpu.memory_space<vmem>>, vector<1x32xf32>
    %c0_5 = arith.constant 0 : index
    %c0_6 = arith.constant 0 : index
    %3 = vector.load %arg3[%c0_5, %c0_6] : memref<32x32xbf16, #tpu.memory_space<vmem>>, vector<32x32xbf16>
    %cst = arith.constant dense<0.000000e+00> : vector<128x32xf32>
    %4 = tpu.matmul %0, %3, %cst {dimension_numbers = #tpu.dot_dimension_numbers<[1], [0], [0], [1], [0, 0, 1, 1], [], []>} : vector<128x32xbf16>, vector<32x32xbf16>, vector<128x32xf32> -> vector<128x32xf32>
    %5 = vector.broadcast %2 : vector<1x32xf32> to vector<128x32xf32>
    %6 = arith.addf %5, %4 : vector<128x32xf32>
    %c0_7 = arith.constant 0 : index
    %c0_8 = arith.constant 0 : index
    %7 = vector.load %arg4[%c0_7, %c0_8] : memref<32x32xbf16, #tpu.memory_space<vmem>>, vector<32x32xbf16>
    %cst_9 = arith.constant dense<0.000000e+00> : vector<128x32xf32>
    %8 = tpu.matmul %1, %7, %cst_9 {dimension_numbers = #tpu.dot_dimension_numbers<[1], [0], [0], [1], [0, 0, 1, 1], [], []>} : vector<128x32xbf16>, vector<32x32xbf16>, vector<128x32xf32> -> vector<128x32xf32>
    %9 = arith.addf %6, %8 : vector<128x32xf32>
    %10 = math.tanh %9 : vector<128x32xf32>
    %c0_10 = arith.constant 0 : index
    %c0_11 = arith.constant 0 : index
    %11 = vector.load %arg6[%c0_10, %c0_11] : memref<128x32xf32, #tpu.memory_space<vmem>>, vector<128x32xf32>
    tpu.vector_store %arg6[%c0_10, %c0_11], %10 {strides = array<i32>} : memref<128x32xf32, #tpu.memory_space<vmem>>, vector<128x32xf32>,
    return
  }
  func.func @transform_0(%arg0: i32) -> (i32, i32) {
    %c0_i32 = arith.constant 0 : i32
    %c0_i32_0 = arith.constant 0 : i32
    return %arg0, %c0_i32 : i32, i32
  }
  func.func @transform_1(%arg0: i32) -> (i32, i32) {
    %c0_i32 = arith.constant 0 : i32
    %c0_i32_0 = arith.constant 0 : i32
    return %arg0, %c0_i32 : i32, i32
  }
  func.func @transform_2(%arg0: i32) -> (i32, i32) {
    %c0_i32 = arith.constant 0 : i32
    %c0_i32_0 = arith.constant 0 : i32
    %c0_i32_1 = arith.constant 0 : i32
    return %c0_i32, %c0_i32_0 : i32, i32
  }
  func.func @transform_3(%arg0: i32) -> (i32, i32) {
    %c0_i32 = arith.constant 0 : i32
    %c0_i32_0 = arith.constant 0 : i32
    %c0_i32_1 = arith.constant 0 : i32
    return %c0_i32, %c0_i32_0 : i32, i32
  }
  func.func @transform_4(%arg0: i32) -> (i32, i32) {
    %c0_i32 = arith.constant 0 : i32
    %c0_i32_0 = arith.constant 0 : i32
    %c0_i32_1 = arith.constant 0 : i32
    return %c0_i32, %c0_i32_0 : i32, i32
  }
  func.func @transform_5(%arg0: i32) -> (i32, i32) {
    %c0_i32 = arith.constant 0 : i32
    %c0_i32_0 = arith.constant 0 : i32
    return %arg0, %c0_i32 : i32, i32
  }
}

</mosaic_0001>

<bundles_post_ra>
// kernel: rnn_forward.7
= control target key start
LH: loop header
LB: loop body
LE: loop exit
PB: predicated region body
PF: predicated region fallthrough
CT: control target
= control target key end

     0   :  { %vm121_vm0 = vcmask 261120   ;;  %s1559_s2 = inlined_call_operand.vmem [shape: bf16[32,128], index: 2, kind: input, shape index: {}]   ;;  %s1560_s4 = inlined_call_operand.vmem [shape: bf16[32,128], index: 4, kind: input, shape index: {}]   ;;  %s1561_s0 = inlined_call_operand.vmem [shape: bf16[128,32], index: 0, kind: input, shape index: {}]   ;;  %s1562_s3 = inlined_call_operand.vmem [shape: bf16[32,128], index: 3, kind: input, shape index: {}]   ;;  %s1563_s5 = inlined_call_operand.vmem [shape: bf16[32,128], index: 5, kind: input, shape index: {}]   ;;  %s1564_s1 = inlined_call_operand.vmem [shape: bf16[128,32], index: 1, kind: input, shape index: {}]   ;;  %s1565_s6 = inlined_call_operand.vmem [shape: f32[1,128], index: 6, kind: input, shape index: {}]   ;;  %s1566_s7 = inlined_call_operand.vmem [shape: f32[1,128], index: 7, kind: input, shape index: {}]   ;;  %s1567_s8 = inlined_call_operand.vmem [shape: bf16[128,128], index: 8, kind: output, shape index: {0}]   ;;  %s1568_s9 = inlined_call_operand.vmem [shape: bf16[128,128], index: 9, kind: output, shape index: {1}]  }
   0x1   :  { %v1291_v0 = vld [vmem:[%s1559_s2] sm:$0xff]   ;;  %v1293_v2 = vld [vmem:[%s1559_s2 + $0x8] sm:$0xff]   ;;  %v1299_v8 = vld [vmem:[%s1561_s0 + $0x10] sm:$0xff]  }
   0x2   :  { %v1292_v1 = vld [vmem:[%s1560_s4] sm:$0xff]   ;;  %1147 = vmatprep.subr.bf16.mxu0 %v1291_v0  ;;  %v1294_v3 = vld [vmem:[%s1560_s4 + $0x8] sm:$0xff]   ;;  %v1300_v11 = vld [vmem:[%s1561_s0 + $0x18] sm:$0xff]  }
   0x3   :  { %1187 = vmatprep.subr.bf16.mxu1 %v1292_v1  ;;  %1148 = vmatpush3.bf16.msra.mxu0 %v1291_v0  ;;  %v1295_v4 = vld [vmem:[%s1561_s0] sm:$0xff]   ;;  %v1296_v5 = vld [vmem:[%s1561_s0 + $0x8] sm:$0xff]   ;;  %v1305_v14 = vld [vmem:[%s1561_s0 + $0x30] sm:$0xff]  }
   0x4   :  { %1188 = vmatpush3.bf16.msra.mxu1 %v1292_v1  ;;  %1149 = vmatprep.subr.bf16.mxu0 %v1293_v2  ;;  %v1297_v6 = vld [vmem:[%s1562_s3] sm:$0xff]   ;;  %v1303_v9 = vld [vmem:[%s1562_s3 + $0x8] sm:$0xff]   ;;  %v1306_v15 = vld [vmem:[%s1561_s0 + $0x38] sm:$0xff]  }
   0x5   :  { %1189 = vmatprep.subr.bf16.mxu1 %v1294_v3  ;;  %1151 = vmatprep.mubr.msk.bf16.mxu0 %vm121_vm0, %v1295_v4  ;;  %v1298_v7 = vld [vmem:[%s1563_s5] sm:$0xff]   ;;  %v1304_v10 = vld [vmem:[%s1563_s5 + $0x8] sm:$0xff]   ;;  %v1309_v18 = vld [vmem:[%s1564_s1 + $0x10] sm:$0xff]  }
   0x6   :  { %1191 = vmatprep.mubr.msk.bf16.mxu1 %vm121_vm0, %v1295_v4  ;;  %v1301_v12 = vld [vmem:[%s1561_s0 + $0x20] sm:$0xff]   ;;  %v1302_v13 = vld [vmem:[%s1561_s0 + $0x28] sm:$0xff]   ;;  %v1310_v19 = vld [vmem:[%s1564_s1 + $0x18] sm:$0xff]  }
   0x7   :  { %1150 = vmatpush3.bf16.msra.mxu0 %v1293_v2  ;;  %v1307_v16 = vld [vmem:[%s1564_s1] sm:$0xff]   ;;  %v1308_v17 = vld [vmem:[%s1564_s1 + $0x8] sm:$0xff]   ;;  %v1313_v22 = vld [vmem:[%s1564_s1 + $0x30] sm:$0xff]  }
   0x8   :  { %1190 = vmatpush3.bf16.msra.mxu1 %v1294_v3  ;;  %1167 = vmatprep.subr.bf16.mxu0 %v1297_v6  ;;  %v1311_v20 = vld [vmem:[%s1564_s1 + $0x20] sm:$0xff]   ;;  %v1312_v21 = vld [vmem:[%s1564_s1 + $0x28] sm:$0xff]   ;;  %v1314_v23 = vld [vmem:[%s1564_s1 + $0x38] sm:$0xff]  }
   0x9   :  { %1207 = vmatprep.subr.bf16.mxu1 %v1298_v7  ;;  %v1472_v24 = vld [vmem:[%s1565_s6] ss:$0 sm:$0xff] }
   0xa   :  { %1152 = vmatmul.mubr.msk.bf16.vlgmr.msra.gmra.mrb[0].mxu0 %vm121_vm0, %v1296_v5  ;;  %v1477_v26 = vld [vmem:[%s1566_s7] ss:$0 sm:$0xff] }
   0xb   :  { %1192 = vmatmul.mubr.msk.bf16.vlgmr.msra.gmra.mrb[0].mxu1 %vm121_vm0, %v1296_v5  ;;  %1168 = vmatpush3.bf16.msra.mxu0 %v1297_v6 }
   0xc   :  { %1208 = vmatpush3.bf16.msra.mxu1 %v1298_v7  ;;  %1155 = vmatprep.mubr.msk.bf16.mxu0 %vm121_vm0, %v1299_v8 }
   0xd   :  { %1195 = vmatprep.mubr.msk.bf16.mxu1 %vm121_vm0, %v1299_v8  ;;  %1169 = vmatprep.subr.bf16.mxu0 %v1303_v9 }
   0xe   :  { %1209 = vmatprep.subr.bf16.mxu1 %v1304_v10 }
   0xf   :  { %1170 = vmatpush3.bf16.msra.mxu0 %v1303_v9 }
  0x10   :  { %1210 = vmatpush3.bf16.msra.mxu1 %v1304_v10 }
  0x12   :  { %1156 = vmatmul.mubr.msk.bf16.gmra.mrb[4].mxu0 %vm121_vm0, %v1300_v11 }
  0x13   :  { %1196 = vmatmul.mubr.msk.bf16.gmra.mrb[4].mxu1 %vm121_vm0, %v1300_v11  ;;  %1159 = vmatprep.mubr.msk.bf16.mxu0 %vm121_vm0, %v1301_v12 }
  0x14   :  { %1199 = vmatprep.mubr.msk.bf16.mxu1 %vm121_vm0, %v1301_v12 }
  0x1a   :  { %1160 = vmatmul.mubr.msk.bf16.gmra.mrb[8].mxu0 %vm121_vm0, %v1302_v13 }
  0x1b   :  { %1200 = vmatmul.mubr.msk.bf16.gmra.mrb[8].mxu1 %vm121_vm0, %v1302_v13  ;;  %1163 = vmatprep.mubr.msk.bf16.mxu0 %vm121_vm0, %v1305_v14 }
  0x1c   :  { %1203 = vmatprep.mubr.msk.bf16.mxu1 %vm121_vm0, %v1305_v14 }
  0x22   :  { %1164 = vmatmul.mubr.msk.bf16.gmra.mrb[12].mxu0 %vm121_vm0, %v1306_v15 }
  0x23   :  { %1204 = vmatmul.mubr.msk.bf16.gmra.mrb[12].mxu1 %vm121_vm0, %v1306_v15  ;;  %1171 = vmatprep.mubr.msk.bf16.mxu0 %vm121_vm0, %v1307_v16 }
  0x24   :  { %1211 = vmatprep.mubr.msk.bf16.mxu1 %vm121_vm0, %v1307_v16 }
  0x2a   :  { %1172 = vmatmul.mubr.msk.bf16.vlgmr.msra.gmra.mrb[0].mxu0 %vm121_vm0, %v1308_v17 }
  0x2b   :  { %1212 = vmatmul.mubr.msk.bf16.vlgmr.msra.gmra.mrb[0].mxu1 %vm121_vm0, %v1308_v17  ;;  %1175 = vmatprep.mubr.msk.bf16.mxu0 %vm121_vm0, %v1309_v18 }
  0x2c   :  { %1215 = vmatprep.mubr.msk.bf16.mxu1 %vm121_vm0, %v1309_v18 }
  0x32   :  { %1176 = vmatmul.mubr.msk.bf16.gmra.mrb[4].mxu0 %vm121_vm0, %v1310_v19 }
  0x33   :  { %1216 = vmatmul.mubr.msk.bf16.gmra.mrb[4].mxu1 %vm121_vm0, %v1310_v19  ;;  %1179 = vmatprep.mubr.msk.bf16.mxu0 %vm121_vm0, %v1311_v20 }
  0x34   :  { %1219 = vmatprep.mubr.msk.bf16.mxu1 %vm121_vm0, %v1311_v20 }
  0x3a   :  { %1180 = vmatmul.mubr.msk.bf16.gmra.mrb[8].mxu0 %vm121_vm0, %v1312_v21 }
  0x3b   :  { %1220 = vmatmul.mubr.msk.bf16.gmra.mrb[8].mxu1 %vm121_vm0, %v1312_v21  ;;  %1183 = vmatprep.mubr.msk.bf16.mxu0 %vm121_vm0, %v1313_v22 }
  0x3c   :  { %1223 = vmatprep.mubr.msk.bf16.mxu1 %vm121_vm0, %v1313_v22 }
  0x42   :  { %1184 = vmatmul.mubr.msk.bf16.gmra.mrb[12].mxu0 %vm121_vm0, %v1314_v23 }
  0x43   :  { %1224 = vmatmul.mubr.msk.bf16.gmra.mrb[12].mxu1 %vm121_vm0, %v1314_v23 }
  0xfd   :  { %v1173_v25 = vpop.f32.mrb[0].mxu0 }
  0xfe   :  { %v1213_v27 = vpop.f32.mrb[0].mxu1  ;;  %v379_v28 = vpop.f32.mrb[1].mxu0  ;;  %v1227_v31 = vadd.f32 %v1173_v25, %v1472_v24 }
  0xff   :  { %v724_v29 = vpop.f32.mrb[1].mxu1  ;;  %v1174_v30 = vpop.f32.mrb[2].mxu0  ;;  %v1243_v35 = vadd.f32 %v1213_v27, %v1477_v26  ;;  %v1228_v36 = vadd.f32 %v1472_v24, %v379_v28 }
 0x100   :  { %v1229_v32 = vadd.f32 %v1174_v30, %v1472_v24  ;;  %v1214_v33 = vpop.f32.mrb[2].mxu1  ;;  %v382_v34 = vpop.f32.mrb[3].mxu0  ;;  %v1244_v40 = vadd.f32 %v1477_v26, %v724_v29 }
 0x101   :  { %v1245_v37 = vadd.f32 %v1214_v33, %v1477_v26  ;;  %v1230_v38 = vadd.f32 %v1472_v24, %v382_v34  ;;  %v727_v39 = vpop.f32.mrb[3].mxu1 }
 0x102   :  { %v1021_v41 = vpack.c.bf16 %v1229_v32, %v1227_v31  ;;  %v1246_v42 = vadd.f32 %v1477_v26, %v727_v39 }
 0x103   :  { %v1061_v43 = vpack.c.bf16 %v1245_v37, %v1243_v35  ;;  %v1016_v44 = vpack.c.bf16 %v1230_v38, %v1228_v36 }
 0x104   :  { %1093 = vst [vmem:[%s1567_s8 + $0x8] sm:$0xff] %v1021_v41   ;;  %v1056_v45 = vpack.c.bf16 %v1246_v42, %v1244_v40 }
 0x105   :  { %1100 = vst [vmem:[%s1568_s9 + $0x8] sm:$0xff] %v1061_v43   ;;  %1017 = vst [vmem:[%s1567_s8] sm:$0xff] %v1016_v44   ;;  %v1177_v46 = vpop.f32.mrb[4].mxu0 }
 0x106   :  { %1057 = vst [vmem:[%s1568_s9] sm:$0xff] %v1056_v45   ;;  %v1217_v47 = vpop.f32.mrb[4].mxu1  ;;  %v395_v48 = vpop.f32.mrb[5].mxu0  ;;  %v1231_v51 = vadd.f32 %v1177_v46, %v1472_v24 }
 0x107   :  { %v740_v49 = vpop.f32.mrb[5].mxu1  ;;  %v1178_v50 = vpop.f32.mrb[6].mxu0  ;;  %v1247_v55 = vadd.f32 %v1217_v47, %v1477_v26  ;;  %v1232_v56 = vadd.f32 %v1472_v24, %v395_v48 }
 0x108   :  { %v1233_v52 = vadd.f32 %v1178_v50, %v1472_v24  ;;  %v1218_v53 = vpop.f32.mrb[6].mxu1  ;;  %v398_v54 = vpop.f32.mrb[7].mxu0  ;;  %v1248_v60 = vadd.f32 %v1477_v26, %v740_v49 }
 0x109   :  { %v1249_v57 = vadd.f32 %v1218_v53, %v1477_v26  ;;  %v1234_v58 = vadd.f32 %v1472_v24, %v398_v54  ;;  %v743_v59 = vpop.f32.mrb[7].mxu1 }
 0x10a   :  { %v1031_v61 = vpack.c.bf16 %v1233_v52, %v1231_v51  ;;  %v1250_v62 = vadd.f32 %v1477_v26, %v743_v59 }
 0x10b   :  { %v1071_v63 = vpack.c.bf16 %v1249_v57, %v1247_v55  ;;  %v1026_v0 = vpack.c.bf16 %v1234_v58, %v1232_v56 }
 0x10c   :  { %1095 = vst [vmem:[%s1567_s8 + $0x18] sm:$0xff] %v1031_v61   ;;  %v1066_v1 = vpack.c.bf16 %v1250_v62, %v1248_v60 }
 0x10d   :  { %1102 = vst [vmem:[%s1568_s9 + $0x18] sm:$0xff] %v1071_v63   ;;  %1094 = vst [vmem:[%s1567_s8 + $0x10] sm:$0xff] %v1026_v0   ;;  %v1181_v2 = vpop.f32.mrb[8].mxu0 }
 0x10e   :  { %1101 = vst [vmem:[%s1568_s9 + $0x10] sm:$0xff] %v1066_v1   ;;  %v1221_v3 = vpop.f32.mrb[8].mxu1  ;;  %v411_v4 = vpop.f32.mrb[9].mxu0  ;;  %v1235_v7 = vadd.f32 %v1181_v2, %v1472_v24 }
 0x10f   :  { %v756_v5 = vpop.f32.mrb[9].mxu1  ;;  %v1182_v6 = vpop.f32.mrb[10].mxu0  ;;  %v1251_v11 = vadd.f32 %v1221_v3, %v1477_v26  ;;  %v1236_v12 = vadd.f32 %v1472_v24, %v411_v4 }
 0x110   :  { %v1237_v8 = vadd.f32 %v1182_v6, %v1472_v24  ;;  %v1222_v9 = vpop.f32.mrb[10].mxu1  ;;  %v414_v10 = vpop.f32.mrb[11].mxu0  ;;  %v1252_v16 = vadd.f32 %v1477_v26, %v756_v5 }
 0x111   :  { %v1253_v13 = vadd.f32 %v1222_v9, %v1477_v26  ;;  %v1238_v14 = vadd.f32 %v1472_v24, %v414_v10  ;;  %v759_v15 = vpop.f32.mrb[11].mxu1 }
 0x112   :  { %v1041_v17 = vpack.c.bf16 %v1237_v8, %v1235_v7  ;;  %v1254_v18 = vadd.f32 %v1477_v26, %v759_v15 }
 0x113   :  { %v1081_v19 = vpack.c.bf16 %v1253_v13, %v1251_v11  ;;  %v1036_v20 = vpack.c.bf16 %v1238_v14, %v1236_v12 }
 0x114   :  { %1097 = vst [vmem:[%s1567_s8 + $0x28] sm:$0xff] %v1041_v17   ;;  %v1076_v21 = vpack.c.bf16 %v1254_v18, %v1252_v16 }
 0x115   :  { %1104 = vst [vmem:[%s1568_s9 + $0x28] sm:$0xff] %v1081_v19   ;;  %1096 = vst [vmem:[%s1567_s8 + $0x20] sm:$0xff] %v1036_v20   ;;  %v1185_v22 = vpop.f32.mrb[12].mxu0 }
 0x116   :  { %1103 = vst [vmem:[%s1568_s9 + $0x20] sm:$0xff] %v1076_v21   ;;  %v1225_v23 = vpop.f32.mrb[12].mxu1  ;;  %v427_v25 = vpop.f32.mrb[13].mxu0  ;;  %v1239_v29 = vadd.f32 %v1185_v22, %v1472_v24 }
 0x117   :  { %v772_v27 = vpop.f32.mrb[13].mxu1  ;;  %v1186_v28 = vpop.f32.mrb[14].mxu0  ;;  %v1255_v33 = vadd.f32 %v1225_v23, %v1477_v26  ;;  %v1240_v34 = vadd.f32 %v1472_v24, %v427_v25 }
 0x118   :  { %v1241_v30 = vadd.f32 %v1186_v28, %v1472_v24  ;;  %v1226_v31 = vpop.f32.mrb[14].mxu1  ;;  %v430_v32 = vpop.f32.mrb[15].mxu0  ;;  %v1256_v38 = vadd.f32 %v1477_v26, %v772_v27 }
 0x119   :  { %v1257_v35 = vadd.f32 %v1226_v31, %v1477_v26  ;;  %v1242_v36 = vadd.f32 %v1472_v24, %v430_v32  ;;  %v775_v37 = vpop.f32.mrb[15].mxu1 }
 0x11a   :  { %v1051_v39 = vpack.c.bf16 %v1241_v30, %v1239_v29  ;;  %v1258_v40 = vadd.f32 %v1477_v26, %v775_v37 }
 0x11b   :  { %v1091_v41 = vpack.c.bf16 %v1257_v35, %v1255_v33  ;;  %v1046_v42 = vpack.c.bf16 %v1242_v36, %v1240_v34 }
 0x11c   :  { %1099 = vst [vmem:[%s1567_s8 + $0x38] sm:$0xff] %v1051_v39   ;;  %v1086_v43 = vpack.c.bf16 %v1258_v40, %v1256_v38 }
 0x11d   :  { %1106 = vst [vmem:[%s1568_s9 + $0x38] sm:$0xff] %v1091_v41   ;;  %1098 = vst [vmem:[%s1567_s8 + $0x30] sm:$0xff] %v1046_v42  }
 0x11e   :  { %1105 = vst [vmem:[%s1568_s9 + $0x30] sm:$0xff] %v1086_v43  }

// kernel: rnn_forward.5
= control target key start
LH: loop header
LB: loop body
LE: loop exit
PB: predicated region body
PF: predicated region fallthrough
CT: control target
= control target key end

     0   :  { %vm88_vm0 = vcmask 130048   ;;  %s949_s1 = inlined_call_operand.vmem [shape: bf16[16,128], index: 1, kind: input, shape index: {}]   ;;  %s950_s2 = inlined_call_operand.vmem [shape: bf16[16,128], index: 2, kind: input, shape index: {}]   ;;  %s951_s0 = inlined_call_operand.vmem [shape: bf16[128,16], index: 0, kind: input, shape index: {}]   ;;  %s952_s3 = inlined_call_operand.vmem [shape: f32[1,128], index: 3, kind: input, shape index: {}]   ;;  %s953_s4 = inlined_call_operand.vmem [shape: f32[1,128], index: 4, kind: input, shape index: {}]   ;;  %s954_s5 = inlined_call_operand.vmem [shape: bf16[128,128], index: 5, kind: output, shape index: {0}]   ;;  %s955_s6 = inlined_call_operand.vmem [shape: bf16[128,128], index: 6, kind: output, shape index: {1}]  }
   0x1   :  { %v768_v0 = vld [vmem:[%s949_s1] sm:$0xff]   ;;  %v771_v3 = vld [vmem:[%s951_s0 + $0x8] sm:$0xff]   ;;  %v772_v4 = vld [vmem:[%s951_s0 + $0x10] sm:$0xff]  }
   0x2   :  { %v769_v1 = vld [vmem:[%s950_s2] sm:$0xff]   ;;  %732 = vmatprep.subr.bf16.mxu0 %v768_v0  ;;  %v773_v5 = vld [vmem:[%s951_s0 + $0x18] sm:$0xff]   ;;  %v775_v7 = vld [vmem:[%s951_s0 + $0x28] sm:$0xff]  }
   0x3   :  { %v770_v2 = vld [vmem:[%s951_s0] sm:$0xff]   ;;  %750 = vmatprep.subr.bf16.mxu1 %v769_v1  ;;  %733 = vmatpush3.bf16.msra.mxu0 %v768_v0  ;;  %v776_v8 = vld [vmem:[%s951_s0 + $0x30] sm:$0xff]   ;;  %v777_v9 = vld [vmem:[%s951_s0 + $0x38] sm:$0xff]  }
   0x4   :  { %751 = vmatpush3.bf16.msra.mxu1 %v769_v1  ;;  %734 = vmatprep.mubr.msk.bf16.mxu0 %vm88_vm0, %v770_v2  ;;  %v774_v6 = vld [vmem:[%s951_s0 + $0x20] sm:$0xff]  }
   0x5   :  { %752 = vmatprep.mubr.msk.bf16.mxu1 %vm88_vm0, %v770_v2  ;;  %v862_v10 = vld [vmem:[%s952_s3] ss:$0 sm:$0xff] }
   0x6   :  { %735 = vmatmul.mubr.msk.bf16.vlgmr.msra.gmra.mrb[0].mxu0 %vm88_vm0, %v771_v3  ;;  %v867_v12 = vld [vmem:[%s953_s4] ss:$0 sm:$0xff] }
   0x7   :  { %753 = vmatmul.mubr.msk.bf16.vlgmr.msra.gmra.mrb[0].mxu1 %vm88_vm0, %v771_v3  ;;  %738 = vmatprep.mubr.msk.bf16.mxu0 %vm88_vm0, %v772_v4 }
   0x8   :  { %756 = vmatprep.mubr.msk.bf16.mxu1 %vm88_vm0, %v772_v4 }
   0xe   :  { %739 = vmatmul.mubr.msk.bf16.gmra.mrb[4].mxu0 %vm88_vm0, %v773_v5 }
   0xf   :  { %757 = vmatmul.mubr.msk.bf16.gmra.mrb[4].mxu1 %vm88_vm0, %v773_v5  ;;  %742 = vmatprep.mubr.msk.bf16.mxu0 %vm88_vm0, %v774_v6 }
  0x10   :  { %760 = vmatprep.mubr.msk.bf16.mxu1 %vm88_vm0, %v774_v6 }
  0x16   :  { %743 = vmatmul.mubr.msk.bf16.gmra.mrb[8].mxu0 %vm88_vm0, %v775_v7 }
  0x17   :  { %761 = vmatmul.mubr.msk.bf16.gmra.mrb[8].mxu1 %vm88_vm0, %v775_v7  ;;  %746 = vmatprep.mubr.msk.bf16.mxu0 %vm88_vm0, %v776_v8 }
  0x18   :  { %764 = vmatprep.mubr.msk.bf16.mxu1 %vm88_vm0, %v776_v8 }
  0x1e   :  { %747 = vmatmul.mubr.msk.bf16.gmra.mrb[12].mxu0 %vm88_vm0, %v777_v9 }
  0x1f   :  { %765 = vmatmul.mubr.msk.bf16.gmra.mrb[12].mxu1 %vm88_vm0, %v777_v9 }
  0xd9   :  { %v736_v11 = vpop.f32.mrb[0].mxu0 }
  0xda   :  { %v754_v13 = vpop.f32.mrb[0].mxu1  ;;  %v147_v14 = vpop.f32.mrb[1].mxu0  ;;  %v218_v17 = vadd.f32 %v736_v11, %v862_v10 }
  0xdb   :  { %v355_v15 = vpop.f32.mrb[1].mxu1  ;;  %v737_v16 = vpop.f32.mrb[2].mxu0  ;;  %v426_v21 = vadd.f32 %v754_v13, %v867_v12  ;;  %v216_v22 = vadd.f32 %v862_v10, %v147_v14 }
  0xdc   :  { %v219_v18 = vadd.f32 %v737_v16, %v862_v10  ;;  %v755_v19 = vpop.f32.mrb[2].mxu1  ;;  %v150_v20 = vpop.f32.mrb[3].mxu0  ;;  %v424_v26 = vadd.f32 %v867_v12, %v355_v15 }
  0xdd   :  { %v427_v23 = vadd.f32 %v755_v19, %v867_v12  ;;  %v217_v24 = vadd.f32 %v862_v10, %v150_v20  ;;  %v358_v25 = vpop.f32.mrb[3].mxu1 }
  0xde   :  { %v628_v27 = vpack.c.bf16 %v219_v18, %v218_v17  ;;  %v425_v28 = vadd.f32 %v867_v12, %v358_v25 }
  0xdf   :  { %v668_v29 = vpack.c.bf16 %v427_v23, %v426_v21  ;;  %v623_v30 = vpack.c.bf16 %v217_v24, %v216_v22 }
  0xe0   :  { %700 = vst [vmem:[%s954_s5 + $0x8] sm:$0xff] %v628_v27   ;;  %v663_v31 = vpack.c.bf16 %v425_v28, %v424_v26 }
  0xe1   :  { %707 = vst [vmem:[%s955_s6 + $0x8] sm:$0xff] %v668_v29   ;;  %624 = vst [vmem:[%s954_s5] sm:$0xff] %v623_v30   ;;  %v740_v32 = vpop.f32.mrb[4].mxu0 }
  0xe2   :  { %664 = vst [vmem:[%s955_s6] sm:$0xff] %v663_v31   ;;  %v758_v33 = vpop.f32.mrb[4].mxu1  ;;  %v163_v34 = vpop.f32.mrb[5].mxu0  ;;  %v222_v37 = vadd.f32 %v740_v32, %v862_v10 }
  0xe3   :  { %v371_v35 = vpop.f32.mrb[5].mxu1  ;;  %v741_v36 = vpop.f32.mrb[6].mxu0  ;;  %v430_v41 = vadd.f32 %v758_v33, %v867_v12  ;;  %v220_v42 = vadd.f32 %v862_v10, %v163_v34 }
  0xe4   :  { %v223_v38 = vadd.f32 %v741_v36, %v862_v10  ;;  %v759_v39 = vpop.f32.mrb[6].mxu1  ;;  %v166_v40 = vpop.f32.mrb[7].mxu0  ;;  %v428_v46 = vadd.f32 %v867_v12, %v371_v35 }
  0xe5   :  { %v431_v43 = vadd.f32 %v759_v39, %v867_v12  ;;  %v221_v44 = vadd.f32 %v862_v10, %v166_v40  ;;  %v374_v45 = vpop.f32.mrb[7].mxu1 }
  0xe6   :  { %v638_v47 = vpack.c.bf16 %v223_v38, %v222_v37  ;;  %v429_v48 = vadd.f32 %v867_v12, %v374_v45 }
  0xe7   :  { %v678_v49 = vpack.c.bf16 %v431_v43, %v430_v41  ;;  %v633_v50 = vpack.c.bf16 %v221_v44, %v220_v42 }
  0xe8   :  { %702 = vst [vmem:[%s954_s5 + $0x18] sm:$0xff] %v638_v47   ;;  %v673_v51 = vpack.c.bf16 %v429_v48, %v428_v46 }
  0xe9   :  { %709 = vst [vmem:[%s955_s6 + $0x18] sm:$0xff] %v678_v49   ;;  %701 = vst [vmem:[%s954_s5 + $0x10] sm:$0xff] %v633_v50   ;;  %v744_v52 = vpop.f32.mrb[8].mxu0 }
  0xea   :  { %708 = vst [vmem:[%s955_s6 + $0x10] sm:$0xff] %v673_v51   ;;  %v762_v53 = vpop.f32.mrb[8].mxu1  ;;  %v179_v54 = vpop.f32.mrb[9].mxu0  ;;  %v226_v57 = vadd.f32 %v744_v52, %v862_v10 }
  0xeb   :  { %v387_v55 = vpop.f32.mrb[9].mxu1  ;;  %v745_v56 = vpop.f32.mrb[10].mxu0  ;;  %v434_v61 = vadd.f32 %v762_v53, %v867_v12  ;;  %v224_v62 = vadd.f32 %v862_v10, %v179_v54 }
  0xec   :  { %v227_v58 = vadd.f32 %v745_v56, %v862_v10  ;;  %v763_v59 = vpop.f32.mrb[10].mxu1  ;;  %v182_v60 = vpop.f32.mrb[11].mxu0  ;;  %v432_v2 = vadd.f32 %v867_v12, %v387_v55 }
  0xed   :  { %v435_v63 = vadd.f32 %v763_v59, %v867_v12  ;;  %v225_v0 = vadd.f32 %v862_v10, %v182_v60  ;;  %v390_v1 = vpop.f32.mrb[11].mxu1 }
  0xee   :  { %v648_v3 = vpack.c.bf16 %v227_v58, %v226_v57  ;;  %v433_v4 = vadd.f32 %v867_v12, %v390_v1 }
  0xef   :  { %v688_v5 = vpack.c.bf16 %v435_v63, %v434_v61  ;;  %v643_v6 = vpack.c.bf16 %v225_v0, %v224_v62 }
  0xf0   :  { %704 = vst [vmem:[%s954_s5 + $0x28] sm:$0xff] %v648_v3   ;;  %v683_v7 = vpack.c.bf16 %v433_v4, %v432_v2 }
  0xf1   :  { %711 = vst [vmem:[%s955_s6 + $0x28] sm:$0xff] %v688_v5   ;;  %703 = vst [vmem:[%s954_s5 + $0x20] sm:$0xff] %v643_v6   ;;  %v748_v8 = vpop.f32.mrb[12].mxu0 }
  0xf2   :  { %710 = vst [vmem:[%s955_s6 + $0x20] sm:$0xff] %v683_v7   ;;  %v766_v9 = vpop.f32.mrb[12].mxu1  ;;  %v195_v11 = vpop.f32.mrb[13].mxu0  ;;  %v230_v15 = vadd.f32 %v748_v8, %v862_v10 }
  0xf3   :  { %v403_v13 = vpop.f32.mrb[13].mxu1  ;;  %v749_v14 = vpop.f32.mrb[14].mxu0  ;;  %v438_v19 = vadd.f32 %v766_v9, %v867_v12  ;;  %v228_v20 = vadd.f32 %v862_v10, %v195_v11 }
  0xf4   :  { %v231_v16 = vadd.f32 %v749_v14, %v862_v10  ;;  %v767_v17 = vpop.f32.mrb[14].mxu1  ;;  %v198_v18 = vpop.f32.mrb[15].mxu0  ;;  %v436_v24 = vadd.f32 %v867_v12, %v403_v13 }
  0xf5   :  { %v439_v21 = vadd.f32 %v767_v17, %v867_v12  ;;  %v229_v22 = vadd.f32 %v862_v10, %v198_v18  ;;  %v406_v23 = vpop.f32.mrb[15].mxu1 }
  0xf6   :  { %v658_v25 = vpack.c.bf16 %v231_v16, %v230_v15  ;;  %v437_v26 = vadd.f32 %v867_v12, %v406_v23 }
  0xf7   :  { %v698_v27 = vpack.c.bf16 %v439_v21, %v438_v19  ;;  %v653_v28 = vpack.c.bf16 %v229_v22, %v228_v20 }
  0xf8   :  { %706 = vst [vmem:[%s954_s5 + $0x38] sm:$0xff] %v658_v25   ;;  %v693_v29 = vpack.c.bf16 %v437_v26, %v436_v24 }
  0xf9   :  { %713 = vst [vmem:[%s955_s6 + $0x38] sm:$0xff] %v698_v27   ;;  %705 = vst [vmem:[%s954_s5 + $0x30] sm:$0xff] %v653_v28  }
  0xfa   :  { %712 = vst [vmem:[%s955_s6 + $0x30] sm:$0xff] %v693_v29  }

// kernel: rnn_forward.9
= control target key start
LH: loop header
LB: loop body
LE: loop exit
PB: predicated region body
PF: predicated region fallthrough
CT: control target
= control target key end

     0   :  { %vm110_vm0 = vcmask 261120   ;;  %s855_s2 = inlined_call_operand.vmem [shape: bf16[32,32], index: 2, kind: input, shape index: {}]   ;;  %s856_s3 = inlined_call_operand.vmem [shape: bf16[32,32], index: 3, kind: input, shape index: {}]   ;;  %s857_s0 = inlined_call_operand.vmem [shape: bf16[128,32], index: 0, kind: input, shape index: {}]   ;;  %s858_s1 = inlined_call_operand.vmem [shape: bf16[128,32], index: 1, kind: input, shape index: {}]   ;;  %s859_s4 = inlined_call_operand.vmem [shape: f32[1,32], index: 4, kind: input, shape index: {}]   ;;  %s860_s5 = inlined_call_operand.vmem [shape: f32[128,32], index: 5, kind: output, shape index: {}]  }
   0x1   :  { %v612_v0 = vld [vmem:[%s855_s2] sm:$0xff]   ;;  %v614_v2 = vld [vmem:[%s855_s2 + $0x8] sm:$0xff]   ;;  %v620_v8 = vld [vmem:[%s857_s0 + $0x10] sm:$0xff]  }
   0x2   :  { %v613_v1 = vld [vmem:[%s856_s3] sm:$0xff]   ;;  %540 = vmatprep.subr.bf16.mxu1 %v612_v0  ;;  %v615_v3 = vld [vmem:[%s856_s3 + $0x8] sm:$0xff]   ;;  %v621_v9 = vld [vmem:[%s858_s1 + $0x10] sm:$0xff]  }
   0x3   :  { %560 = vmatprep.subr.bf16.mxu0 %v613_v1  ;;  %541 = vmatpush3.bf16.msra.mxu1 %v612_v0  ;;  %v616_v4 = vld [vmem:[%s857_s0] sm:$0xff]   ;;  %v618_v6 = vld [vmem:[%s857_s0 + $0x8] sm:$0xff]   ;;  %v622_v10 = vld [vmem:[%s857_s0 + $0x18] sm:$0xff]  }
   0x4   :  { %561 = vmatpush3.bf16.msra.mxu0 %v613_v1  ;;  %542 = vmatprep.subr.bf16.mxu1 %v614_v2  ;;  %v617_v5 = vld [vmem:[%s858_s1] sm:$0xff]   ;;  %v619_v7 = vld [vmem:[%s858_s1 + $0x8] sm:$0xff]   ;;  %v623_v11 = vld [vmem:[%s858_s1 + $0x18] sm:$0xff]  }
   0x5   :  { %562 = vmatprep.subr.bf16.mxu0 %v615_v3  ;;  %544 = vmatprep.mubr.msk.bf16.mxu1 %vm110_vm0, %v616_v4  ;;  %v624_v12 = vld [vmem:[%s857_s0 + $0x20] sm:$0xff]   ;;  %v626_v14 = vld [vmem:[%s857_s0 + $0x28] sm:$0xff]   ;;  %v628_v16 = vld [vmem:[%s857_s0 + $0x30] sm:$0xff]  }
   0x6   :  { %564 = vmatprep.mubr.msk.bf16.mxu0 %vm110_vm0, %v617_v5  ;;  %v625_v13 = vld [vmem:[%s858_s1 + $0x20] sm:$0xff]   ;;  %v627_v15 = vld [vmem:[%s858_s1 + $0x28] sm:$0xff]   ;;  %v629_v17 = vld [vmem:[%s858_s1 + $0x30] sm:$0xff]  }
   0x7   :  { %543 = vmatpush3.bf16.msra.mxu1 %v614_v2  ;;  %v630_v18 = vld [vmem:[%s857_s0 + $0x38] sm:$0xff]   ;;  %v773_v20 = vld [vmem:[%s859_s4] ss:$0 sm:$0xff] }
   0x8   :  { %563 = vmatpush3.bf16.msra.mxu0 %v615_v3  ;;  %v631_v19 = vld [vmem:[%s858_s1 + $0x38] sm:$0xff]  }
   0xa   :  { %545 = vmatmul.mubr.msk.bf16.vlgmr.msra.gmra.mrb[0].mxu1 %vm110_vm0, %v618_v6 }
   0xb   :  { %565 = vmatmul.mubr.msk.bf16.vlgmr.msra.gmra.mrb[0].mxu0 %vm110_vm0, %v619_v7  ;;  %548 = vmatprep.mubr.msk.bf16.mxu1 %vm110_vm0, %v620_v8 }
   0xc   :  { %568 = vmatprep.mubr.msk.bf16.mxu0 %vm110_vm0, %v621_v9 }
  0x12   :  { %549 = vmatmul.mubr.msk.bf16.gmra.mrb[4].mxu1 %vm110_vm0, %v622_v10 }
  0x13   :  { %569 = vmatmul.mubr.msk.bf16.gmra.mrb[4].mxu0 %vm110_vm0, %v623_v11  ;;  %552 = vmatprep.mubr.msk.bf16.mxu1 %vm110_vm0, %v624_v12 }
  0x14   :  { %572 = vmatprep.mubr.msk.bf16.mxu0 %vm110_vm0, %v625_v13 }
  0x1a   :  { %553 = vmatmul.mubr.msk.bf16.gmra.mrb[8].mxu1 %vm110_vm0, %v626_v14 }
  0x1b   :  { %573 = vmatmul.mubr.msk.bf16.gmra.mrb[8].mxu0 %vm110_vm0, %v627_v15  ;;  %556 = vmatprep.mubr.msk.bf16.mxu1 %vm110_vm0, %v628_v16 }
  0x1c   :  { %576 = vmatprep.mubr.msk.bf16.mxu0 %vm110_vm0, %v629_v17 }
  0x22   :  { %557 = vmatmul.mubr.msk.bf16.gmra.mrb[12].mxu1 %vm110_vm0, %v630_v18 }
  0x23   :  { %577 = vmatmul.mubr.msk.bf16.gmra.mrb[12].mxu0 %vm110_vm0, %v631_v19 }
  0xdd   :  { %v546_v21 = vpop.f32.mrb[0].mxu1 }
  0xde   :  { %v240_v22 = vadd.f32 %v546_v21, %v773_v20  ;;  %v566_v23 = vpop.f32.mrb[0].mxu0  ;;  %v169_v24 = vpop.f32.mrb[1].mxu1 }
  0xdf   :  { %v238_v25 = vadd.f32 %v773_v20, %v169_v24  ;;  %v368_v26 = vpop.f32.mrb[1].mxu0  ;;  %v547_v27 = vpop.f32.mrb[2].mxu1 }
  0xe0   :  { %v433_v28 = vadd.f32 %v566_v23, %v240_v22  ;;  %v241_v29 = vadd.f32 %v547_v27, %v773_v20  ;;  %v567_v30 = vpop.f32.mrb[2].mxu0  ;;  %v172_v31 = vpop.f32.mrb[3].mxu1 }
  0xe1   :  { %v431_v32 = vadd.f32 %v368_v26, %v238_v25  ;;  %v239_v33 = vadd.f32 %v773_v20, %v172_v31  ;;  %v371_v34 = vpop.f32.mrb[3].mxu0 }
  0xe2   :  { %632 = vtanh.f32 %v433_v28  ;;  %v434_v35 = vadd.f32 %v567_v30, %v241_v29 }
  0xe3   :  { %634 = vtanh.f32 %v431_v32  ;;  %v432_v36 = vadd.f32 %v371_v34, %v239_v33 }
  0xe4   :  { %636 = vtanh.f32 %v434_v35 }
  0xe5   :  { %638 = vtanh.f32 %v432_v36  ;;  %v550_v37 = vpop.f32.mrb[4].mxu1 }
  0xe6   :  { %v244_v38 = vadd.f32 %v550_v37, %v773_v20  ;;  %v570_v39 = vpop.f32.mrb[4].mxu0  ;;  %v185_v40 = vpop.f32.mrb[5].mxu1 }
  0xe7   :  { %v242_v41 = vadd.f32 %v773_v20, %v185_v40  ;;  %v384_v42 = vpop.f32.mrb[5].mxu0  ;;  %v551_v43 = vpop.f32.mrb[6].mxu1 }
  0xe8   :  { %v437_v44 = vadd.f32 %v570_v39, %v244_v38  ;;  %v245_v45 = vadd.f32 %v551_v43, %v773_v20  ;;  %v571_v46 = vpop.f32.mrb[6].mxu0  ;;  %v188_v47 = vpop.f32.mrb[7].mxu1 }
  0xe9   :  { %v435_v48 = vadd.f32 %v384_v42, %v242_v41  ;;  %v243_v49 = vadd.f32 %v773_v20, %v188_v47  ;;  %v387_v50 = vpop.f32.mrb[7].mxu0 }
  0xea   :  { %640 = vtanh.f32 %v437_v44  ;;  %v438_v51 = vadd.f32 %v571_v46, %v245_v45 }
  0xeb   :  { %642 = vtanh.f32 %v435_v48  ;;  %v436_v52 = vadd.f32 %v387_v50, %v243_v49 }
  0xec   :  { %v633_v53 = vpop.eup %632  ;;  %644 = vtanh.f32 %v438_v51 }
  0xed   :  { %v635_v54 = vpop.eup %634  ;;  %465 = vst.msk [vmem:[%s860_s5 + $0x10] sm:$0xff] %vm110_vm0, %v633_v53  ;;  %646 = vtanh.f32 %v436_v52  ;;  %v554_v55 = vpop.f32.mrb[8].mxu1 }
  0xee   :  { %v637_v56 = vpop.eup %636  ;;  %463 = vst.msk [vmem:[%s860_s5] sm:$0xff] %vm110_vm0, %v635_v54  ;;  %v248_v57 = vadd.f32 %v554_v55, %v773_v20  ;;  %v574_v58 = vpop.f32.mrb[8].mxu0 }
  0xef   :  { %v201_v59 = vpop.f32.mrb[9].mxu1  ;;  %v639_v60 = vpop.eup %638  ;;  %466 = vst.msk [vmem:[%s860_s5 + $0x18] sm:$0xff] %vm110_vm0, %v637_v56 }
  0xf0   :  { %v246_v61 = vadd.f32 %v773_v20, %v201_v59  ;;  %v400_v62 = vpop.f32.mrb[9].mxu0  ;;  %v555_v63 = vpop.f32.mrb[10].mxu1  ;;  %464 = vst.msk [vmem:[%s860_s5 + $0x8] sm:$0xff] %vm110_vm0, %v639_v60  ;;  %v441_v0 = vadd.f32 %v574_v58, %v248_v57 }
  0xf1   :  { %v249_v1 = vadd.f32 %v555_v63, %v773_v20  ;;  %v575_v2 = vpop.f32.mrb[10].mxu0  ;;  %v204_v3 = vpop.f32.mrb[11].mxu1 }
  0xf2   :  { %v439_v4 = vadd.f32 %v400_v62, %v246_v61  ;;  %v247_v5 = vadd.f32 %v773_v20, %v204_v3  ;;  %v403_v6 = vpop.f32.mrb[11].mxu0  ;;  %648 = vtanh.f32 %v441_v0 }
  0xf3   :  { %v442_v7 = vadd.f32 %v575_v2, %v249_v1 }
  0xf4   :  { %650 = vtanh.f32 %v439_v4  ;;  %v440_v8 = vadd.f32 %v403_v6, %v247_v5  ;;  %v641_v9 = vpop.eup %640 }
  0xf5   :  { %652 = vtanh.f32 %v442_v7  ;;  %v643_v10 = vpop.eup %642  ;;  %469 = vst.msk [vmem:[%s860_s5 + $0x30] sm:$0xff] %vm110_vm0, %v641_v9  ;;  %v558_v11 = vpop.f32.mrb[12].mxu1 }
  0xf6   :  { %654 = vtanh.f32 %v440_v8  ;;  %v645_v12 = vpop.eup %644  ;;  %467 = vst.msk [vmem:[%s860_s5 + $0x20] sm:$0xff] %vm110_vm0, %v643_v10  ;;  %v252_v13 = vadd.f32 %v558_v11, %v773_v20  ;;  %v578_v14 = vpop.f32.mrb[12].mxu0 }
  0xf7   :  { %v217_v15 = vpop.f32.mrb[13].mxu1  ;;  %v647_v16 = vpop.eup %646  ;;  %470 = vst.msk [vmem:[%s860_s5 + $0x38] sm:$0xff] %vm110_vm0, %v645_v12 }
  0xf8   :  { %v250_v17 = vadd.f32 %v773_v20, %v217_v15  ;;  %v416_v18 = vpop.f32.mrb[13].mxu0  ;;  %v559_v19 = vpop.f32.mrb[14].mxu1  ;;  %468 = vst.msk [vmem:[%s860_s5 + $0x28] sm:$0xff] %vm110_vm0, %v647_v16  ;;  %v445_v21 = vadd.f32 %v578_v14, %v252_v13 }
  0xf9   :  { %v253_v22 = vadd.f32 %v559_v19, %v773_v20  ;;  %v579_v23 = vpop.f32.mrb[14].mxu0  ;;  %v220_v24 = vpop.f32.mrb[15].mxu1 }
  0xfa   :  { %v443_v25 = vadd.f32 %v416_v18, %v250_v17  ;;  %v251_v26 = vadd.f32 %v773_v20, %v220_v24  ;;  %v419_v27 = vpop.f32.mrb[15].mxu0  ;;  %656 = vtanh.f32 %v445_v21 }
  0xfb   :  { %v446_v28 = vadd.f32 %v579_v23, %v253_v22 }
  0xfc   :  { %658 = vtanh.f32 %v443_v25  ;;  %v444_v29 = vadd.f32 %v419_v27, %v251_v26  ;;  %v649_v30 = vpop.eup %648 }
  0xfd   :  { %660 = vtanh.f32 %v446_v28  ;;  %473 = vst.msk [vmem:[%s860_s5 + $0x50] sm:$0xff] %vm110_vm0, %v649_v30 }
  0xfe   :  { %v651_v31 = vpop.eup %650  ;;  %662 = vtanh.f32 %v444_v29 }
  0xff   :  { %v653_v32 = vpop.eup %652  ;;  %471 = vst.msk [vmem:[%s860_s5 + $0x40] sm:$0xff] %vm110_vm0, %v651_v31 }
 0x100   :  { %v655_v20 = vpop.eup %654  ;;  %474 = vst.msk [vmem:[%s860_s5 + $0x58] sm:$0xff] %vm110_vm0, %v653_v32 }
 0x101   :  { %472 = vst.msk [vmem:[%s860_s5 + $0x48] sm:$0xff] %vm110_vm0, %v655_v20 }
 0x104   :  { %v657_v33 = vpop.eup %656 }
 0x105   :  { %477 = vst.msk [vmem:[%s860_s5 + $0x70] sm:$0xff] %vm110_vm0, %v657_v33 }
 0x106   :  { %v659_v34 = vpop.eup %658 }
 0x107   :  { %v661_v35 = vpop.eup %660  ;;  %475 = vst.msk [vmem:[%s860_s5 + $0x60] sm:$0xff] %vm110_vm0, %v659_v34 }
 0x108   :  { %v663_v36 = vpop.eup %662  ;;  %478 = vst.msk [vmem:[%s860_s5 + $0x78] sm:$0xff] %vm110_vm0, %v661_v35 }
 0x109   :  { %476 = vst.msk [vmem:[%s860_s5 + $0x68] sm:$0xff] %vm110_vm0, %v663_v36 }

// kernel: rnn_forward.6
= control target key start
LH: loop header
LB: loop body
LE: loop exit
PB: predicated region body
PF: predicated region fallthrough
CT: control target
= control target key end

     0   :  { %vm65_vm0 = vcmask 257024   ;;  %v4081_v0 = vmov 0.0   ;;  %v4082_v2 = vmov 0   ;;  %vm67_vm1 = vcmask 261120   ;;  %s4084_s13 = smov 32   ;;  %s4085_s20 = smov 64   ;;  %s5355_s3 = inlined_call_operand.vmem [shape: bf16[32,128], index: 3, kind: input, shape index: {}]   ;;  %s5356_s4 = inlined_call_operand.vmem [shape: bf16[32,128], index: 4, kind: input, shape index: {}]   ;;  %s5357_s1 = inlined_call_operand.vmem [shape: bf16[16,8,128], index: 1, kind: input, shape index: {}]   ;;  %s5358_s2 = inlined_call_operand.vmem [shape: bf16[16,8,128], index: 2, kind: input, shape index: {}]   ;;  %s5359_s0 = inlined_call_operand.vmem [shape: s32[8,1], index: 0, kind: input, shape index: {}]   ;;  %s5360_s5 = inlined_call_operand.vmem [shape: bf16[16,8,32], index: 5, kind: output, shape index: {0}]   ;;  %s5361_s6 = inlined_call_operand.vmem [shape: bf16[16,8,32], index: 6, kind: output, shape index: {1}]   ;;  %s5362_s8 = inlined_call_operand.vmem [shape: f32[2,8,32], index: 8, kind: output, shape index: {3}]   ;;  %s5363_s7 = inlined_call_operand.vmem [shape: f32[2,8,32], index: 7, kind: output, shape index: {2}]  }
   0x1   :  { %3542 = vmatprep.subr.bf16.mxu0 %v4081_v0  ;;  %v4136_v1 = vld [vmem:[%s5355_s3] sm:$0xff]   ;;  %3550 = vmatprep.subr.bf16.mxu1 %v4081_v0  ;;  %66 = vst.msk [vmem:[#allocation2] sm:$0xf] %vm65_vm0, %v4082_v2  ;;  %69 = vst.msk [vmem:[#allocation4] sm:$0xf] %vm65_vm0, %v4082_v2  ;;  %v4146_v3 = vld [vmem:[%s5355_s3 + $0x8] sm:$0xff]  }
   0x2   :  { %vm4083_vm2 = vmmov 0   ;;  %68 = vst.msk [vmem:[#allocation3] sm:$0xff] %vm67_vm1, %v4081_v0  ;;  %70 = vst.msk [vmem:[#allocation5] sm:$0xff] %vm67_vm1, %v4081_v0  ;;  %3543 = vmatpush3.bf16.msra.mxu0 %v4136_v1  ;;  %v4160_v4 = vld [vmem:[%s5356_s4] sm:$0xff]   ;;  %3804 = vset.pattern.permute.xlu0 %v4082_v2  ;;  %v4169_v5 = vld [vmem:[%s5356_s4 + $0x8] sm:$0xff]   ;;  %s4086_s30 = smov 96  }
   0x3   :  { %3546 = vmatprep.mubr.msk.bf16.mxu0 %vm4083_vm2, %v4081_v0  ;;  %3554 = vmatprep.mubr.msk.bf16.mxu1 %vm4083_vm2, %v4081_v0  ;;  %v87_v10 = vld [vmem:[%s5357_s1] sm:$0xf]  ;;  %v3255_v11 = vld [vmem:[%s5358_s2 + $0x3c] sm:$0xf] }
   0x4   :  { %3544 = vmatprep.subr.bf16.mxu0 %v4081_v0  ;;  %3805 = vset.pattern.permute.xlu1 %v4082_v2  ;;  %v88_v12 = vunpack.c.l.bf16 %v87_v10  ;;  %v202_v13 = vunpack.c.l.bf16 %v3255_v11  ;;  %v4209_v32 = vld [vmem:[%s5359_s0] sm:$0xff] }
   0x5   :  { %3551 = vmatpush3.bf16.msra.mxu1 %v4160_v4  ;;  %vm3252_vm3 = vcmp.gt.s32.totalorder %v4209_v32, 0  ;;  %vm3260_vm4 = vcmp.gt.s32.totalorder %v4209_v32, 15  ;;  %vm3267_vm9 = vcmp.gt.s32.totalorder %v4209_v32, 1  ;;  %vm3273_vm10 = vcmp.gt.s32.totalorder %v4209_v32, 14 }
   0x6   :  { %3552 = vmatprep.subr.bf16.mxu1 %v4081_v0  ;;  %3545 = vmatpush3.bf16.msra.mxu0 %v4146_v3  ;;  %v4214_v38 = vsel %vm3252_vm3, 1, %v4082_v2  ;;  %v4220_v40 = vsel %vm3260_vm4, 1, %v4082_v2  ;;  %vm3279_vm15 = vcmp.gt.s32.totalorder %v4209_v32, 2  ;;  %vm3285_vm3 = vcmp.gt.s32.totalorder %v4209_v32, 13 }
   0x7   :  { %3558 = vmatprep.subr.bf16.mxu0 %v4081_v0 }
   0x8   :  { %v4173_v6 = vld [vmem:[#allocation2] sm:$0xf]  ;;  %v4177_v7 = vld [vmem:[#allocation4] sm:$0xf] }
   0x9   :  { %3553 = vmatpush3.bf16.msra.mxu1 %v4169_v5  ;;  %v82_v8 = vld [vmem:[#allocation3] sm:$0xff]  ;;  %3547 = vmatmul.mubr.msk.bf16.vlgmr.msra.gmra.mrb[0].mxu0 %vm67_vm1, %v4173_v6  ;;  %v83_v9 = vld [vmem:[#allocation5] sm:$0xff]  ;;  %v3254_v50 = vcombine.low %v4173_v6, %v4173_v6  ;;  %v3263_v53 = vcombine.low %v4177_v7, %v4177_v7 }
   0xa   :  { %154 = vrot.lane.b32.xlu1 %v82_v8, %s4084_s13  ;;  %3559 = vmatpush3.bf16.msra.mxu0 %v4136_v1 }
   0xb   :  { %3566 = vmatprep.subr.bf16.mxu1 %v4081_v0  ;;  %3560 = vmatprep.subr.bf16.mxu0 %v4081_v0 }
   0xc   :  { %3555 = vmatmul.mubr.msk.bf16.vlgmr.msra.gmra.mrb[0].mxu1 %vm67_vm1, %v4177_v7  ;;  %3562 = vmatprep.mubr.msk.bf16.mxu0 %vm4083_vm2, %v4081_v0 }
   0xd   :  { %3567 = vmatpush3.bf16.msra.mxu1 %v4160_v4  ;;  %3570 = vmatprep.mubr.msk.bf16.mxu1 %vm4083_vm2, %v4081_v0 }
   0xe   :  { %267 = vrot.lane.b32.xlu1 %v83_v9, %s4084_s13  ;;  %3568 = vmatprep.subr.bf16.mxu1 %v4081_v0 }
   0xf   :  { %3561 = vmatpush3.bf16.msra.mxu0 %v4146_v3 }
  0x10   :  { %3574 = vmatprep.subr.bf16.mxu0 %v4081_v0 }
  0x11   :  { %3569 = vmatpush3.bf16.msra.mxu1 %v4169_v5 }
  0x12   :  { %3582 = vmatprep.subr.bf16.mxu1 %v4081_v0 }
  0x7c   :  { %v155_v41 = vpop.permute.xlu1 %154 }
  0x80   :  { %v268_v43 = vpop.permute.xlu1 %267 }
  0xdc   :  { %v139_v14 = vpop.f32.mrb[0].mxu0 }
  0xdd   :  { %v145_v15 = vadd.f32 %v139_v14, %v88_v12  ;;  %v3548_v16 = vpop.f32.mrb[1].mxu0 }
  0xde   :  { %v142_v17 = vpop.f32.mrb[2].mxu0 }
  0xdf   :  { %v252_v18 = vpop.f32.mrb[0].mxu1  ;;  %3816 = vtanh.f32 %v145_v15  ;;  %v3549_v19 = vpop.f32.mrb[3].mxu0  ;;  %v3251_v26 = vmul.f32 -1.442695, %v145_v15  ;;  %v4270_v15 = vld [vmem:[%s5358_s2 + $0x34] sm:$0xff]  }
  0xe0   :  { %v258_v20 = vadd.f32 %v252_v18, %v202_v13  ;;  %v3556_v21 = vpop.f32.mrb[1].mxu1  ;;  %v4264_v13 = vld [vmem:[%s5357_s1 + $0x4] sm:$0xff]   ;;  %v411_v19 = vunpack.c.h.bf16 %v4270_v15 }
  0xe1   :  { %v255_v22 = vpop.f32.mrb[2].mxu1  ;;  %v316_v14 = vunpack.c.l.bf16 %v4264_v13 }
  0xe2   :  { %v3557_v23 = vpop.f32.mrb[3].mxu1  ;;  %3818 = vtanh.f32 %v258_v20  ;;  %v3259_v27 = vmul.f32 -1.442695, %v258_v20 }
  0xe3   :  { %3820 = vpow2.f32 %v3251_v26 }
  0xe4   :  { %3822 = vpow2.f32 %v3259_v27 }
  0xe9   :  { %v3817_v24 = vpop.eup %3816 }
  0xea   :  { %159 = vrot.lane.b32.xlu0 %v3817_v24, %s4084_s13 }
  0xec   :  { %v3819_v25 = vpop.eup %3818 }
  0xed   :  { %v3821_v28 = vpop.eup %3820 }
  0xee   :  { %272 = vrot.lane.b32.xlu0 %v3819_v25, %s4084_s13  ;;  %v149_v29 = vadd.f32 1.0, %v3821_v28  ;;  %v3823_v30 = vpop.eup %3822 }
  0xef   :  { %v262_v31 = vadd.f32 1.0, %v3823_v30 }
  0xf0   :  { %3824 = vrcp.f32 %v149_v29 }
  0xf1   :  { %3826 = vrcp.f32 %v262_v31 }
  0xfa   :  { %v3825_v33 = vpop.eup %3824 }
  0xfb   :  { %v3827_v36 = vpop.eup %3826  ;;  %v157_v42 = vmul.f32 %v3825_v33, %v155_v41 }
  0xfc   :  { %v270_v46 = vmul.f32 %v3827_v36, %v268_v43 }
 0x15c   :  { %v160_v34 = vpop.permute.xlu0 %159 }
 0x15d   :  { %v162_v35 = vmul.f32 %v3825_v33, %v160_v34 }
 0x15f   :  { %164 = vrot.lane.b32.xlu0 %v162_v35, %s4084_s13 }
 0x160   :  { %v273_v37 = vpop.permute.xlu0 %272 }
 0x161   :  { %v275_v39 = vmul.f32 %v3827_v36, %v273_v37 }
 0x163   :  { %277 = vrot.lane.b32.xlu1 %v275_v39, %s4084_s13  ;;  %179 = vperm.xlu0 %3804, %v4214_v38  }
 0x167   :  { %293 = vperm.xlu1 %3805, %v4220_v40  }
 0x1d1   :  { %v165_v44 = vpop.permute.xlu0 %164 }
 0x1d2   :  { %v167_v45 = vadd.f32 %v165_v44, %v157_v42 }
 0x1d4   :  { %3828 = vtanh.f32 %v167_v45 }
 0x1d5   :  { %v278_v47 = vpop.permute.xlu1 %277 }
 0x1d6   :  { %v280_v48 = vadd.f32 %v278_v47, %v270_v46 }
 0x1d8   :  { %3830 = vtanh.f32 %v280_v48 }
 0x1de   :  { %v3829_v49 = vpop.eup %3828 }
 0x1df   :  { %170 = vrot.lane.b32.xlu1 %v3829_v49, %s4084_s13 }
 0x1e2   :  { %v3831_v51 = vpop.eup %3830  ;;  %v180_v52 = vpop.permute.xlu0 %179 }
 0x1e3   :  { %vm181_vm5 = vcmp.eq.s32.totalorder %v180_v52, 1  ;;  %195 = vrot.lane.b32.xlu1 %v3254_v50, %s4085_s20  ;;  %283 = vrot.lane.b32.xlu0 %v3831_v51, %s4084_s13 }
 0x1e4   :  { %v4230_v54 = vsel %vm181_vm5, %v167_v45, %v155_v41  ;;  %vm182_vm7 = vmpackc.low %vm181_vm5, %vm181_vm5  ;;  %v4284_v45 = vsel %vm3273_vm10, 1, %v4082_v2 }
 0x1e6   :  { %v294_v55 = vpop.permute.xlu1 %293 }
 0x1e7   :  { %vm295_vm6 = vcmp.eq.s32.totalorder %v294_v55, 1  ;;  %309 = vrot.lane.b32.xlu0 %v3263_v53, %s4085_s20 }
 0x1e8   :  { %v4233_v56 = vsel %vm295_vm6, %v280_v48, %v268_v43  ;;  %vm296_vm8 = vmpackc.low %vm295_vm6, %vm295_vm6  ;;  %v4278_v43 = vsel %vm3267_vm9, 1, %v4082_v2  ;;  %vm3297_vm9 = vcmp.gt.s32.totalorder %v4209_v32, 12 }
 0x251   :  { %v171_v57 = vpop.permute.xlu1 %170 }
 0x252   :  { %v173_v58 = vmul.f32 %v3825_v33, %v171_v57 }
 0x254   :  { %v174_v59 = vpack.c.bf16 %v173_v58, %v173_v58 }
 0x255   :  { %v196_v60 = vpop.permute.xlu1 %195  ;;  %v284_v61 = vpop.permute.xlu0 %283 }
 0x256   :  { %v4235_v62 = vsel %vm182_vm7, %v174_v59, 0  ;;  %v286_v63 = vmul.f32 %v3827_v36, %v284_v61  ;;  %v4237_v6 = vsel %vm182_vm7, %v174_v59, %v196_v60 }
 0x257   :  { %318 = vrot.lane.b32.xlu1 %v4237_v6, %s4085_s20 }
 0x258   :  { %v287_v7 = vpack.c.bf16 %v286_v63, %v286_v63 }
 0x259   :  { %v310_v8 = vpop.permute.xlu0 %309 }
 0x25a   :  { %v4241_v9 = vsel %vm296_vm8, %v287_v7, 0  ;;  %v4243_v10 = vsel %vm296_vm8, %v287_v7, %v310_v8  ;;  %vm3291_vm8 = vcmp.gt.s32.totalorder %v4209_v32, 3 }
 0x25b   :  { %413 = vrot.lane.b32.xlu0 %v4243_v10, %s4085_s20 }
 0x2c9   :  { %v319_v11 = vpop.permute.xlu1 %318 }
 0x2ca   :  { %3563 = vmatmul.mubr.msk.bf16.vlgmr.msra.gmra.mrb[4].mxu0 %vm67_vm1, %v319_v11 }
 0x2cb   :  { %3575 = vmatpush3.bf16.msra.mxu0 %v4136_v1  ;;  %3578 = vmatprep.mubr.msk.bf16.mxu0 %vm4083_vm2, %v4081_v0 }
 0x2cc   :  { %3576 = vmatprep.subr.bf16.mxu0 %v4081_v0 }
 0x2cd   :  { %v414_v12 = vpop.permute.xlu0 %413 }
 0x2ce   :  { %3571 = vmatmul.mubr.msk.bf16.vlgmr.msra.gmra.mrb[4].mxu1 %vm67_vm1, %v414_v12 }
 0x2cf   :  { %3577 = vmatpush3.bf16.msra.mxu0 %v4146_v3  ;;  %3583 = vmatpush3.bf16.msra.mxu1 %v4160_v4 }
 0x2d0   :  { %3584 = vmatprep.subr.bf16.mxu1 %v4081_v0  ;;  %3586 = vmatprep.mubr.msk.bf16.mxu1 %vm4083_vm2, %v4081_v0 }
 0x2d1   :  { %3590 = vmatprep.subr.bf16.mxu0 %v4081_v0 }
 0x2d3   :  { %3585 = vmatpush3.bf16.msra.mxu1 %v4169_v5 }
 0x2d4   :  { %3598 = vmatprep.subr.bf16.mxu1 %v4081_v0 }
 0x39d   :  { %v357_v16 = vpop.f32.mrb[4].mxu0 }
 0x39e   :  { %v363_v17 = vadd.f32 %v357_v16, %v316_v14  ;;  %v3564_v18 = vpop.f32.mrb[5].mxu0 }
 0x39f   :  { %v360_v20 = vpop.f32.mrb[6].mxu0 }
 0x3a0   :  { %3832 = vtanh.f32 %v363_v17  ;;  %v3565_v21 = vpop.f32.mrb[7].mxu0  ;;  %v3266_v29 = vmul.f32 -1.442695, %v363_v17  ;;  %v601_v20 = vunpack.c.l.bf16 %v4270_v15 }
 0x3a1   :  { %v452_v22 = vpop.f32.mrb[4].mxu1 }
 0x3a2   :  { %v458_v23 = vadd.f32 %v452_v22, %v411_v19  ;;  %v3572_v24 = vpop.f32.mrb[5].mxu1 }
 0x3a3   :  { %v455_v25 = vpop.f32.mrb[6].mxu1 }
 0x3a4   :  { %3834 = vtanh.f32 %v458_v23  ;;  %v3573_v26 = vpop.f32.mrb[7].mxu1  ;;  %v3272_v30 = vmul.f32 -1.442695, %v458_v23 }
 0x3a5   :  { %3836 = vpow2.f32 %v3266_v29 }
 0x3a6   :  { %3838 = vpow2.f32 %v3272_v30 }
 0x3aa   :  { %v3833_v27 = vpop.eup %3832 }
 0x3ab   :  { %373 = vrot.lane.b32.xlu1 %v3833_v27, %s4084_s13 }
 0x3ae   :  { %v3835_v28 = vpop.eup %3834 }
 0x3af   :  { %468 = vrot.lane.b32.xlu0 %v3835_v28, %s4084_s13  ;;  %v3837_v31 = vpop.eup %3836 }
 0x3b0   :  { %v367_v33 = vadd.f32 1.0, %v3837_v31  ;;  %v3839_v34 = vpop.eup %3838 }
 0x3b1   :  { %v462_v35 = vadd.f32 1.0, %v3839_v34 }
 0x3b2   :  { %3840 = vrcp.f32 %v367_v33 }
 0x3b3   :  { %3842 = vrcp.f32 %v462_v35 }
 0x3bc   :  { %v3841_v36 = vpop.eup %3840 }
 0x3bd   :  { %v3843_v41 = vpop.eup %3842  ;;  %v371_v46 = vmul.f32 %v3841_v36, %v4230_v54 }
 0x3be   :  { %v466_v49 = vmul.f32 %v3843_v41, %v4233_v56 }
 0x41d   :  { %v374_v37 = vpop.permute.xlu1 %373 }
 0x41e   :  { %v376_v39 = vmul.f32 %v3841_v36, %v374_v37 }
 0x420   :  { %378 = vrot.lane.b32.xlu1 %v376_v39, %s4084_s13 }
 0x421   :  { %v469_v42 = vpop.permute.xlu0 %468 }
 0x422   :  { %v471_v44 = vmul.f32 %v3843_v41, %v469_v42  ;;  %v4332_v42 = vsel %vm3279_vm15, 1, %v4082_v2  ;;  %vm3309_vm15 = vcmp.gt.s32.totalorder %v4209_v32, 11 }
 0x424   :  { %394 = vperm.xlu1 %3805, %v4278_v43   ;;  %473 = vrot.lane.b32.xlu0 %v471_v44, %s4084_s13 }
 0x428   :  { %489 = vperm.xlu0 %3804, %v4284_v45  }
 0x492   :  { %v379_v47 = vpop.permute.xlu1 %378 }
 0x493   :  { %v381_v48 = vadd.f32 %v379_v47, %v371_v46  ;;  %v4338_v46 = vsel %vm3285_vm3, 1, %v4082_v2 }
 0x495   :  { %3844 = vtanh.f32 %v381_v48 }
 0x496   :  { %v474_v50 = vpop.permute.xlu0 %473 }
 0x497   :  { %v476_v51 = vadd.f32 %v474_v50, %v466_v49 }
 0x499   :  { %3846 = vtanh.f32 %v476_v51 }
 0x49f   :  { %v3845_v52 = vpop.eup %3844 }
 0x4a0   :  { %384 = vrot.lane.b32.xlu1 %v3845_v52, %s4084_s13 }
 0x4a3   :  { %v3847_v53 = vpop.eup %3846  ;;  %v395_v55 = vpop.permute.xlu1 %394 }
 0x4a4   :  { %vm396_vm11 = vcmp.eq.s32.totalorder %v395_v55, 1  ;;  %479 = vrot.lane.b32.xlu0 %v3847_v53, %s4084_s13 }
 0x4a5   :  { %v4292_v57 = vsel %vm396_vm11, %v381_v48, %v4230_v54  ;;  %vm397_vm13 = vmpackc.low %vm396_vm11, %vm396_vm11 }
 0x4a7   :  { %v490_v58 = vpop.permute.xlu0 %489 }
 0x4a8   :  { %vm491_vm12 = vcmp.eq.s32.totalorder %v490_v58, 1 }
 0x4a9   :  { %v4295_v59 = vsel %vm491_vm12, %v476_v51, %v4233_v56  ;;  %vm492_vm14 = vmpackc.low %vm491_vm12, %vm491_vm12 }
 0x512   :  { %v385_v60 = vpop.permute.xlu1 %384 }
 0x513   :  { %v387_v61 = vmul.f32 %v3841_v36, %v385_v60 }
 0x515   :  { %v388_v63 = vpack.c.bf16 %v387_v61, %v387_v61 }
 0x516   :  { %v480_v7 = vpop.permute.xlu0 %479 }
 0x517   :  { %v4297_v8 = vsel %vm397_vm13, %v388_v63, 0  ;;  %v482_v11 = vmul.f32 %v3843_v41, %v480_v7  ;;  %v4300_v12 = vsel %vm397_vm13, %v388_v63, %v4237_v6 }
 0x518   :  { %508 = vrot.lane.b32.xlu1 %v4300_v12, %s4085_s20 }
 0x519   :  { %v483_v54 = vpack.c.bf16 %v482_v11, %v482_v11 }
 0x51b   :  { %v4304_v14 = vsel %vm492_vm14, %v483_v54, 0  ;;  %v4307_v56 = vsel %vm492_vm14, %v483_v54, %v4243_v10  ;;  %v506_v10 = vunpack.c.h.bf16 %v4264_v13  ;;  %vm3303_vm14 = vcmp.gt.s32.totalorder %v4209_v32, 4 }
 0x51c   :  { %603 = vrot.lane.b32.xlu0 %v4307_v56, %s4085_s20 }
 0x58a   :  { %v509_v16 = vpop.permute.xlu1 %508 }
 0x58b   :  { %3579 = vmatmul.mubr.msk.bf16.vlgmr.msra.gmra.mrb[8].mxu0 %vm67_vm1, %v509_v16 }
 0x58c   :  { %3591 = vmatpush3.bf16.msra.mxu0 %v4136_v1  ;;  %3594 = vmatprep.mubr.msk.bf16.mxu0 %vm4083_vm2, %v4081_v0 }
 0x58d   :  { %3592 = vmatprep.subr.bf16.mxu0 %v4081_v0 }
 0x58e   :  { %v604_v6 = vpop.permute.xlu0 %603 }
 0x58f   :  { %3587 = vmatmul.mubr.msk.bf16.vlgmr.msra.gmra.mrb[8].mxu1 %vm67_vm1, %v604_v6 }
 0x590   :  { %3593 = vmatpush3.bf16.msra.mxu0 %v4146_v3  ;;  %3599 = vmatpush3.bf16.msra.mxu1 %v4160_v4 }
 0x591   :  { %3600 = vmatprep.subr.bf16.mxu1 %v4081_v0  ;;  %3602 = vmatprep.mubr.msk.bf16.mxu1 %vm4083_vm2, %v4081_v0 }
 0x592   :  { %3606 = vmatprep.subr.bf16.mxu0 %v4081_v0 }
 0x594   :  { %3601 = vmatpush3.bf16.msra.mxu1 %v4169_v5 }
 0x595   :  { %3614 = vmatprep.subr.bf16.mxu1 %v4081_v0 }
 0x65e   :  { %v547_v17 = vpop.f32.mrb[8].mxu0 }
 0x65f   :  { %v553_v18 = vadd.f32 %v547_v17, %v506_v10  ;;  %v3580_v19 = vpop.f32.mrb[9].mxu0 }
 0x660   :  { %v550_v21 = vpop.f32.mrb[10].mxu0 }
 0x661   :  { %3848 = vtanh.f32 %v553_v18  ;;  %v3581_v22 = vpop.f32.mrb[11].mxu0  ;;  %v3278_v13 = vmul.f32 -1.442695, %v553_v18  ;;  %v4388_v21 = vld [vmem:[%s5358_s2 + $0x2c] sm:$0xff]  }
 0x662   :  { %v642_v23 = vpop.f32.mrb[8].mxu1 }
 0x663   :  { %v648_v24 = vadd.f32 %v642_v23, %v601_v20  ;;  %v3588_v25 = vpop.f32.mrb[9].mxu1 }
 0x664   :  { %v645_v26 = vpop.f32.mrb[10].mxu1  ;;  %v791_v25 = vunpack.c.h.bf16 %v4388_v21 }
 0x665   :  { %3850 = vtanh.f32 %v648_v24  ;;  %v3589_v27 = vpop.f32.mrb[11].mxu1  ;;  %v3284_v30 = vmul.f32 -1.442695, %v648_v24 }
 0x666   :  { %3852 = vpow2.f32 %v3278_v13 }
 0x667   :  { %3854 = vpow2.f32 %v3284_v30 }
 0x66b   :  { %v3849_v28 = vpop.eup %3848 }
 0x66c   :  { %563 = vrot.lane.b32.xlu1 %v3849_v28, %s4084_s13 }
 0x66f   :  { %v3851_v29 = vpop.eup %3850 }
 0x670   :  { %658 = vrot.lane.b32.xlu0 %v3851_v29, %s4084_s13  ;;  %v3853_v15 = vpop.eup %3852 }
 0x671   :  { %v557_v31 = vadd.f32 1.0, %v3853_v15  ;;  %v3855_v33 = vpop.eup %3854 }
 0x672   :  { %v652_v34 = vadd.f32 1.0, %v3855_v33 }
 0x673   :  { %3856 = vrcp.f32 %v557_v31 }
 0x674   :  { %3858 = vrcp.f32 %v652_v34 }
 0x67d   :  { %v3857_v35 = vpop.eup %3856 }
 0x67e   :  { %v3859_v39 = vpop.eup %3858  ;;  %v561_v47 = vmul.f32 %v3857_v35, %v4292_v57 }
 0x67f   :  { %v656_v50 = vmul.f32 %v3859_v39, %v4295_v59 }
 0x6de   :  { %v564_v36 = vpop.permute.xlu1 %563 }
 0x6df   :  { %v566_v37 = vmul.f32 %v3857_v35, %v564_v36 }
 0x6e1   :  { %568 = vrot.lane.b32.xlu1 %v566_v37, %s4084_s13 }
 0x6e2   :  { %v659_v41 = vpop.permute.xlu0 %658 }
 0x6e3   :  { %v661_v44 = vmul.f32 %v3859_v39, %v659_v41 }
 0x6e5   :  { %584 = vperm.xlu1 %3805, %v4332_v42   ;;  %663 = vrot.lane.b32.xlu0 %v661_v44, %s4084_s13 }
 0x6e9   :  { %679 = vperm.xlu0 %3804, %v4338_v46  }
 0x753   :  { %v569_v48 = vpop.permute.xlu1 %568 }
 0x754   :  { %v571_v49 = vadd.f32 %v569_v48, %v561_v47 }
 0x756   :  { %3860 = vtanh.f32 %v571_v49 }
 0x757   :  { %v664_v51 = vpop.permute.xlu0 %663 }
 0x758   :  { %v666_v52 = vadd.f32 %v664_v51, %v656_v50  ;;  %v4396_v51 = vsel %vm3291_vm8, 1, %v4082_v2  ;;  %vm3321_vm8 = vcmp.gt.s32.totalorder %v4209_v32, 10 }
 0x75a   :  { %3862 = vtanh.f32 %v666_v52 }
 0x760   :  { %v3861_v53 = vpop.eup %3860 }
 0x761   :  { %574 = vrot.lane.b32.xlu1 %v3861_v53, %s4084_s13  ;;  %v4402_v53 = vsel %vm3297_vm9, 1, %v4082_v2 }
 0x764   :  { %v3863_v55 = vpop.eup %3862  ;;  %v585_v58 = vpop.permute.xlu1 %584 }
 0x765   :  { %vm586_vm4 = vcmp.eq.s32.totalorder %v585_v58, 1  ;;  %669 = vrot.lane.b32.xlu0 %v3863_v55, %s4084_s13 }
 0x766   :  { %v4346_v60 = vsel %vm586_vm4, %v571_v49, %v4292_v57  ;;  %vm587_vm6 = vmpackc.low %vm586_vm4, %vm586_vm4 }
 0x768   :  { %v680_v61 = vpop.permute.xlu0 %679 }
 0x769   :  { %vm681_vm5 = vcmp.eq.s32.totalorder %v680_v61, 1 }
 0x76a   :  { %v4349_v63 = vsel %vm681_vm5, %v666_v52, %v4295_v59  ;;  %vm682_vm7 = vmpackc.low %vm681_vm5, %vm681_vm5 }
 0x7d3   :  { %v575_v7 = vpop.permute.xlu1 %574 }
 0x7d4   :  { %v577_v11 = vmul.f32 %v3857_v35, %v575_v7 }
 0x7d6   :  { %v578_v54 = vpack.c.bf16 %v577_v11, %v577_v11 }
 0x7d7   :  { %v670_v16 = vpop.permute.xlu0 %669 }
 0x7d8   :  { %v4351_v6 = vsel %vm587_vm6, %v578_v54, 0  ;;  %v672_v10 = vmul.f32 %v3859_v39, %v670_v16  ;;  %v4354_v17 = vsel %vm587_vm6, %v578_v54, %v4300_v12 }
 0x7d9   :  { %698 = vrot.lane.b32.xlu1 %v4354_v17, %s4085_s20 }
 0x7da   :  { %v673_v57 = vpack.c.bf16 %v672_v10, %v672_v10 }
 0x7dc   :  { %v4358_v18 = vsel %vm682_vm7, %v673_v57, 0  ;;  %v4361_v59 = vsel %vm682_vm7, %v673_v57, %v4307_v56  ;;  %v4382_v56 = vld [vmem:[%s5357_s1 + $0xc] sm:$0xff]   ;;  %vm3315_vm7 = vcmp.gt.s32.totalorder %v4209_v32, 5 }
 0x7dd   :  { %793 = vrot.lane.b32.xlu0 %v4361_v59, %s4085_s20  ;;  %v696_v20 = vunpack.c.l.bf16 %v4382_v56 }
 0x84b   :  { %v699_v19 = vpop.permute.xlu1 %698 }
 0x84c   :  { %3595 = vmatmul.mubr.msk.bf16.vlgmr.msra.gmra.mrb[12].mxu0 %vm67_vm1, %v699_v19 }
 0x84d   :  { %3607 = vmatpush3.bf16.msra.mxu0 %v4136_v1  ;;  %3610 = vmatprep.mubr.msk.bf16.mxu0 %vm4083_vm2, %v4081_v0 }
 0x84e   :  { %3608 = vmatprep.subr.bf16.mxu0 %v4081_v0 }
 0x84f   :  { %v794_v12 = vpop.permute.xlu0 %793 }
 0x850   :  { %3603 = vmatmul.mubr.msk.bf16.vlgmr.msra.gmra.mrb[12].mxu1 %vm67_vm1, %v794_v12 }
 0x851   :  { %3609 = vmatpush3.bf16.msra.mxu0 %v4146_v3  ;;  %3615 = vmatpush3.bf16.msra.mxu1 %v4160_v4 }
 0x852   :  { %3616 = vmatprep.subr.bf16.mxu1 %v4081_v0  ;;  %3618 = vmatprep.mubr.msk.bf16.mxu1 %vm4083_vm2, %v4081_v0 }
 0x853   :  { %3622 = vmatprep.subr.bf16.mxu0 %v4081_v0 }
 0x855   :  { %3617 = vmatpush3.bf16.msra.mxu1 %v4169_v5 }
 0x856   :  { %3630 = vmatprep.subr.bf16.mxu1 %v4081_v0 }
 0x91f   :  { %v737_v22 = vpop.f32.mrb[12].mxu0 }
 0x920   :  { %v743_v23 = vadd.f32 %v737_v22, %v696_v20  ;;  %v3596_v24 = vpop.f32.mrb[13].mxu0 }
 0x921   :  { %v740_v26 = vpop.f32.mrb[14].mxu0 }
 0x922   :  { %3864 = vtanh.f32 %v743_v23  ;;  %v3597_v27 = vpop.f32.mrb[15].mxu0  ;;  %v3290_v34 = vmul.f32 -1.442695, %v743_v23 }
 0x923   :  { %v832_v28 = vpop.f32.mrb[12].mxu1 }
 0x924   :  { %v838_v29 = vadd.f32 %v832_v28, %v791_v25  ;;  %v3604_v13 = vpop.f32.mrb[13].mxu1 }
 0x925   :  { %v835_v30 = vpop.f32.mrb[14].mxu1 }
 0x926   :  { %3866 = vtanh.f32 %v838_v29  ;;  %v3605_v15 = vpop.f32.mrb[15].mxu1  ;;  %v3296_v35 = vmul.f32 -1.442695, %v838_v29 }
 0x927   :  { %3868 = vpow2.f32 %v3290_v34 }
 0x928   :  { %3870 = vpow2.f32 %v3296_v35 }
 0x92c   :  { %v3865_v31 = vpop.eup %3864 }
 0x92d   :  { %753 = vrot.lane.b32.xlu1 %v3865_v31, %s4084_s13 }
 0x930   :  { %v3867_v33 = vpop.eup %3866 }
 0x931   :  { %848 = vrot.lane.b32.xlu0 %v3867_v33, %s4084_s13  ;;  %v3869_v36 = vpop.eup %3868  ;;  %v981_v33 = vunpack.c.l.bf16 %v4388_v21 }
 0x932   :  { %v747_v37 = vadd.f32 1.0, %v3869_v36  ;;  %v3871_v39 = vpop.eup %3870 }
 0x933   :  { %v842_v41 = vadd.f32 1.0, %v3871_v39 }
 0x934   :  { %3872 = vrcp.f32 %v747_v37 }
 0x935   :  { %3874 = vrcp.f32 %v842_v41 }
 0x93e   :  { %v3873_v44 = vpop.eup %3872 }
 0x93f   :  { %v3875_v49 = vpop.eup %3874  ;;  %v751_v55 = vmul.f32 %v3873_v44, %v4346_v60 }
 0x940   :  { %v846_v7 = vmul.f32 %v3875_v49, %v4349_v63 }
 0x99f   :  { %v754_v47 = vpop.permute.xlu1 %753 }
 0x9a0   :  { %v756_v48 = vmul.f32 %v3873_v44, %v754_v47 }
 0x9a2   :  { %758 = vrot.lane.b32.xlu1 %v756_v48, %s4084_s13 }
 0x9a3   :  { %v849_v50 = vpop.permute.xlu0 %848 }
 0x9a4   :  { %v851_v52 = vmul.f32 %v3875_v49, %v849_v50 }
 0x9a6   :  { %774 = vperm.xlu1 %3805, %v4396_v51   ;;  %853 = vrot.lane.b32.xlu0 %v851_v52, %s4084_s13 }
 0x9aa   :  { %869 = vperm.xlu0 %3804, %v4402_v53  }
 0xa14   :  { %v759_v58 = vpop.permute.xlu1 %758 }
 0xa15   :  { %v761_v61 = vadd.f32 %v759_v58, %v751_v55 }
 0xa17   :  { %3876 = vtanh.f32 %v761_v61 }
 0xa18   :  { %v854_v11 = vpop.permute.xlu0 %853 }
 0xa19   :  { %v856_v54 = vadd.f32 %v854_v11, %v846_v7 }
 0xa1b   :  { %3878 = vtanh.f32 %v856_v54 }
 0xa21   :  { %v3877_v16 = vpop.eup %3876 }
 0xa22   :  { %764 = vrot.lane.b32.xlu1 %v3877_v16, %s4084_s13  ;;  %v4450_v16 = vsel %vm3303_vm14, 1, %v4082_v2 }
 0xa25   :  { %v3879_v10 = vpop.eup %3878  ;;  %v775_v57 = vpop.permute.xlu1 %774 }
 0xa26   :  { %vm776_vm10 = vcmp.eq.s32.totalorder %v775_v57, 1  ;;  %859 = vrot.lane.b32.xlu0 %v3879_v10, %s4084_s13  ;;  %v4456_v57 = vsel %vm3309_vm15, 1, %v4082_v2 }
 0xa27   :  { %v4410_v19 = vsel %vm776_vm10, %v761_v61, %v4346_v60  ;;  %vm777_vm12 = vmpackc.low %vm776_vm10, %vm776_vm10 }
 0xa29   :  { %v870_v12 = vpop.permute.xlu0 %869 }
 0xa2a   :  { %vm871_vm11 = vcmp.eq.s32.totalorder %v870_v12, 1 }
 0xa2b   :  { %v4413_v20 = vsel %vm871_vm11, %v856_v54, %v4349_v63  ;;  %vm872_vm13 = vmpackc.low %vm871_vm11, %vm871_vm11 }
 0xa94   :  { %v765_v22 = vpop.permute.xlu1 %764 }
 0xa95   :  { %v767_v23 = vmul.f32 %v3873_v44, %v765_v22 }
 0xa97   :  { %v768_v24 = vpack.c.bf16 %v767_v23, %v767_v23 }
 0xa98   :  { %v860_v25 = vpop.permute.xlu0 %859 }
 0xa99   :  { %v4415_v26 = vsel %vm777_vm12, %v768_v24, 0  ;;  %v862_v27 = vmul.f32 %v3875_v49, %v860_v25  ;;  %v4418_v28 = vsel %vm777_vm12, %v768_v24, %v4354_v17 }
 0xa9a   :  { %888 = vrot.lane.b32.xlu1 %v4418_v28, %s4085_s20 }
 0xa9b   :  { %v863_v60 = vpack.c.bf16 %v862_v27, %v862_v27 }
 0xa9d   :  { %v4422_v29 = vsel %vm872_vm13, %v863_v60, 0  ;;  %v4425_v63 = vsel %vm872_vm13, %v863_v60, %v4361_v59  ;;  %v886_v59 = vunpack.c.h.bf16 %v4382_v56 }
 0xa9e   :  { %983 = vrot.lane.b32.xlu0 %v4425_v63, %s4085_s20 }
 0xb0c   :  { %v889_v13 = vpop.permute.xlu1 %888 }
 0xb0d   :  { %3611 = vmatmul.mubr.msk.bf16.vlgmr.msra.gmra.mrb[16].mxu0 %vm67_vm1, %v889_v13 }
 0xb0e   :  { %3623 = vmatpush3.bf16.msra.mxu0 %v4136_v1  ;;  %3626 = vmatprep.mubr.msk.bf16.mxu0 %vm4083_vm2, %v4081_v0 }
 0xb0f   :  { %3624 = vmatprep.subr.bf16.mxu0 %v4081_v0 }
 0xb10   :  { %v984_v17 = vpop.permute.xlu0 %983 }
 0xb11   :  { %3619 = vmatmul.mubr.msk.bf16.vlgmr.msra.gmra.mrb[16].mxu1 %vm67_vm1, %v984_v17 }
 0xb12   :  { %3625 = vmatpush3.bf16.msra.mxu0 %v4146_v3  ;;  %3631 = vmatpush3.bf16.msra.mxu1 %v4160_v4 }
 0xb13   :  { %3632 = vmatprep.subr.bf16.mxu1 %v4081_v0  ;;  %3634 = vmatprep.mubr.msk.bf16.mxu1 %vm4083_vm2, %v4081_v0 }
 0xb14   :  { %3638 = vmatprep.subr.bf16.mxu0 %v4081_v0 }
 0xb16   :  { %3633 = vmatpush3.bf16.msra.mxu1 %v4169_v5 }
 0xb17   :  { %3646 = vmatprep.subr.bf16.mxu1 %v4081_v0 }
 0xbe0   :  { %v927_v30 = vpop.f32.mrb[16].mxu0 }
 0xbe1   :  { %v933_v15 = vadd.f32 %v927_v30, %v886_v59  ;;  %v3612_v31 = vpop.f32.mrb[17].mxu0 }
 0xbe2   :  { %v930_v34 = vpop.f32.mrb[18].mxu0 }
 0xbe3   :  { %3880 = vtanh.f32 %v933_v15  ;;  %v3613_v35 = vpop.f32.mrb[19].mxu0  ;;  %v3302_v56 = vmul.f32 -1.442695, %v933_v15 }
 0xbe4   :  { %v1022_v36 = vpop.f32.mrb[16].mxu1 }
 0xbe5   :  { %v1028_v37 = vadd.f32 %v1022_v36, %v981_v33  ;;  %v3620_v39 = vpop.f32.mrb[17].mxu1 }
 0xbe6   :  { %v1025_v41 = vpop.f32.mrb[18].mxu1 }
 0xbe7   :  { %3882 = vtanh.f32 %v1028_v37  ;;  %v3621_v44 = vpop.f32.mrb[19].mxu1  ;;  %v3308_v49 = vmul.f32 -1.442695, %v1028_v37 }
 0xbe8   :  { %3884 = vpow2.f32 %v3302_v56 }
 0xbe9   :  { %3886 = vpow2.f32 %v3308_v49 }
 0xbed   :  { %v3881_v47 = vpop.eup %3880 }
 0xbee   :  { %943 = vrot.lane.b32.xlu1 %v3881_v47, %s4084_s13 }
 0xbf1   :  { %v3883_v48 = vpop.eup %3882 }
 0xbf2   :  { %1038 = vrot.lane.b32.xlu0 %v3883_v48, %s4084_s13  ;;  %v3885_v21 = vpop.eup %3884 }
 0xbf3   :  { %v937_v50 = vadd.f32 1.0, %v3885_v21  ;;  %v3887_v52 = vpop.eup %3886 }
 0xbf4   :  { %v1032_v55 = vadd.f32 1.0, %v3887_v52 }
 0xbf5   :  { %3888 = vrcp.f32 %v937_v50 }
 0xbf6   :  { %3890 = vrcp.f32 %v1032_v55 }
 0xbff   :  { %v3889_v58 = vpop.eup %3888 }
 0xc00   :  { %v3891_v11 = vpop.eup %3890  ;;  %v941_v12 = vmul.f32 %v3889_v58, %v4410_v19 }
 0xc01   :  { %v1036_v24 = vmul.f32 %v3891_v11, %v4413_v20 }
 0xc60   :  { %v944_v61 = vpop.permute.xlu1 %943 }
 0xc61   :  { %v946_v7 = vmul.f32 %v3889_v58, %v944_v61 }
 0xc63   :  { %948 = vrot.lane.b32.xlu1 %v946_v7, %s4084_s13 }
 0xc64   :  { %v1039_v54 = vpop.permute.xlu0 %1038 }
 0xc65   :  { %v1041_v10 = vmul.f32 %v3891_v11, %v1039_v54 }
 0xc67   :  { %964 = vperm.xlu1 %3805, %v4450_v16   ;;  %1043 = vrot.lane.b32.xlu0 %v1041_v10, %s4084_s13 }
 0xc6b   :  { %1059 = vperm.xlu0 %3804, %v4456_v57  }
 0xcd5   :  { %v949_v22 = vpop.permute.xlu1 %948 }
 0xcd6   :  { %v951_v23 = vadd.f32 %v949_v22, %v941_v12 }
 0xcd8   :  { %3892 = vtanh.f32 %v951_v23 }
 0xcd9   :  { %v1044_v25 = vpop.permute.xlu0 %1043 }
 0xcda   :  { %v1046_v27 = vadd.f32 %v1044_v25, %v1036_v24 }
 0xcdc   :  { %3894 = vtanh.f32 %v1046_v27 }
 0xce2   :  { %v3893_v60 = vpop.eup %3892 }
 0xce3   :  { %954 = vrot.lane.b32.xlu1 %v3893_v60, %s4084_s13 }
 0xce6   :  { %v3895_v13 = vpop.eup %3894  ;;  %v965_v17 = vpop.permute.xlu1 %964 }
 0xce7   :  { %vm966_vm3 = vcmp.eq.s32.totalorder %v965_v17, 1  ;;  %1049 = vrot.lane.b32.xlu0 %v3895_v13, %s4084_s13  ;;  %v4514_v17 = vsel %vm3315_vm7, 1, %v4082_v2 }
 0xce8   :  { %v4464_v59 = vsel %vm966_vm3, %v951_v23, %v4410_v19  ;;  %vm967_vm5 = vmpackc.low %vm966_vm3, %vm966_vm3 }
 0xcea   :  { %v1060_v30 = vpop.permute.xlu0 %1059 }
 0xceb   :  { %vm1061_vm4 = vcmp.eq.s32.totalorder %v1060_v30, 1 }
 0xcec   :  { %v4467_v15 = vsel %vm1061_vm4, %v1046_v27, %v4413_v20  ;;  %vm1062_vm6 = vmpackc.low %vm1061_vm4, %vm1061_vm4 }
 0xd55   :  { %v955_v31 = vpop.permute.xlu1 %954 }
 0xd56   :  { %v957_v33 = vmul.f32 %v3889_v58, %v955_v31  ;;  %v4520_v31 = vsel %vm3321_vm8, 1, %v4082_v2 }
 0xd58   :  { %v958_v34 = vpack.c.bf16 %v957_v33, %v957_v33 }
 0xd59   :  { %v1050_v35 = vpop.permute.xlu0 %1049 }
 0xd5a   :  { %v4469_v36 = vsel %vm967_vm5, %v958_v34, 0  ;;  %v1052_v37 = vmul.f32 %v3891_v11, %v1050_v35  ;;  %v4472_v39 = vsel %vm967_vm5, %v958_v34, %v4418_v28 }
 0xd5b   :  { %1078 = vrot.lane.b32.xlu1 %v4472_v39, %s4085_s20 }
 0xd5c   :  { %v1053_v19 = vpack.c.bf16 %v1052_v37, %v1052_v37 }
 0xd5e   :  { %v4476_v41 = vsel %vm1062_vm6, %v1053_v19, 0  ;;  %v4479_v20 = vsel %vm1062_vm6, %v1053_v19, %v4425_v63 }
 0xd5f   :  { %1173 = vrot.lane.b32.xlu0 %v4479_v20, %s4085_s20 }
 0xdcd   :  { %v1079_v44 = vpop.permute.xlu1 %1078 }
 0xdce   :  { %3627 = vmatmul.mubr.msk.bf16.vlgmr.msra.gmra.mrb[20].mxu0 %vm67_vm1, %v1079_v44 }
 0xdcf   :  { %3639 = vmatpush3.bf16.msra.mxu0 %v4136_v1  ;;  %3642 = vmatprep.mubr.msk.bf16.mxu0 %vm4083_vm2, %v4081_v0  ;;  %v4500_v1 = vld [vmem:[%s5357_s1 + $0x14] sm:$0xff]  }
 0xdd0   :  { %3640 = vmatprep.subr.bf16.mxu0 %v4081_v0 }
 0xdd1   :  { %v1174_v28 = vpop.permute.xlu0 %1173 }
 0xdd2   :  { %3635 = vmatmul.mubr.msk.bf16.vlgmr.msra.gmra.mrb[20].mxu1 %vm67_vm1, %v1174_v28 }
 0xdd3   :  { %3641 = vmatpush3.bf16.msra.mxu0 %v4146_v3  ;;  %3647 = vmatpush3.bf16.msra.mxu1 %v4160_v4  ;;  %v1076_v3 = vunpack.c.l.bf16 %v4500_v1  ;;  %v4506_v4 = vld [vmem:[%s5358_s2 + $0x24] sm:$0xff]  }
 0xdd4   :  { %3648 = vmatprep.subr.bf16.mxu1 %v4081_v0  ;;  %3650 = vmatprep.mubr.msk.bf16.mxu1 %vm4083_vm2, %v4081_v0  ;;  %v1171_v56 = vunpack.c.h.bf16 %v4506_v4 }
 0xdd5   :  { %3654 = vmatprep.subr.bf16.mxu0 %v4081_v0 }
 0xdd7   :  { %3649 = vmatpush3.bf16.msra.mxu1 %v4169_v5 }
 0xdd8   :  { %3662 = vmatprep.subr.bf16.mxu1 %v4081_v0 }
 0xea1   :  { %v1117_v63 = vpop.f32.mrb[20].mxu0 }
 0xea2   :  { %v1123_v47 = vadd.f32 %v1117_v63, %v1076_v3  ;;  %v3628_v48 = vpop.f32.mrb[21].mxu0 }
 0xea3   :  { %v1120_v5 = vpop.f32.mrb[22].mxu0 }
 0xea4   :  { %3896 = vtanh.f32 %v1123_v47  ;;  %v3629_v49 = vpop.f32.mrb[23].mxu0  ;;  %v3314_v11 = vmul.f32 -1.442695, %v1123_v47 }
 0xea5   :  { %v1212_v21 = vpop.f32.mrb[20].mxu1 }
 0xea6   :  { %v1218_v50 = vadd.f32 %v1212_v21, %v1171_v56  ;;  %v3636_v52 = vpop.f32.mrb[21].mxu1 }
 0xea7   :  { %v1215_v55 = vpop.f32.mrb[22].mxu1 }
 0xea8   :  { %3898 = vtanh.f32 %v1218_v50  ;;  %v3637_v58 = vpop.f32.mrb[23].mxu1  ;;  %v3320_v54 = vmul.f32 -1.442695, %v1218_v50 }
 0xea9   :  { %3900 = vpow2.f32 %v3314_v11  ;;  %v4567_v11 = vld [vmem:[%s5356_s4] sm:$0xff]  }
 0xeaa   :  { %3902 = vpow2.f32 %v3320_v54  ;;  %v4577_v54 = vld [vmem:[%s5356_s4 + $0x8] sm:$0xff]  }
 0xeae   :  { %v3897_v61 = vpop.eup %3896 }
 0xeaf   :  { %1133 = vrot.lane.b32.xlu1 %v3897_v61, %s4084_s13 }
 0xeb2   :  { %v3899_v7 = vpop.eup %3898 }
 0xeb3   :  { %1228 = vrot.lane.b32.xlu0 %v3899_v7, %s4084_s13  ;;  %v3901_v10 = vpop.eup %3900  ;;  %v4561_v7 = vld [vmem:[%s5355_s3 + $0x8] sm:$0xff]  }
 0xeb4   :  { %v1127_v12 = vadd.f32 1.0, %v3901_v10  ;;  %v3903_v22 = vpop.eup %3902  ;;  %v1266_v10 = vunpack.c.h.bf16 %v4500_v1 }
 0xeb5   :  { %v1222_v23 = vadd.f32 1.0, %v3903_v22 }
 0xeb6   :  { %3904 = vrcp.f32 %v1127_v12 }
 0xeb7   :  { %3906 = vrcp.f32 %v1222_v23 }
 0xec0   :  { %v3905_v24 = vpop.eup %3904 }
 0xec1   :  { %v3907_v60 = vpop.eup %3906  ;;  %v1131_v33 = vmul.f32 %v3905_v24, %v4464_v59 }
 0xec2   :  { %v1226_v37 = vmul.f32 %v3907_v60, %v4467_v15 }
 0xf21   :  { %v1134_v25 = vpop.permute.xlu1 %1133 }
 0xf22   :  { %v1136_v27 = vmul.f32 %v3905_v24, %v1134_v25 }
 0xf24   :  { %1138 = vrot.lane.b32.xlu1 %v1136_v27, %s4084_s13 }
 0xf25   :  { %v1229_v13 = vpop.permute.xlu0 %1228 }
 0xf26   :  { %v1231_v30 = vmul.f32 %v3907_v60, %v1229_v13 }
 0xf28   :  { %1154 = vperm.xlu1 %3805, %v4514_v17   ;;  %1233 = vrot.lane.b32.xlu0 %v1231_v30, %s4084_s13 }
 0xf2c   :  { %1249 = vperm.xlu0 %3804, %v4520_v31  }
 0xf96   :  { %v1139_v34 = vpop.permute.xlu1 %1138 }
 0xf97   :  { %v1141_v35 = vadd.f32 %v1139_v34, %v1131_v33 }
 0xf99   :  { %3908 = vtanh.f32 %v1141_v35 }
 0xf9a   :  { %v1234_v19 = vpop.permute.xlu0 %1233 }
 0xf9b   :  { %v1236_v44 = vadd.f32 %v1234_v19, %v1226_v37 }
 0xf9d   :  { %3910 = vtanh.f32 %v1236_v44 }
 0xfa3   :  { %v3909_v32 = vpop.eup %3908 }
 0xfa4   :  { %1144 = vrot.lane.b32.xlu1 %v3909_v32, %s4084_s13 }
 0xfa7   :  { %v3911_v28 = vpop.eup %3910  ;;  %v1155_v3 = vpop.permute.xlu1 %1154 }
 0xfa8   :  { %vm1156_vm9 = vcmp.eq.s32.totalorder %v1155_v3, 1  ;;  %1239 = vrot.lane.b32.xlu0 %v3911_v28, %s4084_s13 }
 0xfa9   :  { %v4528_v63 = vsel %vm1156_vm9, %v1141_v35, %v4464_v59  ;;  %vm1157_vm11 = vmpackc.low %vm1156_vm9, %vm1156_vm9 }
 0xfab   :  { %v1250_v47 = vpop.permute.xlu0 %1249 }
 0xfac   :  { %vm1251_vm10 = vcmp.eq.s32.totalorder %v1250_v47, 1 }
 0xfad   :  { %v4531_v48 = vsel %vm1251_vm10, %v1236_v44, %v4467_v15  ;;  %vm1252_vm12 = vmpackc.low %vm1251_vm10, %vm1251_vm10 }
0x1016   :  { %v1145_v56 = vpop.permute.xlu1 %1144 }
0x1017   :  { %v1147_v5 = vmul.f32 %v3905_v24, %v1145_v56  ;;  %v1361_v24 = vunpack.c.l.bf16 %v4506_v4 }
0x1019   :  { %v1148_v49 = vpack.c.bf16 %v1147_v5, %v1147_v5  ;;  %v4588_v5 = vld [vmem:[%s5359_s0] sm:$0xff] }
0x101a   :  { %v1240_v21 = vpop.permute.xlu0 %1239  ;;  %vm3327_vm13 = vcmp.gt.s32.totalorder %v4588_v5, 6  ;;  %vm3333_vm14 = vcmp.gt.s32.totalorder %v4588_v5, 9  ;;  %vm3339_vm6 = vcmp.gt.s32.totalorder %v4588_v5, 7  ;;  %vm3345_vm7 = vcmp.gt.s32.totalorder %v4588_v5, 8 }
0x101b   :  { %v4533_v50 = vsel %vm1157_vm11, %v1148_v49, 0  ;;  %v1242_v52 = vmul.f32 %v3907_v60, %v1240_v21  ;;  %v4536_v55 = vsel %vm1157_vm11, %v1148_v49, %v4472_v39  ;;  %v4551_v39 = vld [vmem:[%s5355_s3] sm:$0xff]  }
0x101c   :  { %1268 = vrot.lane.b32.xlu1 %v4536_v55, %s4085_s20 }
0x101d   :  { %v1243_v59 = vpack.c.bf16 %v1242_v52, %v1242_v52  ;;  %v4593_v52 = vsel %vm3327_vm13, 1, %v4082_v2 }
0x101f   :  { %v4540_v58 = vsel %vm1252_vm12, %v1243_v59, 0  ;;  %v4543_v15 = vsel %vm1252_vm12, %v1243_v59, %v4479_v20 }
0x1020   :  { %1363 = vrot.lane.b32.xlu0 %v4543_v15, %s4085_s20 }
0x108e   :  { %v1269_v61 = vpop.permute.xlu1 %1268 }
0x108f   :  { %3643 = vmatmul.mubr.msk.bf16.vlgmr.msra.gmra.mrb[24].mxu0 %vm67_vm1, %v1269_v61  ;;  %v4599_v61 = vsel %vm3333_vm14, 1, %v4082_v2 }
0x1090   :  { %3655 = vmatpush3.bf16.msra.mxu0 %v4551_v39  ;;  %3658 = vmatprep.mubr.msk.bf16.mxu0 %vm4083_vm2, %v4081_v0 }
0x1091   :  { %3656 = vmatprep.subr.bf16.mxu0 %v4081_v0 }
0x1092   :  { %v1364_v20 = vpop.permute.xlu0 %1363 }
0x1093   :  { %3651 = vmatmul.mubr.msk.bf16.vlgmr.msra.gmra.mrb[24].mxu1 %vm67_vm1, %v1364_v20 }
0x1094   :  { %3657 = vmatpush3.bf16.msra.mxu0 %v4561_v7  ;;  %3663 = vmatpush3.bf16.msra.mxu1 %v4567_v11 }
0x1095   :  { %3664 = vmatprep.subr.bf16.mxu1 %v4081_v0  ;;  %3666 = vmatprep.mubr.msk.bf16.mxu1 %vm4083_vm2, %v4081_v0 }
0x1096   :  { %3670 = vmatprep.subr.bf16.mxu0 %v4081_v0 }
0x1098   :  { %3665 = vmatpush3.bf16.msra.mxu1 %v4577_v54 }
0x1099   :  { %3678 = vmatprep.subr.bf16.mxu1 %v4081_v0 }
0x1162   :  { %v1307_v12 = vpop.f32.mrb[24].mxu0 }
0x1163   :  { %v1313_v22 = vadd.f32 %v1307_v12, %v1266_v10  ;;  %v3644_v23 = vpop.f32.mrb[25].mxu0 }
0x1164   :  { %v1310_v25 = vpop.f32.mrb[26].mxu0 }
0x1165   :  { %3912 = vtanh.f32 %v1313_v22  ;;  %v3645_v27 = vpop.f32.mrb[27].mxu0  ;;  %v3326_v1 = vmul.f32 -1.442695, %v1313_v22 }
0x1166   :  { %v1402_v60 = vpop.f32.mrb[24].mxu1 }
0x1167   :  { %v1408_v13 = vadd.f32 %v1402_v60, %v1361_v24  ;;  %v3652_v30 = vpop.f32.mrb[25].mxu1 }
0x1168   :  { %v1405_v33 = vpop.f32.mrb[26].mxu1 }
0x1169   :  { %3914 = vtanh.f32 %v1408_v13  ;;  %v3653_v34 = vpop.f32.mrb[27].mxu1  ;;  %v3332_v19 = vmul.f32 -1.442695, %v1408_v13 }
0x116a   :  { %3916 = vpow2.f32 %v3326_v1 }
0x116b   :  { %3918 = vpow2.f32 %v3332_v19 }
0x116f   :  { %v3913_v35 = vpop.eup %3912 }
0x1170   :  { %1323 = vrot.lane.b32.xlu1 %v3913_v35, %s4084_s13 }
0x1173   :  { %v3915_v37 = vpop.eup %3914 }
0x1174   :  { %1418 = vrot.lane.b32.xlu0 %v3915_v37, %s4084_s13  ;;  %v3917_v4 = vpop.eup %3916 }
0x1175   :  { %v1317_v44 = vadd.f32 1.0, %v3917_v4  ;;  %v3919_v32 = vpop.eup %3918 }
0x1176   :  { %v1412_v28 = vadd.f32 1.0, %v3919_v32 }
0x1177   :  { %3920 = vrcp.f32 %v1317_v44 }
0x1178   :  { %3922 = vrcp.f32 %v1412_v28 }
0x1181   :  { %v3921_v3 = vpop.eup %3920 }
0x1182   :  { %v3923_v49 = vpop.eup %3922  ;;  %v1321_v20 = vmul.f32 %v3921_v3, %v4528_v63 }
0x1183   :  { %v1416_v22 = vmul.f32 %v3923_v49, %v4531_v48 }
0x11e2   :  { %v1324_v47 = vpop.permute.xlu1 %1323 }
0x11e3   :  { %v1326_v56 = vmul.f32 %v3921_v3, %v1324_v47  ;;  %v4649_v47 = vld [vmem:[%s5358_s2 + $0x1c] sm:$0xff]  }
0x11e5   :  { %1328 = vrot.lane.b32.xlu1 %v1326_v56, %s4084_s13 }
0x11e6   :  { %v1419_v21 = vpop.permute.xlu0 %1418 }
0x11e7   :  { %v1421_v59 = vmul.f32 %v3923_v49, %v1419_v21 }
0x11e9   :  { %1344 = vperm.xlu1 %3805, %v4593_v52   ;;  %1423 = vrot.lane.b32.xlu0 %v1421_v59, %s4084_s13  ;;  %v1551_v59 = vunpack.c.h.bf16 %v4649_v47 }
0x11ed   :  { %1439 = vperm.xlu0 %3804, %v4599_v61  }
0x1257   :  { %v1329_v10 = vpop.permute.xlu1 %1328 }
0x1258   :  { %v1331_v12 = vadd.f32 %v1329_v10, %v1321_v20 }
0x125a   :  { %3924 = vtanh.f32 %v1331_v12 }
0x125b   :  { %v1424_v23 = vpop.permute.xlu0 %1423 }
0x125c   :  { %v1426_v24 = vadd.f32 %v1424_v23, %v1416_v22 }
0x125e   :  { %3926 = vtanh.f32 %v1426_v24 }
0x1264   :  { %v3925_v25 = vpop.eup %3924 }
0x1265   :  { %1334 = vrot.lane.b32.xlu1 %v3925_v25, %s4084_s13 }
0x1268   :  { %v3927_v27 = vpop.eup %3926  ;;  %v1345_v60 = vpop.permute.xlu1 %1344 }
0x1269   :  { %vm1346_vm15 = vcmp.eq.s32.totalorder %v1345_v60, 1  ;;  %1429 = vrot.lane.b32.xlu0 %v3927_v27, %s4084_s13 }
0x126a   :  { %v4607_v13 = vsel %vm1346_vm15, %v1331_v12, %v4528_v63  ;;  %vm1347_vm4 = vmpackc.low %vm1346_vm15, %vm1346_vm15 }
0x126c   :  { %v1440_v30 = vpop.permute.xlu0 %1439 }
0x126d   :  { %vm1441_vm3 = vcmp.eq.s32.totalorder %v1440_v30, 1 }
0x126e   :  { %v4610_v33 = vsel %vm1441_vm3, %v1426_v24, %v4531_v48  ;;  %vm1442_vm5 = vmpackc.low %vm1441_vm3, %vm1441_vm3 }
0x12d7   :  { %v1335_v34 = vpop.permute.xlu1 %1334 }
0x12d8   :  { %v1337_v35 = vmul.f32 %v3921_v3, %v1335_v34 }
0x12da   :  { %v1338_v37 = vpack.c.bf16 %v1337_v35, %v1337_v35 }
0x12db   :  { %v1430_v1 = vpop.permute.xlu0 %1429 }
0x12dc   :  { %v4612_v19 = vsel %vm1347_vm4, %v1338_v37, 0  ;;  %v1432_v4 = vmul.f32 %v3923_v49, %v1430_v1  ;;  %v4615_v44 = vsel %vm1347_vm4, %v1338_v37, %v4536_v55 }
0x12dd   :  { %1458 = vrot.lane.b32.xlu1 %v4615_v44, %s4085_s20 }
0x12de   :  { %v1433_v63 = vpack.c.bf16 %v1432_v4, %v1432_v4 }
0x12e0   :  { %v4619_v32 = vsel %vm1442_vm5, %v1433_v63, 0  ;;  %v4622_v48 = vsel %vm1442_vm5, %v1433_v63, %v4543_v15  ;;  %v4643_v15 = vld [vmem:[%s5357_s1 + $0x1c] sm:$0xff]  }
0x12e1   :  { %1553 = vrot.lane.b32.xlu0 %v4622_v48, %s4085_s20  ;;  %v1456_v3 = vunpack.c.l.bf16 %v4643_v15 }
0x134f   :  { %v1459_v28 = vpop.permute.xlu1 %1458 }
0x1350   :  { %3659 = vmatmul.mubr.msk.bf16.vlgmr.msra.gmra.mrb[28].mxu0 %vm67_vm1, %v1459_v28 }
0x1351   :  { %3671 = vmatpush3.bf16.msra.mxu0 %v4551_v39  ;;  %3674 = vmatprep.mubr.msk.bf16.mxu0 %vm4083_vm2, %v4081_v0 }
0x1352   :  { %3672 = vmatprep.subr.bf16.mxu0 %v4081_v0 }
0x1353   :  { %v1554_v55 = vpop.permute.xlu0 %1553 }
0x1354   :  { %3667 = vmatmul.mubr.msk.bf16.vlgmr.msra.gmra.mrb[28].mxu1 %vm67_vm1, %v1554_v55 }
0x1355   :  { %3673 = vmatpush3.bf16.msra.mxu0 %v4561_v7  ;;  %3679 = vmatpush3.bf16.msra.mxu1 %v4567_v11 }
0x1356   :  { %3680 = vmatprep.subr.bf16.mxu1 %v4081_v0  ;;  %3682 = vmatprep.mubr.msk.bf16.mxu1 %vm4083_vm2, %v4081_v0 }
0x1357   :  { %3686 = vmatprep.subr.bf16.mxu0 %v4081_v0 }
0x1359   :  { %3681 = vmatpush3.bf16.msra.mxu1 %v4577_v54 }
0x135a   :  { %3694 = vmatprep.subr.bf16.mxu1 %v4081_v0 }
0x1423   :  { %v1497_v56 = vpop.f32.mrb[28].mxu0 }
0x1424   :  { %v1503_v49 = vadd.f32 %v1497_v56, %v1456_v3  ;;  %v3660_v21 = vpop.f32.mrb[29].mxu0 }
0x1425   :  { %v1500_v20 = vpop.f32.mrb[30].mxu0 }
0x1426   :  { %3928 = vtanh.f32 %v1503_v49  ;;  %v3661_v10 = vpop.f32.mrb[31].mxu0  ;;  %v3338_v30 = vmul.f32 -1.442695, %v1503_v49  ;;  %v4657_v49 = vsel %vm3339_vm6, 1, %v4082_v2 }
0x1427   :  { %v1592_v12 = vpop.f32.mrb[28].mxu1 }
0x1428   :  { %v1598_v22 = vadd.f32 %v1592_v12, %v1551_v59  ;;  %v3668_v23 = vpop.f32.mrb[29].mxu1  ;;  %v4663_v59 = vsel %vm3345_vm7, 1, %v4082_v2 }
0x1429   :  { %v1595_v24 = vpop.f32.mrb[30].mxu1 }
0x142a   :  { %3930 = vtanh.f32 %v1598_v22  ;;  %v3669_v25 = vpop.f32.mrb[31].mxu1  ;;  %v3344_v34 = vmul.f32 -1.442695, %v1598_v22 }
0x142b   :  { %3932 = vpow2.f32 %v3338_v30 }
0x142c   :  { %3934 = vpow2.f32 %v3344_v34 }
0x1430   :  { %v3929_v27 = vpop.eup %3928 }
0x1431   :  { %1513 = vrot.lane.b32.xlu1 %v3929_v27, %s4084_s13 }
0x1434   :  { %v3931_v60 = vpop.eup %3930 }
0x1435   :  { %1608 = vrot.lane.b32.xlu0 %v3931_v60, %s4084_s13  ;;  %v3933_v35 = vpop.eup %3932 }
0x1436   :  { %v1507_v37 = vadd.f32 1.0, %v3933_v35  ;;  %v3935_v1 = vpop.eup %3934 }
0x1437   :  { %v1602_v4 = vadd.f32 1.0, %v3935_v1 }
0x1438   :  { %3936 = vrcp.f32 %v1507_v37 }
0x1439   :  { %3938 = vrcp.f32 %v1602_v4 }
0x1442   :  { %v3937_v63 = vpop.eup %3936 }
0x1443   :  { %v3939_v3 = vpop.eup %3938  ;;  %v1511_v20 = vmul.f32 %v3937_v63, %v4607_v13 }
0x1444   :  { %v1606_v22 = vmul.f32 %v3939_v3, %v4610_v33 }
0x14a3   :  { %v1514_v28 = vpop.permute.xlu1 %1513 }
0x14a4   :  { %v1516_v55 = vmul.f32 %v3937_v63, %v1514_v28 }
0x14a6   :  { %1518 = vrot.lane.b32.xlu1 %v1516_v55, %s4084_s13 }
0x14a7   :  { %v1609_v56 = vpop.permute.xlu0 %1608 }
0x14a8   :  { %v1611_v21 = vmul.f32 %v3939_v3, %v1609_v56 }
0x14aa   :  { %1534 = vperm.xlu1 %3805, %v4657_v49   ;;  %1613 = vrot.lane.b32.xlu0 %v1611_v21, %s4084_s13 }
0x14ae   :  { %1629 = vperm.xlu0 %3804, %v4663_v59  }
0x1518   :  { %v1519_v10 = vpop.permute.xlu1 %1518 }
0x1519   :  { %v1521_v12 = vadd.f32 %v1519_v10, %v1511_v20  ;;  %v1741_v10 = vunpack.c.l.bf16 %v4649_v47 }
0x151b   :  { %3940 = vtanh.f32 %v1521_v12 }
0x151c   :  { %v1614_v23 = vpop.permute.xlu0 %1613 }
0x151d   :  { %v1616_v24 = vadd.f32 %v1614_v23, %v1606_v22 }
0x151f   :  { %3942 = vtanh.f32 %v1616_v24 }
0x1525   :  { %v3941_v5 = vpop.eup %3940 }
0x1526   :  { %1524 = vrot.lane.b32.xlu1 %v3941_v5, %s4084_s13 }
0x1529   :  { %v3943_v25 = vpop.eup %3942  ;;  %v1535_v27 = vpop.permute.xlu1 %1534 }
0x152a   :  { %vm1536_vm8 = vcmp.eq.s32.totalorder %v1535_v27, 1  ;;  %1619 = vrot.lane.b32.xlu0 %v3943_v25, %s4084_s13 }
0x152b   :  { %v4671_v2 = vsel %vm1536_vm8, %v1521_v12, %v4607_v13  ;;  %vm1537_vm10 = vmpackc.low %vm1536_vm8, %vm1536_vm8 }
0x152d   :  { %v1630_v60 = vpop.permute.xlu0 %1629 }
0x152e   :  { %vm1631_vm9 = vcmp.eq.s32.totalorder %v1630_v60, 1 }
0x152f   :  { %v4674_v30 = vsel %vm1631_vm9, %v1616_v24, %v4610_v33  ;;  %vm1632_vm11 = vmpackc.low %vm1631_vm9, %vm1631_vm9 }
0x1598   :  { %v1525_v34 = vpop.permute.xlu1 %1524 }
0x1599   :  { %v1527_v35 = vmul.f32 %v3937_v63, %v1525_v34 }
0x159b   :  { %v1528_v37 = vpack.c.bf16 %v1527_v35, %v1527_v35 }
0x159c   :  { %v1620_v1 = vpop.permute.xlu0 %1619 }
0x159d   :  { %v4676_v4 = vsel %vm1537_vm10, %v1528_v37, 0  ;;  %v1622_v28 = vmul.f32 %v3939_v3, %v1620_v1  ;;  %v4679_v55 = vsel %vm1537_vm10, %v1528_v37, %v4615_v44 }
0x159e   :  { %1648 = vrot.lane.b32.xlu1 %v4679_v55, %s4085_s20 }
0x159f   :  { %v1623_v13 = vpack.c.bf16 %v1622_v28, %v1622_v28 }
0x15a1   :  { %v4683_v56 = vsel %vm1632_vm11, %v1623_v13, 0  ;;  %v4686_v33 = vsel %vm1632_vm11, %v1623_v13, %v4622_v48  ;;  %v1646_v48 = vunpack.c.h.bf16 %v4643_v15 }
0x15a2   :  { %1743 = vrot.lane.b32.xlu0 %v4686_v33, %s4085_s20 }
0x1610   :  { %v1649_v63 = vpop.permute.xlu1 %1648 }
0x1611   :  { %3675 = vmatmul.mubr.msk.bf16.vlgmr.msra.gmra.mrb[32].mxu0 %vm67_vm1, %v1649_v63 }
0x1612   :  { %3687 = vmatpush3.bf16.msra.mxu0 %v4551_v39  ;;  %3690 = vmatprep.mubr.msk.bf16.mxu0 %vm4083_vm2, %v4081_v0 }
0x1613   :  { %3688 = vmatprep.subr.bf16.mxu0 %v4081_v0 }
0x1614   :  { %v1744_v44 = vpop.permute.xlu0 %1743 }
0x1615   :  { %3683 = vmatmul.mubr.msk.bf16.vlgmr.msra.gmra.mrb[32].mxu1 %vm67_vm1, %v1744_v44 }
0x1616   :  { %3689 = vmatpush3.bf16.msra.mxu0 %v4561_v7  ;;  %3695 = vmatpush3.bf16.msra.mxu1 %v4567_v11 }
0x1617   :  { %3696 = vmatprep.subr.bf16.mxu1 %v4081_v0  ;;  %3698 = vmatprep.mubr.msk.bf16.mxu1 %vm4083_vm2, %v4081_v0 }
0x1618   :  { %3702 = vmatprep.subr.bf16.mxu0 %v4081_v0 }
0x161a   :  { %3697 = vmatpush3.bf16.msra.mxu1 %v4577_v54 }
0x161b   :  { %3710 = vmatprep.subr.bf16.mxu1 %v4081_v0 }
0x16e4   :  { %v1687_v3 = vpop.f32.mrb[32].mxu0 }
0x16e5   :  { %v1693_v21 = vadd.f32 %v1687_v3, %v1646_v48  ;;  %v3676_v20 = vpop.f32.mrb[33].mxu0 }
0x16e6   :  { %v1690_v12 = vpop.f32.mrb[34].mxu0 }
0x16e7   :  { %3944 = vtanh.f32 %v1693_v21  ;;  %v3677_v22 = vpop.f32.mrb[35].mxu0  ;;  %v3350_v15 = vmul.f32 -1.442695, %v1693_v21 }
0x16e8   :  { %v1782_v23 = vpop.f32.mrb[32].mxu1 }
0x16e9   :  { %v1788_v24 = vadd.f32 %v1782_v23, %v1741_v10  ;;  %v3684_v5 = vpop.f32.mrb[33].mxu1 }
0x16ea   :  { %v1785_v25 = vpop.f32.mrb[34].mxu1 }
0x16eb   :  { %3946 = vtanh.f32 %v1788_v24  ;;  %v3685_v27 = vpop.f32.mrb[35].mxu1  ;;  %v3356_v35 = vmul.f32 -1.442695, %v1788_v24 }
0x16ec   :  { %3948 = vpow2.f32 %v3350_v15 }
0x16ed   :  { %3950 = vpow2.f32 %v3356_v35 }
0x16f1   :  { %v3945_v60 = vpop.eup %3944 }
0x16f2   :  { %1703 = vrot.lane.b32.xlu1 %v3945_v60, %s4084_s13 }
0x16f5   :  { %v3947_v34 = vpop.eup %3946 }
0x16f6   :  { %1798 = vrot.lane.b32.xlu0 %v3947_v34, %s4084_s13  ;;  %v3949_v47 = vpop.eup %3948 }
0x16f7   :  { %v1697_v37 = vadd.f32 1.0, %v3949_v47  ;;  %v3951_v1 = vpop.eup %3950 }
0x16f8   :  { %v1792_v28 = vadd.f32 1.0, %v3951_v1 }
0x16f9   :  { %3952 = vrcp.f32 %v1697_v37 }
0x16fa   :  { %3954 = vrcp.f32 %v1792_v28 }
0x1703   :  { %v3953_v13 = vpop.eup %3952 }
0x1704   :  { %v3955_v48 = vpop.eup %3954  ;;  %v1701_v21 = vmul.f32 %v3953_v13, %v4671_v2 }
0x1705   :  { %v1796_v22 = vmul.f32 %v3955_v48, %v4674_v30 }
0x1764   :  { %v1704_v63 = vpop.permute.xlu1 %1703 }
0x1765   :  { %v1706_v44 = vmul.f32 %v3953_v13, %v1704_v63 }
0x1767   :  { %1708 = vrot.lane.b32.xlu1 %v1706_v44, %s4084_s13 }
0x1768   :  { %v1799_v3 = vpop.permute.xlu0 %1798 }
0x1769   :  { %v1801_v20 = vmul.f32 %v3955_v48, %v1799_v3 }
0x176b   :  { %1724 = vperm.xlu1 %3805, %v4663_v59   ;;  %1803 = vrot.lane.b32.xlu0 %v1801_v20, %s4084_s13 }
0x176f   :  { %1819 = vperm.xlu0 %3804, %v4657_v49  }
0x17d9   :  { %v1709_v10 = vpop.permute.xlu1 %1708 }
0x17da   :  { %v1711_v12 = vadd.f32 %v1709_v10, %v1701_v21 }
0x17dc   :  { %3956 = vtanh.f32 %v1711_v12 }
0x17dd   :  { %v1804_v23 = vpop.permute.xlu0 %1803 }
0x17de   :  { %v1806_v24 = vadd.f32 %v1804_v23, %v1796_v22 }
0x17e0   :  { %3958 = vtanh.f32 %v1806_v24 }
0x17e6   :  { %v3957_v5 = vpop.eup %3956 }
0x17e7   :  { %1714 = vrot.lane.b32.xlu1 %v3957_v5, %s4084_s13 }
0x17ea   :  { %v3959_v25 = vpop.eup %3958  ;;  %v1725_v27 = vpop.permute.xlu1 %1724 }
0x17eb   :  { %vm1726_vm12 = vcmp.eq.s32.totalorder %v1725_v27, 1  ;;  %1809 = vrot.lane.b32.xlu0 %v3959_v25, %s4084_s13 }
0x17ec   :  { %v4717_v49 = vsel %vm1726_vm12, %v1711_v12, %v4671_v2  ;;  %vm1727_vm14 = vmpackc.low %vm1726_vm12, %vm1726_vm12 }
0x17ee   :  { %v1820_v59 = vpop.permute.xlu0 %1819 }
0x17ef   :  { %vm1821_vm13 = vcmp.eq.s32.totalorder %v1820_v59, 1 }
0x17f0   :  { %v4720_v60 = vsel %vm1821_vm13, %v1806_v24, %v4674_v30  ;;  %vm1822_vm15 = vmpackc.low %vm1821_vm13, %vm1821_vm13 }
0x1859   :  { %v1715_v34 = vpop.permute.xlu1 %1714 }
0x185a   :  { %v1717_v15 = vmul.f32 %v3953_v13, %v1715_v34 }
0x185c   :  { %v1718_v35 = vpack.c.bf16 %v1717_v15, %v1717_v15 }
0x185d   :  { %v1810_v47 = vpop.permute.xlu0 %1809 }
0x185e   :  { %v4722_v37 = vsel %vm1727_vm14, %v1718_v35, 0  ;;  %v1812_v1 = vmul.f32 %v3955_v48, %v1810_v47  ;;  %v4725_v28 = vsel %vm1727_vm14, %v1718_v35, %v4679_v55  ;;  %v4759_v48 = vld [vmem:[%s5358_s2 + $0x14] sm:$0xff]  }
0x185f   :  { %1838 = vrot.lane.b32.xlu1 %v4725_v28, %s4085_s20  ;;  %v1931_v10 = vunpack.c.h.bf16 %v4759_v48 }
0x1860   :  { %v1813_v2 = vpack.c.bf16 %v1812_v1, %v1812_v1 }
0x1862   :  { %v4729_v63 = vsel %vm1822_vm15, %v1813_v2, 0  ;;  %v4732_v30 = vsel %vm1822_vm15, %v1813_v2, %v4686_v33  ;;  %v4753_v33 = vld [vmem:[%s5357_s1 + $0x24] sm:$0xff]  }
0x1863   :  { %1933 = vrot.lane.b32.xlu0 %v4732_v30, %s4085_s20  ;;  %v1836_v44 = vunpack.c.l.bf16 %v4753_v33 }
0x18d1   :  { %v1839_v13 = vpop.permute.xlu1 %1838 }
0x18d2   :  { %3691 = vmatmul.mubr.msk.bf16.vlgmr.msra.gmra.mrb[36].mxu0 %vm67_vm1, %v1839_v13 }
0x18d3   :  { %3703 = vmatpush3.bf16.msra.mxu0 %v4551_v39  ;;  %3706 = vmatprep.mubr.msk.bf16.mxu0 %vm4083_vm2, %v4081_v0 }
0x18d4   :  { %3704 = vmatprep.subr.bf16.mxu0 %v4081_v0 }
0x18d5   :  { %v1934_v55 = vpop.permute.xlu0 %1933 }
0x18d6   :  { %3699 = vmatmul.mubr.msk.bf16.vlgmr.msra.gmra.mrb[36].mxu1 %vm67_vm1, %v1934_v55 }
0x18d7   :  { %3705 = vmatpush3.bf16.msra.mxu0 %v4561_v7  ;;  %3711 = vmatpush3.bf16.msra.mxu1 %v4567_v11 }
0x18d8   :  { %3712 = vmatprep.subr.bf16.mxu1 %v4081_v0  ;;  %3714 = vmatprep.mubr.msk.bf16.mxu1 %vm4083_vm2, %v4081_v0 }
0x18d9   :  { %3718 = vmatprep.subr.bf16.mxu0 %v4081_v0 }
0x18db   :  { %3713 = vmatpush3.bf16.msra.mxu1 %v4577_v54 }
0x18dc   :  { %3726 = vmatprep.subr.bf16.mxu1 %v4081_v0 }
0x19a5   :  { %v1877_v3 = vpop.f32.mrb[36].mxu0 }
0x19a6   :  { %v1883_v20 = vadd.f32 %v1877_v3, %v1836_v44  ;;  %v3692_v21 = vpop.f32.mrb[37].mxu0 }
0x19a7   :  { %v1880_v12 = vpop.f32.mrb[38].mxu0 }
0x19a8   :  { %3960 = vtanh.f32 %v1883_v20  ;;  %v3693_v22 = vpop.f32.mrb[39].mxu0  ;;  %v3362_v15 = vmul.f32 -1.442695, %v1883_v20 }
0x19a9   :  { %v1972_v23 = vpop.f32.mrb[36].mxu1 }
0x19aa   :  { %v1978_v24 = vadd.f32 %v1972_v23, %v1931_v10  ;;  %v3700_v5 = vpop.f32.mrb[37].mxu1 }
0x19ab   :  { %v1975_v25 = vpop.f32.mrb[38].mxu1 }
0x19ac   :  { %3962 = vtanh.f32 %v1978_v24  ;;  %v3701_v27 = vpop.f32.mrb[39].mxu1  ;;  %v3368_v35 = vmul.f32 -1.442695, %v1978_v24 }
0x19ad   :  { %3964 = vpow2.f32 %v3362_v15 }
0x19ae   :  { %3966 = vpow2.f32 %v3368_v35 }
0x19b2   :  { %v3961_v59 = vpop.eup %3960 }
0x19b3   :  { %1893 = vrot.lane.b32.xlu1 %v3961_v59, %s4084_s13 }
0x19b6   :  { %v3963_v34 = vpop.eup %3962 }
0x19b7   :  { %1988 = vrot.lane.b32.xlu0 %v3963_v34, %s4084_s13  ;;  %v3965_v47 = vpop.eup %3964 }
0x19b8   :  { %v1887_v1 = vadd.f32 1.0, %v3965_v47  ;;  %v3967_v2 = vpop.eup %3966 }
0x19b9   :  { %v1982_v13 = vadd.f32 1.0, %v3967_v2 }
0x19ba   :  { %3968 = vrcp.f32 %v1887_v1 }
0x19bb   :  { %3970 = vrcp.f32 %v1982_v13 }
0x19c4   :  { %v3969_v55 = vpop.eup %3968 }
0x19c5   :  { %v3971_v21 = vpop.eup %3970  ;;  %v1891_v20 = vmul.f32 %v3969_v55, %v4717_v49 }
0x19c6   :  { %v1986_v24 = vmul.f32 %v3971_v21, %v4720_v60 }
0x1a25   :  { %v1894_v44 = vpop.permute.xlu1 %1893 }
0x1a26   :  { %v1896_v3 = vmul.f32 %v3969_v55, %v1894_v44 }
0x1a28   :  { %1898 = vrot.lane.b32.xlu1 %v1896_v3, %s4084_s13 }
0x1a29   :  { %v1989_v10 = vpop.permute.xlu0 %1988 }
0x1a2a   :  { %v1991_v12 = vmul.f32 %v3971_v21, %v1989_v10 }
0x1a2c   :  { %1914 = vperm.xlu1 %3805, %v4599_v61   ;;  %1993 = vrot.lane.b32.xlu0 %v1991_v12, %s4084_s13 }
0x1a30   :  { %2009 = vperm.xlu0 %3804, %v4593_v52  }
0x1a9a   :  { %v1899_v22 = vpop.permute.xlu1 %1898 }
0x1a9b   :  { %v1901_v23 = vadd.f32 %v1899_v22, %v1891_v20  ;;  %v2121_v22 = vunpack.c.l.bf16 %v4759_v48 }
0x1a9d   :  { %3972 = vtanh.f32 %v1901_v23 }
0x1a9e   :  { %v1994_v5 = vpop.permute.xlu0 %1993 }
0x1a9f   :  { %v1996_v25 = vadd.f32 %v1994_v5, %v1986_v24 }
0x1aa1   :  { %3974 = vtanh.f32 %v1996_v25 }
0x1aa7   :  { %v3973_v27 = vpop.eup %3972 }
0x1aa8   :  { %1904 = vrot.lane.b32.xlu1 %v3973_v27, %s4084_s13 }
0x1aab   :  { %v3975_v59 = vpop.eup %3974  ;;  %v1915_v34 = vpop.permute.xlu1 %1914 }
0x1aac   :  { %vm1916_vm3 = vcmp.eq.s32.totalorder %v1915_v34, 1  ;;  %1999 = vrot.lane.b32.xlu0 %v3975_v59, %s4084_s13 }
0x1aad   :  { %v4773_v52 = vsel %vm1916_vm3, %v1901_v23, %v4717_v49  ;;  %vm1917_vm5 = vmpackc.low %vm1916_vm3, %vm1916_vm3 }
0x1aaf   :  { %v2010_v61 = vpop.permute.xlu0 %2009 }
0x1ab0   :  { %vm2011_vm4 = vcmp.eq.s32.totalorder %v2010_v61, 1 }
0x1ab1   :  { %v4776_v15 = vsel %vm2011_vm4, %v1996_v25, %v4720_v60  ;;  %vm2012_vm6 = vmpackc.low %vm2011_vm4, %vm2011_vm4 }
0x1b1a   :  { %v1905_v35 = vpop.permute.xlu1 %1904 }
0x1b1b   :  { %v1907_v47 = vmul.f32 %v3969_v55, %v1905_v35 }
0x1b1d   :  { %v1908_v1 = vpack.c.bf16 %v1907_v47, %v1907_v47 }
0x1b1e   :  { %v2000_v2 = vpop.permute.xlu0 %1999 }
0x1b1f   :  { %v4778_v13 = vsel %vm1917_vm5, %v1908_v1, 0  ;;  %v2002_v44 = vmul.f32 %v3971_v21, %v2000_v2  ;;  %v4781_v3 = vsel %vm1917_vm5, %v1908_v1, %v4725_v28 }
0x1b20   :  { %2028 = vrot.lane.b32.xlu1 %v4781_v3, %s4085_s20 }
0x1b21   :  { %v2003_v49 = vpack.c.bf16 %v2002_v44, %v2002_v44 }
0x1b23   :  { %v4785_v10 = vsel %vm2012_vm6, %v2003_v49, 0  ;;  %v4788_v60 = vsel %vm2012_vm6, %v2003_v49, %v4732_v30  ;;  %v2026_v30 = vunpack.c.h.bf16 %v4753_v33 }
0x1b24   :  { %2123 = vrot.lane.b32.xlu0 %v4788_v60, %s4085_s20 }
0x1b92   :  { %v2029_v55 = vpop.permute.xlu1 %2028 }
0x1b93   :  { %3707 = vmatmul.mubr.msk.bf16.vlgmr.msra.gmra.mrb[40].mxu0 %vm67_vm1, %v2029_v55 }
0x1b94   :  { %3719 = vmatpush3.bf16.msra.mxu0 %v4551_v39  ;;  %3722 = vmatprep.mubr.msk.bf16.mxu0 %vm4083_vm2, %v4081_v0 }
0x1b95   :  { %3720 = vmatprep.subr.bf16.mxu0 %v4081_v0 }
0x1b96   :  { %v2124_v28 = vpop.permute.xlu0 %2123 }
0x1b97   :  { %3715 = vmatmul.mubr.msk.bf16.vlgmr.msra.gmra.mrb[40].mxu1 %vm67_vm1, %v2124_v28 }
0x1b98   :  { %3721 = vmatpush3.bf16.msra.mxu0 %v4561_v7  ;;  %3727 = vmatpush3.bf16.msra.mxu1 %v4567_v11 }
0x1b99   :  { %3728 = vmatprep.subr.bf16.mxu1 %v4081_v0  ;;  %3730 = vmatprep.mubr.msk.bf16.mxu1 %vm4083_vm2, %v4081_v0 }
0x1b9a   :  { %3734 = vmatprep.subr.bf16.mxu0 %v4081_v0 }
0x1b9c   :  { %3729 = vmatpush3.bf16.msra.mxu1 %v4577_v54 }
0x1b9d   :  { %3742 = vmatprep.subr.bf16.mxu1 %v4081_v0 }
0x1c66   :  { %v2067_v21 = vpop.f32.mrb[40].mxu0 }
0x1c67   :  { %v2073_v12 = vadd.f32 %v2067_v21, %v2026_v30  ;;  %v3708_v20 = vpop.f32.mrb[41].mxu0 }
0x1c68   :  { %v2070_v23 = vpop.f32.mrb[42].mxu0 }
0x1c69   :  { %3976 = vtanh.f32 %v2073_v12  ;;  %v3709_v24 = vpop.f32.mrb[43].mxu0  ;;  %v3374_v33 = vmul.f32 -1.442695, %v2073_v12 }
0x1c6a   :  { %v2162_v5 = vpop.f32.mrb[40].mxu1 }
0x1c6b   :  { %v2168_v25 = vadd.f32 %v2162_v5, %v2121_v22  ;;  %v3716_v27 = vpop.f32.mrb[41].mxu1 }
0x1c6c   :  { %v2165_v59 = vpop.f32.mrb[42].mxu1 }
0x1c6d   :  { %3978 = vtanh.f32 %v2168_v25  ;;  %v3717_v34 = vpop.f32.mrb[43].mxu1  ;;  %v3380_v47 = vmul.f32 -1.442695, %v2168_v25 }
0x1c6e   :  { %3980 = vpow2.f32 %v3374_v33 }
0x1c6f   :  { %3982 = vpow2.f32 %v3380_v47 }
0x1c73   :  { %v3977_v61 = vpop.eup %3976 }
0x1c74   :  { %2083 = vrot.lane.b32.xlu1 %v3977_v61, %s4084_s13 }
0x1c77   :  { %v3979_v35 = vpop.eup %3978 }
0x1c78   :  { %2178 = vrot.lane.b32.xlu0 %v3979_v35, %s4084_s13  ;;  %v3981_v48 = vpop.eup %3980 }
0x1c79   :  { %v2077_v1 = vadd.f32 1.0, %v3981_v48  ;;  %v3983_v2 = vpop.eup %3982 }
0x1c7a   :  { %v2172_v44 = vadd.f32 1.0, %v3983_v2 }
0x1c7b   :  { %3984 = vrcp.f32 %v2077_v1 }
0x1c7c   :  { %3986 = vrcp.f32 %v2172_v44 }
0x1c85   :  { %v3985_v49 = vpop.eup %3984 }
0x1c86   :  { %v3987_v30 = vpop.eup %3986  ;;  %v2081_v12 = vmul.f32 %v3985_v49, %v4773_v52 }
0x1c87   :  { %v2176_v24 = vmul.f32 %v3987_v30, %v4776_v15 }
0x1ce6   :  { %v2084_v55 = vpop.permute.xlu1 %2083 }
0x1ce7   :  { %v2086_v28 = vmul.f32 %v3985_v49, %v2084_v55 }
0x1ce9   :  { %2088 = vrot.lane.b32.xlu1 %v2086_v28, %s4084_s13 }
0x1cea   :  { %v2179_v21 = vpop.permute.xlu0 %2178 }
0x1ceb   :  { %v2181_v20 = vmul.f32 %v3987_v30, %v2179_v21 }
0x1ced   :  { %2104 = vperm.xlu1 %3805, %v4520_v31   ;;  %2183 = vrot.lane.b32.xlu0 %v2181_v20, %s4084_s13 }
0x1cf1   :  { %2199 = vperm.xlu0 %3804, %v4514_v17  }
0x1d5b   :  { %v2089_v22 = vpop.permute.xlu1 %2088 }
0x1d5c   :  { %v2091_v23 = vadd.f32 %v2089_v22, %v2081_v12 }
0x1d5e   :  { %3988 = vtanh.f32 %v2091_v23 }
0x1d5f   :  { %v2184_v5 = vpop.permute.xlu0 %2183 }
0x1d60   :  { %v2186_v25 = vadd.f32 %v2184_v5, %v2176_v24 }
0x1d62   :  { %3990 = vtanh.f32 %v2186_v25 }
0x1d68   :  { %v3989_v27 = vpop.eup %3988 }
0x1d69   :  { %2094 = vrot.lane.b32.xlu1 %v3989_v27, %s4084_s13 }
0x1d6c   :  { %v3991_v59 = vpop.eup %3990  ;;  %v2105_v34 = vpop.permute.xlu1 %2104 }
0x1d6d   :  { %vm2106_vm7 = vcmp.eq.s32.totalorder %v2105_v34, 1  ;;  %2189 = vrot.lane.b32.xlu0 %v3991_v59, %s4084_s13 }
0x1d6e   :  { %v4819_v17 = vsel %vm2106_vm7, %v2091_v23, %v4773_v52  ;;  %vm2107_vm9 = vmpackc.low %vm2106_vm7, %vm2106_vm7 }
0x1d70   :  { %v2200_v31 = vpop.permute.xlu0 %2199 }
0x1d71   :  { %vm2201_vm8 = vcmp.eq.s32.totalorder %v2200_v31, 1 }
0x1d72   :  { %v4822_v61 = vsel %vm2201_vm8, %v2186_v25, %v4776_v15  ;;  %vm2202_vm10 = vmpackc.low %vm2201_vm8, %vm2201_vm8 }
0x1ddb   :  { %v2095_v35 = vpop.permute.xlu1 %2094 }
0x1ddc   :  { %v2097_v33 = vmul.f32 %v3985_v49, %v2095_v35 }
0x1dde   :  { %v2098_v47 = vpack.c.bf16 %v2097_v33, %v2097_v33 }
0x1ddf   :  { %v2190_v48 = vpop.permute.xlu0 %2189 }
0x1de0   :  { %v4824_v1 = vsel %vm2107_vm9, %v2098_v47, 0  ;;  %v2192_v2 = vmul.f32 %v3987_v30, %v2190_v48  ;;  %v4827_v44 = vsel %vm2107_vm9, %v2098_v47, %v4781_v3 }
0x1de1   :  { %2218 = vrot.lane.b32.xlu1 %v4827_v44, %s4085_s20 }
0x1de2   :  { %v2193_v52 = vpack.c.bf16 %v2192_v2, %v2192_v2 }
0x1de4   :  { %v4831_v55 = vsel %vm2202_vm10, %v2193_v52, 0  ;;  %v4834_v15 = vsel %vm2202_vm10, %v2193_v52, %v4788_v60 }
0x1de5   :  { %2313 = vrot.lane.b32.xlu0 %v4834_v15, %s4085_s20 }
0x1e53   :  { %v2219_v49 = vpop.permute.xlu1 %2218 }
0x1e54   :  { %3723 = vmatmul.mubr.msk.bf16.vlgmr.msra.gmra.mrb[44].mxu0 %vm67_vm1, %v2219_v49 }
0x1e55   :  { %3735 = vmatpush3.bf16.msra.mxu0 %v4551_v39  ;;  %3738 = vmatprep.mubr.msk.bf16.mxu0 %vm4083_vm2, %v4081_v0  ;;  %v4855_v39 = vld [vmem:[%s5357_s1 + $0x2c] sm:$0xff]  }
0x1e56   :  { %3736 = vmatprep.subr.bf16.mxu0 %v4081_v0 }
0x1e57   :  { %v2314_v3 = vpop.permute.xlu0 %2313 }
0x1e58   :  { %3731 = vmatmul.mubr.msk.bf16.vlgmr.msra.gmra.mrb[44].mxu1 %vm67_vm1, %v2314_v3 }
0x1e59   :  { %3737 = vmatpush3.bf16.msra.mxu0 %v4561_v7  ;;  %3743 = vmatpush3.bf16.msra.mxu1 %v4567_v11  ;;  %v2216_v7 = vunpack.c.l.bf16 %v4855_v39  ;;  %v4861_v11 = vld [vmem:[%s5358_s2 + $0xc] sm:$0xff]  }
0x1e5a   :  { %3744 = vmatprep.subr.bf16.mxu1 %v4081_v0  ;;  %3746 = vmatprep.mubr.msk.bf16.mxu1 %vm4083_vm2, %v4081_v0  ;;  %v2311_v21 = vunpack.c.h.bf16 %v4861_v11 }
0x1e5b   :  { %3750 = vmatprep.subr.bf16.mxu0 %v4081_v0 }
0x1e5d   :  { %3745 = vmatpush3.bf16.msra.mxu1 %v4577_v54 }
0x1e5e   :  { %3758 = vmatprep.subr.bf16.mxu1 %v4081_v0 }
0x1f27   :  { %v2257_v60 = vpop.f32.mrb[44].mxu0 }
0x1f28   :  { %v2263_v28 = vadd.f32 %v2257_v60, %v2216_v7  ;;  %v3724_v30 = vpop.f32.mrb[45].mxu0 }
0x1f29   :  { %v2260_v54 = vpop.f32.mrb[46].mxu0 }
0x1f2a   :  { %3992 = vtanh.f32 %v2263_v28  ;;  %v3725_v20 = vpop.f32.mrb[47].mxu0  ;;  %v3386_v59 = vmul.f32 -1.442695, %v2263_v28 }
0x1f2b   :  { %v2352_v12 = vpop.f32.mrb[44].mxu1 }
0x1f2c   :  { %v2358_v22 = vadd.f32 %v2352_v12, %v2311_v21  ;;  %v3732_v23 = vpop.f32.mrb[45].mxu1 }
0x1f2d   :  { %v2355_v24 = vpop.f32.mrb[46].mxu1 }
0x1f2e   :  { %3994 = vtanh.f32 %v2358_v22  ;;  %v3733_v5 = vpop.f32.mrb[47].mxu1  ;;  %v3392_v34 = vmul.f32 -1.442695, %v2358_v22 }
0x1f2f   :  { %3996 = vpow2.f32 %v3386_v59 }
0x1f30   :  { %3998 = vpow2.f32 %v3392_v34 }
0x1f34   :  { %v3993_v25 = vpop.eup %3992 }
0x1f35   :  { %2273 = vrot.lane.b32.xlu1 %v3993_v25, %s4084_s13 }
0x1f38   :  { %v3995_v27 = vpop.eup %3994 }
0x1f39   :  { %2368 = vrot.lane.b32.xlu0 %v3995_v27, %s4084_s13  ;;  %v3997_v31 = vpop.eup %3996 }
0x1f3a   :  { %v2267_v35 = vadd.f32 1.0, %v3997_v31  ;;  %v3999_v33 = vpop.eup %3998 }
0x1f3b   :  { %v2362_v47 = vadd.f32 1.0, %v3999_v33 }
0x1f3c   :  { %4000 = vrcp.f32 %v2267_v35 }
0x1f3d   :  { %4002 = vrcp.f32 %v2362_v47 }
0x1f46   :  { %v4001_v48 = vpop.eup %4000 }
0x1f47   :  { %v4003_v49 = vpop.eup %4002  ;;  %v2271_v60 = vmul.f32 %v4001_v48, %v4819_v17 }
0x1f48   :  { %v2366_v21 = vmul.f32 %v4003_v49, %v4822_v61 }
0x1fa7   :  { %v2274_v2 = vpop.permute.xlu1 %2273 }
0x1fa8   :  { %v2276_v52 = vmul.f32 %v4001_v48, %v2274_v2  ;;  %v4914_v2 = vld [vmem:[%s5356_s4] sm:$0xff]  }
0x1faa   :  { %2278 = vrot.lane.b32.xlu1 %v2276_v52, %s4084_s13  ;;  %v4924_v52 = vld [vmem:[%s5356_s4 + $0x8] sm:$0xff]  }
0x1fab   :  { %v2369_v3 = vpop.permute.xlu0 %2368 }
0x1fac   :  { %v2371_v7 = vmul.f32 %v4003_v49, %v2369_v3 }
0x1fae   :  { %2294 = vperm.xlu1 %3805, %v4456_v57   ;;  %2373 = vrot.lane.b32.xlu0 %v2371_v7, %s4084_s13 }
0x1fb2   :  { %2389 = vperm.xlu0 %3804, %v4450_v16  }
0x201c   :  { %v2279_v28 = vpop.permute.xlu1 %2278 }
0x201d   :  { %v2281_v30 = vadd.f32 %v2279_v28, %v2271_v60  ;;  %v2501_v28 = vunpack.c.l.bf16 %v4861_v11 }
0x201f   :  { %4004 = vtanh.f32 %v2281_v30 }
0x2020   :  { %v2374_v54 = vpop.permute.xlu0 %2373 }
0x2021   :  { %v2376_v20 = vadd.f32 %v2374_v54, %v2366_v21 }
0x2023   :  { %4006 = vtanh.f32 %v2376_v20 }
0x2029   :  { %v4005_v12 = vpop.eup %4004 }
0x202a   :  { %2284 = vrot.lane.b32.xlu1 %v4005_v12, %s4084_s13 }
0x202d   :  { %v4007_v22 = vpop.eup %4006  ;;  %v2295_v23 = vpop.permute.xlu1 %2294 }
0x202e   :  { %vm2296_vm11 = vcmp.eq.s32.totalorder %v2295_v23, 1  ;;  %2379 = vrot.lane.b32.xlu0 %v4007_v22, %s4084_s13 }
0x202f   :  { %v4875_v16 = vsel %vm2296_vm11, %v2281_v30, %v4819_v17  ;;  %vm2297_vm13 = vmpackc.low %vm2296_vm11, %vm2296_vm11 }
0x2031   :  { %v2390_v57 = vpop.permute.xlu0 %2389 }
0x2032   :  { %vm2391_vm12 = vcmp.eq.s32.totalorder %v2390_v57, 1 }
0x2033   :  { %v4878_v24 = vsel %vm2391_vm12, %v2376_v20, %v4822_v61  ;;  %vm2392_vm14 = vmpackc.low %vm2391_vm12, %vm2391_vm12 }
0x209c   :  { %v2285_v5 = vpop.permute.xlu1 %2284 }
0x209d   :  { %v2287_v25 = vmul.f32 %v4001_v48, %v2285_v5  ;;  %v4908_v48 = vld [vmem:[%s5355_s3 + $0x8] sm:$0xff]  }
0x209f   :  { %v2288_v27 = vpack.c.bf16 %v2287_v25, %v2287_v25 }
0x20a0   :  { %v2380_v59 = vpop.permute.xlu0 %2379 }
0x20a1   :  { %v4880_v34 = vsel %vm2297_vm13, %v2288_v27, 0  ;;  %v2382_v31 = vmul.f32 %v4003_v49, %v2380_v59  ;;  %v4883_v35 = vsel %vm2297_vm13, %v2288_v27, %v4827_v44  ;;  %v4898_v44 = vld [vmem:[%s5355_s3] sm:$0xff]   ;;  %v2406_v49 = vunpack.c.h.bf16 %v4855_v39 }
0x20a2   :  { %2408 = vrot.lane.b32.xlu1 %v4883_v35, %s4085_s20 }
0x20a3   :  { %v2383_v17 = vpack.c.bf16 %v2382_v31, %v2382_v31 }
0x20a5   :  { %v4887_v33 = vsel %vm2392_vm14, %v2383_v17, 0  ;;  %v4890_v61 = vsel %vm2392_vm14, %v2383_v17, %v4834_v15 }
0x20a6   :  { %2503 = vrot.lane.b32.xlu0 %v4890_v61, %s4085_s20 }
0x2114   :  { %v2409_v47 = vpop.permute.xlu1 %2408 }
0x2115   :  { %3739 = vmatmul.mubr.msk.bf16.vlgmr.msra.gmra.mrb[48].mxu0 %vm67_vm1, %v2409_v47 }
0x2116   :  { %3751 = vmatpush3.bf16.msra.mxu0 %v4898_v44  ;;  %3754 = vmatprep.mubr.msk.bf16.mxu0 %vm4083_vm2, %v4081_v0 }
0x2117   :  { %3752 = vmatprep.subr.bf16.mxu0 %v4081_v0 }
0x2118   :  { %v2504_v15 = vpop.permute.xlu0 %2503 }
0x2119   :  { %3747 = vmatmul.mubr.msk.bf16.vlgmr.msra.gmra.mrb[48].mxu1 %vm67_vm1, %v2504_v15 }
0x211a   :  { %3753 = vmatpush3.bf16.msra.mxu0 %v4908_v48  ;;  %3759 = vmatpush3.bf16.msra.mxu1 %v4914_v2 }
0x211b   :  { %3760 = vmatprep.subr.bf16.mxu1 %v4081_v0  ;;  %3762 = vmatprep.mubr.msk.bf16.mxu1 %vm4083_vm2, %v4081_v0 }
0x211c   :  { %3766 = vmatprep.subr.bf16.mxu0 %v4081_v0 }
0x211e   :  { %3761 = vmatpush3.bf16.msra.mxu1 %v4924_v52 }
0x211f   :  { %3774 = vmatprep.subr.bf16.mxu1 %v4081_v0 }
0x21e8   :  { %v2447_v3 = vpop.f32.mrb[48].mxu0 }
0x21e9   :  { %v2453_v7 = vadd.f32 %v2447_v3, %v2406_v49  ;;  %v3740_v60 = vpop.f32.mrb[49].mxu0 }
0x21ea   :  { %v2450_v30 = vpop.f32.mrb[50].mxu0 }
0x21eb   :  { %4008 = vtanh.f32 %v2453_v7  ;;  %v3741_v21 = vpop.f32.mrb[51].mxu0  ;;  %v3398_v39 = vmul.f32 -1.442695, %v2453_v7 }
0x21ec   :  { %v2542_v54 = vpop.f32.mrb[48].mxu1 }
0x21ed   :  { %v2548_v20 = vadd.f32 %v2542_v54, %v2501_v28  ;;  %v3748_v12 = vpop.f32.mrb[49].mxu1 }
0x21ee   :  { %v2545_v22 = vpop.f32.mrb[50].mxu1 }
0x21ef   :  { %4010 = vtanh.f32 %v2548_v20  ;;  %v3749_v23 = vpop.f32.mrb[51].mxu1  ;;  %v3404_v25 = vmul.f32 -1.442695, %v2548_v20 }
0x21f0   :  { %4012 = vpow2.f32 %v3398_v39 }
0x21f1   :  { %4014 = vpow2.f32 %v3404_v25 }
0x21f5   :  { %v4009_v57 = vpop.eup %4008 }
0x21f6   :  { %2463 = vrot.lane.b32.xlu1 %v4009_v57, %s4084_s13 }
0x21f9   :  { %v4011_v5 = vpop.eup %4010 }
0x21fa   :  { %2558 = vrot.lane.b32.xlu0 %v4011_v5, %s4084_s13  ;;  %v4013_v11 = vpop.eup %4012 }
0x21fb   :  { %v2457_v27 = vadd.f32 1.0, %v4013_v11  ;;  %v4015_v59 = vpop.eup %4014 }
0x21fc   :  { %v2552_v31 = vadd.f32 1.0, %v4015_v59 }
0x21fd   :  { %4016 = vrcp.f32 %v2457_v27 }
0x21fe   :  { %4018 = vrcp.f32 %v2552_v31 }
0x2207   :  { %v4017_v17 = vpop.eup %4016 }
0x2208   :  { %v4019_v49 = vpop.eup %4018  ;;  %v2461_v7 = vmul.f32 %v4017_v17, %v4875_v16 }
0x2209   :  { %v2556_v21 = vmul.f32 %v4019_v49, %v4878_v24 }
0x2268   :  { %v2464_v47 = vpop.permute.xlu1 %2463 }
0x2269   :  { %v2466_v15 = vmul.f32 %v4017_v17, %v2464_v47 }
0x226b   :  { %2468 = vrot.lane.b32.xlu1 %v2466_v15, %s4084_s13 }
0x226c   :  { %v2559_v3 = vpop.permute.xlu0 %2558 }
0x226d   :  { %v2561_v60 = vmul.f32 %v4019_v49, %v2559_v3 }
0x226f   :  { %2484 = vperm.xlu1 %3805, %v4402_v53   ;;  %2563 = vrot.lane.b32.xlu0 %v2561_v60, %s4084_s13 }
0x2273   :  { %2579 = vperm.xlu0 %3804, %v4396_v51  }
0x22dd   :  { %v2469_v28 = vpop.permute.xlu1 %2468 }
0x22de   :  { %v2471_v30 = vadd.f32 %v2469_v28, %v2461_v7 }
0x22e0   :  { %4020 = vtanh.f32 %v2471_v30 }
0x22e1   :  { %v2564_v54 = vpop.permute.xlu0 %2563 }
0x22e2   :  { %v2566_v20 = vadd.f32 %v2564_v54, %v2556_v21 }
0x22e4   :  { %4022 = vtanh.f32 %v2566_v20 }
0x22ea   :  { %v4021_v12 = vpop.eup %4020 }
0x22eb   :  { %2474 = vrot.lane.b32.xlu1 %v4021_v12, %s4084_s13 }
0x22ee   :  { %v4023_v22 = vpop.eup %4022  ;;  %v2485_v23 = vpop.permute.xlu1 %2484 }
0x22ef   :  { %vm2486_vm15 = vcmp.eq.s32.totalorder %v2485_v23, 1  ;;  %2569 = vrot.lane.b32.xlu0 %v4023_v22, %s4084_s13 }
0x22f0   :  { %v4941_v51 = vsel %vm2486_vm15, %v2471_v30, %v4875_v16  ;;  %vm2487_vm4 = vmpackc.low %vm2486_vm15, %vm2486_vm15 }
0x22f2   :  { %v2580_v53 = vpop.permute.xlu0 %2579 }
0x22f3   :  { %vm2581_vm3 = vcmp.eq.s32.totalorder %v2580_v53, 1 }
0x22f4   :  { %v4944_v57 = vsel %vm2581_vm3, %v2566_v20, %v4878_v24  ;;  %vm2582_vm5 = vmpackc.low %vm2581_vm3, %vm2581_vm3 }
0x235d   :  { %v2475_v5 = vpop.permute.xlu1 %2474 }
0x235e   :  { %v2477_v39 = vmul.f32 %v4017_v17, %v2475_v5 }
0x2360   :  { %v2478_v25 = vpack.c.bf16 %v2477_v39, %v2477_v39 }
0x2361   :  { %v2570_v11 = vpop.permute.xlu0 %2569 }
0x2362   :  { %v4946_v27 = vsel %vm2487_vm4, %v2478_v25, 0  ;;  %v2572_v59 = vmul.f32 %v4019_v49, %v2570_v11  ;;  %v4949_v31 = vsel %vm2487_vm4, %v2478_v25, %v4883_v35  ;;  %v4983_v49 = vld [vmem:[%s5358_s2 + $0x4] sm:$0xff]  }
0x2363   :  { %2598 = vrot.lane.b32.xlu1 %v4949_v31, %s4085_s20  ;;  %v2691_v28 = vunpack.c.h.bf16 %v4983_v49 }
0x2364   :  { %v2573_v16 = vpack.c.bf16 %v2572_v59, %v2572_v59 }
0x2366   :  { %v4953_v47 = vsel %vm2582_vm5, %v2573_v16, 0  ;;  %v4956_v24 = vsel %vm2582_vm5, %v2573_v16, %v4890_v61  ;;  %v4977_v61 = vld [vmem:[%s5357_s1 + $0x34] sm:$0xff]  }
0x2367   :  { %2693 = vrot.lane.b32.xlu0 %v4956_v24, %s4085_s20  ;;  %v2596_v15 = vunpack.c.l.bf16 %v4977_v61 }
0x23d5   :  { %v2599_v17 = vpop.permute.xlu1 %2598 }
0x23d6   :  { %3755 = vmatmul.mubr.msk.bf16.vlgmr.msra.gmra.mrb[52].mxu0 %vm67_vm1, %v2599_v17 }
0x23d7   :  { %3767 = vmatpush3.bf16.msra.mxu0 %v4898_v44  ;;  %3770 = vmatprep.mubr.msk.bf16.mxu0 %vm4083_vm2, %v4081_v0 }
0x23d8   :  { %3768 = vmatprep.subr.bf16.mxu0 %v4081_v0 }
0x23d9   :  { %v2694_v35 = vpop.permute.xlu0 %2693 }
0x23da   :  { %3763 = vmatmul.mubr.msk.bf16.vlgmr.msra.gmra.mrb[52].mxu1 %vm67_vm1, %v2694_v35 }
0x23db   :  { %3769 = vmatpush3.bf16.msra.mxu0 %v4908_v48  ;;  %3775 = vmatpush3.bf16.msra.mxu1 %v4914_v2 }
0x23dc   :  { %3776 = vmatprep.subr.bf16.mxu1 %v4081_v0  ;;  %3778 = vmatprep.mubr.msk.bf16.mxu1 %vm4083_vm2, %v4081_v0 }
0x23dd   :  { %3782 = vmatprep.subr.bf16.mxu0 %v4081_v0 }
0x23df   :  { %3777 = vmatpush3.bf16.msra.mxu1 %v4924_v52 }
0x23e0   :  { %3790 = vmatprep.subr.bf16.mxu1 %v4081_v0 }
0x24a9   :  { %v2637_v3 = vpop.f32.mrb[52].mxu0 }
0x24aa   :  { %v2643_v60 = vadd.f32 %v2637_v3, %v2596_v15  ;;  %v3756_v7 = vpop.f32.mrb[53].mxu0 }
0x24ab   :  { %v2640_v30 = vpop.f32.mrb[54].mxu0 }
0x24ac   :  { %4024 = vtanh.f32 %v2643_v60  ;;  %v3757_v21 = vpop.f32.mrb[55].mxu0  ;;  %v3410_v39 = vmul.f32 -1.442695, %v2643_v60 }
0x24ad   :  { %v2732_v54 = vpop.f32.mrb[52].mxu1 }
0x24ae   :  { %v2738_v20 = vadd.f32 %v2732_v54, %v2691_v28  ;;  %v3764_v12 = vpop.f32.mrb[53].mxu1 }
0x24af   :  { %v2735_v22 = vpop.f32.mrb[54].mxu1 }
0x24b0   :  { %4026 = vtanh.f32 %v2738_v20  ;;  %v3765_v23 = vpop.f32.mrb[55].mxu1  ;;  %v3416_v25 = vmul.f32 -1.442695, %v2738_v20 }
0x24b1   :  { %4028 = vpow2.f32 %v3410_v39 }
0x24b2   :  { %4030 = vpow2.f32 %v3416_v25 }
0x24b6   :  { %v4025_v53 = vpop.eup %4024 }
0x24b7   :  { %2653 = vrot.lane.b32.xlu1 %v4025_v53, %s4084_s13 }
0x24ba   :  { %v4027_v5 = vpop.eup %4026 }
0x24bb   :  { %2748 = vrot.lane.b32.xlu0 %v4027_v5, %s4084_s13  ;;  %v4029_v11 = vpop.eup %4028 }
0x24bc   :  { %v2647_v59 = vadd.f32 1.0, %v4029_v11  ;;  %v4031_v16 = vpop.eup %4030 }
0x24bd   :  { %v2742_v17 = vadd.f32 1.0, %v4031_v16 }
0x24be   :  { %4032 = vrcp.f32 %v2647_v59 }
0x24bf   :  { %4034 = vrcp.f32 %v2742_v17 }
0x24c8   :  { %v4033_v35 = vpop.eup %4032 }
0x24c9   :  { %v4035_v7 = vpop.eup %4034  ;;  %v2651_v60 = vmul.f32 %v4033_v35, %v4941_v51 }
0x24ca   :  { %v2746_v20 = vmul.f32 %v4035_v7, %v4944_v57 }
0x2529   :  { %v2654_v15 = vpop.permute.xlu1 %2653 }
0x252a   :  { %v2656_v3 = vmul.f32 %v4033_v35, %v2654_v15 }
0x252c   :  { %2658 = vrot.lane.b32.xlu1 %v2656_v3, %s4084_s13 }
0x252d   :  { %v2749_v28 = vpop.permute.xlu0 %2748 }
0x252e   :  { %v2751_v30 = vmul.f32 %v4035_v7, %v2749_v28 }
0x2530   :  { %2674 = vperm.xlu1 %3805, %v4338_v46   ;;  %2753 = vrot.lane.b32.xlu0 %v2751_v30, %s4084_s13 }
0x2534   :  { %2769 = vperm.xlu0 %3804, %v4332_v42  }
0x259e   :  { %v2659_v21 = vpop.permute.xlu1 %2658 }
0x259f   :  { %v2661_v54 = vadd.f32 %v2659_v21, %v2651_v60  ;;  %v2881_v60 = vunpack.c.l.bf16 %v4983_v49 }
0x25a1   :  { %4036 = vtanh.f32 %v2661_v54 }
0x25a2   :  { %v2754_v12 = vpop.permute.xlu0 %2753 }
0x25a3   :  { %v2756_v22 = vadd.f32 %v2754_v12, %v2746_v20 }
0x25a5   :  { %4038 = vtanh.f32 %v2756_v22 }
0x25ab   :  { %v4037_v23 = vpop.eup %4036 }
0x25ac   :  { %2664 = vrot.lane.b32.xlu1 %v4037_v23, %s4084_s13 }
0x25af   :  { %v4039_v53 = vpop.eup %4038  ;;  %v2675_v5 = vpop.permute.xlu1 %2674 }
0x25b0   :  { %vm2676_vm6 = vcmp.eq.s32.totalorder %v2675_v5, 1  ;;  %2759 = vrot.lane.b32.xlu0 %v4039_v53, %s4084_s13 }
0x25b1   :  { %v4997_v42 = vsel %vm2676_vm6, %v2661_v54, %v4941_v51  ;;  %vm2677_vm8 = vmpackc.low %vm2676_vm6, %vm2676_vm6 }
0x25b3   :  { %v2770_v46 = vpop.permute.xlu0 %2769 }
0x25b4   :  { %vm2771_vm7 = vcmp.eq.s32.totalorder %v2770_v46, 1 }
0x25b5   :  { %v5000_v39 = vsel %vm2771_vm7, %v2756_v22, %v4944_v57  ;;  %vm2772_vm9 = vmpackc.low %vm2771_vm7, %vm2771_vm7 }
0x261e   :  { %v2665_v25 = vpop.permute.xlu1 %2664 }
0x261f   :  { %v2667_v11 = vmul.f32 %v4033_v35, %v2665_v25 }
0x2621   :  { %v2668_v59 = vpack.c.bf16 %v2667_v11, %v2667_v11 }
0x2622   :  { %v2760_v16 = vpop.permute.xlu0 %2759 }
0x2623   :  { %v5002_v17 = vsel %vm2677_vm8, %v2668_v59, 0  ;;  %v2762_v15 = vmul.f32 %v4035_v7, %v2760_v16  ;;  %v5005_v3 = vsel %vm2677_vm8, %v2668_v59, %v4949_v31 }
0x2624   :  { %2788 = vrot.lane.b32.xlu1 %v5005_v3, %s4085_s20 }
0x2625   :  { %v2763_v51 = vpack.c.bf16 %v2762_v15, %v2762_v15 }
0x2627   :  { %v5009_v28 = vsel %vm2772_vm9, %v2763_v51, 0  ;;  %v5012_v57 = vsel %vm2772_vm9, %v2763_v51, %v4956_v24 }
0x2628   :  { %2883 = vrot.lane.b32.xlu0 %v5012_v57, %s4085_s20 }
0x2696   :  { %v2789_v35 = vpop.permute.xlu1 %2788 }
0x2697   :  { %3771 = vmatmul.mubr.msk.bf16.vlgmr.msra.gmra.mrb[56].mxu0 %vm67_vm1, %v2789_v35 }
0x2698   :  { %3783 = vmatpush3.bf16.msra.mxu0 %v4898_v44  ;;  %3786 = vmatprep.mubr.msk.bf16.mxu0 %vm4083_vm2, %v4081_v0  ;;  %v2786_v44 = vunpack.c.h.bf16 %v4977_v61 }
0x2699   :  { %3784 = vmatprep.subr.bf16.mxu0 %v4081_v0 }
0x269a   :  { %v2884_v31 = vpop.permute.xlu0 %2883 }
0x269b   :  { %3779 = vmatmul.mubr.msk.bf16.vlgmr.msra.gmra.mrb[56].mxu1 %vm67_vm1, %v2884_v31 }
0x269c   :  { %3785 = vmatpush3.bf16.msra.mxu0 %v4908_v48  ;;  %3791 = vmatpush3.bf16.msra.mxu1 %v4914_v2 }
0x269d   :  { %3792 = vmatprep.subr.bf16.mxu1 %v4081_v0  ;;  %3794 = vmatprep.mubr.msk.bf16.mxu1 %vm4083_vm2, %v4081_v0 }
0x26a0   :  { %3793 = vmatpush3.bf16.msra.mxu1 %v4924_v52 }
0x276a   :  { %v2827_v24 = vpop.f32.mrb[56].mxu0 }
0x276b   :  { %v2833_v7 = vadd.f32 %v2827_v24, %v2786_v44  ;;  %v3772_v30 = vpop.f32.mrb[57].mxu0 }
0x276c   :  { %v2830_v21 = vpop.f32.mrb[58].mxu0 }
0x276d   :  { %4040 = vtanh.f32 %v2833_v7  ;;  %v3773_v54 = vpop.f32.mrb[59].mxu0  ;;  %v3422_v52 = vmul.f32 -1.442695, %v2833_v7 }
0x276e   :  { %v2922_v48 = vpop.f32.mrb[56].mxu1 }
0x276f   :  { %v2928_v20 = vadd.f32 %v2922_v48, %v2881_v60  ;;  %v3780_v2 = vpop.f32.mrb[57].mxu1 }
0x2770   :  { %v2925_v12 = vpop.f32.mrb[58].mxu1 }
0x2771   :  { %4042 = vtanh.f32 %v2928_v20  ;;  %v3781_v22 = vpop.f32.mrb[59].mxu1  ;;  %v3428_v61 = vmul.f32 -1.442695, %v2928_v20 }
0x2772   :  { %4044 = vpow2.f32 %v3422_v52 }
0x2773   :  { %4046 = vpow2.f32 %v3428_v61 }
0x2777   :  { %v4041_v23 = vpop.eup %4040 }
0x2778   :  { %2843 = vrot.lane.b32.xlu1 %v4041_v23, %s4084_s13 }
0x277b   :  { %v4043_v0 = vpop.eup %4042 }
0x277c   :  { %2938 = vrot.lane.b32.xlu0 %v4043_v0, %s4084_s13  ;;  %v4045_v49 = vpop.eup %4044 }
0x277d   :  { %v2837_v53 = vadd.f32 1.0, %v4045_v49  ;;  %v4047_v5 = vpop.eup %4046 }
0x277e   :  { %v2932_v46 = vadd.f32 1.0, %v4047_v5 }
0x277f   :  { %4048 = vrcp.f32 %v2837_v53 }
0x2780   :  { %4050 = vrcp.f32 %v2932_v46  ;;  %v3069_v46 = vld [vmem:[%s5358_s2] sm:$0xf] }
0x2789   :  { %v4049_v25 = vpop.eup %4048 }
0x278a   :  { %v4051_v16 = vpop.eup %4050  ;;  %v2841_v35 = vmul.f32 %v4049_v25, %v4997_v42 }
0x278b   :  { %v2936_v24 = vmul.f32 %v4051_v16, %v5000_v39 }
0x27ea   :  { %v2844_v11 = vpop.permute.xlu1 %2843 }
0x27eb   :  { %v2846_v59 = vmul.f32 %v4049_v25, %v2844_v11 }
0x27ed   :  { %2848 = vrot.lane.b32.xlu1 %v2846_v59, %s4084_s13  ;;  %v3070_v59 = vunpack.c.l.bf16 %v3069_v46  ;;  %v3268_v46 = vcombine.low %v4297_v8, %v4297_v8  ;;  %v3280_v8 = vcombine.low %v4351_v6, %v4351_v6  ;;  %v3286_v6 = vcombine.low %v4358_v18, %v4358_v18 }
0x27ee   :  { %v2939_v15 = vpop.permute.xlu0 %2938  ;;  %v3298_v18 = vcombine.low %v4422_v29, %v4422_v29  ;;  %v3322_v29 = vcombine.low %v4540_v58, %v4540_v58  ;;  %v3346_v58 = vcombine.low %v4683_v56, %v4683_v56  ;;  %v3370_v56 = vcombine.low %v4785_v10, %v4785_v10 }
0x27ef   :  { %v2941_v51 = vmul.f32 %v4051_v16, %v2939_v15  ;;  %v3394_v10 = vcombine.low %v4887_v33, %v4887_v33  ;;  %v3418_v33 = vcombine.low %v5009_v28, %v5009_v28 }
0x27f1   :  { %2864 = vperm.xlu1 %3805, %v4284_v45   ;;  %2943 = vrot.lane.b32.xlu0 %v2941_v51, %s4084_s13 }
0x27f5   :  { %2959 = vperm.xlu0 %3804, %v4278_v43  }
0x285f   :  { %v2849_v31 = vpop.permute.xlu1 %2848 }
0x2860   :  { %v2851_v44 = vadd.f32 %v2849_v31, %v2841_v35 }
0x2862   :  { %4052 = vtanh.f32 %v2851_v44 }
0x2863   :  { %v2944_v7 = vpop.permute.xlu0 %2943 }
0x2864   :  { %v2946_v30 = vadd.f32 %v2944_v7, %v2936_v24 }
0x2866   :  { %4054 = vtanh.f32 %v2946_v30 }
0x286c   :  { %v4053_v60 = vpop.eup %4052 }
0x286d   :  { %2854 = vrot.lane.b32.xlu1 %v4053_v60, %s4084_s13 }
0x2870   :  { %v4055_v21 = vpop.eup %4054  ;;  %v2865_v54 = vpop.permute.xlu1 %2864 }
0x2871   :  { %vm2866_vm2 = vcmp.eq.s32.totalorder %v2865_v54, 1  ;;  %2949 = vrot.lane.b32.xlu0 %v4055_v21, %s4084_s13 }
0x2872   :  { %v5041_v43 = vsel %vm2866_vm2, %v2851_v44, %v4997_v42  ;;  %vm2867_vm11 = vmpackc.low %vm2866_vm2, %vm2866_vm2 }
0x2874   :  { %v2960_v45 = vpop.permute.xlu0 %2959 }
0x2875   :  { %vm2961_vm10 = vcmp.eq.s32.totalorder %v2960_v45, 1 }
0x2876   :  { %v5044_v48 = vsel %vm2961_vm10, %v2946_v30, %v5000_v39  ;;  %vm2962_vm12 = vmpackc.low %vm2961_vm10, %vm2961_vm10 }
0x28df   :  { %v2855_v20 = vpop.permute.xlu1 %2854 }
0x28e0   :  { %v2857_v2 = vmul.f32 %v4049_v25, %v2855_v20 }
0x28e2   :  { %v2858_v12 = vpack.c.bf16 %v2857_v2, %v2857_v2 }
0x28e3   :  { %v2950_v22 = vpop.permute.xlu0 %2949 }
0x28e4   :  { %v5046_v23 = vsel %vm2867_vm11, %v2858_v12, 0  ;;  %v2952_v0 = vmul.f32 %v4051_v16, %v2950_v22  ;;  %v5049_v52 = vsel %vm2867_vm11, %v2858_v12, %v5005_v3  ;;  %v3432_v3 = vld [vmem:[%s5357_s1 + $0x3c] sm:$0xf] }
0x28e5   :  { %2978 = vrot.lane.b32.xlu1 %v5049_v52, %s4085_s20  ;;  %v2976_v5 = vunpack.c.l.bf16 %v3432_v3  ;;  %v3253_v3 = vcombine.low %v4235_v62, %v4235_v62 }
0x28e6   :  { %v2953_v42 = vpack.c.bf16 %v2952_v0, %v2952_v0 }
0x28e8   :  { %v5053_v61 = vsel %vm2962_vm12, %v2953_v42, 0  ;;  %v5056_v39 = vsel %vm2962_vm12, %v2953_v42, %v5012_v57 }
0x28e9   :  { %3072 = vrot.lane.b32.xlu0 %v5056_v39, %s4085_s20 }
0x2957   :  { %v2979_v49 = vpop.permute.xlu1 %2978 }
0x2958   :  { %3787 = vmatmul.mubr.msk.bf16.vlgmr.msra.gmra.mrb[60].mxu0 %vm67_vm1, %v2979_v49 }
0x295b   :  { %v3073_v53 = vpop.permute.xlu0 %3072 }
0x295c   :  { %3795 = vmatmul.mubr.msk.bf16.vlgmr.msra.gmra.mrb[60].mxu1 %vm67_vm1, %v3073_v53 }
0x2a2b   :  { %v3017_v57 = vpop.f32.mrb[60].mxu0 }
0x2a2c   :  { %v3023_v25 = vadd.f32 %v3017_v57, %v2976_v5  ;;  %v3788_v11 = vpop.f32.mrb[61].mxu0  ;;  %v3261_v5 = vcombine.low %v4241_v9, %v4241_v9 }
0x2a2d   :  { %v3020_v16 = vpop.f32.mrb[62].mxu0 }
0x2a2e   :  { %4056 = vtanh.f32 %v3023_v25  ;;  %v3789_v15 = vpop.f32.mrb[63].mxu0  ;;  %v3434_v60 = vmul.f32 -1.442695, %v3023_v25 }
0x2a2f   :  { %v3111_v51 = vpop.f32.mrb[60].mxu1  ;;  %v3274_v15 = vcombine.low %v4304_v14, %v4304_v14 }
0x2a30   :  { %v3117_v35 = vadd.f32 %v3111_v51, %v3070_v59  ;;  %v3796_v31 = vpop.f32.mrb[61].mxu1  ;;  %v3292_v51 = vcombine.low %v4415_v26, %v4415_v26  ;;  %v3304_v26 = vcombine.low %v4469_v36, %v4469_v36  ;;  %v3316_v36 = vcombine.low %v4533_v50, %v4533_v50 }
0x2a31   :  { %v3114_v44 = vpop.f32.mrb[62].mxu1  ;;  %v3340_v50 = vcombine.low %v4676_v4, %v4676_v4  ;;  %v3364_v4 = vcombine.low %v4778_v13, %v4778_v13  ;;  %v3388_v13 = vcombine.low %v4880_v34, %v4880_v34  ;;  %v3412_v34 = vcombine.low %v5002_v17, %v5002_v17 }
0x2a32   :  { %4058 = vtanh.f32 %v3117_v35  ;;  %v3797_v24 = vpop.f32.mrb[63].mxu1  ;;  %v3439_v21 = vmul.f32 -1.442695, %v3117_v35  ;;  %v3430_v17 = vcombine.low %v5053_v61, %v5053_v61 }
0x2a33   :  { %4060 = vpow2.f32 %v3434_v60 }
0x2a34   :  { %4062 = vpow2.f32 %v3439_v21 }
0x2a38   :  { %v4057_v7 = vpop.eup %4056 }
0x2a39   :  { %3033 = vrot.lane.b32.xlu1 %v4057_v7, %s4084_s13  ;;  %v3328_v7 = vcombine.low %v4612_v19, %v4612_v19  ;;  %v3352_v19 = vcombine.low %v4722_v37, %v4722_v37  ;;  %v3376_v37 = vcombine.low %v4824_v1, %v4824_v1  ;;  %v3400_v1 = vcombine.low %v4946_v27, %v4946_v27 }
0x2a3a   :  { %v3424_v27 = vcombine.low %v5046_v23, %v5046_v23 }
0x2a3c   :  { %v4059_v30 = vpop.eup %4058 }
0x2a3d   :  { %3127 = vrot.lane.b32.xlu0 %v4059_v30, %s4084_s13  ;;  %v4061_v54 = vpop.eup %4060 }
0x2a3e   :  { %v3027_v45 = vadd.f32 1.0, %v4061_v54  ;;  %v4063_v20 = vpop.eup %4062 }
0x2a3f   :  { %v3121_v2 = vadd.f32 1.0, %v4063_v20 }
0x2a40   :  { %4064 = vrcp.f32 %v3027_v45 }
0x2a41   :  { %4066 = vrcp.f32 %v3121_v2 }
0x2a4a   :  { %v5070_v12 = vpop.eup %4064 }
0x2a4b   :  { %v5074_v42 = vpop.eup %4066 }
0x2aab   :  { %v3034_v22 = vpop.permute.xlu1 %3033 }
0x2aac   :  { %v3036_v0 = vmul.f32 %v5070_v12, %v3034_v22 }
0x2aae   :  { %3038 = vrot.lane.b32.xlu1 %v3036_v0, %s4084_s13 }
0x2aaf   :  { %v3128_v49 = vpop.permute.xlu0 %3127 }
0x2ab0   :  { %v3130_v53 = vmul.f32 %v5074_v42, %v3128_v49 }
0x2ab2   :  { %3054 = vperm.xlu1 %3805, %v4220_v40   ;;  %3132 = vrot.lane.b32.xlu0 %v3130_v53, %s4084_s13  ;;  %v3031_v40 = vmul.f32 %v5070_v12, %v5041_v43 }
0x2ab6   :  { %187 = vrot.lane.b32.xlu1 %v3253_v3, %s4085_s20  ;;  %3147 = vperm.xlu0 %3804, %v4214_v38   ;;  %v3125_v38 = vmul.f32 %v5074_v42, %v5044_v48 }
0x2aba   :  { %402 = vrot.lane.b32.xlu1 %v3268_v46, %s4085_s20  ;;  %301 = vrot.lane.b32.xlu0 %v3261_v5, %s4085_s20 }
0x2b20   :  { %v3039_v57 = vpop.permute.xlu1 %3038 }
0x2b21   :  { %v5091_v25 = vadd.f32 %v3039_v57, %v3031_v40 }
0x2b23   :  { %4068 = vtanh.f32 %v5091_v25 }
0x2b24   :  { %v3133_v62 = vpop.permute.xlu0 %3132 }
0x2b25   :  { %v3135_v9 = vadd.f32 %v3133_v62, %v3125_v38 }
0x2b27   :  { %4070 = vtanh.f32 %v3135_v9 }
0x2b2d   :  { %v4069_v11 = vpop.eup %4068 }
0x2b2e   :  { %3044 = vrot.lane.b32.xlu1 %v4069_v11, %s4084_s13 }
0x2b31   :  { %v4071_v59 = vpop.eup %4070  ;;  %v5099_v16 = vpop.permute.xlu1 %3054 }
0x2b32   :  { %592 = vrot.lane.b32.xlu1 %v3280_v8, %s4085_s20  ;;  %3138 = vrot.lane.b32.xlu0 %v4071_v59, %s4084_s13  ;;  %vm3056_vm14 = vcmp.eq.s32.totalorder %v5099_v16, 1 }
0x2b33   :  { %vm3057_vm15 = vmpackc.low %vm3056_vm14, %vm3056_vm14 }
0x2b35   :  { %v188_v35 = vpop.permute.xlu1 %187  ;;  %v5107_v31 = vpop.permute.xlu0 %3147 }
0x2b36   :  { %191 = vst.msk [vmem:[%s5360_s5] sm:$0xf] %vm65_vm0, %v188_v35  ;;  %vm3149_vm13 = vcmp.eq.s32.totalorder %v5107_v31, 1  ;;  %782 = vrot.lane.b32.xlu1 %v3292_v51, %s4085_s20  ;;  %497 = vrot.lane.b32.xlu0 %v3274_v15, %s4085_s20 }
0x2b37   :  { %v5119_v14 = vsel %vm3149_vm13, %v3135_v9, %v5044_v48  ;;  %v3310_v48 = vcombine.low %v4476_v41, %v4476_v41  ;;  %v3334_v41 = vcombine.low %v4619_v32, %v4619_v32  ;;  %v3358_v32 = vcombine.low %v4729_v63, %v4729_v63  ;;  %vm3150_vm3 = vmpackc.low %vm3149_vm13, %vm3149_vm13 }
0x2b38   :  { %v3382_v63 = vcombine.low %v4831_v55, %v4831_v55  ;;  %v3406_v55 = vcombine.low %v4953_v47, %v4953_v47  ;;  %v3068_v47 = vsel %vm3056_vm14, %v5091_v25, %v5041_v43 }
0x2b39   :  { %v403_v44 = vpop.permute.xlu1 %402  ;;  %v302_v24 = vpop.permute.xlu0 %301 }
0x2b3a   :  { %3269 = vst.msk [vmem:[%s5360_s5 + $0x4] sm:$0xf] %vm65_vm0, %v403_v44  ;;  %3262 = vst.msk [vmem:[%s5361_s6 + $0x3c] sm:$0xf] %vm65_vm0, %v302_v24  ;;  %972 = vrot.lane.b32.xlu1 %v3304_v26, %s4085_s20  ;;  %687 = vrot.lane.b32.xlu0 %v3286_v6, %s4085_s20 }
0x2b3e   :  { %1162 = vrot.lane.b32.xlu1 %v3316_v36, %s4085_s20  ;;  %877 = vrot.lane.b32.xlu0 %v3298_v18, %s4085_s20 }
0x2b42   :  { %1352 = vrot.lane.b32.xlu1 %v3328_v7, %s4085_s20  ;;  %1067 = vrot.lane.b32.xlu0 %v3310_v48, %s4085_s20 }
0x2b46   :  { %1542 = vrot.lane.b32.xlu1 %v3340_v50, %s4085_s20  ;;  %1257 = vrot.lane.b32.xlu0 %v3322_v29, %s4085_s20 }
0x2b4a   :  { %1732 = vrot.lane.b32.xlu1 %v3352_v19, %s4085_s20  ;;  %1447 = vrot.lane.b32.xlu0 %v3334_v41, %s4085_s20 }
0x2b4e   :  { %1922 = vrot.lane.b32.xlu1 %v3364_v4, %s4085_s20  ;;  %1637 = vrot.lane.b32.xlu0 %v3346_v58, %s4085_s20 }
0x2b52   :  { %2112 = vrot.lane.b32.xlu1 %v3376_v37, %s4085_s20  ;;  %1827 = vrot.lane.b32.xlu0 %v3358_v32, %s4085_s20 }
0x2b56   :  { %2302 = vrot.lane.b32.xlu1 %v3388_v13, %s4085_s20  ;;  %2017 = vrot.lane.b32.xlu0 %v3370_v56, %s4085_s20 }
0x2b5a   :  { %2492 = vrot.lane.b32.xlu1 %v3400_v1, %s4085_s20  ;;  %2207 = vrot.lane.b32.xlu0 %v3382_v63, %s4085_s20 }
0x2b5e   :  { %2682 = vrot.lane.b32.xlu1 %v3412_v34, %s4085_s20  ;;  %2397 = vrot.lane.b32.xlu0 %v3394_v10, %s4085_s20 }
0x2b62   :  { %2872 = vrot.lane.b32.xlu1 %v3424_v27, %s4085_s20  ;;  %2587 = vrot.lane.b32.xlu0 %v3406_v55, %s4085_s20 }
0x2b66   :  { %2777 = vrot.lane.b32.xlu0 %v3418_v33, %s4085_s20 }
0x2b6a   :  { %2967 = vrot.lane.b32.xlu0 %v3430_v17, %s4085_s20 }
0x2b6e   :  { %3169 = vrot.lane.b32.xlu0 %v3068_v47, %s4086_s30 }
0x2ba0   :  { %v3045_v23 = vpop.permute.xlu1 %3044 }
0x2ba1   :  { %v3047_v30 = vmul.f32 %v5070_v12, %v3045_v23 }
0x2ba3   :  { %v3048_v60 = vpack.c.bf16 %v3047_v30, %v3047_v30 }
0x2ba4   :  { %v593_v28 = vpop.permute.xlu1 %592  ;;  %v3139_v21 = vpop.permute.xlu0 %3138 }
0x2ba5   :  { %v3058_v54 = vsel %vm3057_vm15, %v3048_v60, 0  ;;  %3281 = vst.msk [vmem:[%s5360_s5 + $0x8] sm:$0xf] %vm65_vm0, %v593_v28  ;;  %v3141_v61 = vmul.f32 %v5074_v42, %v3139_v21  ;;  %v3067_v43 = vsel %vm3057_vm15, %v3048_v60, %v5049_v52 }
0x2ba6   :  { %v3436_v45 = vcombine.low %v3058_v54, %v3058_v54  ;;  %v3442_v52 = vcombine.low %v3067_v43, %v3067_v43  ;;  %v3188_v46 = vunpack.c.l.bf16 %v3067_v43 }
0x2ba7   :  { %v3142_v20 = vpack.c.bf16 %v3141_v61, %v3141_v61 }
0x2ba8   :  { %3062 = vrot.lane.b32.xlu1 %v3436_v45, %s4085_s20  ;;  %v783_v2 = vpop.permute.xlu1 %782  ;;  %v498_v12 = vpop.permute.xlu0 %497 }
0x2ba9   :  { %v3151_v22 = vsel %vm3150_vm3, %v3142_v20, 0  ;;  %3293 = vst.msk [vmem:[%s5360_s5 + $0xc] sm:$0xf] %vm65_vm0, %v783_v2  ;;  %3275 = vst.msk [vmem:[%s5361_s6 + $0x38] sm:$0xf] %vm65_vm0, %v498_v12  ;;  %v3159_v42 = vsel %vm3150_vm3, %v3142_v20, %v5056_v39 }
0x2baa   :  { %v3441_v0 = vcombine.low %v3151_v22, %v3151_v22  ;;  %v3443_v3 = vcombine.low %v3159_v42, %v3159_v42  ;;  %v3195_v5 = vunpack.c.l.bf16 %v3159_v42 }
0x2bac   :  { %3164 = vrot.lane.b32.xlu1 %v3442_v52, %s4085_s20  ;;  %v973_v49 = vpop.permute.xlu1 %972  ;;  %3155 = vrot.lane.b32.xlu0 %v3441_v0, %s4085_s20  ;;  %v688_v53 = vpop.permute.xlu0 %687  ;;  %v3806_v57 = vpack.i.bf16 %v3195_v5, %v3188_v46 }
0x2bad   :  { %3305 = vst.msk [vmem:[%s5360_s5 + $0x10] sm:$0xf] %vm65_vm0, %v973_v49  ;;  %3287 = vst.msk [vmem:[%s5361_s6 + $0x34] sm:$0xf] %vm65_vm0, %v688_v53 }
0x2bb0   :  { %v1163_v39 = vpop.permute.xlu1 %1162  ;;  %3176 = vrot.lane.b32.xlu1 %v3443_v3, %s4085_s20  ;;  %3181 = vrot.lane.b32.xlu0 %v5119_v14, %s4086_s30  ;;  %v878_v40 = vpop.permute.xlu0 %877 }
0x2bb1   :  { %3317 = vst.msk [vmem:[%s5360_s5 + $0x14] sm:$0xf] %vm65_vm0, %v1163_v39  ;;  %3299 = vst.msk [vmem:[%s5361_s6 + $0x30] sm:$0xf] %vm65_vm0, %v878_v40 }
0x2bb4   :  { %v1353_v25 = vpop.permute.xlu1 %1352  ;;  %3807 = vrot.lane.b32.xlu1 %v3806_v57, %s4085_s20  ;;  %v1068_v38 = vpop.permute.xlu0 %1067 }
0x2bb5   :  { %3329 = vst.msk [vmem:[%s5360_s5 + $0x18] sm:$0xf] %vm65_vm0, %v1353_v25  ;;  %3311 = vst.msk [vmem:[%s5361_s6 + $0x2c] sm:$0xf] %vm65_vm0, %v1068_v38 }
0x2bb8   :  { %v1543_v62 = vpop.permute.xlu1 %1542  ;;  %v1258_v9 = vpop.permute.xlu0 %1257 }
0x2bb9   :  { %3341 = vst.msk [vmem:[%s5360_s5 + $0x1c] sm:$0xf] %vm65_vm0, %v1543_v62  ;;  %3323 = vst.msk [vmem:[%s5361_s6 + $0x28] sm:$0xf] %vm65_vm0, %v1258_v9 }
0x2bbc   :  { %v1733_v11 = vpop.permute.xlu1 %1732  ;;  %v1448_v8 = vpop.permute.xlu0 %1447 }
0x2bbd   :  { %3353 = vst.msk [vmem:[%s5360_s5 + $0x20] sm:$0xf] %vm65_vm0, %v1733_v11  ;;  %3335 = vst.msk [vmem:[%s5361_s6 + $0x24] sm:$0xf] %vm65_vm0, %v1448_v8 }
0x2bc0   :  { %v1923_v59 = vpop.permute.xlu1 %1922  ;;  %v1638_v16 = vpop.permute.xlu0 %1637 }
0x2bc1   :  { %3365 = vst.msk [vmem:[%s5360_s5 + $0x24] sm:$0xf] %vm65_vm0, %v1923_v59  ;;  %3347 = vst.msk [vmem:[%s5361_s6 + $0x20] sm:$0xf] %vm65_vm0, %v1638_v16 }
0x2bc4   :  { %v2113_v15 = vpop.permute.xlu1 %2112  ;;  %v1828_v51 = vpop.permute.xlu0 %1827 }
0x2bc5   :  { %3377 = vst.msk [vmem:[%s5360_s5 + $0x28] sm:$0xf] %vm65_vm0, %v2113_v15  ;;  %3359 = vst.msk [vmem:[%s5361_s6 + $0x1c] sm:$0xf] %vm65_vm0, %v1828_v51 }
0x2bc8   :  { %v2303_v35 = vpop.permute.xlu1 %2302  ;;  %v2018_v31 = vpop.permute.xlu0 %2017 }
0x2bc9   :  { %3389 = vst.msk [vmem:[%s5360_s5 + $0x2c] sm:$0xf] %vm65_vm0, %v2303_v35  ;;  %3371 = vst.msk [vmem:[%s5361_s6 + $0x18] sm:$0xf] %vm65_vm0, %v2018_v31 }
0x2bcc   :  { %v2493_v14 = vpop.permute.xlu1 %2492  ;;  %v2208_v6 = vpop.permute.xlu0 %2207 }
0x2bcd   :  { %3401 = vst.msk [vmem:[%s5360_s5 + $0x30] sm:$0xf] %vm65_vm0, %v2493_v14  ;;  %3383 = vst.msk [vmem:[%s5361_s6 + $0x14] sm:$0xf] %vm65_vm0, %v2208_v6 }
0x2bd0   :  { %v2683_v26 = vpop.permute.xlu1 %2682  ;;  %v2398_v44 = vpop.permute.xlu0 %2397 }
0x2bd1   :  { %3413 = vst.msk [vmem:[%s5360_s5 + $0x34] sm:$0xf] %vm65_vm0, %v2683_v26  ;;  %3395 = vst.msk [vmem:[%s5361_s6 + $0x10] sm:$0xf] %vm65_vm0, %v2398_v44 }
0x2bd4   :  { %v2873_v24 = vpop.permute.xlu1 %2872  ;;  %v2588_v18 = vpop.permute.xlu0 %2587 }
0x2bd5   :  { %3425 = vst.msk [vmem:[%s5360_s5 + $0x38] sm:$0xf] %vm65_vm0, %v2873_v24  ;;  %3407 = vst.msk [vmem:[%s5361_s6 + $0xc] sm:$0xf] %vm65_vm0, %v2588_v18 }
0x2bd8   :  { %v2778_v36 = vpop.permute.xlu0 %2777 }
0x2bd9   :  { %3419 = vst.msk [vmem:[%s5361_s6 + $0x8] sm:$0xf] %vm65_vm0, %v2778_v36 }
0x2bdc   :  { %v2968_v48 = vpop.permute.xlu0 %2967 }
0x2bdd   :  { %3431 = vst.msk [vmem:[%s5361_s6 + $0x4] sm:$0xf] %vm65_vm0, %v2968_v48 }
0x2be0   :  { %v3170_v7 = vpop.permute.xlu0 %3169 }
0x2be1   :  { %3172 = vst.msk [vmem:[#allocation3] sm:$0xff] %vm67_vm1, %v3170_v7  ;;  %3194 = vst.msk [vmem:[%s5362_s8] sm:$0xff] %vm67_vm1, %v3170_v7 }
0x2c1a   :  { %v3063_v29 = vpop.permute.xlu1 %3062 }
0x2c1b   :  { %3437 = vst.msk [vmem:[%s5360_s5 + $0x3c] sm:$0xf] %vm65_vm0, %v3063_v29 }
0x2c1e   :  { %v3165_v50 = vpop.permute.xlu1 %3164  ;;  %v3156_v41 = vpop.permute.xlu0 %3155 }
0x2c1f   :  { %3167 = vst.msk [vmem:[#allocation2] sm:$0xf] %vm65_vm0, %v3165_v50  ;;  %3158 = vst.msk [vmem:[%s5361_s6] sm:$0xf] %vm65_vm0, %v3156_v41 }
0x2c22   :  { %v3177_v19 = vpop.permute.xlu1 %3176  ;;  %v3182_v58 = vpop.permute.xlu0 %3181 }
0x2c23   :  { %3179 = vst.msk [vmem:[#allocation4] sm:$0xf] %vm65_vm0, %v3177_v19 }
0x2c24   :  { %3184 = vst.msk [vmem:[#allocation5] sm:$0xff] %vm67_vm1, %v3182_v58  ;;  %3445 = vst.msk [vmem:[%s5362_s8 + $0x8] sm:$0xff] %vm67_vm1, %v3182_v58 }
0x2c26   :  { %v3808_v4 = vpop.permute.xlu1 %3807 }
0x2c27   :  { %v3810_v32 = vunpack.i.h.bf16 %v3808_v4  ;;  %v3809_v37 = vunpack.i.l.bf16 %v3808_v4 }
0x2c29   :  { %3444 = vst.msk [vmem:[%s5363_s7 + $0x8] sm:$0xff] %vm67_vm1, %v3810_v32  ;;  %3193 = vst.msk [vmem:[%s5363_s7] sm:$0xff] %vm67_vm1, %v3809_v37 }

</bundles_post_ra>
